<compile_context>
chip_gen: v7x
topology: tpu7x:2x2x1
jax: 0.10.0
libtpu: 0.0.40
codegen_flags: <defaults>
</compile_context>

<pallas_src>
import jax
import jax.numpy as jnp
from jax.experimental import pallas as pl
from jax.experimental.pallas import tpu as pltpu

EPS = 1e-5


# ----------------------------- in-kernel helpers -----------------------------

def _idiv_const(x, d):
    """Divide a non-negative int32 array by a positive Python constant."""
    if d & (d - 1) == 0:                        # power of two -> plain shift
        return jnp.right_shift(x, d.bit_length() - 1)
    return x // d                                # general fallback


def _depthwise3x3(xp, dw, N, H, W, C):
    """3x3 depthwise conv, padding already applied. xp: (N,H+2,W+2,C), dw: (9,C)."""
    acc = jnp.zeros((N, H, W, C), jnp.float32)
    for dy in range(3):
        for dx in range(3):
            t = dy * 3 + dx
            tap = dw[t:t + 1, :]                 # (1, C) broadcasts on the lane dim
            acc = acc + xp[:, dy:dy + H, dx:dx + W, :] * tap
    return acc


def _pointwise_bn(y4, w, gamma, beta, relu):
    """1x1 conv (MXU matmul) + single-pass training-mode BatchNorm (fused scale/shift).

    y4: (N, H, W, Cin) -> returns (N*H*W, Cout), rows in row-major (n, h, w) order.
    """
    N, H, W, Cin = y4.shape
    M = N * H * W
    u = jnp.dot(y4.reshape(M, Cin), w, preferred_element_type=jnp.float32)  # (M, Cout)
    inv_m = 1.0 / M
    mean = jnp.sum(u, axis=0, keepdims=True) * inv_m                        # (1, Cout)
    var = jnp.sum(u * u, axis=0, keepdims=True) * inv_m - mean * mean       # biased var
    scale = gamma * jax.lax.rsqrt(var + EPS)
    shift = beta - mean * scale
    o = u * scale + shift
    return jnp.maximum(o, 0.0) if relu else o


# --------------------------------- kernel ------------------------------------

def fused_block_kernel(x_ref,
                       dw1_ref, pw1_ref, g1_ref, b1_ref,
                       dw2_ref, pw2_ref, g2_ref, b2_ref,
                       wc_ref, bc_ref,
                       out_ref, pad_ref):
    N, H, W, C = x_ref.shape
    Ho, Wo = (H + 1) // 2, (W + 1) // 2
    M, Mo = N * H * W, N * Ho * Wo
    f32 = jnp.float32

    # -- zero only the 1-wide border of the padded VMEM scratch (done once; the
    #    interior is overwritten below and the border is shared by both convs).
    pad_ref[:, 0:1, :, :] = jnp.zeros((N, 1, W + 2, C), f32)
    pad_ref[:, H + 1:H + 2, :, :] = jnp.zeros((N, 1, W + 2, C), f32)
    pad_ref[:, :, 0:1, :] = jnp.zeros((N, H + 2, 1, C), f32)
    pad_ref[:, :, W + 1:W + 2, :] = jnp.zeros((N, H + 2, 1, C), f32)

    x = x_ref[...]                               # single HBM->VMEM DMA of the activation

    # ---- first SeperableConvBlock (use_relu=True)
    pad_ref[:, 1:H + 1, 1:W + 1, :] = x
    d1 = _depthwise3x3(pad_ref[...], dw1_ref[...], N, H, W, C)
    y1 = _pointwise_bn(d1, pw1_ref[...], g1_ref[...], b1_ref[...], relu=True)   # (M, C)

    # ---- second SeperableConvBlock (use_relu=False), reusing the padded scratch
    pad_ref[:, 1:H + 1, 1:W + 1, :] = y1.reshape(N, H, W, C)
    d2 = _depthwise3x3(pad_ref[...], dw2_ref[...], N, H, W, C)
    y2 = _pointwise_bn(d2, pw2_ref[...], g2_ref[...], b2_ref[...], relu=False)  # (M, C)

    # ---- residual add + ReLU (flattened (M, C) layout)
    z = jnp.maximum(x.reshape(M, C) + y2, 0.0)

    # ---- stride-2 1x1 conv + bias + ReLU, fully in-VMEM.
    # Subsample the even (h, w) positions of z with a 0/1 row-selection matmul on the
    # MXU, then apply the 1x1 conv weights.  Only the (Mo, Cout) result hits HBM.
    row = jax.lax.broadcasted_iota(jnp.int32, (Mo, 1), 0)
    n_i = _idiv_const(row, Ho * Wo)
    rem = row - n_i * (Ho * Wo)
    ho = _idiv_const(rem, Wo)
    wo = rem - ho * Wo
    target = (n_i * H + 2 * ho) * W + 2 * wo                          # (Mo, 1) source row
    col = jax.lax.broadcasted_iota(jnp.int32, (Mo, M), 1)
    sel = (col == target).astype(f32)                                 # (Mo, M) 0/1 matrix
    zs = jnp.dot(sel, z, preferred_element_type=jnp.float32)          # (Mo, C) = z at even (h, w)
    o = jnp.dot(zs, wc_ref[...], preferred_element_type=jnp.float32) + bc_ref[...]
    out_ref[...] = jnp.maximum(o, 0.0)                                # (Mo, Cout)


# --------------------------------- wrapper -----------------------------------

@jax.jit
def seperable_residual_conv_block(x_nchw, params):
    # NCHW -> NHWC at the boundary (tiny, channels-last inside the kernel).
    x = jnp.transpose(x_nchw, (0, 2, 3, 1)).astype(jnp.float32)
    N, H, W, C = x.shape
    Ho, Wo = (H + 1) // 2, (W + 1) // 2
    Cout = params["wc"].shape[1]

    vmem = pl.BlockSpec(memory_space=pltpu.MemorySpace.VMEM)

    out_flat = pl.pallas_call(
        fused_block_kernel,
        out_shape=jax.ShapeDtypeStruct((N * Ho * Wo, Cout), jnp.float32),
        in_specs=[vmem] * 11,
        out_specs=vmem,
        scratch_shapes=[pltpu.VMEM((N, H + 2, W + 2, C), jnp.float32)],
        compiler_params=pltpu.CompilerParams(vmem_limit_bytes=32 * 1024 * 1024),
    )(x,
      params["dw1"], params["pw1"], params["g1"], params["b1"],
      params["dw2"], params["pw2"], params["g2"], params["b2"],
      params["wc"], params["bc"])

    out = out_flat.reshape(N, Ho, Wo, Cout)                            # free (major split)
    return jnp.transpose(out, (0, 3, 1, 2))                            # NHWC -> NCHW


# ------------------------- pure-JAX reference (check) -------------------------

def ref_forward(x_nchw, p):
    x = x_nchw.astype(jnp.float32)
    C = x.shape[1]

    def depthwise(t, dw):
        w = dw.T.reshape(C, 1, 3, 3)                               # (C,1,3,3) OIHW, groups=C
        return jax.lax.conv_general_dilated(
            t, w, (1, 1), ((1, 1), (1, 1)),
            dimension_numbers=("NCHW", "OIHW", "NCHW"), feature_group_count=C)

    def pointwise(t, pw):
        w = pw.T[:, :, None, None]                                 # (Cout,Cin,1,1)
        return jax.lax.conv_general_dilated(
            t, w, (1, 1), ((0, 0), (0, 0)),
            dimension_numbers=("NCHW", "OIHW", "NCHW"))

    def bn(t, g, b):
        mean = t.mean(axis=(0, 2, 3), keepdims=True)
        var = ((t - mean) ** 2).mean(axis=(0, 2, 3), keepdims=True)
        return (t - mean) * jax.lax.rsqrt(var + EPS) * g.reshape(1, -1, 1, 1) + b.reshape(1, -1, 1, 1)

    y = jnp.maximum(bn(pointwise(depthwise(x, p["dw1"]), p["pw1"]), p["g1"], p["b1"]), 0.0)
    y = bn(pointwise(depthwise(y, p["dw2"]), p["pw2"]), p["g2"], p["b2"])
    z = jnp.maximum(x + y, 0.0)
    wc = p["wc"].T[:, :, None, None]
    o = jax.lax.conv_general_dilated(
        z, wc, (2, 2), ((0, 0), (0, 0)),
        dimension_numbers=("NCHW", "OIHW", "NCHW")) + p["bc"].reshape(1, -1, 1, 1)
    return jnp.maximum(o, 0.0)


# ----------------------------------- main -------------------------------------

def make_params(key, c_in, c_out):
    ks = jax.random.split(key, 10)
    f32 = jnp.float32
    return {
        "dw1": 0.3 * jax.random.normal(ks[0], (9, c_in), f32),
        "pw1": 0.3 * jax.random.normal(ks[1], (c_in, c_in), f32),
        "g1": 1.0 + 0.1 * jax.random.normal(ks[2], (1, c_in), f32),
        "b1": 0.1 * jax.random.normal(ks[3], (1, c_in), f32),
        "dw2": 0.3 * jax.random.normal(ks[4], (9, c_in), f32),
        "pw2": 0.3 * jax.random.normal(ks[5], (c_in, c_in), f32),
        "g2": 1.0 + 0.1 * jax.random.normal(ks[6], (1, c_in), f32),
        "b2": 0.1 * jax.random.normal(ks[7], (1, c_in), f32),
        "wc": 0.3 * jax.random.normal(ks[8], (c_in, c_out), f32),
        "bc": 0.1 * jax.random.normal(ks[9], (1, c_out), f32),
    }


if __name__ == "__main__":
    key = jax.random.PRNGKey(0)
    k_x, k_p = jax.random.split(key)

    in_channels, out_channels = 4, 8
    x = jax.random.normal(k_x, (2, in_channels, 16, 16), jnp.float32)   # NCHW like PyTorch
    params = make_params(k_p, in_channels, out_channels)

    out = seperable_residual_conv_block(x, params)
    out = jax.block_until_ready(out)

    ref = ref_forward(x, params)
    assert out.shape == ref.shape == (2, out_channels, 8, 8), (out.shape, ref.shape)
    assert jnp.allclose(out, ref, rtol=1e-4, atol=1e-4), float(jnp.max(jnp.abs(out - ref)))

    print("KERNEL_OK")
</pallas_src>

<mosaic_0001>
module attributes {stable_mosaic.version = 11 : i64} {
  func.func @fused_block_kernel(%arg0: memref<2x16x16x4xf32, #tpu.memory_space<vmem>>, %arg1: memref<9x4xf32, #tpu.memory_space<vmem>>, %arg2: memref<4x4xf32, #tpu.memory_space<vmem>>, %arg3: memref<1x4xf32, #tpu.memory_space<vmem>>, %arg4: memref<1x4xf32, #tpu.memory_space<vmem>>, %arg5: memref<9x4xf32, #tpu.memory_space<vmem>>, %arg6: memref<4x4xf32, #tpu.memory_space<vmem>>, %arg7: memref<1x4xf32, #tpu.memory_space<vmem>>, %arg8: memref<1x4xf32, #tpu.memory_space<vmem>>, %arg9: memref<4x8xf32, #tpu.memory_space<vmem>>, %arg10: memref<1x8xf32, #tpu.memory_space<vmem>>, %arg11: memref<128x8xf32, #tpu.memory_space<vmem>>, %arg12: memref<2x18x18x4xf32, #tpu.memory_space<vmem>>) attributes {dimension_semantics = [], scalar_prefetch = 0 : i64, scratch_operands = 1 : i64, tpu.core_type = #tpu.core_type<tc>} {
    %cst = arith.constant 0.000000e+00 : f32
    %0 = vector.broadcast %cst : f32 to vector<2x1x18x4xf32>
    %c0 = arith.constant 0 : index
    %c0_0 = arith.constant 0 : index
    %c0_1 = arith.constant 0 : index
    %c0_2 = arith.constant 0 : index
    %1 = vector.load %arg12[%c0, %c0_0, %c0_1, %c0_2] : memref<2x18x18x4xf32, #tpu.memory_space<vmem>>, vector<2x1x18x4xf32>
    tpu.vector_store %arg12[%c0, %c0_0, %c0_1, %c0_2], %0 {strides = array<i32>} : memref<2x18x18x4xf32, #tpu.memory_space<vmem>>, vector<2x1x18x4xf32>,
    %cst_3 = arith.constant 0.000000e+00 : f32
    %2 = vector.broadcast %cst_3 : f32 to vector<2x1x18x4xf32>
    %c0_4 = arith.constant 0 : index
    %c17 = arith.constant 17 : index
    %c0_5 = arith.constant 0 : index
    %c0_6 = arith.constant 0 : index
    %3 = vector.load %arg12[%c0_4, %c17, %c0_5, %c0_6] : memref<2x18x18x4xf32, #tpu.memory_space<vmem>>, vector<2x1x18x4xf32>
    tpu.vector_store %arg12[%c0_4, %c17, %c0_5, %c0_6], %2 {strides = array<i32>} : memref<2x18x18x4xf32, #tpu.memory_space<vmem>>, vector<2x1x18x4xf32>,
    %cst_7 = arith.constant 0.000000e+00 : f32
    %4 = vector.broadcast %cst_7 : f32 to vector<2x18x1x4xf32>
    %c0_8 = arith.constant 0 : index
    %c0_9 = arith.constant 0 : index
    %c0_10 = arith.constant 0 : index
    %c0_11 = arith.constant 0 : index
    %5 = vector.load %arg12[%c0_8, %c0_9, %c0_10, %c0_11] : memref<2x18x18x4xf32, #tpu.memory_space<vmem>>, vector<2x18x1x4xf32>
    tpu.vector_store %arg12[%c0_8, %c0_9, %c0_10, %c0_11], %4 {strides = array<i32>} : memref<2x18x18x4xf32, #tpu.memory_space<vmem>>, vector<2x18x1x4xf32>,
    %cst_12 = arith.constant 0.000000e+00 : f32
    %6 = vector.broadcast %cst_12 : f32 to vector<2x18x1x4xf32>
    %c0_13 = arith.constant 0 : index
    %c0_14 = arith.constant 0 : index
    %c17_15 = arith.constant 17 : index
    %c0_16 = arith.constant 0 : index
    %7 = vector.load %arg12[%c0_13, %c0_14, %c17_15, %c0_16] : memref<2x18x18x4xf32, #tpu.memory_space<vmem>>, vector<2x18x1x4xf32>
    tpu.vector_store %arg12[%c0_13, %c0_14, %c17_15, %c0_16], %6 {strides = array<i32>} : memref<2x18x18x4xf32, #tpu.memory_space<vmem>>, vector<2x18x1x4xf32>,
    %c0_17 = arith.constant 0 : index
    %c0_18 = arith.constant 0 : index
    %c0_19 = arith.constant 0 : index
    %c0_20 = arith.constant 0 : index
    %8 = vector.load %arg0[%c0_17, %c0_18, %c0_19, %c0_20] : memref<2x16x16x4xf32, #tpu.memory_space<vmem>>, vector<2x16x16x4xf32>
    %c0_21 = arith.constant 0 : index
    %c1 = arith.constant 1 : index
    %c1_22 = arith.constant 1 : index
    %c0_23 = arith.constant 0 : index
    %9 = vector.load %arg12[%c0_21, %c1, %c1_22, %c0_23] : memref<2x18x18x4xf32, #tpu.memory_space<vmem>>, vector<2x16x16x4xf32>
    tpu.vector_store %arg12[%c0_21, %c1, %c1_22, %c0_23], %8 {strides = array<i32>} : memref<2x18x18x4xf32, #tpu.memory_space<vmem>>, vector<2x16x16x4xf32>,
    %c0_24 = arith.constant 0 : index
    %c0_25 = arith.constant 0 : index
    %c0_26 = arith.constant 0 : index
    %c0_27 = arith.constant 0 : index
    %10 = vector.load %arg12[%c0_24, %c0_25, %c0_26, %c0_27] : memref<2x18x18x4xf32, #tpu.memory_space<vmem>>, vector<2x18x18x4xf32>
    %c0_28 = arith.constant 0 : index
    %c0_29 = arith.constant 0 : index
    %11 = vector.load %arg1[%c0_28, %c0_29] : memref<9x4xf32, #tpu.memory_space<vmem>>, vector<9x4xf32>
    %cst_30 = arith.constant 0.000000e+00 : f32
    %12 = vector.broadcast %cst_30 : f32 to vector<2x16x16x4xf32>
    %13 = vector.extract_strided_slice %11 {offsets = [0, 0], sizes = [1, 4], strides = [1, 1]} : vector<9x4xf32> to vector<1x4xf32>
    %14 = vector.extract_strided_slice %10 {offsets = [0, 0, 0, 0], sizes = [2, 16, 16, 4], strides = [1, 1, 1, 1]} : vector<2x18x18x4xf32> to vector<2x16x16x4xf32>
    %15 = vector.shape_cast %13 : vector<1x4xf32> to vector<1x1x1x4xf32>
    %16 = vector.broadcast %15 : vector<1x1x1x4xf32> to vector<2x16x16x4xf32>
    %17 = arith.mulf %14, %16 : vector<2x16x16x4xf32>
    %18 = arith.addf %12, %17 : vector<2x16x16x4xf32>
    %19 = vector.extract_strided_slice %11 {offsets = [1, 0], sizes = [1, 4], strides = [1, 1]} : vector<9x4xf32> to vector<1x4xf32>
    %20 = vector.extract_strided_slice %10 {offsets = [0, 0, 1, 0], sizes = [2, 16, 16, 4], strides = [1, 1, 1, 1]} : vector<2x18x18x4xf32> to vector<2x16x16x4xf32>
    %21 = vector.shape_cast %19 : vector<1x4xf32> to vector<1x1x1x4xf32>
    %22 = vector.broadcast %21 : vector<1x1x1x4xf32> to vector<2x16x16x4xf32>
    %23 = arith.mulf %20, %22 : vector<2x16x16x4xf32>
    %24 = arith.addf %18, %23 : vector<2x16x16x4xf32>
    %25 = vector.extract_strided_slice %11 {offsets = [2, 0], sizes = [1, 4], strides = [1, 1]} : vector<9x4xf32> to vector<1x4xf32>
    %26 = vector.extract_strided_slice %10 {offsets = [0, 0, 2, 0], sizes = [2, 16, 16, 4], strides = [1, 1, 1, 1]} : vector<2x18x18x4xf32> to vector<2x16x16x4xf32>
    %27 = vector.shape_cast %25 : vector<1x4xf32> to vector<1x1x1x4xf32>
    %28 = vector.broadcast %27 : vector<1x1x1x4xf32> to vector<2x16x16x4xf32>
    %29 = arith.mulf %26, %28 : vector<2x16x16x4xf32>
    %30 = arith.addf %24, %29 : vector<2x16x16x4xf32>
    %31 = vector.extract_strided_slice %11 {offsets = [3, 0], sizes = [1, 4], strides = [1, 1]} : vector<9x4xf32> to vector<1x4xf32>
    %32 = vector.extract_strided_slice %10 {offsets = [0, 1, 0, 0], sizes = [2, 16, 16, 4], strides = [1, 1, 1, 1]} : vector<2x18x18x4xf32> to vector<2x16x16x4xf32>
    %33 = vector.shape_cast %31 : vector<1x4xf32> to vector<1x1x1x4xf32>
    %34 = vector.broadcast %33 : vector<1x1x1x4xf32> to vector<2x16x16x4xf32>
    %35 = arith.mulf %32, %34 : vector<2x16x16x4xf32>
    %36 = arith.addf %30, %35 : vector<2x16x16x4xf32>
    %37 = vector.extract_strided_slice %11 {offsets = [4, 0], sizes = [1, 4], strides = [1, 1]} : vector<9x4xf32> to vector<1x4xf32>
    %38 = vector.extract_strided_slice %10 {offsets = [0, 1, 1, 0], sizes = [2, 16, 16, 4], strides = [1, 1, 1, 1]} : vector<2x18x18x4xf32> to vector<2x16x16x4xf32>
    %39 = vector.shape_cast %37 : vector<1x4xf32> to vector<1x1x1x4xf32>
    %40 = vector.broadcast %39 : vector<1x1x1x4xf32> to vector<2x16x16x4xf32>
    %41 = arith.mulf %38, %40 : vector<2x16x16x4xf32>
    %42 = arith.addf %36, %41 : vector<2x16x16x4xf32>
    %43 = vector.extract_strided_slice %11 {offsets = [5, 0], sizes = [1, 4], strides = [1, 1]} : vector<9x4xf32> to vector<1x4xf32>
    %44 = vector.extract_strided_slice %10 {offsets = [0, 1, 2, 0], sizes = [2, 16, 16, 4], strides = [1, 1, 1, 1]} : vector<2x18x18x4xf32> to vector<2x16x16x4xf32>
    %45 = vector.shape_cast %43 : vector<1x4xf32> to vector<1x1x1x4xf32>
    %46 = vector.broadcast %45 : vector<1x1x1x4xf32> to vector<2x16x16x4xf32>
    %47 = arith.mulf %44, %46 : vector<2x16x16x4xf32>
    %48 = arith.addf %42, %47 : vector<2x16x16x4xf32>
    %49 = vector.extract_strided_slice %11 {offsets = [6, 0], sizes = [1, 4], strides = [1, 1]} : vector<9x4xf32> to vector<1x4xf32>
    %50 = vector.extract_strided_slice %10 {offsets = [0, 2, 0, 0], sizes = [2, 16, 16, 4], strides = [1, 1, 1, 1]} : vector<2x18x18x4xf32> to vector<2x16x16x4xf32>
    %51 = vector.shape_cast %49 : vector<1x4xf32> to vector<1x1x1x4xf32>
    %52 = vector.broadcast %51 : vector<1x1x1x4xf32> to vector<2x16x16x4xf32>
    %53 = arith.mulf %50, %52 : vector<2x16x16x4xf32>
    %54 = arith.addf %48, %53 : vector<2x16x16x4xf32>
    %55 = vector.extract_strided_slice %11 {offsets = [7, 0], sizes = [1, 4], strides = [1, 1]} : vector<9x4xf32> to vector<1x4xf32>
    %56 = vector.extract_strided_slice %10 {offsets = [0, 2, 1, 0], sizes = [2, 16, 16, 4], strides = [1, 1, 1, 1]} : vector<2x18x18x4xf32> to vector<2x16x16x4xf32>
    %57 = vector.shape_cast %55 : vector<1x4xf32> to vector<1x1x1x4xf32>
    %58 = vector.broadcast %57 : vector<1x1x1x4xf32> to vector<2x16x16x4xf32>
    %59 = arith.mulf %56, %58 : vector<2x16x16x4xf32>
    %60 = arith.addf %54, %59 : vector<2x16x16x4xf32>
    %61 = vector.extract_strided_slice %11 {offsets = [8, 0], sizes = [1, 4], strides = [1, 1]} : vector<9x4xf32> to vector<1x4xf32>
    %62 = vector.extract_strided_slice %10 {offsets = [0, 2, 2, 0], sizes = [2, 16, 16, 4], strides = [1, 1, 1, 1]} : vector<2x18x18x4xf32> to vector<2x16x16x4xf32>
    %63 = vector.shape_cast %61 : vector<1x4xf32> to vector<1x1x1x4xf32>
    %64 = vector.broadcast %63 : vector<1x1x1x4xf32> to vector<2x16x16x4xf32>
    %65 = arith.mulf %62, %64 : vector<2x16x16x4xf32>
    %66 = arith.addf %60, %65 : vector<2x16x16x4xf32>
    %c0_31 = arith.constant 0 : index
    %c0_32 = arith.constant 0 : index
    %67 = vector.load %arg2[%c0_31, %c0_32] : memref<4x4xf32, #tpu.memory_space<vmem>>, vector<4x4xf32>
    %c0_33 = arith.constant 0 : index
    %c0_34 = arith.constant 0 : index
    %68 = vector.load %arg3[%c0_33, %c0_34] : memref<1x4xf32, #tpu.memory_space<vmem>>, vector<1x4xf32>
    %c0_35 = arith.constant 0 : index
    %c0_36 = arith.constant 0 : index
    %69 = vector.load %arg4[%c0_35, %c0_36] : memref<1x4xf32, #tpu.memory_space<vmem>>, vector<1x4xf32>
    %70 = vector.shape_cast %66 : vector<2x16x16x4xf32> to vector<512x4xf32>
    %cst_37 = arith.constant dense<0.000000e+00> : vector<512x4xf32>
    %71 = tpu.matmul %70, %67, %cst_37 {dimension_numbers = #tpu.dot_dimension_numbers<[1], [0], [0], [1], [0, 0, 1, 1], [], []>} : vector<512x4xf32>, vector<4x4xf32>, vector<512x4xf32> -> vector<512x4xf32>
    %cst_38 = arith.constant dense<0.000000e+00> : vector<4xf32>
    %72 = vector.multi_reduction <add>, %71, %cst_38 [0] : vector<512x4xf32> to vector<4xf32>
    %73 = vector.shape_cast %72 : vector<4xf32> to vector<1x4xf32>
    %cst_39 = arith.constant 0.001953125 : f32
    %74 = vector.broadcast %cst_39 : f32 to vector<1x4xf32>
    %75 = arith.mulf %73, %74 : vector<1x4xf32>
    %76 = arith.mulf %71, %71 : vector<512x4xf32>
    %cst_40 = arith.constant dense<0.000000e+00> : vector<4xf32>
    %77 = vector.multi_reduction <add>, %76, %cst_40 [0] : vector<512x4xf32> to vector<4xf32>
    %78 = vector.shape_cast %77 : vector<4xf32> to vector<1x4xf32>
    %cst_41 = arith.constant 0.001953125 : f32
    %79 = vector.broadcast %cst_41 : f32 to vector<1x4xf32>
    %80 = arith.mulf %78, %79 : vector<1x4xf32>
    %81 = arith.mulf %75, %75 : vector<1x4xf32>
    %82 = arith.subf %80, %81 : vector<1x4xf32>
    %cst_42 = arith.constant 9.99999974E-6 : f32
    %83 = vector.broadcast %cst_42 : f32 to vector<1x4xf32>
    %84 = arith.addf %82, %83 : vector<1x4xf32>
    %85 = math.rsqrt %84 : vector<1x4xf32>
    %86 = arith.mulf %68, %85 : vector<1x4xf32>
    %87 = arith.mulf %75, %86 : vector<1x4xf32>
    %88 = arith.subf %69, %87 : vector<1x4xf32>
    %89 = vector.broadcast %86 : vector<1x4xf32> to vector<512x4xf32>
    %90 = arith.mulf %71, %89 : vector<512x4xf32>
    %91 = vector.broadcast %88 : vector<1x4xf32> to vector<512x4xf32>
    %92 = arith.addf %90, %91 : vector<512x4xf32>
    %cst_43 = arith.constant 0.000000e+00 : f32
    %93 = vector.broadcast %cst_43 : f32 to vector<512x4xf32>
    %94 = arith.maximumf %92, %93 : vector<512x4xf32>
    %95 = vector.shape_cast %94 : vector<512x4xf32> to vector<2x16x16x4xf32>
    %c0_44 = arith.constant 0 : index
    %c1_45 = arith.constant 1 : index
    %c1_46 = arith.constant 1 : index
    %c0_47 = arith.constant 0 : index
    %96 = vector.load %arg12[%c0_44, %c1_45, %c1_46, %c0_47] : memref<2x18x18x4xf32, #tpu.memory_space<vmem>>, vector<2x16x16x4xf32>
    tpu.vector_store %arg12[%c0_44, %c1_45, %c1_46, %c0_47], %95 {strides = array<i32>} : memref<2x18x18x4xf32, #tpu.memory_space<vmem>>, vector<2x16x16x4xf32>,
    %c0_48 = arith.constant 0 : index
    %c0_49 = arith.constant 0 : index
    %c0_50 = arith.constant 0 : index
    %c0_51 = arith.constant 0 : index
    %97 = vector.load %arg12[%c0_48, %c0_49, %c0_50, %c0_51] : memref<2x18x18x4xf32, #tpu.memory_space<vmem>>, vector<2x18x18x4xf32>
    %c0_52 = arith.constant 0 : index
    %c0_53 = arith.constant 0 : index
    %98 = vector.load %arg5[%c0_52, %c0_53] : memref<9x4xf32, #tpu.memory_space<vmem>>, vector<9x4xf32>
    %cst_54 = arith.constant 0.000000e+00 : f32
    %99 = vector.broadcast %cst_54 : f32 to vector<2x16x16x4xf32>
    %100 = vector.extract_strided_slice %98 {offsets = [0, 0], sizes = [1, 4], strides = [1, 1]} : vector<9x4xf32> to vector<1x4xf32>
    %101 = vector.extract_strided_slice %97 {offsets = [0, 0, 0, 0], sizes = [2, 16, 16, 4], strides = [1, 1, 1, 1]} : vector<2x18x18x4xf32> to vector<2x16x16x4xf32>
    %102 = vector.shape_cast %100 : vector<1x4xf32> to vector<1x1x1x4xf32>
    %103 = vector.broadcast %102 : vector<1x1x1x4xf32> to vector<2x16x16x4xf32>
    %104 = arith.mulf %101, %103 : vector<2x16x16x4xf32>
    %105 = arith.addf %99, %104 : vector<2x16x16x4xf32>
    %106 = vector.extract_strided_slice %98 {offsets = [1, 0], sizes = [1, 4], strides = [1, 1]} : vector<9x4xf32> to vector<1x4xf32>
    %107 = vector.extract_strided_slice %97 {offsets = [0, 0, 1, 0], sizes = [2, 16, 16, 4], strides = [1, 1, 1, 1]} : vector<2x18x18x4xf32> to vector<2x16x16x4xf32>
    %108 = vector.shape_cast %106 : vector<1x4xf32> to vector<1x1x1x4xf32>
    %109 = vector.broadcast %108 : vector<1x1x1x4xf32> to vector<2x16x16x4xf32>
    %110 = arith.mulf %107, %109 : vector<2x16x16x4xf32>
    %111 = arith.addf %105, %110 : vector<2x16x16x4xf32>
    %112 = vector.extract_strided_slice %98 {offsets = [2, 0], sizes = [1, 4], strides = [1, 1]} : vector<9x4xf32> to vector<1x4xf32>
    %113 = vector.extract_strided_slice %97 {offsets = [0, 0, 2, 0], sizes = [2, 16, 16, 4], strides = [1, 1, 1, 1]} : vector<2x18x18x4xf32> to vector<2x16x16x4xf32>
    %114 = vector.shape_cast %112 : vector<1x4xf32> to vector<1x1x1x4xf32>
    %115 = vector.broadcast %114 : vector<1x1x1x4xf32> to vector<2x16x16x4xf32>
    %116 = arith.mulf %113, %115 : vector<2x16x16x4xf32>
    %117 = arith.addf %111, %116 : vector<2x16x16x4xf32>
    %118 = vector.extract_strided_slice %98 {offsets = [3, 0], sizes = [1, 4], strides = [1, 1]} : vector<9x4xf32> to vector<1x4xf32>
    %119 = vector.extract_strided_slice %97 {offsets = [0, 1, 0, 0], sizes = [2, 16, 16, 4], strides = [1, 1, 1, 1]} : vector<2x18x18x4xf32> to vector<2x16x16x4xf32>
    %120 = vector.shape_cast %118 : vector<1x4xf32> to vector<1x1x1x4xf32>
    %121 = vector.broadcast %120 : vector<1x1x1x4xf32> to vector<2x16x16x4xf32>
    %122 = arith.mulf %119, %121 : vector<2x16x16x4xf32>
    %123 = arith.addf %117, %122 : vector<2x16x16x4xf32>
    %124 = vector.extract_strided_slice %98 {offsets = [4, 0], sizes = [1, 4], strides = [1, 1]} : vector<9x4xf32> to vector<1x4xf32>
    %125 = vector.extract_strided_slice %97 {offsets = [0, 1, 1, 0], sizes = [2, 16, 16, 4], strides = [1, 1, 1, 1]} : vector<2x18x18x4xf32> to vector<2x16x16x4xf32>
    %126 = vector.shape_cast %124 : vector<1x4xf32> to vector<1x1x1x4xf32>
    %127 = vector.broadcast %126 : vector<1x1x1x4xf32> to vector<2x16x16x4xf32>
    %128 = arith.mulf %125, %127 : vector<2x16x16x4xf32>
    %129 = arith.addf %123, %128 : vector<2x16x16x4xf32>
    %130 = vector.extract_strided_slice %98 {offsets = [5, 0], sizes = [1, 4], strides = [1, 1]} : vector<9x4xf32> to vector<1x4xf32>
    %131 = vector.extract_strided_slice %97 {offsets = [0, 1, 2, 0], sizes = [2, 16, 16, 4], strides = [1, 1, 1, 1]} : vector<2x18x18x4xf32> to vector<2x16x16x4xf32>
    %132 = vector.shape_cast %130 : vector<1x4xf32> to vector<1x1x1x4xf32>
    %133 = vector.broadcast %132 : vector<1x1x1x4xf32> to vector<2x16x16x4xf32>
    %134 = arith.mulf %131, %133 : vector<2x16x16x4xf32>
    %135 = arith.addf %129, %134 : vector<2x16x16x4xf32>
    %136 = vector.extract_strided_slice %98 {offsets = [6, 0], sizes = [1, 4], strides = [1, 1]} : vector<9x4xf32> to vector<1x4xf32>
    %137 = vector.extract_strided_slice %97 {offsets = [0, 2, 0, 0], sizes = [2, 16, 16, 4], strides = [1, 1, 1, 1]} : vector<2x18x18x4xf32> to vector<2x16x16x4xf32>
    %138 = vector.shape_cast %136 : vector<1x4xf32> to vector<1x1x1x4xf32>
    %139 = vector.broadcast %138 : vector<1x1x1x4xf32> to vector<2x16x16x4xf32>
    %140 = arith.mulf %137, %139 : vector<2x16x16x4xf32>
    %141 = arith.addf %135, %140 : vector<2x16x16x4xf32>
    %142 = vector.extract_strided_slice %98 {offsets = [7, 0], sizes = [1, 4], strides = [1, 1]} : vector<9x4xf32> to vector<1x4xf32>
    %143 = vector.extract_strided_slice %97 {offsets = [0, 2, 1, 0], sizes = [2, 16, 16, 4], strides = [1, 1, 1, 1]} : vector<2x18x18x4xf32> to vector<2x16x16x4xf32>
    %144 = vector.shape_cast %142 : vector<1x4xf32> to vector<1x1x1x4xf32>
    %145 = vector.broadcast %144 : vector<1x1x1x4xf32> to vector<2x16x16x4xf32>
    %146 = arith.mulf %143, %145 : vector<2x16x16x4xf32>
    %147 = arith.addf %141, %146 : vector<2x16x16x4xf32>
    %148 = vector.extract_strided_slice %98 {offsets = [8, 0], sizes = [1, 4], strides = [1, 1]} : vector<9x4xf32> to vector<1x4xf32>
    %149 = vector.extract_strided_slice %97 {offsets = [0, 2, 2, 0], sizes = [2, 16, 16, 4], strides = [1, 1, 1, 1]} : vector<2x18x18x4xf32> to vector<2x16x16x4xf32>
    %150 = vector.shape_cast %148 : vector<1x4xf32> to vector<1x1x1x4xf32>
    %151 = vector.broadcast %150 : vector<1x1x1x4xf32> to vector<2x16x16x4xf32>
    %152 = arith.mulf %149, %151 : vector<2x16x16x4xf32>
    %153 = arith.addf %147, %152 : vector<2x16x16x4xf32>
    %c0_55 = arith.constant 0 : index
    %c0_56 = arith.constant 0 : index
    %154 = vector.load %arg6[%c0_55, %c0_56] : memref<4x4xf32, #tpu.memory_space<vmem>>, vector<4x4xf32>
    %c0_57 = arith.constant 0 : index
    %c0_58 = arith.constant 0 : index
    %155 = vector.load %arg7[%c0_57, %c0_58] : memref<1x4xf32, #tpu.memory_space<vmem>>, vector<1x4xf32>
    %c0_59 = arith.constant 0 : index
    %c0_60 = arith.constant 0 : index
    %156 = vector.load %arg8[%c0_59, %c0_60] : memref<1x4xf32, #tpu.memory_space<vmem>>, vector<1x4xf32>
    %157 = vector.shape_cast %153 : vector<2x16x16x4xf32> to vector<512x4xf32>
    %cst_61 = arith.constant dense<0.000000e+00> : vector<512x4xf32>
    %158 = tpu.matmul %157, %154, %cst_61 {dimension_numbers = #tpu.dot_dimension_numbers<[1], [0], [0], [1], [0, 0, 1, 1], [], []>} : vector<512x4xf32>, vector<4x4xf32>, vector<512x4xf32> -> vector<512x4xf32>
    %cst_62 = arith.constant dense<0.000000e+00> : vector<4xf32>
    %159 = vector.multi_reduction <add>, %158, %cst_62 [0] : vector<512x4xf32> to vector<4xf32>
    %160 = vector.shape_cast %159 : vector<4xf32> to vector<1x4xf32>
    %cst_63 = arith.constant 0.001953125 : f32
    %161 = vector.broadcast %cst_63 : f32 to vector<1x4xf32>
    %162 = arith.mulf %160, %161 : vector<1x4xf32>
    %163 = arith.mulf %158, %158 : vector<512x4xf32>
    %cst_64 = arith.constant dense<0.000000e+00> : vector<4xf32>
    %164 = vector.multi_reduction <add>, %163, %cst_64 [0] : vector<512x4xf32> to vector<4xf32>
    %165 = vector.shape_cast %164 : vector<4xf32> to vector<1x4xf32>
    %cst_65 = arith.constant 0.001953125 : f32
    %166 = vector.broadcast %cst_65 : f32 to vector<1x4xf32>
    %167 = arith.mulf %165, %166 : vector<1x4xf32>
    %168 = arith.mulf %162, %162 : vector<1x4xf32>
    %169 = arith.subf %167, %168 : vector<1x4xf32>
    %cst_66 = arith.constant 9.99999974E-6 : f32
    %170 = vector.broadcast %cst_66 : f32 to vector<1x4xf32>
    %171 = arith.addf %169, %170 : vector<1x4xf32>
    %172 = math.rsqrt %171 : vector<1x4xf32>
    %173 = arith.mulf %155, %172 : vector<1x4xf32>
    %174 = arith.mulf %162, %173 : vector<1x4xf32>
    %175 = arith.subf %156, %174 : vector<1x4xf32>
    %176 = vector.broadcast %173 : vector<1x4xf32> to vector<512x4xf32>
    %177 = arith.mulf %158, %176 : vector<512x4xf32>
    %178 = vector.broadcast %175 : vector<1x4xf32> to vector<512x4xf32>
    %179 = arith.addf %177, %178 : vector<512x4xf32>
    %180 = vector.shape_cast %8 : vector<2x16x16x4xf32> to vector<512x4xf32>
    %181 = arith.addf %180, %179 : vector<512x4xf32>
    %cst_67 = arith.constant 0.000000e+00 : f32
    %182 = vector.broadcast %cst_67 : f32 to vector<512x4xf32>
    %183 = arith.maximumf %181, %182 : vector<512x4xf32>
    %184 = tpu.iota {dimensions = array<i32: 0>} : vector<128x1xi32>
    %c6_i32 = arith.constant 6 : i32
    %185 = vector.broadcast %c6_i32 : i32 to vector<128x1xi32>
    %186 = arith.shrsi %184, %185 : vector<128x1xi32>
    %c64_i32 = arith.constant 64 : i32
    %187 = vector.broadcast %c64_i32 : i32 to vector<128x1xi32>
    %188 = arith.muli %186, %187 : vector<128x1xi32>
    %189 = arith.subi %184, %188 : vector<128x1xi32>
    %c3_i32 = arith.constant 3 : i32
    %190 = vector.broadcast %c3_i32 : i32 to vector<128x1xi32>
    %191 = arith.shrsi %189, %190 : vector<128x1xi32>
    %c8_i32 = arith.constant 8 : i32
    %192 = vector.broadcast %c8_i32 : i32 to vector<128x1xi32>
    %193 = arith.muli %191, %192 : vector<128x1xi32>
    %194 = arith.subi %189, %193 : vector<128x1xi32>
    %c16_i32 = arith.constant 16 : i32
    %195 = vector.broadcast %c16_i32 : i32 to vector<128x1xi32>
    %196 = arith.muli %186, %195 : vector<128x1xi32>
    %c2_i32 = arith.constant 2 : i32
    %197 = vector.broadcast %c2_i32 : i32 to vector<128x1xi32>
    %198 = arith.muli %197, %191 : vector<128x1xi32>
    %199 = arith.addi %196, %198 : vector<128x1xi32>
    %c16_i32_68 = arith.constant 16 : i32
    %200 = vector.broadcast %c16_i32_68 : i32 to vector<128x1xi32>
    %201 = arith.muli %199, %200 : vector<128x1xi32>
    %c2_i32_69 = arith.constant 2 : i32
    %202 = vector.broadcast %c2_i32_69 : i32 to vector<128x1xi32>
    %203 = arith.muli %202, %194 : vector<128x1xi32>
    %204 = arith.addi %201, %203 : vector<128x1xi32>
    %205 = tpu.iota {dimensions = array<i32: 1>} : vector<128x512xi32>
    %206 = vector.broadcast %204 : vector<128x1xi32> to vector<128x512xi32>
    %207 = arith.cmpi eq, %205, %206 : vector<128x512xi32>
    %208 = arith.extui %207 : vector<128x512xi1> to vector<128x512xi32>
    %209 = arith.sitofp %208 : vector<128x512xi32> to vector<128x512xf32>
    %cst_70 = arith.constant dense<0.000000e+00> : vector<128x4xf32>
    %210 = tpu.matmul %209, %183, %cst_70 {dimension_numbers = #tpu.dot_dimension_numbers<[1], [0], [0], [1], [0, 0, 1, 1], [], []>} : vector<128x512xf32>, vector<512x4xf32>, vector<128x4xf32> -> vector<128x4xf32>
    %c0_71 = arith.constant 0 : index
    %c0_72 = arith.constant 0 : index
    %211 = vector.load %arg9[%c0_71, %c0_72] : memref<4x8xf32, #tpu.memory_space<vmem>>, vector<4x8xf32>
    %cst_73 = arith.constant dense<0.000000e+00> : vector<128x8xf32>
    %212 = tpu.matmul %210, %211, %cst_73 {dimension_numbers = #tpu.dot_dimension_numbers<[1], [0], [0], [1], [0, 0, 1, 1], [], []>} : vector<128x4xf32>, vector<4x8xf32>, vector<128x8xf32> -> vector<128x8xf32>
    %c0_74 = arith.constant 0 : index
    %c0_75 = arith.constant 0 : index
    %213 = vector.load %arg10[%c0_74, %c0_75] : memref<1x8xf32, #tpu.memory_space<vmem>>, vector<1x8xf32>
    %214 = vector.broadcast %213 : vector<1x8xf32> to vector<128x8xf32>
    %215 = arith.addf %212, %214 : vector<128x8xf32>
    %cst_76 = arith.constant 0.000000e+00 : f32
    %216 = vector.broadcast %cst_76 : f32 to vector<128x8xf32>
    %217 = arith.maximumf %215, %216 : vector<128x8xf32>
    %c0_77 = arith.constant 0 : index
    %c0_78 = arith.constant 0 : index
    %218 = vector.load %arg11[%c0_77, %c0_78] : memref<128x8xf32, #tpu.memory_space<vmem>>, vector<128x8xf32>
    tpu.vector_store %arg11[%c0_77, %c0_78], %217 {strides = array<i32>} : memref<128x8xf32, #tpu.memory_space<vmem>>, vector<128x8xf32>,
    return
  }
}

</mosaic_0001>

<bundles_post_ra>
// kernel: seperable_residual_conv_block.1
= control target key start
LH: loop header
LB: loop body
LE: loop exit
PB: predicated region body
PF: predicated region fallthrough
CT: control target
= control target key end

     0   :  { %vm3862_vm0 = vcmask 1043456   ;;  %vm38_vm1 = vcmask 31744   ;;  %vm53_vm2 = vcmask 24576   ;;  %v11282_v1 = vmov 0.0   ;;  %s20163_s2 = inlined_call_operand.vmem [shape: f32[4,4], index: 2, kind: input, shape index: {}]   ;;  %s20164_s0 = inlined_call_operand.vmem [shape: f32[2,16,16,4], index: 0, kind: input, shape index: {}]   ;;  %s20165_s1 = inlined_call_operand.vmem [shape: f32[9,4], index: 1, kind: input, shape index: {}]   ;;  %s20166_s6 = inlined_call_operand.vmem [shape: f32[4,4], index: 6, kind: input, shape index: {}]   ;;  %s20167_s5 = inlined_call_operand.vmem [shape: f32[9,4], index: 5, kind: input, shape index: {}]   ;;  %s20168_s3 = inlined_call_operand.vmem [shape: f32[1,4], index: 3, kind: input, shape index: {}]   ;;  %s20169_s4 = inlined_call_operand.vmem [shape: f32[1,4], index: 4, kind: input, shape index: {}]   ;;  %s20170_s7 = inlined_call_operand.vmem [shape: f32[1,4], index: 7, kind: input, shape index: {}]   ;;  %s20171_s8 = inlined_call_operand.vmem [shape: f32[1,4], index: 8, kind: input, shape index: {}]   ;;  %s20172_s9 = inlined_call_operand.vmem [shape: f32[4,8], index: 9, kind: input, shape index: {}]   ;;  %s20173_s10 = inlined_call_operand.vmem [shape: f32[1,8], index: 10, kind: input, shape index: {}]   ;;  %s20174_s11 = inlined_call_operand.vmem [shape: f32[128,8], index: 11, kind: output, shape index: {}]  }
   0x1   :  { %v11347_v0 = vld [vmem:[%s20163_s2] sm:$0xf]  ;;  %39 = vst.msk [vmem:[#allocation2] sm:$0xff] %vm38_vm1, %v11282_v1  ;;  %40 = vst.msk [vmem:[#allocation2 + $0x8] sm:$0xff] %vm38_vm1, %v11282_v1  ;;  %v11365_v3 = vld [vmem:[%s20164_s0 + $0x8] sm:$0xff]  ;;  %v20175_v4 = vlaneseq  ;;  %vm41_vm3 = vcmask 25600  }
   0x2   :  { %55 = vst.msk [vmem:[#allocation2 + $0x18] sm:$0x1] %vm53_vm2, %v11282_v1  ;;  %56 = vst.msk [vmem:[#allocation2 + $0x30] sm:$0x1] %vm53_vm2, %v11282_v1  ;;  %v11360_v2 = vld [vmem:[%s20164_s0] sm:$0xff]  ;;  %10980 = vmatprep.subr.msk.mxu0 %vm3862_vm0, %v11347_v0  ;;  %v11510_v5 = vld [vmem:[%s20164_s0 + $0x10] sm:$0xff]  ;;  %11266 = vmatprep.subr.msk.mxu1 %vm3862_vm0, %v11347_v0 }
   0x3   :  { %20394 = vst [vmem:[#allocation3_spill] sm:$0xff] %v11360_v2  ;;  %20395 = vst [vmem:[#allocation4_spill] sm:$0xff] %v11365_v3  ;;  %v11515_v6 = vld [vmem:[%s20164_s0 + $0x18] sm:$0xff]  ;;  %10981 = vmatpush3.msk.msra.mxu0 %vm3862_vm0, %v11347_v0  ;;  %v11538_v7 = vld [vmem:[%s20165_s1] sm:$0xff]  ;;  %v11541_v8 = vshrl.u32 %v20175_v4, 7  ;;  %11267 = vmatpush3.msk.msra.mxu1 %vm3862_vm0, %v11347_v0  ;;  %vm693_vm4 = vcmask 1046528  }
   0x4   :  { %43 = vst.msk [vmem:[#allocation2 + $0x1b0] sm:$0xff] %vm38_vm1, %v11282_v1  ;;  %44 = vst.msk [vmem:[#allocation2 + $0x1b8] sm:$0xff] %vm38_vm1, %v11282_v1  ;;  %v11550_v9 = vld [vmem:[%s20164_s0 + $0x20] sm:$0xff]  ;;  %v11559_v10 = vld [vmem:[%s20164_s0 + $0x28] sm:$0xff]  ;;  %vm1178_vm5 = vcmask 1045504  }
   0x5   :  { %47 = vst.msk [vmem:[#allocation2 + $0x198] sm:$0xff] %vm38_vm1, %v11282_v1  ;;  %48 = vst.msk [vmem:[#allocation2 + $0x1a0] sm:$0xff] %vm38_vm1, %v11282_v1  ;;  %v11572_v11 = vld [vmem:[%s20164_s0 + $0x30] sm:$0xff]  ;;  %v11577_v12 = vld [vmem:[%s20164_s0 + $0x38] sm:$0xff]  ;;  %v11580_v13 = vsub.s32 0, %v11541_v8  ;;  %v20182_v14 = vsub.s32 1, %v11541_v8 }
   0x6   :  { %50 = vst.msk [vmem:[#allocation2 + $0x348] sm:$0xff] %vm38_vm1, %v11282_v1  ;;  %51 = vst.msk [vmem:[#allocation2 + $0x350] sm:$0xff] %vm38_vm1, %v11282_v1  ;;  %v20181_v15 = vsub.s32 2, %v11541_v8  ;;  %v20180_v16 = vsub.s32 3, %v11541_v8  ;;  %v11594_v17 = vld [vmem:[%s20164_s0 + $0x40] sm:$0xff]  ;;  %v11599_v18 = vld [vmem:[%s20164_s0 + $0x48] sm:$0xff] }
   0x7   :  { %57 = vst.msk [vmem:[#allocation2 + $0x48] sm:$0x1] %vm53_vm2, %v11282_v1  ;;  %58 = vst.msk [vmem:[#allocation2 + $0x60] sm:$0x1] %vm53_vm2, %v11282_v1  ;;  %v20178_v19 = vsub.s32 4, %v11541_v8  ;;  %v20177_v20 = vsub.s32 5, %v11541_v8  ;;  %v11621_v25 = vrot.slane %v11538_v7, %v11580_v13  ;;  %v11626_v26 = vrot.slane %v11538_v7, %v20182_v14 }
   0x8   :  { %59 = vst.msk [vmem:[#allocation2 + $0x78] sm:$0x1] %vm53_vm2, %v11282_v1  ;;  %60 = vst.msk [vmem:[#allocation2 + $0x90] sm:$0x1] %vm53_vm2, %v11282_v1  ;;  %v20179_v21 = vsub.s32 6, %v11541_v8  ;;  %v20176_v22 = vsub.s32 7, %v11541_v8  ;;  %v11631_v27 = vrot.slane %v11538_v7, %v20181_v15  ;;  %v11687_v39 = vrot.slane %v11538_v7, %v20180_v16 }
   0x9   :  { %61 = vst.msk [vmem:[#allocation2 + $0xa8] sm:$0x1] %vm53_vm2, %v11282_v1  ;;  %62 = vst.msk [vmem:[#allocation2 + $0xc0] sm:$0x1] %vm53_vm2, %v11282_v1  ;;  %v11612_v23 = vld [vmem:[%s20164_s0 + $0x50] sm:$0xff]  ;;  %v11617_v24 = vld [vmem:[%s20164_s0 + $0x58] sm:$0xff]  ;;  %v11655_v32 = vrot.slane %v11538_v7, %v20178_v19  ;;  %v11660_v33 = vrot.slane %v11538_v7, %v20177_v20 }
   0xa   :  { %63 = vst.msk [vmem:[#allocation2 + $0xd8] sm:$0x1] %vm53_vm2, %v11282_v1  ;;  %64 = vst.msk [vmem:[#allocation2 + $0xf0] sm:$0x1] %vm53_vm2, %v11282_v1  ;;  %v11640_v28 = vld [vmem:[%s20164_s0 + $0x60] sm:$0xff]  ;;  %v11645_v29 = vld [vmem:[%s20164_s0 + $0x68] sm:$0xff]  ;;  %v11692_v40 = vrot.slane %v11538_v7, %v20176_v22  ;;  %v11708_v46 = vrot.slane %v11538_v7, %v20179_v21 }
   0xb   :  { %65 = vst.msk [vmem:[#allocation2 + $0x108] sm:$0x1] %vm53_vm2, %v11282_v1  ;;  %66 = vst.msk [vmem:[#allocation2 + $0x120] sm:$0x1] %vm53_vm2, %v11282_v1  ;;  %v11650_v30 = vld [vmem:[%s20164_s0 + $0x70] sm:$0xff]  ;;  %v256_v31 = vld [vmem:[#allocation2 + $0x8] sm:$0xff] }
   0xc   :  { %67 = vst.msk [vmem:[#allocation2 + $0x138] sm:$0x1] %vm53_vm2, %v11282_v1  ;;  %68 = vst.msk [vmem:[#allocation2 + $0x150] sm:$0x1] %vm53_vm2, %v11282_v1  ;;  %v11669_v34 = vld [vmem:[%s20164_s0 + $0x78] sm:$0xff]  ;;  %v11676_v35 = vld [vmem:[%s20164_s0 + $0x80] sm:$0xff]  ;;  %v11679_v37 = vmul.f32 %v11626_v26, %v256_v31  ;;  %v11682_v38 = vmul.f32 %v11631_v27, %v256_v31 }
   0xd   :  { %69 = vst.msk [vmem:[#allocation2 + $0x168] sm:$0x1] %vm53_vm2, %v11282_v1  ;;  %70 = vst.msk [vmem:[#allocation2 + $0x180] sm:$0x1] %vm53_vm2, %v11282_v1  ;;  %v11725_v56 = vld [vmem:[%s20165_s1 + $0x8] ss:$0 sm:$0xff] }
   0xe   :  { %73 = vst.msk [vmem:[#allocation2 + $0x1c8] sm:$0x1] %vm53_vm2, %v11282_v1  ;;  %74 = vst.msk [vmem:[#allocation2 + $0x1e0] sm:$0x1] %vm53_vm2, %v11282_v1  ;;  %v695_v47 = vrot.slane %v11679_v37, 1  ;;  %v1180_v48 = vrot.slane %v11682_v38, 2 }
   0xf   :  { %75 = vst.msk [vmem:[#allocation2 + $0x1f8] sm:$0x1] %vm53_vm2, %v11282_v1  ;;  %76 = vst.msk [vmem:[#allocation2 + $0x210] sm:$0x1] %vm53_vm2, %v11282_v1  ;;  %v11758_v22 = vld [vmem:[%s20164_s0 + $0x88] sm:$0xff] }
  0x10   :  { %77 = vst.msk [vmem:[#allocation2 + $0x228] sm:$0x1] %vm53_vm2, %v11282_v1  ;;  %78 = vst.msk [vmem:[#allocation2 + $0x240] sm:$0x1] %vm53_vm2, %v11282_v1 }
  0x11   :  { %79 = vst.msk [vmem:[#allocation2 + $0x258] sm:$0x1] %vm53_vm2, %v11282_v1  ;;  %80 = vst.msk [vmem:[#allocation2 + $0x270] sm:$0x1] %vm53_vm2, %v11282_v1 }
  0x12   :  { %81 = vst.msk [vmem:[#allocation2 + $0x288] sm:$0x1] %vm53_vm2, %v11282_v1  ;;  %82 = vst.msk [vmem:[#allocation2 + $0x2a0] sm:$0x1] %vm53_vm2, %v11282_v1 }
  0x13   :  { %83 = vst.msk [vmem:[#allocation2 + $0x2b8] sm:$0x1] %vm53_vm2, %v11282_v1  ;;  %84 = vst.msk [vmem:[#allocation2 + $0x2d0] sm:$0x1] %vm53_vm2, %v11282_v1 }
  0x14   :  { %85 = vst.msk [vmem:[#allocation2 + $0x2e8] sm:$0x1] %vm53_vm2, %v11282_v1  ;;  %86 = vst.msk [vmem:[#allocation2 + $0x300] sm:$0x1] %vm53_vm2, %v11282_v1 }
  0x15   :  { %87 = vst.msk [vmem:[#allocation2 + $0x318] sm:$0x1] %vm53_vm2, %v11282_v1  ;;  %88 = vst.msk [vmem:[#allocation2 + $0x330] sm:$0x1] %vm53_vm2, %v11282_v1 }
  0x16   :  { %91 = vst.msk [vmem:[#allocation2 + $0x29] sm:$0x1] %vm53_vm2, %v11282_v1  ;;  %92 = vst.msk [vmem:[#allocation2 + $0x41] sm:$0x1] %vm53_vm2, %v11282_v1 }
  0x17   :  { %93 = vst.msk [vmem:[#allocation2 + $0x59] sm:$0x1] %vm53_vm2, %v11282_v1  ;;  %94 = vst.msk [vmem:[#allocation2 + $0x71] sm:$0x1] %vm53_vm2, %v11282_v1 }
  0x18   :  { %95 = vst.msk [vmem:[#allocation2 + $0x89] sm:$0x1] %vm53_vm2, %v11282_v1  ;;  %96 = vst.msk [vmem:[#allocation2 + $0xa1] sm:$0x1] %vm53_vm2, %v11282_v1 }
  0x19   :  { %97 = vst.msk [vmem:[#allocation2 + $0xb9] sm:$0x1] %vm53_vm2, %v11282_v1  ;;  %98 = vst.msk [vmem:[#allocation2 + $0xd1] sm:$0x1] %vm53_vm2, %v11282_v1 }
  0x1a   :  { %99 = vst.msk [vmem:[#allocation2 + $0xe9] sm:$0x1] %vm53_vm2, %v11282_v1  ;;  %100 = vst.msk [vmem:[#allocation2 + $0x101] sm:$0x1] %vm53_vm2, %v11282_v1 }
  0x1b   :  { %101 = vst.msk [vmem:[#allocation2 + $0x119] sm:$0x1] %vm53_vm2, %v11282_v1  ;;  %102 = vst.msk [vmem:[#allocation2 + $0x131] sm:$0x1] %vm53_vm2, %v11282_v1 }
  0x1c   :  { %103 = vst.msk [vmem:[#allocation2 + $0x149] sm:$0x1] %vm53_vm2, %v11282_v1  ;;  %104 = vst.msk [vmem:[#allocation2 + $0x161] sm:$0x1] %vm53_vm2, %v11282_v1 }
  0x1d   :  { %105 = vst.msk [vmem:[#allocation2 + $0x179] sm:$0x1] %vm53_vm2, %v11282_v1  ;;  %106 = vst.msk [vmem:[#allocation2 + $0x191] sm:$0x1] %vm53_vm2, %v11282_v1 }
  0x1e   :  { %109 = vst.msk [vmem:[#allocation2 + $0x1d9] sm:$0x1] %vm53_vm2, %v11282_v1  ;;  %110 = vst.msk [vmem:[#allocation2 + $0x1f1] sm:$0x1] %vm53_vm2, %v11282_v1 }
  0x1f   :  { %111 = vst.msk [vmem:[#allocation2 + $0x209] sm:$0x1] %vm53_vm2, %v11282_v1  ;;  %112 = vst.msk [vmem:[#allocation2 + $0x221] sm:$0x1] %vm53_vm2, %v11282_v1 }
  0x20   :  { %113 = vst.msk [vmem:[#allocation2 + $0x239] sm:$0x1] %vm53_vm2, %v11282_v1  ;;  %114 = vst.msk [vmem:[#allocation2 + $0x251] sm:$0x1] %vm53_vm2, %v11282_v1 }
  0x21   :  { %115 = vst.msk [vmem:[#allocation2 + $0x269] sm:$0x1] %vm53_vm2, %v11282_v1  ;;  %116 = vst.msk [vmem:[#allocation2 + $0x281] sm:$0x1] %vm53_vm2, %v11282_v1 }
  0x22   :  { %117 = vst.msk [vmem:[#allocation2 + $0x299] sm:$0x1] %vm53_vm2, %v11282_v1  ;;  %118 = vst.msk [vmem:[#allocation2 + $0x2b1] sm:$0x1] %vm53_vm2, %v11282_v1 }
  0x23   :  { %119 = vst.msk [vmem:[#allocation2 + $0x2c9] sm:$0x1] %vm53_vm2, %v11282_v1  ;;  %120 = vst.msk [vmem:[#allocation2 + $0x2e1] sm:$0x1] %vm53_vm2, %v11282_v1 }
  0x24   :  { %121 = vst.msk [vmem:[#allocation2 + $0x2f9] sm:$0x1] %vm53_vm2, %v11282_v1  ;;  %122 = vst.msk [vmem:[#allocation2 + $0x311] sm:$0x1] %vm53_vm2, %v11282_v1 }
  0x25   :  { %123 = vst.msk [vmem:[#allocation2 + $0x329] sm:$0x1] %vm53_vm2, %v11282_v1  ;;  %124 = vst.msk [vmem:[#allocation2 + $0x341] sm:$0x1] %vm53_vm2, %v11282_v1 }
  0x26   :  { %54 = vst.msk [vmem:[#allocation2] sm:$0x1] %vm53_vm2, %v11282_v1  ;;  %20396 = vst [vmem:[#allocation5_spill] sm:$0xff] %v11510_v5 }
  0x27   :  { %20397 = vst [vmem:[#allocation6_spill] sm:$0xff] %v11515_v6  ;;  %191 = vst.msk [vmem:[#allocation2 + $0x19] sm:$0xff] %vm38_vm1, %v11360_v2 }
  0x28   :  { %192 = vst.msk [vmem:[#allocation2 + $0x21] sm:$0xff] %vm38_vm1, %v11365_v3  ;;  %193 = vst.msk [vmem:[#allocation2 + $0x31] sm:$0xff] %vm38_vm1, %v11510_v5 }
  0x29   :  { %71 = vst.msk [vmem:[#allocation2 + $0x198] sm:$0x1] %vm53_vm2, %v11282_v1  ;;  %72 = vst.msk [vmem:[#allocation2 + $0x1b0] sm:$0x1] %vm53_vm2, %v11282_v1 }
  0x2a   :  { %89 = vst.msk [vmem:[#allocation2 + $0x348] sm:$0x1] %vm53_vm2, %v11282_v1  ;;  %20398 = vst [vmem:[#allocation7_spill] sm:$0xff] %v11541_v8 }
  0x2b   :  { %194 = vst.msk [vmem:[#allocation2 + $0x39] sm:$0xff] %vm38_vm1, %v11515_v6  ;;  %20399 = vst [vmem:[#allocation8_spill] sm:$0xff] %v11550_v9 }
  0x2c   :  { %42 = vst.msk [vmem:[#allocation2 + $0x10] sm:$0x3] %vm41_vm3, %v11282_v1  ;;  %45 = vst.msk [vmem:[#allocation2 + $0x1c0] sm:$0x3] %vm41_vm3, %v11282_v1 }
  0x2d   :  { %49 = vst.msk [vmem:[#allocation2 + $0x1a8] sm:$0x3] %vm41_vm3, %v11282_v1  ;;  %52 = vst.msk [vmem:[#allocation2 + $0x358] sm:$0x3] %vm41_vm3, %v11282_v1  ;;  %v255_v36 = vld [vmem:[#allocation2] sm:$0xff] }
  0x2e   :  { %90 = vst.msk [vmem:[#allocation2 + $0x11] sm:$0x1] %vm53_vm2, %v11282_v1  ;;  %20400 = vst [vmem:[#allocation9_spill] sm:$0xff] %v11559_v10  ;;  %v11698_v41 = vld [vmem:[#allocation2 + $0x18] sm:$0xff]  ;;  %v369_v43 = vmul.f32 %v11621_v25, %v255_v36  ;;  %v501_v44 = vmul.f32 %v11626_v26, %v255_v36  ;;  %v986_v45 = vmul.f32 %v11631_v27, %v255_v36 }
  0x2f   :  { %195 = vst.msk [vmem:[#allocation2 + $0x49] sm:$0xff] %vm38_vm1, %v11550_v9  ;;  %20401 = vst [vmem:[#allocation10_spill] sm:$0xff] %v11572_v11  ;;  %v11700_v42 = vld [vmem:[#allocation2 + $0x20] sm:$0xff]  ;;  %v1603_v49 = vmul.f32 %v11655_v32, %v11698_v41  ;;  %v11716_v51 = vld [vmem:[#allocation2 + $0x30] sm:$0xff]  ;;  %v2087_v54 = vmul.f32 %v11660_v33, %v11698_v41  ;;  %v1471_v57 = vmul.f32 %v11687_v39, %v11698_v41 }
  0x30   :  { %107 = vst.msk [vmem:[#allocation2 + $0x1a9] sm:$0x1] %vm53_vm2, %v11282_v1  ;;  %108 = vst.msk [vmem:[#allocation2 + $0x1c1] sm:$0x1] %vm53_vm2, %v11282_v1  ;;  %v1604_v50 = vmul.f32 %v11655_v32, %v11700_v42  ;;  %v694_v52 = vrot.slane %v501_v44, 1  ;;  %v1179_v53 = vrot.slane %v986_v45, 2  ;;  %v2088_v55 = vmul.f32 %v11660_v33, %v11700_v42 }
  0x31   :  { %125 = vst.msk [vmem:[#allocation2 + $0x359] sm:$0x1] %vm53_vm2, %v11282_v1  ;;  %20402 = vst [vmem:[#allocation11_spill] sm:$0xff] %v11577_v12  ;;  %v1795_v58 = vrot.slane %v1603_v49, 1  ;;  %v2703_v60 = vmul.f32 %v11692_v40, %v11716_v51  ;;  %v2279_v0 = vrot.slane %v2087_v54, 2  ;;  %v2571_v38 = vmul.f32 %v11708_v46, %v11716_v51 }
  0x32   :  { %20403 = vst [vmem:[#allocation12_spill] sm:$0xff] %v11580_v13  ;;  %196 = vst.msk [vmem:[#allocation2 + $0x51] sm:$0xff] %vm38_vm1, %v11559_v10  ;;  %v1796_v59 = vrot.slane %v1604_v50, 1  ;;  %v11731_v61 = vld [vmem:[#allocation2 + $0x38] sm:$0xff]  ;;  %v696_v62 = vsel %vm693_vm4, %v694_v52, %v695_v47  ;;  %v1181_v63 = vsel %vm1178_vm5, %v1179_v53, %v1180_v48  ;;  %v2280_v1 = vrot.slane %v2088_v55, 2 }
  0x33   :  { %197 = vst.msk [vmem:[#allocation2 + $0x61] sm:$0xff] %vm38_vm1, %v11572_v11  ;;  %198 = vst.msk [vmem:[#allocation2 + $0x69] sm:$0xff] %vm38_vm1, %v11577_v12  ;;  %v918_v36 = vadd.f32 %v696_v62, %v369_v43  ;;  %v2704_v44 = vmul.f32 %v11692_v40, %v11731_v61  ;;  %v2895_v49 = vrot.slane %v2703_v60, 1  ;;  %v3187_v50 = vmul.f32 %v11725_v56, %v11716_v51  ;;  %v11747_v54 = vld [vmem:[#allocation2 + $0x28] sm:$0x3] }
  0x34   :  { %20404 = vst [vmem:[#allocation13_spill] sm:$0xff] %v11594_v17  ;;  %20405 = vst [vmem:[#allocation14_spill] sm:$0xff] %v11599_v18  ;;  %v1797_v37 = vsel %vm693_vm4, %v1795_v58, %v1796_v59  ;;  %v2281_v45 = vsel %vm1178_vm5, %v2279_v0, %v2280_v1  ;;  %v11745_v52 = vmul.f32 %v11725_v56, %v11731_v61 }
  0x35   :  { %199 = vst.msk [vmem:[#allocation2 + $0x79] sm:$0xff] %vm38_vm1, %v11594_v17  ;;  %200 = vst.msk [vmem:[#allocation2 + $0x81] sm:$0xff] %vm38_vm1, %v11599_v18  ;;  %v257_v7 = vld [vmem:[#allocation2 + $0x10] sm:$0x3]  ;;  %v1403_v53 = vadd.f32 %v1181_v63, %v918_v36  ;;  %v2896_v43 = vrot.slane %v2704_v44, 1  ;;  %v3379_v62 = vrot.slane %v3187_v50, 2  ;;  %v370_v60 = vmul.f32 %v11621_v25, %v256_v31 }
  0x36   :  { %20406 = vst [vmem:[#allocation15_spill] sm:$0xff] %v11612_v23  ;;  %20407 = vst [vmem:[#allocation16_spill] sm:$0xff] %v11617_v24  ;;  %v503_v55 = vmul.f32 %v11626_v26, %v257_v7  ;;  %v988_v58 = vmul.f32 %v11631_v27, %v257_v7  ;;  %v3380_v4 = vrot.slane %v11745_v52, 2  ;;  %v1605_v0 = vmul.f32 %v11655_v32, %v11747_v54  ;;  %v11763_v63 = vld [vmem:[%s20164_s0 + $0x90] sm:$0xff]  ;;  %v11772_v31 = vld [vmem:[%s20164_s0 + $0x98] sm:$0xff] }
  0x37   :  { %201 = vst.msk [vmem:[#allocation2 + $0x91] sm:$0xff] %vm38_vm1, %v11612_v23  ;;  %202 = vst.msk [vmem:[#allocation2 + $0x99] sm:$0xff] %vm38_vm1, %v11617_v24  ;;  %v1535_v36 = vadd.f32 %v1471_v57, %v1403_v53  ;;  %v1472_v50 = vmul.f32 %v11687_v39, %v11700_v42  ;;  %v2897_v52 = vsel %vm693_vm4, %v2895_v49, %v2896_v43  ;;  %v11778_v53 = vld [vmem:[#allocation2 + $0x40] sm:$0x3] }
  0x38   :  { %20408 = vst [vmem:[#allocation17_spill] sm:$0xff] %v11640_v28  ;;  %20409 = vst [vmem:[#allocation18_spill] sm:$0xff] %v11645_v29  ;;  %v697_v7 = vrot.slane %v503_v55, 1  ;;  %v1182_v44 = vrot.slane %v988_v58, 2  ;;  %v3381_v57 = vsel %vm1178_vm5, %v3379_v62, %v3380_v4  ;;  %v1798_v55 = vrot.slane %v1605_v0, 1 }
  0x39   :  { %20410 = vst [vmem:[#allocation19_spill] sm:$0xff] %v11650_v30  ;;  %203 = vst.msk [vmem:[#allocation2 + $0xa9] sm:$0xff] %vm38_vm1, %v11640_v28  ;;  %v2089_v58 = vmul.f32 %v11660_v33, %v11747_v54  ;;  %v2019_v20 = vadd.f32 %v1797_v37, %v1535_v36  ;;  %v2705_v16 = vmul.f32 %v11692_v40, %v11778_v53 }
  0x3a   :  { %204 = vst.msk [vmem:[#allocation2 + $0xb1] sm:$0xff] %vm38_vm1, %v11645_v29  ;;  %20411 = vst [vmem:[#allocation20_spill] sm:$0xff] %v11669_v34  ;;  %v698_v19 = vsel %vm693_vm4, %v695_v47, %v697_v7  ;;  %v1183_v21 = vsel %vm1178_vm5, %v1180_v48, %v1182_v44  ;;  %v2572_v62 = vmul.f32 %v11708_v46, %v11731_v61 }
  0x3b   :  { %205 = vst.msk [vmem:[#allocation2 + $0xc1] sm:$0xff] %vm38_vm1, %v11650_v30  ;;  %20412 = vst [vmem:[#allocation21_spill] sm:$0xff] %v11676_v35  ;;  %v919_v49 = vadd.f32 %v698_v19, %v370_v60  ;;  %v2282_v15 = vrot.slane %v2089_v58, 2  ;;  %v3189_v0 = vmul.f32 %v11725_v56, %v11778_v53  ;;  %v2503_v14 = vadd.f32 %v2281_v45, %v2019_v20 }
  0x3c   :  { %206 = vst.msk [vmem:[#allocation2 + $0xc9] sm:$0xff] %vm38_vm1, %v11669_v34  ;;  %207 = vst.msk [vmem:[#allocation2 + $0xd9] sm:$0xff] %vm38_vm1, %v11676_v35  ;;  %v504_v47 = vmul.f32 %v11626_v26, %v11698_v41  ;;  %v371_v19 = vmul.f32 %v11621_v25, %v11698_v41  ;;  %v11800_v60 = vmul.f32 %v11626_v26, %v11700_v42 }
  0x3d   :  { %20413 = vst [vmem:[#allocation22_spill] sm:$0xff] %v11758_v22  ;;  %20414 = vst [vmem:[#allocation23_spill] sm:$0xff] %v11763_v63  ;;  %v1404_v37 = vadd.f32 %v1183_v21, %v919_v49  ;;  %v2283_v48 = vsel %vm1178_vm5, %v2280_v1, %v2282_v15  ;;  %v2635_v36 = vadd.f32 %v2571_v38, %v2503_v14  ;;  %v3382_v7 = vrot.slane %v3189_v0, 2 }
  0x3e   :  { %208 = vst.msk [vmem:[#allocation2 + $0xe1] sm:$0xff] %vm38_vm1, %v11758_v22  ;;  %20415 = vst [vmem:[#allocation24_spill] sm:$0xff] %v11772_v31  ;;  %v699_v44 = vrot.slane %v504_v47, 1  ;;  %v989_v20 = vmul.f32 %v11631_v27, %v11698_v41  ;;  %v700_v21 = vrot.slane %v11800_v60, 1  ;;  %v11808_v15 = vmul.f32 %v11631_v27, %v11700_v42  ;;  %v11820_v47 = vld [vmem:[#allocation2 + $0x48] sm:$0xff] }
  0x3f   :  { %209 = vst.msk [vmem:[#allocation2 + $0xf1] sm:$0xff] %vm38_vm1, %v11763_v63  ;;  %210 = vst.msk [vmem:[#allocation2 + $0xf9] sm:$0xff] %vm38_vm1, %v11772_v31  ;;  %v1799_v63 = vsel %vm693_vm4, %v1796_v59, %v1798_v55  ;;  %v2898_v31 = vrot.slane %v2705_v16, 1  ;;  %v1536_v16 = vadd.f32 %v1472_v50, %v1404_v37  ;;  %v3119_v1 = vadd.f32 %v2897_v52, %v2635_v36 }
  0x40   :  { %v1184_v45 = vrot.slane %v989_v20, 2  ;;  %v1473_v55 = vmul.f32 %v11687_v39, %v11716_v51  ;;  %v1606_v14 = vmul.f32 %v11655_v32, %v11716_v51  ;;  %v701_v41 = vsel %vm693_vm4, %v699_v44, %v700_v21  ;;  %v11827_v44 = vld [vmem:[#allocation2 + $0x50] sm:$0xff] }
  0x41   :  { %v2899_v59 = vsel %vm693_vm4, %v2896_v43, %v2898_v31  ;;  %v2020_v38 = vadd.f32 %v1799_v63, %v1536_v16  ;;  %v1185_v50 = vrot.slane %v11808_v15, 2  ;;  %v1607_v43 = vmul.f32 %v11655_v32, %v11731_v61 }
  0x42   :  { %v3603_v31 = vadd.f32 %v3381_v57, %v3119_v1  ;;  %v920_v58 = vadd.f32 %v701_v41, %v371_v19  ;;  %v1800_v49 = vrot.slane %v1606_v14, 1  ;;  %v2090_v52 = vmul.f32 %v11660_v33, %v11716_v51 }
  0x43   :  { %v2504_v0 = vadd.f32 %v2283_v48, %v2020_v38  ;;  %v1186_v37 = vsel %vm1178_vm5, %v1184_v45, %v1185_v50  ;;  %v1801_v60 = vrot.slane %v1607_v43, 1  ;;  %v2091_v63 = vmul.f32 %v11660_v33, %v11731_v61  ;;  %v11837_v45 = vld [vmem:[%s20164_s0 + $0xa0] sm:$0xff] }
  0x44   :  { %10982 = vmatprep.mubr.msk.f32.mxu0 %vm38_vm1, %v3603_v31  ;;  %v3383_v36 = vsel %vm1178_vm5, %v3380_v4, %v3382_v7  ;;  %v1405_v57 = vadd.f32 %v1186_v37, %v920_v58  ;;  %v2284_v19 = vrot.slane %v2090_v52, 2  ;;  %v2706_v20 = vmul.f32 %v11692_v40, %v11820_v47  ;;  %20416 = vst [vmem:[#allocation25_spill] sm:$0xff] %v11837_v45  ;;  %v11842_v4 = vld [vmem:[%s20164_s0 + $0xa8] sm:$0xff] }
  0x45   :  { %v2636_v48 = vadd.f32 %v2572_v62, %v2504_v0  ;;  %v1802_v16 = vsel %vm693_vm4, %v1800_v49, %v1801_v60  ;;  %v2285_v15 = vrot.slane %v2091_v63, 2  ;;  %v2707_v1 = vmul.f32 %v11692_v40, %v11827_v44  ;;  %20417 = vst [vmem:[#allocation26_spill] sm:$0xff] %v11842_v4  ;;  %211 = vst.msk [vmem:[#allocation2 + $0x109] sm:$0xff] %vm38_vm1, %v11837_v45 }
  0x46   :  { %v1537_v7 = vadd.f32 %v1473_v55, %v1405_v57  ;;  %v2900_v14 = vrot.slane %v2706_v20, 1  ;;  %v3190_v62 = vmul.f32 %v11725_v56, %v11820_v47  ;;  %v3191_v38 = vmul.f32 %v11725_v56, %v11827_v44  ;;  %212 = vst.msk [vmem:[#allocation2 + $0x111] sm:$0xff] %vm38_vm1, %v11842_v4  ;;  %v11862_v20 = vld [vmem:[#allocation2 + $0x58] sm:$0x3] }
  0x47   :  { %v3120_v41 = vadd.f32 %v2899_v59, %v2636_v48  ;;  %v2286_v43 = vsel %vm1178_vm5, %v2284_v19, %v2285_v15  ;;  %v2573_v31 = vmul.f32 %v11708_v46, %v11820_v47  ;;  %v2901_v55 = vrot.slane %v2707_v1, 1 }
  0x48   :  { %v2021_v58 = vadd.f32 %v1802_v16, %v1537_v7  ;;  %v3384_v49 = vrot.slane %v3190_v62, 2  ;;  %v3385_v52 = vrot.slane %v3191_v38, 2  ;;  %v506_v0 = vmul.f32 %v11626_v26, %v11747_v54 }
  0x49   :  { %v3604_v37 = vadd.f32 %v3383_v36, %v3120_v41  ;;  %v2902_v63 = vsel %vm693_vm4, %v2900_v14, %v2901_v55  ;;  %v372_v57 = vmul.f32 %v11621_v25, %v11700_v42  ;;  %v991_v59 = vmul.f32 %v11631_v27, %v11747_v54 }
  0x4a   :  { %v2505_v19 = vadd.f32 %v2286_v43, %v2021_v58  ;;  %v702_v48 = vrot.slane %v506_v0, 1  ;;  %v1474_v16 = vmul.f32 %v11687_v39, %v11731_v61  ;;  %v1608_v1 = vmul.f32 %v11655_v32, %v11778_v53 }
  0x4b   :  { %10983 = vmatmul.mubr.msk.f32.vlgmr.msra.gmra.mrb[0].mxu0 %vm38_vm1, %v3604_v37  ;;  %v3386_v36 = vsel %vm1178_vm5, %v3384_v49, %v3385_v52  ;;  %v1187_v7 = vrot.slane %v991_v59, 2  ;;  %v2092_v42 = vmul.f32 %v11660_v33, %v11778_v53  ;;  %v2708_v54 = vmul.f32 %v11692_v40, %v11862_v20 }
  0x4c   :  { %v2637_v14 = vadd.f32 %v2573_v31, %v2505_v19  ;;  %v703_v62 = vsel %vm693_vm4, %v700_v21, %v702_v48  ;;  %v1803_v38 = vrot.slane %v1608_v1, 1  ;;  %v3192_v41 = vmul.f32 %v11725_v56, %v11862_v20 }
  0x4d   :  { %v921_v43 = vadd.f32 %v703_v62, %v372_v57  ;;  %v1188_v58 = vsel %vm1178_vm5, %v1185_v50, %v1187_v7  ;;  %v2287_v0 = vrot.slane %v2092_v42, 2  ;;  %v2903_v37 = vrot.slane %v2708_v54, 1 }
  0x4e   :  { %v3121_v49 = vadd.f32 %v2902_v63, %v2637_v14  ;;  %v1804_v59 = vsel %vm693_vm4, %v1801_v60, %v1803_v38  ;;  %v2574_v4 = vmul.f32 %v11708_v46, %v11827_v44  ;;  %v3387_v22 = vrot.slane %v3192_v41, 2 }
  0x4f   :  { %v1406_v45 = vadd.f32 %v1188_v58, %v921_v43  ;;  %v373_v21 = vmul.f32 %v11621_v25, %v11716_v51  ;;  %v507_v31 = vmul.f32 %v11626_v26, %v11716_v51  ;;  %v2288_v57 = vsel %vm1178_vm5, %v2285_v15, %v2287_v0  ;;  %v11912_v58 = vld [vmem:[#allocation2 + $0x60] sm:$0xff]  ;;  %v11914_v0 = vld [vmem:[#allocation2 + $0x68] sm:$0xff] }
  0x50   :  { %v3605_v19 = vadd.f32 %v3386_v36, %v3121_v49  ;;  %v11888_v50 = vmul.f32 %v11626_v26, %v11731_v61  ;;  %v992_v60 = vmul.f32 %v11631_v27, %v11716_v51  ;;  %v2904_v48 = vsel %vm693_vm4, %v2901_v55, %v2903_v37 }
  0x51   :  { %v1538_v63 = vadd.f32 %v1474_v16, %v1406_v45  ;;  %v704_v1 = vrot.slane %v507_v31, 1  ;;  %v993_v7 = vmul.f32 %v11631_v27, %v11731_v61  ;;  %v1609_v15 = vmul.f32 %v11655_v32, %v11820_v47 }
  0x52   :  { %10985 = vmatprep.mubr.msk.f32.mxu0 %vm38_vm1, %v3605_v19  ;;  %v705_v36 = vrot.slane %v11888_v50, 1  ;;  %v1189_v42 = vrot.slane %v992_v60, 2  ;;  %v11901_v54 = vmul.f32 %v11655_v32, %v11827_v44  ;;  %v2093_v55 = vmul.f32 %v11660_v33, %v11820_v47 }
  0x53   :  { %v2022_v51 = vadd.f32 %v1804_v59, %v1538_v63  ;;  %v1190_v45 = vrot.slane %v993_v7, 2  ;;  %v11907_v16 = vmul.f32 %v11660_v33, %v11827_v44  ;;  %v3388_v14 = vsel %vm1178_vm5, %v3385_v52, %v3387_v22 }
  0x54   :  { %v706_v62 = vsel %vm693_vm4, %v704_v1, %v705_v36  ;;  %v1805_v38 = vrot.slane %v1609_v15, 1  ;;  %v1806_v41 = vrot.slane %v11901_v54, 1  ;;  %v1475_v59 = vmul.f32 %v11687_v39, %v11820_v47 }
  0x55   :  { %v2506_v43 = vadd.f32 %v2288_v57, %v2022_v51  ;;  %v922_v37 = vadd.f32 %v706_v62, %v373_v21  ;;  %v1191_v49 = vsel %vm1178_vm5, %v1189_v42, %v1190_v45  ;;  %v2289_v31 = vrot.slane %v2093_v55, 2  ;;  %v11929_v57 = vld [vmem:[%s20164_s0 + $0xb0] sm:$0xff]  ;;  %v11934_v21 = vld [vmem:[%s20164_s0 + $0xb8] sm:$0xff] }
  0x56   :  { %v2290_v19 = vrot.slane %v11907_v16, 2  ;;  %v2709_v22 = vmul.f32 %v11692_v40, %v11912_v58  ;;  %v11924_v52 = vmul.f32 %v11692_v40, %v11914_v0  ;;  %20418 = vst [vmem:[#allocation27_spill] sm:$0xff] %v11929_v57  ;;  %20419 = vst [vmem:[#allocation28_spill] sm:$0xff] %v11934_v21  ;;  %v3193_v63 = vmul.f32 %v11725_v56, %v11912_v58 }
  0x57   :  { %v2638_v50 = vadd.f32 %v2574_v4, %v2506_v43  ;;  %v1407_v60 = vadd.f32 %v1191_v49, %v922_v37  ;;  %v11940_v1 = vmul.f32 %v11725_v56, %v11914_v0  ;;  %213 = vst.msk [vmem:[#allocation2 + $0x121] sm:$0xff] %vm38_vm1, %v11929_v57  ;;  %214 = vst.msk [vmem:[#allocation2 + $0x129] sm:$0xff] %vm38_vm1, %v11934_v21 }
  0x58   :  { %v1807_v7 = vsel %vm693_vm4, %v1805_v38, %v1806_v41  ;;  %v2575_v42 = vmul.f32 %v11708_v46, %v11912_v58  ;;  %v2905_v4 = vrot.slane %v2709_v22, 1  ;;  %v2906_v15 = vrot.slane %v11924_v52, 1 }
  0x59   :  { %v3122_v54 = vadd.f32 %v2904_v48, %v2638_v50  ;;  %v1539_v51 = vadd.f32 %v1475_v59, %v1407_v60  ;;  %v3389_v55 = vrot.slane %v3193_v63, 2  ;;  %v3390_v16 = vrot.slane %v11940_v1, 2  ;;  %v11961_v59 = vld [vmem:[#allocation2 + $0x70] sm:$0x3] }
  0x5a   :  { %v2291_v62 = vsel %vm1178_vm5, %v2289_v31, %v2290_v19  ;;  %v374_v43 = vmul.f32 %v11621_v25, %v11731_v61  ;;  %v509_v37 = vmul.f32 %v11626_v26, %v11778_v53  ;;  %v994_v38 = vmul.f32 %v11631_v27, %v11778_v53 }
  0x5b   :  { %v3606_v49 = vadd.f32 %v3388_v14, %v3122_v54  ;;  %v2023_v22 = vadd.f32 %v1807_v7, %v1539_v51  ;;  %v2907_v52 = vsel %vm693_vm4, %v2905_v4, %v2906_v15  ;;  %v1611_v48 = vmul.f32 %v11655_v32, %v11862_v20 }
  0x5c   :  { %v707_v50 = vrot.slane %v509_v37, 1  ;;  %v1192_v31 = vrot.slane %v994_v38, 2  ;;  %v1476_v61 = vmul.f32 %v11687_v39, %v11827_v44  ;;  %v2095_v60 = vmul.f32 %v11660_v33, %v11862_v20 }
  0x5d   :  { %10986 = vmatmul.mubr.msk.f32.gmra.mrb[2].mxu0 %vm38_vm1, %v3606_v49  ;;  %v2507_v53 = vadd.f32 %v2291_v62, %v2023_v22  ;;  %v3391_v14 = vsel %vm1178_vm5, %v3389_v55, %v3390_v16  ;;  %v1808_v63 = vrot.slane %v1611_v48, 1  ;;  %v2711_v7 = vmul.f32 %v11692_v40, %v11961_v59 }
  0x5e   :  { %v708_v4 = vsel %vm693_vm4, %v705_v36, %v707_v50  ;;  %v1193_v54 = vsel %vm1178_vm5, %v1190_v45, %v1192_v31  ;;  %v2292_v51 = vrot.slane %v2095_v60, 2  ;;  %v3195_v37 = vmul.f32 %v11725_v56, %v11961_v59 }
  0x5f   :  { %v2639_v38 = vadd.f32 %v2575_v42, %v2507_v53  ;;  %v923_v21 = vadd.f32 %v708_v4, %v374_v43  ;;  %v2576_v62 = vmul.f32 %v11708_v46, %v11914_v0  ;;  %v375_v55 = vmul.f32 %v11621_v25, %v11820_v47 }
  0x60   :  { %v1809_v49 = vsel %vm693_vm4, %v1806_v41, %v1808_v63  ;;  %v2908_v22 = vrot.slane %v2711_v7, 1  ;;  %v510_v36 = vmul.f32 %v11626_v26, %v11820_v47  ;;  %v11986_v45 = vmul.f32 %v11626_v26, %v11827_v44 }
  0x61   :  { %v3123_v48 = vadd.f32 %v2907_v52, %v2639_v38  ;;  %v1408_v50 = vadd.f32 %v1193_v54, %v923_v21  ;;  %v2293_v42 = vsel %vm1178_vm5, %v2290_v19, %v2292_v51  ;;  %v995_v43 = vmul.f32 %v11631_v27, %v11820_v47 }
  0x62   :  { %v3392_v31 = vrot.slane %v3195_v37, 2  ;;  %v709_v60 = vrot.slane %v510_v36, 1  ;;  %v710_v53 = vrot.slane %v11986_v45, 1  ;;  %v11994_v41 = vmul.f32 %v11631_v27, %v11827_v44 }
  0x63   :  { %v3607_v63 = vadd.f32 %v3391_v14, %v3123_v48  ;;  %v1540_v7 = vadd.f32 %v1476_v61, %v1408_v50  ;;  %v1194_v4 = vrot.slane %v995_v43, 2  ;;  %v1477_v52 = vmul.f32 %v11687_v39, %v11912_v58  ;;  %v12013_v43 = vld [vmem:[#allocation2 + $0x78] sm:$0xff] }
  0x64   :  { %v711_v21 = vsel %vm693_vm4, %v709_v60, %v710_v53  ;;  %v1195_v19 = vrot.slane %v11994_v41, 2  ;;  %v1612_v47 = vmul.f32 %v11655_v32, %v11912_v58  ;;  %v1613_v54 = vmul.f32 %v11655_v32, %v11914_v0  ;;  %v12015_v60 = vld [vmem:[#allocation2 + $0x80] sm:$0xff] }
  0x65   :  { %10988 = vmatprep.mubr.msk.f32.mxu0 %vm38_vm1, %v3607_v63  ;;  %v2024_v51 = vadd.f32 %v1809_v49, %v1540_v7  ;;  %v924_v37 = vadd.f32 %v711_v21, %v375_v55  ;;  %v2096_v61 = vmul.f32 %v11660_v33, %v11912_v58  ;;  %v12009_v14 = vmul.f32 %v11660_v33, %v11914_v0 }
  0x66   :  { %v2909_v38 = vsel %vm693_vm4, %v2906_v15, %v2908_v22  ;;  %v1196_v36 = vsel %vm1178_vm5, %v1194_v4, %v1195_v19  ;;  %v1810_v45 = vrot.slane %v1612_v47, 1  ;;  %v1811_v48 = vrot.slane %v1613_v54, 1  ;;  %v12035_v4 = vld [vmem:[%s20164_s0 + $0xc8] sm:$0xff] }
  0x67   :  { %v2508_v50 = vadd.f32 %v2293_v42, %v2024_v51  ;;  %v1409_v49 = vadd.f32 %v1196_v36, %v924_v37  ;;  %v2294_v55 = vrot.slane %v2096_v61, 2  ;;  %v2295_v41 = vrot.slane %v12009_v14, 2  ;;  %v12030_v42 = vld [vmem:[%s20164_s0 + $0xc0] sm:$0xff]  ;;  %20421 = vst [vmem:[#allocation30_spill] sm:$0xff] %v12035_v4  ;;  %216 = vst.msk [vmem:[#allocation2 + $0x141] sm:$0xff] %vm38_vm1, %v12035_v4 }
  0x68   :  { %v1812_v63 = vsel %vm693_vm4, %v1810_v45, %v1811_v48  ;;  %v2712_v7 = vmul.f32 %v11692_v40, %v12013_v43  ;;  %v12023_v15 = vmul.f32 %v11692_v40, %v12015_v60  ;;  %v3196_v22 = vmul.f32 %v11725_v56, %v12013_v43  ;;  %20420 = vst [vmem:[#allocation29_spill] sm:$0xff] %v12030_v42 }
  0x69   :  { %v2640_v21 = vadd.f32 %v2576_v62, %v2508_v50  ;;  %v3393_v47 = vsel %vm1178_vm5, %v3390_v16, %v3392_v31  ;;  %v1541_v54 = vadd.f32 %v1477_v52, %v1409_v49  ;;  %v12042_v51 = vmul.f32 %v11725_v56, %v12015_v60  ;;  %215 = vst.msk [vmem:[#allocation2 + $0x139] sm:$0xff] %vm38_vm1, %v12030_v42 }
  0x6a   :  { %v2296_v37 = vsel %vm1178_vm5, %v2294_v55, %v2295_v41  ;;  %v2577_v62 = vmul.f32 %v11708_v46, %v12013_v43  ;;  %v2910_v61 = vrot.slane %v2712_v7, 1  ;;  %v2911_v1 = vrot.slane %v12023_v15, 1  ;;  %v12062_v15 = vld [vmem:[#allocation2 + $0x88] sm:$0x3] }
  0x6b   :  { %v3124_v16 = vadd.f32 %v2909_v38, %v2640_v21  ;;  %v2025_v31 = vadd.f32 %v1812_v63, %v1541_v54  ;;  %v3394_v52 = vrot.slane %v3196_v22, 2  ;;  %v512_v14 = vmul.f32 %v11626_v26, %v11862_v20 }
  0x6c   :  { %v376_v45 = vmul.f32 %v11621_v25, %v11827_v44  ;;  %v997_v50 = vmul.f32 %v11631_v27, %v11862_v20  ;;  %v1614_v49 = vmul.f32 %v11655_v32, %v11961_v59  ;;  %v2912_v38 = vsel %vm693_vm4, %v2910_v61, %v2911_v1 }
  0x6d   :  { %v3608_v55 = vadd.f32 %v3393_v47, %v3124_v16  ;;  %v2509_v7 = vadd.f32 %v2296_v37, %v2025_v31  ;;  %v712_v63 = vrot.slane %v512_v14, 1  ;;  %v1478_v21 = vmul.f32 %v11687_v39, %v11914_v0 }
  0x6e   :  { %v1197_v22 = vrot.slane %v997_v50, 2  ;;  %v1813_v54 = vrot.slane %v1614_v49, 1  ;;  %v2098_v44 = vmul.f32 %v11660_v33, %v11961_v59  ;;  %v2714_v47 = vmul.f32 %v11692_v40, %v12062_v15 }
  0x6f   :  { %10989 = vmatmul.mubr.msk.f32.gmra.mrb[4].mxu0 %vm38_vm1, %v3608_v55  ;;  %v2641_v20 = vadd.f32 %v2577_v62, %v2509_v7  ;;  %v713_v36 = vsel %vm693_vm4, %v710_v53, %v712_v63  ;;  %v3198_v37 = vmul.f32 %v11725_v56, %v12062_v15  ;;  %v20422_v61 = vrot.slane %v12042_v51, 2 }
  0x70   :  { %v925_v31 = vadd.f32 %v713_v36, %v376_v45  ;;  %v1198_v14 = vsel %vm1178_vm5, %v1195_v19, %v1197_v22  ;;  %v2297_v50 = vrot.slane %v2098_v44, 2  ;;  %v1814_v55 = vsel %vm693_vm4, %v1811_v48, %v1813_v54 }
  0x71   :  { %v3396_v16 = vsel %vm1178_vm5, %v3394_v52, %v20422_v61  ;;  %v3125_v49 = vadd.f32 %v2912_v38, %v2641_v20  ;;  %v2578_v53 = vmul.f32 %v11708_v46, %v12015_v60  ;;  %v2913_v62 = vrot.slane %v2714_v47, 1 }
  0x72   :  { %v1410_v7 = vadd.f32 %v1198_v14, %v925_v31  ;;  %v3397_v63 = vrot.slane %v3198_v37, 2  ;;  %v513_v4 = vmul.f32 %v11626_v26, %v11912_v58  ;;  %v12085_v42 = vmul.f32 %v11626_v26, %v11914_v0 }
  0x73   :  { %v3609_v52 = vadd.f32 %v3396_v16, %v3125_v49  ;;  %v2298_v19 = vsel %vm1178_vm5, %v2295_v41, %v2297_v50  ;;  %v377_v36 = vmul.f32 %v11621_v25, %v11912_v58  ;;  %v998_v48 = vmul.f32 %v11631_v27, %v11912_v58  ;;  %v12108_v49 = vld [vmem:[#allocation2 + $0x90] sm:$0xff] }
  0x74   :  { %v1542_v45 = vadd.f32 %v1478_v21, %v1410_v7  ;;  %v714_v38 = vrot.slane %v513_v4, 1  ;;  %v715_v22 = vrot.slane %v12085_v42, 1  ;;  %v999_v54 = vmul.f32 %v11631_v27, %v11914_v0 }
  0x75   :  { %10991 = vmatprep.mubr.msk.f32.mxu0 %vm38_vm1, %v3609_v52  ;;  %v1199_v44 = vrot.slane %v998_v48, 2  ;;  %v1479_v20 = vmul.f32 %v11687_v39, %v12013_v43  ;;  %v1615_v41 = vmul.f32 %v11655_v32, %v12013_v43  ;;  %v1616_v47 = vmul.f32 %v11655_v32, %v12015_v60  ;;  %v12111_v52 = vld [vmem:[#allocation2 + $0x98] sm:$0xff] }
  0x76   :  { %v2026_v58 = vadd.f32 %v1814_v55, %v1542_v45  ;;  %v716_v4 = vsel %vm693_vm4, %v714_v38, %v715_v22  ;;  %v1200_v21 = vrot.slane %v999_v54, 2  ;;  %v2099_v42 = vmul.f32 %v11660_v33, %v12013_v43 }
  0x77   :  { %v926_v37 = vadd.f32 %v716_v4, %v377_v36  ;;  %v1815_v61 = vrot.slane %v1615_v41, 1  ;;  %v1816_v16 = vrot.slane %v1616_v47, 1  ;;  %v2100_v31 = vmul.f32 %v11660_v33, %v12015_v60 }
  0x78   :  { %v2510_v14 = vadd.f32 %v2298_v19, %v2026_v58  ;;  %v2914_v50 = vsel %vm693_vm4, %v2911_v1, %v2913_v62  ;;  %v1201_v7 = vsel %vm1178_vm5, %v1199_v44, %v1200_v21  ;;  %v2299_v55 = vrot.slane %v2099_v42, 2  ;;  %v12119_v19 = vld [vmem:[%s20164_s0 + $0xd0] sm:$0xff]  ;;  %v12124_v1 = vld [vmem:[%s20164_s0 + $0xd8] sm:$0xff] }
  0x79   :  { %v1411_v48 = vadd.f32 %v1201_v7, %v926_v37  ;;  %v1817_v45 = vsel %vm693_vm4, %v1815_v61, %v1816_v16  ;;  %v2300_v38 = vrot.slane %v2100_v31, 2  ;;  %v2715_v36 = vmul.f32 %v11692_v40, %v12108_v49  ;;  %20423 = vst [vmem:[#allocation31_spill] sm:$0xff] %v12119_v19  ;;  %20424 = vst [vmem:[#allocation32_spill] sm:$0xff] %v12124_v1 }
  0x7a   :  { %v2642_v62 = vadd.f32 %v2578_v53, %v2510_v14  ;;  %v12128_v54 = vmul.f32 %v11692_v40, %v12111_v52  ;;  %v3199_v44 = vmul.f32 %v11725_v56, %v12108_v49  ;;  %v12134_v41 = vmul.f32 %v11725_v56, %v12111_v52  ;;  %217 = vst.msk [vmem:[#allocation2 + $0x151] sm:$0xff] %vm38_vm1, %v12119_v19 }
  0x7b   :  { %218 = vst.msk [vmem:[#allocation2 + $0x159] sm:$0xff] %vm38_vm1, %v12124_v1  ;;  %v20425_v47 = vrot.slane %v12042_v51, 2  ;;  %v1543_v58 = vadd.f32 %v1479_v20, %v1411_v48  ;;  %v2301_v4 = vsel %vm1178_vm5, %v2299_v55, %v2300_v38  ;;  %v2579_v42 = vmul.f32 %v11708_v46, %v12108_v49 }
  0x7c   :  { %v3126_v37 = vadd.f32 %v2914_v50, %v2642_v62  ;;  %v2915_v61 = vrot.slane %v2715_v36, 1  ;;  %v2916_v31 = vrot.slane %v12128_v54, 1  ;;  %v378_v14 = vmul.f32 %v11621_v25, %v11914_v0  ;;  %v12158_v62 = vld [vmem:[#allocation2 + $0xa0] sm:$0x3] }
  0x7d   :  { %v3398_v53 = vsel %vm1178_vm5, %v20425_v47, %v3397_v63  ;;  %v2027_v7 = vadd.f32 %v1817_v45, %v1543_v58  ;;  %v3399_v19 = vrot.slane %v3199_v44, 2  ;;  %v515_v51 = vmul.f32 %v11626_v26, %v11961_v59 }
  0x7e   :  { %v1000_v63 = vmul.f32 %v11631_v27, %v11961_v59  ;;  %v3610_v20 = vadd.f32 %v3398_v53, %v3126_v37  ;;  %v3400_v55 = vrot.slane %v12134_v41, 2  ;;  %v1480_v50 = vmul.f32 %v11687_v39, %v12015_v60 }
  0x7f   :  { %v1617_v48 = vmul.f32 %v11655_v32, %v12062_v15  ;;  %v2511_v36 = vadd.f32 %v2301_v4, %v2027_v7  ;;  %v717_v0 = vrot.slane %v515_v51, 1  ;;  %v2101_v54 = vmul.f32 %v11660_v33, %v12062_v15 }
  0x80   :  { %v1202_v45 = vrot.slane %v1000_v63, 2  ;;  %10992 = vmatmul.mubr.msk.f32.gmra.mrb[6].mxu0 %vm38_vm1, %v3610_v20  ;;  %v2917_v59 = vsel %vm693_vm4, %v2915_v61, %v2916_v31  ;;  %v2717_v41 = vmul.f32 %v11692_v40, %v12158_v62  ;;  %v3201_v47 = vmul.f32 %v11725_v56, %v12158_v62 }
  0x81   :  { %v1818_v44 = vrot.slane %v1617_v48, 1  ;;  %v2643_v53 = vadd.f32 %v2579_v42, %v2511_v36  ;;  %v718_v58 = vsel %vm693_vm4, %v715_v22, %v717_v0  ;;  %v2302_v37 = vrot.slane %v2101_v54, 2 }
  0x82   :  { %v1203_v4 = vsel %vm1178_vm5, %v1200_v21, %v1202_v45  ;;  %v3401_v7 = vsel %vm1178_vm5, %v3399_v19, %v3400_v55  ;;  %v927_v51 = vadd.f32 %v718_v58, %v378_v14  ;;  %v2580_v61 = vmul.f32 %v11708_v46, %v12111_v52 }
  0x83   :  { %v1819_v63 = vsel %vm693_vm4, %v1816_v16, %v1818_v44  ;;  %v3127_v20 = vadd.f32 %v2917_v59, %v2643_v53  ;;  %v2918_v48 = vrot.slane %v2717_v41, 1  ;;  %v3402_v1 = vrot.slane %v3201_v47, 2 }
  0x84   :  { %v516_v57 = vmul.f32 %v11626_v26, %v12013_v43  ;;  %v1412_v42 = vadd.f32 %v1203_v4, %v927_v51  ;;  %v2303_v22 = vsel %vm1178_vm5, %v2300_v38, %v2302_v37  ;;  %v379_v21 = vmul.f32 %v11621_v25, %v12013_v43  ;;  %v12202_v4 = vld [vmem:[#allocation2 + $0xa8] sm:$0xff] }
  0x85   :  { %v12181_v19 = vmul.f32 %v11626_v26, %v12015_v60  ;;  %v3611_v16 = vadd.f32 %v3401_v7, %v3127_v20  ;;  %v1001_v36 = vmul.f32 %v11631_v27, %v12013_v43  ;;  %v1002_v0 = vmul.f32 %v11631_v27, %v12015_v60 }
  0x86   :  { %v719_v14 = vrot.slane %v516_v57, 1  ;;  %v1544_v45 = vadd.f32 %v1480_v50, %v1412_v42  ;;  %v1481_v38 = vmul.f32 %v11687_v39, %v12108_v49  ;;  %v1618_v59 = vmul.f32 %v11655_v32, %v12108_v49 }
  0x87   :  { %v720_v54 = vrot.slane %v12181_v19, 1  ;;  %10994 = vmatprep.mubr.msk.f32.mxu0 %vm38_vm1, %v3611_v16  ;;  %v1204_v44 = vrot.slane %v1001_v36, 2  ;;  %v1205_v41 = vrot.slane %v1002_v0, 2  ;;  %v1619_v57 = vmul.f32 %v11655_v32, %v12111_v52  ;;  %v12206_v16 = vld [vmem:[#allocation2 + $0xb0] sm:$0xff] }
  0x88   :  { %v2102_v43 = vmul.f32 %v11660_v33, %v12108_v49  ;;  %v2028_v47 = vadd.f32 %v1819_v63, %v1544_v45  ;;  %v1820_v53 = vrot.slane %v1618_v59, 1  ;;  %v12200_v58 = vmul.f32 %v11660_v33, %v12111_v52 }
  0x89   :  { %v721_v50 = vsel %vm693_vm4, %v719_v14, %v720_v54  ;;  %v1206_v7 = vsel %vm1178_vm5, %v1204_v44, %v1205_v41  ;;  %v1821_v51 = vrot.slane %v1619_v57, 1  ;;  %v2919_v19 = vsel %vm693_vm4, %v2916_v31, %v2918_v48  ;;  %v12221_v31 = vld [vmem:[%s20164_s0 + $0xe0] sm:$0xff]  ;;  %v12226_v48 = vld [vmem:[%s20164_s0 + $0xe8] sm:$0xff] }
  0x8a   :  { %v928_v37 = vadd.f32 %v721_v50, %v379_v21  ;;  %v2304_v20 = vrot.slane %v2102_v43, 2  ;;  %v2512_v42 = vadd.f32 %v2303_v22, %v2028_v47  ;;  %v2305_v63 = vrot.slane %v12200_v58, 2  ;;  %20426 = vst [vmem:[#allocation33_spill] sm:$0xff] %v12221_v31  ;;  %20427 = vst [vmem:[#allocation34_spill] sm:$0xff] %v12226_v48 }
  0x8b   :  { %v2718_v14 = vmul.f32 %v11692_v40, %v12202_v4  ;;  %v3403_v36 = vsel %vm1178_vm5, %v3400_v55, %v3402_v1  ;;  %v12214_v21 = vmul.f32 %v11692_v40, %v12206_v16  ;;  %v3202_v45 = vmul.f32 %v11725_v56, %v12202_v4  ;;  %219 = vst.msk [vmem:[#allocation2 + $0x169] sm:$0xff] %vm38_vm1, %v12221_v31 }
  0x8c   :  { %v1413_v0 = vadd.f32 %v1206_v7, %v928_v37  ;;  %v2644_v22 = vadd.f32 %v2580_v61, %v2512_v42  ;;  %v1822_v1 = vsel %vm693_vm4, %v1820_v53, %v1821_v51  ;;  %v12231_v59 = vmul.f32 %v11725_v56, %v12206_v16  ;;  %220 = vst.msk [vmem:[#allocation2 + $0x171] sm:$0xff] %vm38_vm1, %v12226_v48 }
  0x8d   :  { %v2920_v55 = vrot.slane %v2718_v14, 1  ;;  %v2306_v57 = vsel %vm1178_vm5, %v2304_v20, %v2305_v63  ;;  %v2581_v43 = vmul.f32 %v11708_v46, %v12202_v4  ;;  %v2921_v61 = vrot.slane %v12214_v21, 1 }
  0x8e   :  { %v1545_v44 = vadd.f32 %v1481_v38, %v1413_v0  ;;  %v3128_v47 = vadd.f32 %v2919_v19, %v2644_v22  ;;  %v3404_v50 = vrot.slane %v3202_v45, 2  ;;  %v518_v53 = vmul.f32 %v11626_v26, %v12062_v15  ;;  %v12251_v45 = vld [vmem:[#allocation2 + $0xb8] sm:$0x3] }
  0x8f   :  { %v1003_v58 = vmul.f32 %v11631_v27, %v12062_v15  ;;  %v3405_v7 = vrot.slane %v12231_v59, 2  ;;  %v380_v38 = vmul.f32 %v11621_v25, %v12015_v60  ;;  %v1620_v20 = vmul.f32 %v11655_v32, %v12158_v62 }
  0x90   :  { %v2029_v37 = vadd.f32 %v1822_v1, %v1545_v44  ;;  %v3612_v42 = vadd.f32 %v3403_v36, %v3128_v47  ;;  %v2922_v14 = vsel %vm693_vm4, %v2920_v55, %v2921_v61  ;;  %v722_v19 = vrot.slane %v518_v53, 1 }
  0x91   :  { %v1207_v0 = vrot.slane %v1003_v58, 2  ;;  %v1482_v15 = vmul.f32 %v11687_v39, %v12111_v52  ;;  %v1823_v22 = vrot.slane %v1620_v20, 1  ;;  %v2104_v1 = vmul.f32 %v11660_v33, %v12158_v62 }
  0x92   :  { %v2513_v21 = vadd.f32 %v2306_v57, %v2029_v37  ;;  %10995 = vmatmul.mubr.msk.f32.gmra.mrb[8].mxu0 %vm38_vm1, %v3612_v42  ;;  %v723_v60 = vsel %vm693_vm4, %v720_v54, %v722_v19  ;;  %v2720_v55 = vmul.f32 %v11692_v40, %v12251_v45  ;;  %v3204_v44 = vmul.f32 %v11725_v56, %v12251_v45 }
  0x93   :  { %v1208_v36 = vsel %vm1178_vm5, %v1205_v41, %v1207_v0  ;;  %v3406_v47 = vsel %vm1178_vm5, %v3404_v50, %v3405_v7  ;;  %v929_v53 = vadd.f32 %v723_v60, %v380_v38  ;;  %v2307_v58 = vrot.slane %v2104_v1, 2 }
  0x94   :  { %v2645_v57 = vadd.f32 %v2581_v43, %v2513_v21  ;;  %v1824_v37 = vsel %vm693_vm4, %v1821_v51, %v1823_v22  ;;  %v2582_v54 = vmul.f32 %v11708_v46, %v12206_v16  ;;  %v2923_v20 = vrot.slane %v2720_v55, 1 }
  0x95   :  { %v519_v41 = vmul.f32 %v11626_v26, %v12108_v49  ;;  %v1414_v19 = vadd.f32 %v1208_v36, %v929_v53  ;;  %v3407_v0 = vrot.slane %v3204_v44, 2  ;;  %v12274_v43 = vmul.f32 %v11626_v26, %v12111_v52 }
  0x96   :  { %v3129_v42 = vadd.f32 %v2922_v14, %v2645_v57  ;;  %v2308_v50 = vsel %vm1178_vm5, %v2305_v63, %v2307_v58  ;;  %v381_v38 = vmul.f32 %v11621_v25, %v12108_v49  ;;  %v1004_v21 = vmul.f32 %v11631_v27, %v12108_v49 }
  0x97   :  { %v724_v51 = vrot.slane %v519_v41, 1  ;;  %v1546_v1 = vadd.f32 %v1482_v15, %v1414_v19  ;;  %v725_v60 = vrot.slane %v12274_v43, 1  ;;  %v12284_v14 = vmul.f32 %v11631_v27, %v12111_v52 }
  0x98   :  { %v3613_v22 = vadd.f32 %v3406_v47, %v3129_v42  ;;  %v1209_v36 = vrot.slane %v1004_v21, 2  ;;  %v1483_v55 = vmul.f32 %v11687_v39, %v12202_v4  ;;  %v1621_v63 = vmul.f32 %v11655_v32, %v12202_v4  ;;  %v12303_v21 = vld [vmem:[#allocation2 + $0xc0] sm:$0xff] }
  0x99   :  { %v12292_v44 = vmul.f32 %v11655_v32, %v12206_v16  ;;  %v2030_v49 = vadd.f32 %v1824_v37, %v1546_v1  ;;  %v726_v15 = vsel %vm693_vm4, %v724_v51, %v725_v60  ;;  %v1210_v57 = vrot.slane %v12284_v14, 2 }
  0x9a   :  { %10997 = vmatprep.mubr.msk.f32.mxu0 %vm38_vm1, %v3613_v22  ;;  %v2105_v47 = vmul.f32 %v11660_v33, %v12202_v4  ;;  %v930_v53 = vadd.f32 %v726_v15, %v381_v38  ;;  %v1825_v58 = vrot.slane %v1621_v63, 1  ;;  %v2106_v42 = vmul.f32 %v11660_v33, %v12206_v16  ;;  %v12306_v22 = vld [vmem:[#allocation2 + $0xc8] sm:$0xff] }
  0x9b   :  { %v1826_v41 = vrot.slane %v12292_v44, 1  ;;  %v2514_v19 = vadd.f32 %v2308_v50, %v2030_v49  ;;  %v2924_v43 = vsel %vm693_vm4, %v2921_v61, %v2923_v20  ;;  %v1211_v37 = vsel %vm1178_vm5, %v1209_v36, %v1210_v57 }
  0x9c   :  { %v2309_v51 = vrot.slane %v2105_v47, 2  ;;  %v1415_v1 = vadd.f32 %v1211_v37, %v930_v53  ;;  %v2310_v38 = vrot.slane %v2106_v42, 2  ;;  %v2721_v63 = vmul.f32 %v11692_v40, %v12303_v21  ;;  %v12330_v47 = vld [vmem:[%s20164_s0 + $0xf0] sm:$0xff] }
  0x9d   :  { %v1827_v14 = vsel %vm693_vm4, %v1825_v58, %v1826_v41  ;;  %v2646_v44 = vadd.f32 %v2582_v54, %v2514_v19  ;;  %v12313_v50 = vmul.f32 %v11692_v40, %v12306_v22  ;;  %v3205_v61 = vmul.f32 %v11725_v56, %v12303_v21  ;;  %20428 = vst [vmem:[#allocation35_spill] sm:$0xff] %v12330_v47 }
  0x9e   :  { %v12319_v20 = vmul.f32 %v11725_v56, %v12306_v22  ;;  %v3408_v36 = vsel %vm1178_vm5, %v3405_v7, %v3407_v0  ;;  %v1547_v49 = vadd.f32 %v1483_v55, %v1415_v1  ;;  %v2311_v15 = vsel %vm1178_vm5, %v2309_v51, %v2310_v38  ;;  %v12335_v56 = vld [vmem:[%s20164_s0 + $0xf8] sm:$0xff]  ;;  %221 = vst.msk [vmem:[#allocation2 + $0x181] sm:$0xff] %vm38_vm1, %v12330_v47 }
  0x9f   :  { %v2583_v54 = vmul.f32 %v11708_v46, %v12303_v21  ;;  %20429 = vst [vmem:[#allocation36_spill] sm:$0xff] %v12335_v56  ;;  %v3130_v53 = vadd.f32 %v2924_v43, %v2646_v44  ;;  %v2925_v59 = vrot.slane %v2721_v63, 1  ;;  %v20194_v7 = vrot.slane %v12313_v50, 1  ;;  %222 = vst.msk [vmem:[#allocation2 + $0x189] sm:$0xff] %vm38_vm1, %v12335_v56  ;;  %v12353_v63 = vld [vmem:[#allocation2 + $0xd0] sm:$0x3] }
  0xa0   :  { %v382_v0 = vmul.f32 %v11621_v25, %v12111_v52  ;;  %v2031_v55 = vadd.f32 %v1827_v14, %v1547_v49  ;;  %v3409_v58 = vrot.slane %v3205_v61, 2  ;;  %v521_v42 = vmul.f32 %v11626_v26, %v12158_v62  ;;  %v12366_v49 = vld [vmem:[%s20165_s1 + $0x8] ss:$0 sm:$0xff] }
  0xa1   :  { %v1006_v19 = vmul.f32 %v11631_v27, %v12158_v62  ;;  %v3614_v43 = vadd.f32 %v3408_v36, %v3130_v53  ;;  %v3410_v37 = vrot.slane %v12319_v20, 2  ;;  %v1484_v52 = vmul.f32 %v11687_v39, %v12206_v16 }
  0xa2   :  { %v1623_v51 = vmul.f32 %v11655_v32, %v12251_v45  ;;  %v2515_v1 = vadd.f32 %v2311_v15, %v2031_v55  ;;  %v727_v14 = vrot.slane %v521_v42, 1  ;;  %v2107_v61 = vmul.f32 %v11660_v33, %v12251_v45 }
  0xa3   :  { %v1212_v44 = vrot.slane %v1006_v19, 2  ;;  %10998 = vmatmul.mubr.msk.f32.gmra.mrb[10].mxu0 %vm38_vm1, %v3614_v43  ;;  %v2927_v62 = vsel %vm693_vm4, %v2925_v59, %v20194_v7  ;;  %v2723_v36 = vmul.f32 %v11692_v40, %v12353_v63  ;;  %v3207_v15 = vmul.f32 %v12366_v49, %v12353_v63 }
  0xa4   :  { %v1828_v20 = vrot.slane %v1623_v51, 1  ;;  %v2647_v53 = vadd.f32 %v2583_v54, %v2515_v1  ;;  %v728_v55 = vsel %vm693_vm4, %v725_v60, %v727_v14  ;;  %v2312_v19 = vrot.slane %v2107_v61, 2 }
  0xa5   :  { %v1213_v42 = vsel %vm1178_vm5, %v1210_v57, %v1212_v44  ;;  %v3411_v59 = vsel %vm1178_vm5, %v3409_v58, %v3410_v37  ;;  %v931_v43 = vadd.f32 %v728_v55, %v382_v0  ;;  %v2584_v7 = vmul.f32 %v11708_v46, %v12306_v22  ;;  %v12399_v55 = vld [vmem:[#allocation2 + $0xd8] sm:$0xff] }
  0xa6   :  { %v1829_v51 = vsel %vm693_vm4, %v1826_v41, %v1828_v20  ;;  %v3131_v56 = vadd.f32 %v2927_v62, %v2647_v53  ;;  %v2928_v47 = vrot.slane %v2723_v36, 1  ;;  %v3412_v48 = vrot.slane %v3207_v15, 2 }
  0xa7   :  { %v522_v31 = vmul.f32 %v11626_v26, %v12202_v4  ;;  %v1416_v54 = vadd.f32 %v1213_v42, %v931_v43  ;;  %v2313_v60 = vsel %vm1178_vm5, %v2310_v38, %v2312_v19  ;;  %v383_v57 = vmul.f32 %v11621_v25, %v12202_v4 }
  0xa8   :  { %v523_v0 = vmul.f32 %v11626_v26, %v12206_v16  ;;  %v3615_v58 = vadd.f32 %v3411_v59, %v3131_v56  ;;  %v1007_v1 = vmul.f32 %v11631_v27, %v12202_v4  ;;  %v1008_v14 = vmul.f32 %v11631_v27, %v12206_v16 }
  0xa9   :  { %v729_v41 = vrot.slane %v522_v31, 1  ;;  %v1548_v44 = vadd.f32 %v1484_v52, %v1416_v54  ;;  %v1485_v62 = vmul.f32 %v11687_v39, %v12303_v21  ;;  %v1624_v38 = vmul.f32 %v11655_v32, %v12303_v21 }
  0xaa   :  { %v730_v61 = vrot.slane %v523_v0, 1  ;;  %11000 = vmatprep.mubr.msk.f32.mxu0 %vm38_vm1, %v3615_v58  ;;  %v1214_v20 = vrot.slane %v1007_v1, 2  ;;  %v1215_v36 = vrot.slane %v1008_v14, 2  ;;  %v1625_v31 = vmul.f32 %v11655_v32, %v12306_v22  ;;  %v12405_v1 = vld [vmem:[#allocation2 + $0xe0] sm:$0xff] }
  0xab   :  { %v2108_v4 = vmul.f32 %v11660_v33, %v12303_v21  ;;  %v2032_v56 = vadd.f32 %v1829_v51, %v1548_v44  ;;  %v1830_v15 = vrot.slane %v1624_v38, 1  ;;  %v2109_v53 = vmul.f32 %v11660_v33, %v12306_v22 }
  0xac   :  { %v731_v52 = vsel %vm693_vm4, %v729_v41, %v730_v61  ;;  %v1216_v19 = vsel %vm1178_vm5, %v1214_v20, %v1215_v36  ;;  %v1831_v59 = vrot.slane %v1625_v31, 1  ;;  %v20430_v0 = vrot.slane %v12313_v50, 1 }
  0xad   :  { %v932_v42 = vadd.f32 %v731_v52, %v383_v57  ;;  %v2314_v43 = vrot.slane %v2108_v4, 2  ;;  %v2516_v54 = vadd.f32 %v2313_v60, %v2032_v56  ;;  %v2315_v51 = vrot.slane %v2109_v53, 2 }
  0xae   :  { %v2929_v58 = vsel %vm693_vm4, %v20430_v0, %v2928_v47  ;;  %v2724_v41 = vmul.f32 %v11692_v40, %v12399_v55  ;;  %v3413_v14 = vsel %vm1178_vm5, %v3410_v37, %v3412_v48  ;;  %v12412_v57 = vmul.f32 %v11692_v40, %v12405_v1 }
  0xaf   :  { %v1417_v44 = vadd.f32 %v1216_v19, %v932_v42  ;;  %v3208_v60 = vmul.f32 %v12366_v49, %v12399_v55  ;;  %v2648_v38 = vadd.f32 %v2584_v7, %v2516_v54  ;;  %v1832_v50 = vsel %vm693_vm4, %v1830_v15, %v1831_v59 }
  0xb0   :  { %v2930_v47 = vrot.slane %v2724_v41, 1  ;;  %v12419_v20 = vmul.f32 %v12366_v49, %v12405_v1  ;;  %v2316_v4 = vsel %vm1178_vm5, %v2314_v43, %v2315_v51  ;;  %v2585_v48 = vmul.f32 %v11708_v46, %v12399_v55 }
  0xb1   :  { %v1549_v31 = vadd.f32 %v1485_v62, %v1417_v44  ;;  %v2931_v37 = vrot.slane %v12412_v57, 1  ;;  %v3132_v56 = vadd.f32 %v2929_v58, %v2648_v38  ;;  %v3414_v52 = vrot.slane %v3208_v60, 2  ;;  %v12435_v44 = vld [vmem:[#allocation2 + $0xe8] sm:$0x3] }
  0xb2   :  { %v524_v7 = vmul.f32 %v11626_v26, %v12251_v45  ;;  %v1009_v15 = vmul.f32 %v11631_v27, %v12251_v45  ;;  %v3415_v42 = vrot.slane %v12419_v20, 2  ;;  %v384_v62 = vmul.f32 %v11621_v25, %v12206_v16 }
  0xb3   :  { %v2033_v53 = vadd.f32 %v1832_v50, %v1549_v31  ;;  %v1626_v19 = vmul.f32 %v11655_v32, %v12353_v63  ;;  %v3616_v43 = vadd.f32 %v3413_v14, %v3132_v56  ;;  %v2932_v54 = vsel %vm693_vm4, %v2930_v47, %v2931_v37 }
  0xb4   :  { %v732_v0 = vrot.slane %v524_v7, 1  ;;  %v1217_v58 = vrot.slane %v1009_v15, 2  ;;  %v1486_v45 = vmul.f32 %v11687_v39, %v12306_v22  ;;  %v2110_v60 = vmul.f32 %v11660_v33, %v12353_v63 }
  0xb5   :  { %v2517_v41 = vadd.f32 %v2316_v4, %v2033_v53  ;;  %v1833_v57 = vrot.slane %v1626_v19, 1  ;;  %11001 = vmatmul.mubr.msk.f32.gmra.mrb[12].mxu0 %vm38_vm1, %v3616_v43  ;;  %v2726_v38 = vmul.f32 %v11692_v40, %v12435_v44  ;;  %v3210_v50 = vmul.f32 %v12366_v49, %v12435_v44 }
  0xb6   :  { %v733_v16 = vsel %vm693_vm4, %v730_v61, %v732_v0  ;;  %v1218_v14 = vsel %vm1178_vm5, %v1215_v36, %v1217_v58  ;;  %v3416_v31 = vsel %vm1178_vm5, %v3414_v52, %v3415_v42  ;;  %v2317_v56 = vrot.slane %v2110_v60, 2 }
  0xb7   :  { %v2649_v47 = vadd.f32 %v2585_v48, %v2517_v41  ;;  %v933_v4 = vadd.f32 %v733_v16, %v384_v62  ;;  %v1834_v7 = vsel %vm693_vm4, %v1831_v59, %v1833_v57  ;;  %v2586_v61 = vmul.f32 %v11708_v46, %v12405_v1 }
  0xb8   :  { %v2933_v15 = vrot.slane %v2726_v38, 1  ;;  %v525_v36 = vmul.f32 %v11626_v26, %v12303_v21  ;;  %v3417_v43 = vrot.slane %v3210_v50, 2  ;;  %v12458_v48 = vmul.f32 %v11626_v26, %v12306_v22 }
  0xb9   :  { %v3133_v53 = vadd.f32 %v2932_v54, %v2649_v47  ;;  %v1418_v19 = vadd.f32 %v1218_v14, %v933_v4  ;;  %v2318_v52 = vsel %vm1178_vm5, %v2315_v51, %v2317_v56  ;;  %v385_v62 = vmul.f32 %v11621_v25, %v12303_v21 }
  0xba   :  { %v734_v59 = vrot.slane %v525_v36, 1  ;;  %v1010_v0 = vmul.f32 %v11631_v27, %v12303_v21  ;;  %v20199_v57 = vrot.slane %v12458_v48, 1  ;;  %v12468_v54 = vmul.f32 %v11631_v27, %v12306_v22  ;;  %v12481_v21 = vld [vmem:[%s20164_s0 + $0x100] sm:$0xff] }
  0xbb   :  { %v3617_v58 = vadd.f32 %v3416_v31, %v3133_v53  ;;  %v1550_v41 = vadd.f32 %v1486_v45, %v1418_v19  ;;  %v1487_v16 = vmul.f32 %v11687_v39, %v12399_v55  ;;  %v1627_v51 = vmul.f32 %v11655_v32, %v12399_v55  ;;  %20431 = vst [vmem:[#allocation37_spill] sm:$0xff] %v12481_v21  ;;  %v12486_v45 = vld [vmem:[%s20164_s0 + $0x108] sm:$0xff] }
  0xbc   :  { %v1219_v60 = vrot.slane %v1010_v0, 2  ;;  %v12476_v14 = vmul.f32 %v11655_v32, %v12405_v1  ;;  %20432 = vst [vmem:[#allocation38_spill] sm:$0xff] %v12486_v45  ;;  %v736_v50 = vsel %vm693_vm4, %v734_v59, %v20199_v57  ;;  %v1220_v47 = vrot.slane %v12468_v54, 2  ;;  %223 = vst.msk [vmem:[#allocation2 + $0x1c9] sm:$0xff] %vm38_vm1, %v12481_v21  ;;  %v12503_v59 = vld [vmem:[#allocation2 + $0xf0] sm:$0xff] }
  0xbd   :  { %11003 = vmatprep.mubr.msk.f32.mxu0 %vm38_vm1, %v3617_v58  ;;  %v2034_v38 = vadd.f32 %v1834_v7, %v1550_v41  ;;  %v2111_v31 = vmul.f32 %v11660_v33, %v12399_v55  ;;  %224 = vst.msk [vmem:[#allocation2 + $0x1d1] sm:$0xff] %vm38_vm1, %v12486_v45  ;;  %v934_v4 = vadd.f32 %v736_v50, %v385_v62  ;;  %v1835_v56 = vrot.slane %v1627_v51, 1  ;;  %v12506_v41 = vld [vmem:[#allocation2 + $0xf8] sm:$0xff] }
  0xbe   :  { %v1836_v36 = vrot.slane %v12476_v14, 1  ;;  %v2112_v7 = vmul.f32 %v11660_v33, %v12405_v1  ;;  %v2934_v19 = vsel %vm693_vm4, %v2931_v37, %v2933_v15  ;;  %v1221_v0 = vsel %vm1178_vm5, %v1219_v60, %v1220_v47  ;;  %v12519_v37 = vld [vmem:[%s20164_s0 + $0x118] sm:$0xff] }
  0xbf   :  { %v2518_v53 = vadd.f32 %v2318_v52, %v2034_v38  ;;  %v2319_v58 = vrot.slane %v2111_v31, 2  ;;  %v1419_v54 = vadd.f32 %v1221_v0, %v934_v4  ;;  %v2727_v51 = vmul.f32 %v11692_v40, %v12503_v59  ;;  %v12514_v52 = vld [vmem:[%s20164_s0 + $0x110] sm:$0xff]  ;;  %20434 = vst [vmem:[#allocation40_spill] sm:$0xff] %v12519_v37  ;;  %226 = vst.msk [vmem:[#allocation2 + $0x1e9] sm:$0xff] %vm38_vm1, %v12519_v37 }
  0xc0   :  { %v1837_v57 = vsel %vm693_vm4, %v1835_v56, %v1836_v36  ;;  %v2320_v62 = vrot.slane %v2112_v7, 2  ;;  %20433 = vst [vmem:[#allocation39_spill] sm:$0xff] %v12514_v52  ;;  %v12523_v60 = vmul.f32 %v11692_v40, %v12506_v41  ;;  %v3211_v14 = vmul.f32 %v12366_v49, %v12503_v59  ;;  %225 = vst.msk [vmem:[#allocation2 + $0x1e1] sm:$0xff] %vm38_vm1, %v12514_v52 }
  0xc1   :  { %v2650_v15 = vadd.f32 %v2586_v61, %v2518_v53  ;;  %v12529_v38 = vmul.f32 %v12366_v49, %v12506_v41  ;;  %v3418_v61 = vsel %vm1178_vm5, %v3415_v42, %v3417_v43  ;;  %v1551_v50 = vadd.f32 %v1487_v16, %v1419_v54 }
  0xc2   :  { %v2321_v31 = vsel %vm1178_vm5, %v2319_v58, %v2320_v62  ;;  %v2587_v4 = vmul.f32 %v11708_v46, %v12503_v59  ;;  %v2935_v7 = vrot.slane %v2727_v51, 1  ;;  %v2936_v53 = vrot.slane %v12523_v60, 1  ;;  %v12553_v51 = vld [vmem:[#allocation2 + $0x100] sm:$0x3] }
  0xc3   :  { %v3134_v56 = vadd.f32 %v2934_v19, %v2650_v15  ;;  %v386_v0 = vmul.f32 %v11621_v25, %v12306_v22  ;;  %v2035_v52 = vadd.f32 %v1837_v57, %v1551_v50  ;;  %v3419_v45 = vrot.slane %v3211_v14, 2 }
  0xc4   :  { %v527_v20 = vmul.f32 %v11626_v26, %v12353_v63  ;;  %v1012_v42 = vmul.f32 %v11631_v27, %v12353_v63  ;;  %v3420_v16 = vrot.slane %v12529_v38, 2  ;;  %v1488_v19 = vmul.f32 %v11687_v39, %v12405_v1 }
  0xc5   :  { %v3618_v43 = vadd.f32 %v3418_v61, %v3134_v56  ;;  %v1629_v58 = vmul.f32 %v11655_v32, %v12435_v44  ;;  %v2519_v54 = vadd.f32 %v2321_v31, %v2035_v52  ;;  %v2113_v15 = vmul.f32 %v11660_v33, %v12435_v44 }
  0xc6   :  { %v737_v22 = vrot.slane %v527_v20, 1  ;;  %v1222_v57 = vrot.slane %v1012_v42, 2  ;;  %v2937_v63 = vsel %vm693_vm4, %v2935_v7, %v2936_v53  ;;  %v2729_v14 = vmul.f32 %v11692_v40, %v12553_v51 }
  0xc7   :  { %11004 = vmatmul.mubr.msk.f32.gmra.mrb[14].mxu0 %vm38_vm1, %v3618_v43  ;;  %v1838_v60 = vrot.slane %v1629_v58, 1  ;;  %v3213_v38 = vmul.f32 %v12366_v49, %v12553_v51  ;;  %v2651_v61 = vadd.f32 %v2587_v4, %v2519_v54  ;;  %v20435_v52 = vrot.slane %v12458_v48, 1 }
  0xc8   :  { %v1223_v31 = vsel %vm1178_vm5, %v1220_v47, %v1222_v57  ;;  %v2322_v56 = vrot.slane %v2113_v15, 2  ;;  %v3421_v20 = vsel %vm1178_vm5, %v3419_v45, %v3420_v16  ;;  %v2588_v43 = vmul.f32 %v11708_v46, %v12506_v41 }
  0xc9   :  { %v738_v50 = vsel %vm693_vm4, %v20435_v52, %v737_v22  ;;  %v1839_v7 = vsel %vm693_vm4, %v1836_v36, %v1838_v60  ;;  %v3135_v58 = vadd.f32 %v2937_v63, %v2651_v61  ;;  %v2938_v37 = vrot.slane %v2729_v14, 1 }
  0xca   :  { %v935_v42 = vadd.f32 %v738_v50, %v386_v0  ;;  %v3422_v21 = vrot.slane %v3213_v38, 2  ;;  %v528_v4 = vmul.f32 %v11626_v26, %v12399_v55  ;;  %v2323_v54 = vsel %vm1178_vm5, %v2320_v62, %v2322_v56  ;;  %v12599_v56 = vld [vmem:[#allocation2 + $0x108] sm:$0xff] }
  0xcb   :  { %v387_v47 = vmul.f32 %v11621_v25, %v12399_v55  ;;  %v12578_v45 = vmul.f32 %v11626_v26, %v12405_v1  ;;  %v3619_v36 = vadd.f32 %v3421_v20, %v3135_v58  ;;  %v1013_v22 = vmul.f32 %v11631_v27, %v12399_v55 }
  0xcc   :  { %v1420_v48 = vadd.f32 %v1223_v31, %v935_v42  ;;  %v739_v0 = vrot.slane %v528_v4, 1  ;;  %v1014_v57 = vmul.f32 %v11631_v27, %v12405_v1  ;;  %v1489_v62 = vmul.f32 %v11687_v39, %v12503_v59 }
  0xcd   :  { %v740_v63 = vrot.slane %v12578_v45, 1  ;;  %v1630_v60 = vmul.f32 %v11655_v32, %v12503_v59  ;;  %11006 = vmatprep.mubr.msk.f32.mxu0 %vm38_vm1, %v3619_v36  ;;  %v1224_v14 = vrot.slane %v1013_v22, 2  ;;  %v1631_v61 = vmul.f32 %v11655_v32, %v12506_v41  ;;  %v12603_v36 = vld [vmem:[#allocation2 + $0x110] sm:$0xff] }
  0xce   :  { %v1552_v15 = vadd.f32 %v1488_v19, %v1420_v48  ;;  %v1225_v38 = vrot.slane %v1014_v57, 2  ;;  %v2114_v55 = vmul.f32 %v11660_v33, %v12503_v59  ;;  %v12597_v31 = vmul.f32 %v11660_v33, %v12506_v41 }
  0xcf   :  { %v741_v19 = vsel %vm693_vm4, %v739_v0, %v740_v63  ;;  %v1840_v50 = vrot.slane %v1630_v60, 1  ;;  %v1841_v58 = vrot.slane %v1631_v61, 1  ;;  %v2939_v45 = vsel %vm693_vm4, %v2936_v53, %v2938_v37  ;;  %v12618_v37 = vld [vmem:[%s20164_s0 + $0x120] sm:$0xff]  ;;  %v12623_v53 = vld [vmem:[%s20164_s0 + $0x128] sm:$0xff] }
  0xd0   :  { %v2036_v52 = vadd.f32 %v1839_v7, %v1552_v15  ;;  %v936_v20 = vadd.f32 %v741_v19, %v387_v47  ;;  %v1226_v42 = vsel %vm1178_vm5, %v1224_v14, %v1225_v38  ;;  %v2324_v4 = vrot.slane %v2114_v55, 2  ;;  %20436 = vst [vmem:[#allocation41_spill] sm:$0xff] %v12618_v37  ;;  %20437 = vst [vmem:[#allocation42_spill] sm:$0xff] %v12623_v53 }
  0xd1   :  { %v2325_v7 = vrot.slane %v12597_v31, 2  ;;  %v2730_v0 = vmul.f32 %v11692_v40, %v12599_v56  ;;  %v3423_v22 = vsel %vm1178_vm5, %v3420_v16, %v3422_v21  ;;  %v12611_v47 = vmul.f32 %v11692_v40, %v12603_v36  ;;  %227 = vst.msk [vmem:[#allocation2 + $0x1f9] sm:$0xff] %vm38_vm1, %v12618_v37  ;;  %228 = vst.msk [vmem:[#allocation2 + $0x201] sm:$0xff] %vm38_vm1, %v12623_v53 }
  0xd2   :  { %v2520_v48 = vadd.f32 %v2323_v54, %v2036_v52  ;;  %v1421_v57 = vadd.f32 %v1226_v42, %v936_v20  ;;  %v3214_v15 = vmul.f32 %v12366_v49, %v12599_v56  ;;  %v1842_v21 = vsel %vm693_vm4, %v1840_v50, %v1841_v58 }
  0xd3   :  { %v2940_v16 = vrot.slane %v2730_v0, 1  ;;  %v12628_v60 = vmul.f32 %v12366_v49, %v12603_v36  ;;  %v2326_v61 = vsel %vm1178_vm5, %v2324_v4, %v2325_v7  ;;  %v2589_v55 = vmul.f32 %v11708_v46, %v12599_v56 }
  0xd4   :  { %v2652_v54 = vadd.f32 %v2588_v43, %v2520_v48  ;;  %v1553_v14 = vadd.f32 %v1489_v62, %v1421_v57  ;;  %v2941_v43 = vrot.slane %v12611_v47, 1  ;;  %v3424_v19 = vrot.slane %v3214_v15, 2  ;;  %v12648_v15 = vld [vmem:[#allocation2 + $0x118] sm:$0x3] }
  0xd5   :  { %v530_v50 = vmul.f32 %v11626_v26, %v12435_v44  ;;  %v1015_v31 = vmul.f32 %v11631_v27, %v12435_v44  ;;  %v20204_v42 = vrot.slane %v12628_v60, 2  ;;  %v388_v62 = vmul.f32 %v11621_v25, %v12405_v1 }
  0xd6   :  { %v3136_v52 = vadd.f32 %v2939_v45, %v2652_v54  ;;  %v2037_v20 = vadd.f32 %v1842_v21, %v1553_v14  ;;  %v1632_v4 = vmul.f32 %v11655_v32, %v12553_v51  ;;  %v2942_v0 = vsel %vm693_vm4, %v2940_v16, %v2941_v43 }
  0xd7   :  { %v742_v45 = vrot.slane %v530_v50, 1  ;;  %v1227_v57 = vrot.slane %v1015_v31, 2  ;;  %v1490_v44 = vmul.f32 %v11687_v39, %v12506_v41  ;;  %v2116_v21 = vmul.f32 %v11660_v33, %v12553_v51 }
  0xd8   :  { %v3620_v48 = vadd.f32 %v3423_v22, %v3136_v52  ;;  %v2521_v47 = vadd.f32 %v2326_v61, %v2037_v20  ;;  %v1843_v54 = vrot.slane %v1632_v4, 1  ;;  %v2732_v16 = vmul.f32 %v11692_v40, %v12648_v15 }
  0xd9   :  { %v743_v1 = vsel %vm693_vm4, %v740_v63, %v742_v45  ;;  %v1228_v22 = vsel %vm1178_vm5, %v1225_v38, %v1227_v57  ;;  %v3216_v14 = vmul.f32 %v12366_v49, %v12648_v15  ;;  %v3426_v52 = vsel %vm1178_vm5, %v3424_v19, %v20204_v42 }
  0xda   :  { %11007 = vmatmul.mubr.msk.f32.gmra.mrb[16].mxu0 %vm38_vm1, %v3620_v48  ;;  %v2653_v61 = vadd.f32 %v2589_v55, %v2521_v47  ;;  %v937_v50 = vadd.f32 %v743_v1, %v388_v62  ;;  %v2327_v31 = vrot.slane %v2116_v21, 2  ;;  %v1844_v20 = vsel %vm693_vm4, %v1841_v58, %v1843_v54 }
  0xdb   :  { %v2590_v63 = vmul.f32 %v11708_v46, %v12603_v36  ;;  %v2943_v4 = vrot.slane %v2732_v16, 1  ;;  %v531_v38 = vmul.f32 %v11626_v26, %v12503_v59  ;;  %v3427_v57 = vrot.slane %v3216_v14, 2 }
  0xdc   :  { %v3137_v48 = vadd.f32 %v2942_v0, %v2653_v61  ;;  %v1422_v45 = vadd.f32 %v1228_v22, %v937_v50  ;;  %v12671_v55 = vmul.f32 %v11626_v26, %v12506_v41  ;;  %v2328_v19 = vsel %vm1178_vm5, %v2325_v7, %v2327_v31 }
  0xdd   :  { %v389_v62 = vmul.f32 %v11621_v25, %v12503_v59  ;;  %v744_v58 = vrot.slane %v531_v38, 1  ;;  %v1016_v47 = vmul.f32 %v11631_v27, %v12503_v59  ;;  %v1017_v0 = vmul.f32 %v11631_v27, %v12506_v41 }
  0xde   :  { %v3621_v54 = vadd.f32 %v3426_v52, %v3137_v48  ;;  %v1554_v21 = vadd.f32 %v1490_v44, %v1422_v45  ;;  %v745_v1 = vrot.slane %v12671_v55, 1  ;;  %v1491_v16 = vmul.f32 %v11687_v39, %v12599_v56 }
  0xdf   :  { %v1229_v22 = vrot.slane %v1016_v47, 2  ;;  %v1633_v7 = vmul.f32 %v11655_v32, %v12599_v56  ;;  %v1634_v14 = vmul.f32 %v11655_v32, %v12603_v36  ;;  %v1230_v61 = vrot.slane %v1017_v0, 2  ;;  %v12694_v47 = vld [vmem:[#allocation2 + $0x120] sm:$0xff] }
  0xe0   :  { %11009 = vmatprep.mubr.msk.f32.mxu0 %vm38_vm1, %v3621_v54  ;;  %v2038_v59 = vadd.f32 %v1844_v20, %v1554_v21  ;;  %v746_v44 = vsel %vm693_vm4, %v744_v58, %v745_v1  ;;  %v2117_v52 = vmul.f32 %v11660_v33, %v12599_v56  ;;  %v2118_v48 = vmul.f32 %v11660_v33, %v12603_v36  ;;  %v12697_v21 = vld [vmem:[#allocation2 + $0x128] sm:$0xff] }
  0xe1   :  { %v938_v50 = vadd.f32 %v746_v44, %v389_v62  ;;  %v1845_v31 = vrot.slane %v1633_v7, 1  ;;  %v1846_v38 = vrot.slane %v1634_v14, 1  ;;  %v2944_v55 = vsel %vm693_vm4, %v2941_v43, %v2943_v4  ;;  %v12710_v43 = vld [vmem:[%s20164_s0 + $0x138] sm:$0xff] }
  0xe2   :  { %v2522_v45 = vadd.f32 %v2328_v19, %v2038_v59  ;;  %v1231_v54 = vsel %vm1178_vm5, %v1229_v22, %v1230_v61  ;;  %v2329_v20 = vrot.slane %v2117_v52, 2  ;;  %v2330_v42 = vrot.slane %v2118_v48, 2  ;;  %v12705_v19 = vld [vmem:[%s20164_s0 + $0x130] sm:$0xff]  ;;  %20439 = vst [vmem:[#allocation44_spill] sm:$0xff] %v12710_v43  ;;  %230 = vst.msk [vmem:[#allocation2 + $0x219] sm:$0xff] %vm38_vm1, %v12710_v43 }
  0xe3   :  { %v1423_v58 = vadd.f32 %v1231_v54, %v938_v50  ;;  %v1847_v0 = vsel %vm693_vm4, %v1845_v31, %v1846_v38  ;;  %v2733_v62 = vmul.f32 %v11692_v40, %v12694_v47  ;;  %20438 = vst [vmem:[#allocation43_spill] sm:$0xff] %v12705_v19  ;;  %v12714_v22 = vmul.f32 %v11692_v40, %v12697_v21 }
  0xe4   :  { %v2654_v4 = vadd.f32 %v2590_v63, %v2522_v45  ;;  %v3217_v7 = vmul.f32 %v12366_v49, %v12694_v47  ;;  %v12720_v14 = vmul.f32 %v12366_v49, %v12697_v21  ;;  %229 = vst.msk [vmem:[#allocation2 + $0x211] sm:$0xff] %vm38_vm1, %v12705_v19  ;;  %v20440_v59 = vrot.slane %v12628_v60, 2 }
  0xe5   :  { %v1555_v44 = vadd.f32 %v1491_v16, %v1423_v58  ;;  %v2331_v52 = vsel %vm1178_vm5, %v2329_v20, %v2330_v42  ;;  %v2591_v50 = vmul.f32 %v11708_v46, %v12694_v47  ;;  %v2945_v48 = vrot.slane %v2733_v62, 1 }
  0xe6   :  { %v3428_v63 = vsel %vm1178_vm5, %v20440_v59, %v3427_v57  ;;  %v3138_v31 = vadd.f32 %v2944_v55, %v2654_v4  ;;  %v2946_v45 = vrot.slane %v12714_v22, 1  ;;  %v390_v54 = vmul.f32 %v11621_v25, %v12506_v41  ;;  %v12744_v4 = vld [vmem:[#allocation2 + $0x130] sm:$0x3] }
  0xe7   :  { %v2039_v19 = vadd.f32 %v1847_v0, %v1555_v44  ;;  %v3429_v53 = vrot.slane %v3217_v7, 2  ;;  %v533_v60 = vmul.f32 %v11626_v26, %v12553_v51  ;;  %v1018_v57 = vmul.f32 %v11631_v27, %v12553_v51 }
  0xe8   :  { %v3622_v16 = vadd.f32 %v3428_v63, %v3138_v31  ;;  %v3430_v20 = vrot.slane %v12720_v14, 2  ;;  %v1492_v55 = vmul.f32 %v11687_v39, %v12603_v36  ;;  %v1635_v58 = vmul.f32 %v11655_v32, %v12648_v15 }
  0xe9   :  { %v2523_v62 = vadd.f32 %v2331_v52, %v2039_v19  ;;  %v747_v41 = vrot.slane %v533_v60, 1  ;;  %v1232_v0 = vrot.slane %v1018_v57, 2  ;;  %v2119_v22 = vmul.f32 %v11660_v33, %v12648_v15 }
  0xea   :  { %11010 = vmatmul.mubr.msk.f32.gmra.mrb[18].mxu0 %vm38_vm1, %v3622_v16  ;;  %v2947_v51 = vsel %vm693_vm4, %v2945_v48, %v2946_v45  ;;  %v1848_v7 = vrot.slane %v1635_v58, 1  ;;  %v2735_v14 = vmul.f32 %v11692_v40, %v12744_v4  ;;  %v3219_v59 = vmul.f32 %v12366_v49, %v12744_v4 }
  0xeb   :  { %v2655_v63 = vadd.f32 %v2591_v50, %v2523_v62  ;;  %v748_v19 = vsel %vm693_vm4, %v745_v1, %v747_v41  ;;  %v1233_v44 = vsel %vm1178_vm5, %v1230_v61, %v1232_v0  ;;  %v2332_v52 = vrot.slane %v2119_v22, 2 }
  0xec   :  { %v3431_v31 = vsel %vm1178_vm5, %v3429_v53, %v3430_v20  ;;  %v939_v60 = vadd.f32 %v748_v19, %v390_v54  ;;  %v1849_v57 = vsel %vm693_vm4, %v1846_v38, %v1848_v7  ;;  %v2592_v48 = vmul.f32 %v11708_v46, %v12697_v21 }
  0xed   :  { %v3139_v16 = vadd.f32 %v2947_v51, %v2655_v63  ;;  %v2948_v58 = vrot.slane %v2735_v14, 1  ;;  %v3432_v43 = vrot.slane %v3219_v59, 2  ;;  %v534_v37 = vmul.f32 %v11626_v26, %v12599_v56 }
  0xee   :  { %v1424_v50 = vadd.f32 %v1233_v44, %v939_v60  ;;  %v2333_v1 = vsel %vm1178_vm5, %v2330_v42, %v2332_v52  ;;  %v391_v61 = vmul.f32 %v11621_v25, %v12599_v56  ;;  %v12767_v53 = vmul.f32 %v11626_v26, %v12603_v36  ;;  %v12788_v44 = vld [vmem:[#allocation2 + $0x138] sm:$0xff] }
  0xef   :  { %v3623_v38 = vadd.f32 %v3431_v31, %v3139_v16  ;;  %v749_v54 = vrot.slane %v534_v37, 1  ;;  %v1019_v62 = vmul.f32 %v11631_v27, %v12599_v56  ;;  %v1020_v41 = vmul.f32 %v11631_v27, %v12603_v36 }
  0xf0   :  { %v1556_v0 = vadd.f32 %v1492_v55, %v1424_v50  ;;  %v750_v22 = vrot.slane %v12767_v53, 1  ;;  %v1493_v42 = vmul.f32 %v11687_v39, %v12694_v47  ;;  %v1636_v51 = vmul.f32 %v11655_v32, %v12694_v47 }
  0xf1   :  { %11012 = vmatprep.mubr.msk.f32.mxu0 %vm38_vm1, %v3623_v38  ;;  %v1234_v7 = vrot.slane %v1019_v62, 2  ;;  %v1235_v14 = vrot.slane %v1020_v41, 2  ;;  %v1637_v37 = vmul.f32 %v11655_v32, %v12697_v21  ;;  %v2120_v56 = vmul.f32 %v11660_v33, %v12694_v47  ;;  %v12792_v38 = vld [vmem:[#allocation2 + $0x140] sm:$0xff] }
  0xf2   :  { %v2040_v59 = vadd.f32 %v1849_v57, %v1556_v0  ;;  %v751_v55 = vsel %vm693_vm4, %v749_v54, %v750_v22  ;;  %v1850_v63 = vrot.slane %v1636_v51, 1  ;;  %v12786_v19 = vmul.f32 %v11660_v33, %v12697_v21 }
  0xf3   :  { %v940_v52 = vadd.f32 %v751_v55, %v391_v61  ;;  %v1236_v31 = vsel %vm1178_vm5, %v1234_v7, %v1235_v14  ;;  %v1851_v60 = vrot.slane %v1637_v37, 1  ;;  %v2334_v16 = vrot.slane %v2120_v56, 2 }
  0xf4   :  { %v2524_v50 = vadd.f32 %v2333_v1, %v2040_v59  ;;  %v2949_v53 = vsel %vm693_vm4, %v2946_v45, %v2948_v58  ;;  %v2335_v57 = vrot.slane %v12786_v19, 2  ;;  %v2736_v54 = vmul.f32 %v11692_v40, %v12788_v44  ;;  %v12807_v45 = vld [vmem:[%s20164_s0 + $0x140] sm:$0xff]  ;;  %v12812_v58 = vld [vmem:[%s20164_s0 + $0x148] sm:$0xff] }
  0xf5   :  { %v3433_v62 = vsel %vm1178_vm5, %v3430_v20, %v3432_v43  ;;  %v1425_v41 = vadd.f32 %v1236_v31, %v940_v52  ;;  %v12800_v61 = vmul.f32 %v11692_v40, %v12792_v38  ;;  %v3220_v0 = vmul.f32 %v12366_v49, %v12788_v44  ;;  %20441 = vst [vmem:[#allocation45_spill] sm:$0xff] %v12807_v45 }
  0xf6   :  { %20442 = vst [vmem:[#allocation46_spill] sm:$0xff] %v12812_v58  ;;  %v2656_v1 = vadd.f32 %v2592_v48, %v2524_v50  ;;  %v1852_v43 = vsel %vm693_vm4, %v1850_v63, %v1851_v60  ;;  %v2950_v20 = vrot.slane %v2736_v54, 1  ;;  %v12817_v51 = vmul.f32 %v12366_v49, %v12792_v38  ;;  %231 = vst.msk [vmem:[#allocation2 + $0x229] sm:$0xff] %vm38_vm1, %v12807_v45 }
  0xf7   :  { %232 = vst.msk [vmem:[#allocation2 + $0x231] sm:$0xff] %vm38_vm1, %v12812_v58  ;;  %v1557_v7 = vadd.f32 %v1493_v42, %v1425_v41  ;;  %v2336_v37 = vsel %vm1178_vm5, %v2334_v16, %v2335_v57  ;;  %v2593_v56 = vmul.f32 %v11708_v46, %v12788_v44  ;;  %v2951_v48 = vrot.slane %v12800_v61, 1 }
  0xf8   :  { %v3140_v59 = vadd.f32 %v2949_v53, %v2656_v1  ;;  %v3434_v55 = vrot.slane %v3220_v0, 2  ;;  %v536_v63 = vmul.f32 %v11626_v26, %v12648_v15  ;;  %v1021_v19 = vmul.f32 %v11631_v27, %v12648_v15  ;;  %v12837_v0 = vld [vmem:[#allocation2 + $0x148] sm:$0x3] }
  0xf9   :  { %v2041_v52 = vadd.f32 %v1852_v43, %v1557_v7  ;;  %v20209_v31 = vrot.slane %v12817_v51, 2  ;;  %v392_v42 = vmul.f32 %v11621_v25, %v12603_v36  ;;  %v1638_v16 = vmul.f32 %v11655_v32, %v12744_v4 }
  0xfa   :  { %v3624_v50 = vadd.f32 %v3433_v62, %v3140_v59  ;;  %v2952_v54 = vsel %vm693_vm4, %v2950_v20, %v2951_v48  ;;  %v752_v53 = vrot.slane %v536_v63, 1  ;;  %v1237_v41 = vrot.slane %v1021_v19, 2 }
  0xfb   :  { %v2525_v61 = vadd.f32 %v2336_v37, %v2041_v52  ;;  %v1494_v15 = vmul.f32 %v11687_v39, %v12697_v21  ;;  %v1853_v1 = vrot.slane %v1638_v16, 1  ;;  %v2122_v43 = vmul.f32 %v11660_v33, %v12744_v4 }
  0xfc   :  { %11013 = vmatmul.mubr.msk.f32.gmra.mrb[20].mxu0 %vm38_vm1, %v3624_v50  ;;  %v753_v36 = vsel %vm693_vm4, %v750_v22, %v752_v53  ;;  %v1238_v62 = vsel %vm1178_vm5, %v1235_v14, %v1237_v41  ;;  %v2738_v20 = vmul.f32 %v11692_v40, %v12837_v0  ;;  %v3222_v7 = vmul.f32 %v12366_v49, %v12837_v0 }
  0xfd   :  { %v2657_v37 = vadd.f32 %v2593_v56, %v2525_v61  ;;  %v3436_v59 = vsel %vm1178_vm5, %v3434_v55, %v20209_v31  ;;  %v941_v63 = vadd.f32 %v753_v36, %v392_v42  ;;  %v2337_v19 = vrot.slane %v2122_v43, 2 }
  0xfe   :  { %v1854_v52 = vsel %vm693_vm4, %v1851_v60, %v1853_v1  ;;  %v2594_v22 = vmul.f32 %v11708_v46, %v12792_v38  ;;  %v2953_v16 = vrot.slane %v2738_v20, 1  ;;  %v537_v14 = vmul.f32 %v11626_v26, %v12694_v47 }
  0xff   :  { %v3141_v50 = vadd.f32 %v2952_v54, %v2657_v37  ;;  %v1426_v53 = vadd.f32 %v1238_v62, %v941_v63  ;;  %v3437_v41 = vrot.slane %v3222_v7, 2  ;;  %v12860_v56 = vmul.f32 %v11626_v26, %v12697_v21 }
 0x100   :  { %v2338_v55 = vsel %vm1178_vm5, %v2335_v57, %v2337_v19  ;;  %v393_v42 = vmul.f32 %v11621_v25, %v12694_v47  ;;  %v754_v60 = vrot.slane %v537_v14, 1  ;;  %v1022_v61 = vmul.f32 %v11631_v27, %v12694_v47 }
 0x101   :  { %v3625_v1 = vadd.f32 %v3436_v59, %v3141_v50  ;;  %v1558_v43 = vadd.f32 %v1494_v15, %v1426_v53  ;;  %v755_v36 = vrot.slane %v12860_v56, 1  ;;  %v1023_v54 = vmul.f32 %v11631_v27, %v12697_v21 }
 0x102   :  { %v1239_v62 = vrot.slane %v1022_v61, 2  ;;  %v1495_v20 = vmul.f32 %v11687_v39, %v12788_v44  ;;  %v1639_v57 = vmul.f32 %v11655_v32, %v12788_v44  ;;  %v1640_v7 = vmul.f32 %v11655_v32, %v12792_v38  ;;  %v12883_v61 = vld [vmem:[#allocation2 + $0x150] sm:$0xff] }
 0x103   :  { %11015 = vmatprep.mubr.msk.f32.mxu0 %vm38_vm1, %v3625_v1  ;;  %v2042_v47 = vadd.f32 %v1854_v52, %v1558_v43  ;;  %v756_v15 = vsel %vm693_vm4, %v754_v60, %v755_v36  ;;  %v1240_v37 = vrot.slane %v1023_v54, 2  ;;  %v2123_v59 = vmul.f32 %v11660_v33, %v12788_v44  ;;  %v12886_v43 = vld [vmem:[#allocation2 + $0x158] sm:$0xff] }
 0x104   :  { %v942_v63 = vadd.f32 %v756_v15, %v393_v42  ;;  %v1855_v19 = vrot.slane %v1639_v57, 1  ;;  %v1856_v14 = vrot.slane %v1640_v7, 1  ;;  %v2124_v50 = vmul.f32 %v11660_v33, %v12792_v38 }
 0x105   :  { %v2526_v53 = vadd.f32 %v2338_v55, %v2042_v47  ;;  %v2954_v56 = vsel %vm693_vm4, %v2951_v48, %v2953_v16  ;;  %v1241_v1 = vsel %vm1178_vm5, %v1239_v62, %v1240_v37  ;;  %v2339_v52 = vrot.slane %v2123_v59, 2  ;;  %v12894_v55 = vld [vmem:[%s20164_s0 + $0x150] sm:$0xff]  ;;  %v12899_v48 = vld [vmem:[%s20164_s0 + $0x158] sm:$0xff] }
 0x106   :  { %v1427_v60 = vadd.f32 %v1241_v1, %v942_v63  ;;  %v1857_v54 = vsel %vm693_vm4, %v1855_v19, %v1856_v14  ;;  %v2340_v31 = vrot.slane %v2124_v50, 2  ;;  %v2739_v42 = vmul.f32 %v11692_v40, %v12883_v61  ;;  %20443 = vst [vmem:[#allocation47_spill] sm:$0xff] %v12894_v55  ;;  %20444 = vst [vmem:[#allocation48_spill] sm:$0xff] %v12899_v48 }
 0x107   :  { %v2658_v16 = vadd.f32 %v2594_v22, %v2526_v53  ;;  %v12903_v62 = vmul.f32 %v11692_v40, %v12886_v43  ;;  %v3223_v57 = vmul.f32 %v12366_v49, %v12883_v61  ;;  %v12909_v7 = vmul.f32 %v12366_v49, %v12886_v43  ;;  %233 = vst.msk [vmem:[#allocation2 + $0x241] sm:$0xff] %vm38_vm1, %v12894_v55 }
 0x108   :  { %234 = vst.msk [vmem:[#allocation2 + $0x249] sm:$0xff] %vm38_vm1, %v12899_v48  ;;  %v20445_v47 = vrot.slane %v12817_v51, 2  ;;  %v1559_v15 = vadd.f32 %v1495_v20, %v1427_v60  ;;  %v2341_v59 = vsel %vm1178_vm5, %v2339_v52, %v2340_v31  ;;  %v2595_v63 = vmul.f32 %v11708_v46, %v12883_v61 }
 0x109   :  { %v3142_v19 = vadd.f32 %v2954_v56, %v2658_v16  ;;  %v2955_v50 = vrot.slane %v2739_v42, 1  ;;  %v2956_v53 = vrot.slane %v12903_v62, 1  ;;  %v394_v1 = vmul.f32 %v11621_v25, %v12697_v21  ;;  %v12933_v16 = vld [vmem:[#allocation2 + $0x160] sm:$0x3] }
 0x10a   :  { %v3438_v22 = vsel %vm1178_vm5, %v20445_v47, %v3437_v41  ;;  %v2043_v55 = vadd.f32 %v1857_v54, %v1559_v15  ;;  %v3439_v58 = vrot.slane %v3223_v57, 2  ;;  %v539_v51 = vmul.f32 %v11626_v26, %v12744_v4 }
 0x10b   :  { %v1024_v41 = vmul.f32 %v11631_v27, %v12744_v4  ;;  %v3626_v20 = vadd.f32 %v3438_v22, %v3142_v19  ;;  %v3440_v52 = vrot.slane %v12909_v7, 2  ;;  %v1496_v56 = vmul.f32 %v11687_v39, %v12792_v38 }
 0x10c   :  { %v1641_v60 = vmul.f32 %v11655_v32, %v12837_v0  ;;  %v2527_v42 = vadd.f32 %v2341_v59, %v2043_v55  ;;  %v757_v21 = vrot.slane %v539_v51, 1  ;;  %v2125_v62 = vmul.f32 %v11660_v33, %v12837_v0 }
 0x10d   :  { %v1242_v54 = vrot.slane %v1024_v41, 2  ;;  %11016 = vmatmul.mubr.msk.f32.gmra.mrb[22].mxu0 %vm38_vm1, %v3626_v20  ;;  %v2957_v4 = vsel %vm693_vm4, %v2955_v50, %v2956_v53  ;;  %v2741_v7 = vmul.f32 %v11692_v40, %v12933_v16  ;;  %v3225_v47 = vmul.f32 %v12366_v49, %v12933_v16 }
 0x10e   :  { %v1858_v57 = vrot.slane %v1641_v60, 1  ;;  %v2659_v22 = vadd.f32 %v2595_v63, %v2527_v42  ;;  %v758_v55 = vsel %vm693_vm4, %v755_v36, %v757_v21  ;;  %v2342_v59 = vrot.slane %v2125_v62, 2 }
 0x10f   :  { %v1243_v15 = vsel %vm1178_vm5, %v1240_v37, %v1242_v54  ;;  %v3441_v19 = vsel %vm1178_vm5, %v3439_v58, %v3440_v52  ;;  %v943_v51 = vadd.f32 %v758_v55, %v394_v1  ;;  %v2596_v50 = vmul.f32 %v11708_v46, %v12886_v43 }
 0x110   :  { %v1859_v41 = vsel %vm693_vm4, %v1856_v14, %v1858_v57  ;;  %v3143_v20 = vadd.f32 %v2957_v4, %v2659_v22  ;;  %v2958_v60 = vrot.slane %v2741_v7, 1  ;;  %v3442_v48 = vrot.slane %v3225_v47, 2 }
 0x111   :  { %v540_v49 = vmul.f32 %v11626_v26, %v12788_v44  ;;  %v1428_v63 = vadd.f32 %v1243_v15, %v943_v51  ;;  %v2343_v36 = vsel %vm1178_vm5, %v2340_v31, %v2342_v59  ;;  %v395_v37 = vmul.f32 %v11621_v25, %v12788_v44  ;;  %v12977_v59 = vld [vmem:[#allocation2 + $0x168] sm:$0xff] }
 0x112   :  { %v12956_v58 = vmul.f32 %v11626_v26, %v12792_v38  ;;  %v3627_v14 = vadd.f32 %v3441_v19, %v3143_v20  ;;  %v1025_v42 = vmul.f32 %v11631_v27, %v12788_v44  ;;  %v1026_v21 = vmul.f32 %v11631_v27, %v12792_v38 }
 0x113   :  { %v759_v1 = vrot.slane %v540_v49, 1  ;;  %v1560_v54 = vadd.f32 %v1496_v56, %v1428_v63  ;;  %v1497_v31 = vmul.f32 %v11687_v39, %v12883_v61  ;;  %v1642_v4 = vmul.f32 %v11655_v32, %v12883_v61 }
 0x114   :  { %v760_v62 = vrot.slane %v12956_v58, 1  ;;  %11018 = vmatprep.mubr.msk.f32.mxu0 %vm38_vm1, %v3627_v14  ;;  %v1244_v57 = vrot.slane %v1025_v42, 2  ;;  %v1245_v7 = vrot.slane %v1026_v21, 2  ;;  %v1643_v47 = vmul.f32 %v11655_v32, %v12886_v43  ;;  %v12981_v14 = vld [vmem:[#allocation2 + $0x170] sm:$0xff] }
 0x115   :  { %v2126_v44 = vmul.f32 %v11660_v33, %v12883_v61  ;;  %v2044_v22 = vadd.f32 %v1859_v41, %v1560_v54  ;;  %v1860_v55 = vrot.slane %v1642_v4, 1  ;;  %v12975_v15 = vmul.f32 %v11660_v33, %v12886_v43 }
 0x116   :  { %v761_v56 = vsel %vm693_vm4, %v759_v1, %v760_v62  ;;  %v1246_v51 = vsel %vm1178_vm5, %v1244_v57, %v1245_v7  ;;  %v1861_v20 = vrot.slane %v1643_v47, 1  ;;  %v2959_v58 = vsel %vm693_vm4, %v2956_v53, %v2958_v60  ;;  %v13001_v60 = vld [vmem:[%s20164_s0 + $0x160] sm:$0xff] }
 0x117   :  { %v944_v19 = vadd.f32 %v761_v56, %v395_v37  ;;  %v2344_v49 = vrot.slane %v2126_v44, 2  ;;  %v2528_v63 = vadd.f32 %v2343_v36, %v2044_v22  ;;  %v2345_v41 = vrot.slane %v12975_v15, 2  ;;  %v12994_v36 = vld [vmem:[%s20165_s1 + $0x8] ss:$0 sm:$0xff]  ;;  %20446 = vst [vmem:[#allocation49_spill] sm:$0xff] %v13001_v60  ;;  %235 = vst.msk [vmem:[#allocation2 + $0x259] sm:$0xff] %vm38_vm1, %v13001_v60 }
 0x118   :  { %v2742_v1 = vmul.f32 %v11692_v40, %v12977_v59  ;;  %v3443_v42 = vsel %vm1178_vm5, %v3440_v52, %v3442_v48  ;;  %v12989_v37 = vmul.f32 %v11692_v40, %v12981_v14  ;;  %v3226_v53 = vmul.f32 %v12994_v36, %v12977_v59  ;;  %v13006_v48 = vld [vmem:[%s20164_s0 + $0x168] sm:$0xff] }
 0x119   :  { %v1429_v21 = vadd.f32 %v1246_v51, %v944_v19  ;;  %20447 = vst [vmem:[#allocation50_spill] sm:$0xff] %v13006_v48  ;;  %v2660_v52 = vadd.f32 %v2596_v50, %v2528_v63  ;;  %v1862_v54 = vsel %vm693_vm4, %v1860_v55, %v1861_v20  ;;  %v13011_v57 = vmul.f32 %v12994_v36, %v12981_v14 }
 0x11a   :  { %v2960_v4 = vrot.slane %v2742_v1, 1  ;;  %236 = vst.msk [vmem:[#allocation2 + $0x261] sm:$0xff] %vm38_vm1, %v13006_v48  ;;  %v2346_v44 = vsel %vm1178_vm5, %v2344_v49, %v2345_v41  ;;  %v2597_v22 = vmul.f32 %v11708_v46, %v12977_v59  ;;  %v2961_v50 = vrot.slane %v12989_v37, 1 }
 0x11b   :  { %v1561_v47 = vadd.f32 %v1497_v31, %v1429_v21  ;;  %v3144_v56 = vadd.f32 %v2959_v58, %v2660_v52  ;;  %v3444_v55 = vrot.slane %v3226_v53, 2  ;;  %v542_v15 = vmul.f32 %v11626_v26, %v12837_v0  ;;  %v13031_v52 = vld [vmem:[#allocation2 + $0x178] sm:$0x3] }
 0x11c   :  { %v1027_v19 = vmul.f32 %v11631_v27, %v12837_v0  ;;  %v20214_v63 = vrot.slane %v13011_v57, 2  ;;  %v396_v31 = vmul.f32 %v11621_v25, %v12792_v38  ;;  %v1644_v49 = vmul.f32 %v11655_v32, %v12933_v16 }
 0x11d   :  { %v2045_v51 = vadd.f32 %v1862_v54, %v1561_v47  ;;  %v3628_v1 = vadd.f32 %v3443_v42, %v3144_v56  ;;  %v2962_v21 = vsel %vm693_vm4, %v2960_v4, %v2961_v50  ;;  %v762_v58 = vrot.slane %v542_v15, 1 }
 0x11e   :  { %v1247_v37 = vrot.slane %v1027_v19, 2  ;;  %v1498_v0 = vmul.f32 %v11687_v39, %v12886_v43  ;;  %v1863_v54 = vrot.slane %v1644_v49, 1  ;;  %v2128_v47 = vmul.f32 %v11660_v33, %v12933_v16 }
 0x11f   :  { %v2529_v53 = vadd.f32 %v2346_v44, %v2045_v51  ;;  %11019 = vmatmul.mubr.msk.f32.gmra.mrb[24].mxu0 %vm38_vm1, %v3628_v1  ;;  %v763_v38 = vsel %vm693_vm4, %v760_v62, %v762_v58  ;;  %v2744_v4 = vmul.f32 %v11692_v40, %v13031_v52  ;;  %v3228_v44 = vmul.f32 %v12994_v36, %v13031_v52 }
 0x120   :  { %v1248_v42 = vsel %vm1178_vm5, %v1245_v7, %v1247_v37  ;;  %v3446_v15 = vsel %vm1178_vm5, %v3444_v55, %v20214_v63  ;;  %v945_v19 = vadd.f32 %v763_v38, %v396_v31  ;;  %v2347_v51 = vrot.slane %v2128_v47, 2 }
 0x121   :  { %v2661_v56 = vadd.f32 %v2597_v22, %v2529_v53  ;;  %v1864_v49 = vsel %vm693_vm4, %v1861_v20, %v1863_v54  ;;  %v2598_v62 = vmul.f32 %v11708_v46, %v12981_v14  ;;  %v2963_v1 = vrot.slane %v2744_v4, 1 }
 0x122   :  { %v543_v7 = vmul.f32 %v11626_v26, %v12883_v61  ;;  %v1430_v37 = vadd.f32 %v1248_v42, %v945_v19  ;;  %v3447_v48 = vrot.slane %v3228_v44, 2  ;;  %v13054_v22 = vmul.f32 %v11626_v26, %v12886_v43 }
 0x123   :  { %v3145_v58 = vadd.f32 %v2962_v21, %v2661_v56  ;;  %v2348_v55 = vsel %vm1178_vm5, %v2345_v41, %v2347_v51  ;;  %v397_v31 = vmul.f32 %v11621_v25, %v12883_v61  ;;  %v1028_v53 = vmul.f32 %v11631_v27, %v12883_v61 }
 0x124   :  { %v764_v20 = vrot.slane %v543_v7, 1  ;;  %v1562_v47 = vadd.f32 %v1498_v0, %v1430_v37  ;;  %v765_v38 = vrot.slane %v13054_v22, 1  ;;  %v1029_v21 = vmul.f32 %v11631_v27, %v12886_v43 }
 0x125   :  { %v3629_v54 = vadd.f32 %v3446_v15, %v3145_v58  ;;  %v1249_v42 = vrot.slane %v1028_v53, 2  ;;  %v1499_v4 = vmul.f32 %v11687_v39, %v12977_v59  ;;  %v1645_v41 = vmul.f32 %v11655_v32, %v12977_v59  ;;  %v13077_v53 = vld [vmem:[#allocation2 + $0x180] sm:$0xff] }
 0x126   :  { %v1646_v44 = vmul.f32 %v11655_v32, %v12981_v14  ;;  %v2046_v61 = vadd.f32 %v1864_v49, %v1562_v47  ;;  %v766_v0 = vsel %vm693_vm4, %v764_v20, %v765_v38  ;;  %v1250_v56 = vrot.slane %v1029_v21, 2  ;;  %v13080_v47 = vld [vmem:[#allocation2 + $0x188] sm:$0xff] }
 0x127   :  { %11021 = vmatprep.mubr.msk.f32.mxu0 %vm38_vm1, %v3629_v54  ;;  %v2129_v15 = vmul.f32 %v11660_v33, %v12977_v59  ;;  %v946_v19 = vadd.f32 %v766_v0, %v397_v31  ;;  %v1865_v51 = vrot.slane %v1645_v41, 1  ;;  %v2130_v58 = vmul.f32 %v11660_v33, %v12981_v14 }
 0x128   :  { %v1866_v7 = vrot.slane %v1646_v44, 1  ;;  %v2530_v37 = vadd.f32 %v2348_v55, %v2046_v61  ;;  %v2964_v22 = vsel %vm693_vm4, %v2961_v50, %v2963_v1  ;;  %v1251_v54 = vsel %vm1178_vm5, %v1249_v42, %v1250_v56  ;;  %v13088_v55 = vld [vmem:[%s20164_s0 + $0x170] sm:$0xff]  ;;  %v13093_v50 = vld [vmem:[%s20164_s0 + $0x178] sm:$0xff] }
 0x129   :  { %v2349_v49 = vrot.slane %v2129_v15, 2  ;;  %v1431_v20 = vadd.f32 %v1251_v54, %v946_v19  ;;  %v2350_v63 = vrot.slane %v2130_v58, 2  ;;  %v2745_v31 = vmul.f32 %v11692_v40, %v13077_v53  ;;  %20448 = vst [vmem:[#allocation51_spill] sm:$0xff] %v13088_v55  ;;  %20449 = vst [vmem:[#allocation52_spill] sm:$0xff] %v13093_v50 }
 0x12a   :  { %v1867_v21 = vsel %vm693_vm4, %v1865_v51, %v1866_v7  ;;  %v2662_v1 = vadd.f32 %v2598_v62, %v2530_v37  ;;  %v13097_v42 = vmul.f32 %v11692_v40, %v13080_v47  ;;  %v3229_v41 = vmul.f32 %v12994_v36, %v13077_v53  ;;  %237 = vst.msk [vmem:[#allocation2 + $0x271] sm:$0xff] %vm38_vm1, %v13088_v55 }
 0x12b   :  { %v13103_v44 = vmul.f32 %v12994_v36, %v13080_v47  ;;  %238 = vst.msk [vmem:[#allocation2 + $0x279] sm:$0xff] %vm38_vm1, %v13093_v50  ;;  %v20450_v61 = vrot.slane %v13011_v57, 2  ;;  %v1563_v0 = vadd.f32 %v1499_v4, %v1431_v20  ;;  %v2351_v15 = vsel %vm1178_vm5, %v2349_v49, %v2350_v63 }
 0x12c   :  { %v2599_v19 = vmul.f32 %v11708_v46, %v13077_v53  ;;  %v3146_v51 = vadd.f32 %v2964_v22, %v2662_v1  ;;  %v2965_v58 = vrot.slane %v2745_v31, 1  ;;  %v2966_v37 = vrot.slane %v13097_v42, 1  ;;  %v13127_v1 = vld [vmem:[#allocation2 + $0x190] sm:$0x3] }
 0x12d   :  { %v3448_v62 = vsel %vm1178_vm5, %v20450_v61, %v3447_v48  ;;  %v398_v54 = vmul.f32 %v11621_v25, %v12886_v43  ;;  %v2047_v55 = vadd.f32 %v1867_v21, %v1563_v0  ;;  %v3449_v60 = vrot.slane %v3229_v41, 2 }
 0x12e   :  { %v545_v57 = vmul.f32 %v11626_v26, %v12933_v16  ;;  %v1030_v48 = vmul.f32 %v11631_v27, %v12933_v16  ;;  %v3630_v4 = vadd.f32 %v3448_v62, %v3146_v51  ;;  %v3450_v49 = vrot.slane %v13103_v44, 2 }
 0x12f   :  { %v1500_v22 = vmul.f32 %v11687_v39, %v12981_v14  ;;  %v1647_v20 = vmul.f32 %v11655_v32, %v13031_v52  ;;  %v2531_v31 = vadd.f32 %v2351_v15, %v2047_v55  ;;  %v2131_v42 = vmul.f32 %v11660_v33, %v13031_v52 }
 0x130   :  { %v767_v43 = vrot.slane %v545_v57, 1  ;;  %v1252_v21 = vrot.slane %v1030_v48, 2  ;;  %11022 = vmatmul.mubr.msk.f32.gmra.mrb[26].mxu0 %vm38_vm1, %v3630_v4  ;;  %v2967_v16 = vsel %vm693_vm4, %v2965_v58, %v2966_v37  ;;  %v2747_v44 = vmul.f32 %v11692_v40, %v13127_v1 }
 0x131   :  { %v1868_v41 = vrot.slane %v1647_v20, 1  ;;  %v3231_v61 = vmul.f32 %v12994_v36, %v13127_v1  ;;  %v2663_v62 = vadd.f32 %v2599_v19, %v2531_v31  ;;  %v2352_v15 = vrot.slane %v2131_v42, 2 }
 0x132   :  { %v768_v55 = vsel %vm693_vm4, %v765_v38, %v767_v43  ;;  %v1253_v0 = vsel %vm1178_vm5, %v1250_v56, %v1252_v21  ;;  %v3451_v51 = vsel %vm1178_vm5, %v3449_v60, %v3450_v49  ;;  %v2600_v58 = vmul.f32 %v11708_v46, %v13080_v47 }
 0x133   :  { %v947_v57 = vadd.f32 %v768_v55, %v398_v54  ;;  %v1869_v48 = vsel %vm693_vm4, %v1866_v7, %v1868_v41  ;;  %v3147_v4 = vadd.f32 %v2967_v16, %v2663_v62  ;;  %v2968_v20 = vrot.slane %v2747_v44, 1  ;;  %v306_v41 = vld [vmem:[#allocation2 + $0x198] sm:$0xff]  ;;  %v307_v62 = vld [vmem:[#allocation2 + $0x1a0] sm:$0xff] }
 0x134   :  { %v3452_v50 = vrot.slane %v3231_v61, 2  ;;  %v546_v45 = vmul.f32 %v11626_v26, %v12977_v59  ;;  %v2353_v38 = vsel %vm1178_vm5, %v2350_v63, %v2352_v15  ;;  %v399_v56 = vmul.f32 %v11621_v25, %v12977_v59 }
 0x135   :  { %v1432_v19 = vadd.f32 %v1253_v0, %v947_v57  ;;  %v13150_v60 = vmul.f32 %v11626_v26, %v12981_v14  ;;  %v3631_v7 = vadd.f32 %v3451_v51, %v3147_v4  ;;  %v1031_v31 = vmul.f32 %v11631_v27, %v12977_v59 }
 0x136   :  { %v769_v54 = vrot.slane %v546_v45, 1  ;;  %v1032_v43 = vmul.f32 %v11631_v27, %v12981_v14  ;;  %v1501_v63 = vmul.f32 %v11687_v39, %v13077_v53  ;;  %v1648_v16 = vmul.f32 %v11655_v32, %v13077_v53 }
 0x137   :  { %v1564_v21 = vadd.f32 %v1500_v22, %v1432_v19  ;;  %v770_v42 = vrot.slane %v13150_v60, 1  ;;  %11024 = vmatprep.mubr.msk.f32.mxu0 %vm38_vm1, %v3631_v7  ;;  %v1254_v44 = vrot.slane %v1031_v31, 2  ;;  %v1649_v59 = vmul.f32 %v11655_v32, %v13080_v47 }
 0x138   :  { %v1255_v45 = vrot.slane %v1032_v43, 2  ;;  %v2132_v61 = vmul.f32 %v11660_v33, %v13077_v53  ;;  %v1870_v0 = vrot.slane %v1648_v16, 1  ;;  %v13169_v15 = vmul.f32 %v11660_v33, %v13080_v47 }
 0x139   :  { %v2048_v22 = vadd.f32 %v1869_v48, %v1564_v21  ;;  %v771_v55 = vsel %vm693_vm4, %v769_v54, %v770_v42  ;;  %v1871_v4 = vrot.slane %v1649_v59, 1  ;;  %v2969_v7 = vsel %vm693_vm4, %v2966_v37, %v2968_v20  ;;  %v13188_v37 = vld [vmem:[%s20164_s0 + $0x188] sm:$0xff] }
 0x13a   :  { %v948_v51 = vadd.f32 %v771_v55, %v399_v56  ;;  %v1256_v57 = vsel %vm1178_vm5, %v1254_v44, %v1255_v45  ;;  %v2354_v19 = vrot.slane %v2132_v61, 2  ;;  %v2355_v31 = vrot.slane %v13169_v15, 2  ;;  %v13183_v56 = vld [vmem:[%s20164_s0 + $0x180] sm:$0xff]  ;;  %20452 = vst [vmem:[#allocation54_spill] sm:$0xff] %v13188_v37  ;;  %240 = vst.msk [vmem:[#allocation2 + $0x291] sm:$0xff] %vm38_vm1, %v13188_v37 }
 0x13b   :  { %v2532_v60 = vadd.f32 %v2353_v38, %v2048_v22  ;;  %v2748_v53 = vmul.f32 %v11692_v40, %v306_v41  ;;  %v3453_v48 = vsel %vm1178_vm5, %v3450_v49, %v3452_v50  ;;  %v13177_v43 = vmul.f32 %v11692_v40, %v307_v62  ;;  %20451 = vst [vmem:[#allocation53_spill] sm:$0xff] %v13183_v56  ;;  %v13299_v37 = vld [vmem:[#allocation2 + $0x1d8] sm:$0x3] }
 0x13c   :  { %v1433_v54 = vadd.f32 %v1256_v57, %v948_v51  ;;  %v3232_v21 = vmul.f32 %v12994_v36, %v306_v41  ;;  %v1872_v38 = vsel %vm693_vm4, %v1870_v0, %v1871_v4  ;;  %v13192_v49 = vmul.f32 %v12994_v36, %v307_v62  ;;  %239 = vst.msk [vmem:[#allocation2 + $0x289] sm:$0xff] %vm38_vm1, %v13183_v56  ;;  %v308_v57 = vld [vmem:[#allocation2 + $0x1a8] sm:$0x3] }
 0x13d   :  { %v2664_v20 = vadd.f32 %v2600_v58, %v2532_v60  ;;  %v2970_v50 = vrot.slane %v2748_v53, 1  ;;  %v2356_v44 = vsel %vm1178_vm5, %v2354_v19, %v2355_v31  ;;  %v2601_v59 = vmul.f32 %v11708_v46, %v306_v41 }
 0x13e   :  { %v1565_v16 = vadd.f32 %v1501_v63, %v1433_v54  ;;  %v2971_v61 = vrot.slane %v13177_v43, 1  ;;  %v3454_v22 = vrot.slane %v3232_v21, 2  ;;  %v548_v55 = vmul.f32 %v11626_v26, %v13031_v52 }
 0x13f   :  { %v3148_v58 = vadd.f32 %v2969_v7, %v2664_v20  ;;  %v1033_v0 = vmul.f32 %v11631_v27, %v13031_v52  ;;  %v3455_v51 = vrot.slane %v13192_v49, 2  ;;  %v400_v63 = vmul.f32 %v11621_v25, %v12981_v14  ;;  %v309_v20 = vld [vmem:[#allocation2 + $0x1b0] sm:$0xff] }
 0x140   :  { %v2049_v15 = vadd.f32 %v1872_v38, %v1565_v16  ;;  %v1650_v41 = vmul.f32 %v11655_v32, %v13127_v1  ;;  %v2972_v60 = vsel %vm693_vm4, %v2970_v50, %v2971_v61  ;;  %v772_v7 = vrot.slane %v548_v55, 1  ;;  %v310_v16 = vld [vmem:[#allocation2 + $0x1b8] sm:$0xff] }
 0x141   :  { %v3632_v19 = vadd.f32 %v3453_v48, %v3148_v58  ;;  %v1257_v53 = vrot.slane %v1033_v0, 2  ;;  %v1502_v43 = vmul.f32 %v11687_v39, %v13080_v47  ;;  %v2134_v21 = vmul.f32 %v11660_v33, %v13127_v1 }
 0x142   :  { %v2533_v54 = vadd.f32 %v2356_v44, %v2049_v15  ;;  %v1873_v52 = vrot.slane %v1650_v41, 1  ;;  %v773_v14 = vsel %vm693_vm4, %v770_v42, %v772_v7  ;;  %v2750_v48 = vmul.f32 %v11692_v40, %v308_v57 }
 0x143   :  { %11025 = vmatmul.mubr.msk.f32.gmra.mrb[28].mxu0 %vm38_vm1, %v3632_v19  ;;  %v1258_v38 = vsel %vm1178_vm5, %v1255_v45, %v1257_v53  ;;  %v3234_v50 = vmul.f32 %v12994_v36, %v308_v57  ;;  %v3456_v47 = vsel %vm1178_vm5, %v3454_v22, %v3455_v51  ;;  %v949_v58 = vadd.f32 %v773_v14, %v400_v63 }
 0x144   :  { %v2665_v44 = vadd.f32 %v2601_v59, %v2533_v54  ;;  %v2357_v55 = vrot.slane %v2134_v21, 2  ;;  %v1874_v1 = vsel %vm693_vm4, %v1871_v4, %v1873_v52  ;;  %v2602_v0 = vmul.f32 %v11708_v46, %v307_v62  ;;  %v13232_v54 = vld [vmem:[#allocation2 + $0x1c8] sm:$0xff]  ;;  %v13234_v62 = vld [vmem:[#allocation2 + $0x1d0] sm:$0xff] }
 0x145   :  { %v2973_v15 = vrot.slane %v2750_v48, 1  ;;  %v549_v42 = vmul.f32 %v11626_v26, %v309_v20  ;;  %v1434_v41 = vadd.f32 %v1258_v38, %v949_v58  ;;  %v3457_v19 = vrot.slane %v3234_v50, 2 }
 0x146   :  { %v3149_v45 = vadd.f32 %v2972_v60, %v2665_v44  ;;  %v13227_v57 = vmul.f32 %v11626_v26, %v310_v16  ;;  %v2358_v59 = vsel %vm1178_vm5, %v2355_v31, %v2357_v55  ;;  %v401_v7 = vmul.f32 %v11621_v25, %v309_v20 }
 0x147   :  { %v774_v22 = vrot.slane %v549_v42, 1  ;;  %v1034_v63 = vmul.f32 %v11631_v27, %v309_v20  ;;  %v1566_v4 = vadd.f32 %v1502_v43, %v1434_v41  ;;  %v13238_v52 = vmul.f32 %v11631_v27, %v310_v16 }
 0x148   :  { %v3633_v53 = vadd.f32 %v3456_v47, %v3149_v45  ;;  %v20219_v60 = vrot.slane %v13227_v57, 1  ;;  %v1503_v31 = vmul.f32 %v11687_v39, %v13232_v54  ;;  %v1651_v14 = vmul.f32 %v11655_v32, %v13232_v54 }
 0x149   :  { %v1259_v21 = vrot.slane %v1034_v63, 2  ;;  %v13246_v20 = vmul.f32 %v11655_v32, %v13234_v62  ;;  %v2050_v43 = vadd.f32 %v1874_v1, %v1566_v4  ;;  %v1260_v48 = vrot.slane %v13238_v52, 2  ;;  %v13259_v1 = vld [vmem:[#allocation2 + $0x1e0] sm:$0xff]  ;;  %v13262_v63 = vld [vmem:[#allocation2 + $0x1e8] sm:$0xff] }
 0x14a   :  { %11027 = vmatprep.mubr.msk.f32.mxu0 %vm38_vm1, %v3633_v53  ;;  %v776_v38 = vsel %vm693_vm4, %v774_v22, %v20219_v60  ;;  %v2135_v50 = vmul.f32 %v11660_v33, %v13232_v54  ;;  %v1875_v47 = vrot.slane %v1651_v14, 1  ;;  %v2136_v55 = vmul.f32 %v11660_v33, %v13234_v62 }
 0x14b   :  { %v950_v44 = vadd.f32 %v776_v38, %v401_v7  ;;  %v1876_v58 = vrot.slane %v13246_v20, 1  ;;  %v2534_v42 = vadd.f32 %v2358_v59, %v2050_v43  ;;  %v2974_v45 = vsel %vm693_vm4, %v2971_v61, %v2973_v15  ;;  %v13270_v59 = vld [vmem:[%s20164_s0 + $0x190] sm:$0xff]  ;;  %v13275_v61 = vld [vmem:[%s20164_s0 + $0x198] sm:$0xff]  ;;  %v311_v43 = vld [vmem:[#allocation2 + $0x1c0] sm:$0x3] }
 0x14c   :  { %v1261_v41 = vsel %vm1178_vm5, %v1259_v21, %v1260_v48  ;;  %v2359_v22 = vrot.slane %v2135_v50, 2  ;;  %v2360_v7 = vrot.slane %v2136_v55, 2  ;;  %v2751_v52 = vmul.f32 %v11692_v40, %v13259_v1  ;;  %20453 = vst [vmem:[#allocation55_spill] sm:$0xff] %v13270_v59  ;;  %20454 = vst [vmem:[#allocation56_spill] sm:$0xff] %v13275_v61 }
 0x14d   :  { %v1435_v53 = vadd.f32 %v1261_v41, %v950_v44  ;;  %v1877_v4 = vsel %vm693_vm4, %v1875_v47, %v1876_v58  ;;  %v2666_v15 = vadd.f32 %v2602_v0, %v2534_v42  ;;  %v13279_v21 = vmul.f32 %v11692_v40, %v13262_v63  ;;  %241 = vst.msk [vmem:[#allocation2 + $0x2a1] sm:$0xff] %vm38_vm1, %v13270_v59 }
 0x14e   :  { %v3235_v14 = vmul.f32 %v12994_v36, %v13259_v1  ;;  %v13285_v20 = vmul.f32 %v12994_v36, %v13262_v63  ;;  %242 = vst.msk [vmem:[#allocation2 + $0x2a9] sm:$0xff] %vm38_vm1, %v13275_v61  ;;  %v3458_v0 = vsel %vm1178_vm5, %v3455_v51, %v3457_v19  ;;  %v2361_v50 = vsel %vm1178_vm5, %v2359_v22, %v2360_v7 }
 0x14f   :  { %v1567_v38 = vadd.f32 %v1503_v31, %v1435_v53  ;;  %v2603_v44 = vmul.f32 %v11708_v46, %v13259_v1  ;;  %v3150_v47 = vadd.f32 %v2974_v45, %v2666_v15  ;;  %v2975_v55 = vrot.slane %v2751_v52, 1  ;;  %v13308_v52 = vld [vmem:[#allocation2 + $0x1f0] sm:$0x3] }
 0x150   :  { %v2976_v42 = vrot.slane %v13279_v21, 1  ;;  %v402_v41 = vmul.f32 %v11621_v25, %v310_v16  ;;  %v3459_v59 = vrot.slane %v3235_v14, 2  ;;  %v551_v49 = vmul.f32 %v11626_v26, %v311_v43 }
 0x151   :  { %v2051_v60 = vadd.f32 %v1877_v4, %v1567_v38  ;;  %v1036_v51 = vmul.f32 %v11631_v27, %v311_v43  ;;  %v3634_v19 = vadd.f32 %v3458_v0, %v3150_v47  ;;  %v3460_v31 = vrot.slane %v13285_v20, 2 }
 0x152   :  { %v1504_v22 = vmul.f32 %v11687_v39, %v13234_v62  ;;  %v1653_v45 = vmul.f32 %v11655_v32, %v13299_v37  ;;  %v777_v16 = vrot.slane %v551_v49, 1  ;;  %v2137_v15 = vmul.f32 %v11660_v33, %v13299_v37 }
 0x153   :  { %v2535_v53 = vadd.f32 %v2361_v50, %v2051_v60  ;;  %v1262_v4 = vrot.slane %v1036_v51, 2  ;;  %11028 = vmatmul.mubr.msk.f32.gmra.mrb[30].mxu0 %vm38_vm1, %v3634_v19  ;;  %v2977_v21 = vsel %vm693_vm4, %v2975_v55, %v2976_v42  ;;  %v2753_v20 = vmul.f32 %v11692_v40, %v13308_v52 }
 0x154   :  { %v1878_v14 = vrot.slane %v1653_v45, 1  ;;  %v3237_v43 = vmul.f32 %v12994_v36, %v13308_v52  ;;  %v20455_v60 = vrot.slane %v13227_v57, 1  ;;  %v2362_v47 = vrot.slane %v2137_v15, 2 }
 0x155   :  { %v2667_v0 = vadd.f32 %v2603_v44, %v2535_v53  ;;  %v1263_v50 = vsel %vm1178_vm5, %v1260_v48, %v1262_v4  ;;  %v3461_v49 = vsel %vm1178_vm5, %v3459_v59, %v3460_v31  ;;  %v2604_v19 = vmul.f32 %v11708_v46, %v13262_v63 }
 0x156   :  { %v778_v38 = vsel %vm693_vm4, %v20455_v60, %v777_v16  ;;  %v1879_v55 = vsel %vm693_vm4, %v1876_v58, %v1878_v14  ;;  %v2978_v61 = vrot.slane %v2753_v20, 1  ;;  %v3462_v56 = vrot.slane %v3237_v43, 2 }
 0x157   :  { %v951_v51 = vadd.f32 %v778_v38, %v402_v41  ;;  %v3151_v45 = vadd.f32 %v2977_v21, %v2667_v0  ;;  %v552_v44 = vmul.f32 %v11626_v26, %v13232_v54  ;;  %v2363_v53 = vsel %vm1178_vm5, %v2360_v7, %v2362_v47  ;;  %v13354_v47 = vld [vmem:[#allocation2 + $0x1f8] sm:$0xff] }
 0x158   :  { %v403_v48 = vmul.f32 %v11621_v25, %v13232_v54  ;;  %v13333_v59 = vmul.f32 %v11626_v26, %v13234_v62  ;;  %v1037_v16 = vmul.f32 %v11631_v27, %v13232_v54  ;;  %v1038_v4 = vmul.f32 %v11631_v27, %v13234_v62 }
 0x159   :  { %v1436_v57 = vadd.f32 %v1263_v50, %v951_v51  ;;  %v3635_v58 = vadd.f32 %v3461_v49, %v3151_v45  ;;  %v779_v41 = vrot.slane %v552_v44, 1  ;;  %v1505_v7 = vmul.f32 %v11687_v39, %v13259_v1 }
 0x15a   :  { %v780_v21 = vrot.slane %v13333_v59, 1  ;;  %v1654_v14 = vmul.f32 %v11655_v32, %v13259_v1  ;;  %v1264_v20 = vrot.slane %v1037_v16, 2  ;;  %v1265_v43 = vrot.slane %v1038_v4, 2 }
 0x15b   :  { %v1568_v15 = vadd.f32 %v1504_v22, %v1436_v57  ;;  %11030 = vmatprep.mubr.msk.f32.mxu0 %vm38_vm1, %v3635_v58  ;;  %v1655_v0 = vmul.f32 %v11655_v32, %v13262_v63  ;;  %v2138_v54 = vmul.f32 %v11660_v33, %v13259_v1  ;;  %v13352_v50 = vmul.f32 %v11660_v33, %v13262_v63  ;;  %v13358_v58 = vld [vmem:[#allocation2 + $0x200] sm:$0xff] }
 0x15c   :  { %v781_v22 = vsel %vm693_vm4, %v779_v41, %v780_v21  ;;  %v1880_v38 = vrot.slane %v1654_v14, 1  ;;  %v1266_v51 = vsel %vm1178_vm5, %v1264_v20, %v1265_v43  ;;  %v2979_v59 = vsel %vm693_vm4, %v2976_v42, %v2978_v61  ;;  %v13373_v61 = vld [vmem:[%s20164_s0 + $0x1a0] sm:$0xff]  ;;  %v13378_v42 = vld [vmem:[%s20164_s0 + $0x1a8] sm:$0xff] }
 0x15d   :  { %v2052_v60 = vadd.f32 %v1879_v55, %v1568_v15  ;;  %v952_v49 = vadd.f32 %v781_v22, %v403_v48  ;;  %v1881_v45 = vrot.slane %v1655_v0, 1  ;;  %v2364_v44 = vrot.slane %v2138_v54, 2  ;;  %20456 = vst [vmem:[#allocation57_spill] sm:$0xff] %v13373_v61  ;;  %20457 = vst [vmem:[#allocation58_spill] sm:$0xff] %v13378_v42 }
 0x15e   :  { %v2365_v55 = vrot.slane %v13352_v50, 2  ;;  %v2754_v41 = vmul.f32 %v11692_v40, %v13354_v47  ;;  %v3463_v16 = vsel %vm1178_vm5, %v3460_v31, %v3462_v56  ;;  %v13366_v48 = vmul.f32 %v11692_v40, %v13358_v58  ;;  %243 = vst.msk [vmem:[#allocation2 + $0x2b9] sm:$0xff] %vm38_vm1, %v13373_v61  ;;  %244 = vst.msk [vmem:[#allocation2 + $0x2c1] sm:$0xff] %vm38_vm1, %v13378_v42 }
 0x15f   :  { %v2536_v57 = vadd.f32 %v2363_v53, %v2052_v60  ;;  %v1437_v4 = vadd.f32 %v1266_v51, %v952_v49  ;;  %v3238_v15 = vmul.f32 %v12994_v36, %v13354_v47  ;;  %v1882_v56 = vsel %vm693_vm4, %v1880_v38, %v1881_v45 }
 0x160   :  { %v2980_v31 = vrot.slane %v2754_v41, 1  ;;  %v13383_v14 = vmul.f32 %v12994_v36, %v13358_v58  ;;  %v2366_v0 = vsel %vm1178_vm5, %v2364_v44, %v2365_v55  ;;  %v2605_v54 = vmul.f32 %v11708_v46, %v13354_v47 }
 0x161   :  { %v2668_v53 = vadd.f32 %v2604_v19, %v2536_v57  ;;  %v1569_v20 = vadd.f32 %v1505_v7, %v1437_v4  ;;  %v2981_v19 = vrot.slane %v13366_v48, 1  ;;  %v3464_v22 = vrot.slane %v3238_v15, 2  ;;  %v13403_v15 = vld [vmem:[#allocation2 + $0x208] sm:$0x3] }
 0x162   :  { %v554_v38 = vmul.f32 %v11626_v26, %v13299_v37  ;;  %v1039_v50 = vmul.f32 %v11631_v27, %v13299_v37  ;;  %v3465_v51 = vrot.slane %v13383_v14, 2  ;;  %v404_v7 = vmul.f32 %v11621_v25, %v13234_v62 }
 0x163   :  { %v3152_v60 = vadd.f32 %v2979_v59, %v2668_v53  ;;  %v2053_v49 = vadd.f32 %v1882_v56, %v1569_v20  ;;  %v1656_v44 = vmul.f32 %v11655_v32, %v13308_v52  ;;  %v2982_v41 = vsel %vm693_vm4, %v2980_v31, %v2981_v19 }
 0x164   :  { %v782_v59 = vrot.slane %v554_v38, 1  ;;  %v1267_v4 = vrot.slane %v1039_v50, 2  ;;  %v1506_v37 = vmul.f32 %v11687_v39, %v13262_v63  ;;  %v2140_v56 = vmul.f32 %v11660_v33, %v13308_v52 }
 0x165   :  { %v3636_v57 = vadd.f32 %v3463_v16, %v3152_v60  ;;  %v2537_v48 = vadd.f32 %v2366_v0, %v2053_v49  ;;  %v1883_v53 = vrot.slane %v1656_v44, 1  ;;  %v2756_v31 = vmul.f32 %v11692_v40, %v13403_v15 }
 0x166   :  { %v783_v62 = vsel %vm693_vm4, %v780_v21, %v782_v59  ;;  %v1268_v16 = vsel %vm1178_vm5, %v1265_v43, %v1267_v4  ;;  %v3240_v20 = vmul.f32 %v12994_v36, %v13403_v15  ;;  %v3466_v60 = vsel %vm1178_vm5, %v3464_v22, %v3465_v51 }
 0x167   :  { %11031 = vmatmul.mubr.msk.f32.gmra.mrb[32].mxu0 %vm38_vm1, %v3636_v57  ;;  %v2669_v0 = vadd.f32 %v2605_v54, %v2537_v48  ;;  %v953_v38 = vadd.f32 %v783_v62, %v404_v7  ;;  %v2367_v50 = vrot.slane %v2140_v56, 2  ;;  %v1884_v49 = vsel %vm693_vm4, %v1881_v45, %v1883_v53 }
 0x168   :  { %v2606_v21 = vmul.f32 %v11708_v46, %v13358_v58  ;;  %v2983_v44 = vrot.slane %v2756_v31, 1  ;;  %v555_v43 = vmul.f32 %v11626_v26, %v13259_v1  ;;  %v3467_v4 = vrot.slane %v3240_v20, 2 }
 0x169   :  { %v3153_v57 = vadd.f32 %v2982_v41, %v2669_v0  ;;  %v1438_v59 = vadd.f32 %v1268_v16, %v953_v38  ;;  %v13426_v54 = vmul.f32 %v11626_v26, %v13262_v63  ;;  %v2368_v22 = vsel %vm1178_vm5, %v2365_v55, %v2367_v50 }
 0x16a   :  { %v405_v7 = vmul.f32 %v11621_v25, %v13259_v1  ;;  %v784_v45 = vrot.slane %v555_v43, 1  ;;  %v1040_v48 = vmul.f32 %v11631_v27, %v13259_v1  ;;  %v1041_v41 = vmul.f32 %v11631_v27, %v13262_v63 }
 0x16b   :  { %v3637_v53 = vadd.f32 %v3466_v60, %v3153_v57  ;;  %v1570_v56 = vadd.f32 %v1506_v37, %v1438_v59  ;;  %v785_v62 = vrot.slane %v13426_v54, 1  ;;  %v1507_v31 = vmul.f32 %v11687_v39, %v13354_v47 }
 0x16c   :  { %v1269_v16 = vrot.slane %v1040_v48, 2  ;;  %v1657_v55 = vmul.f32 %v11655_v32, %v13354_v47  ;;  %v1658_v20 = vmul.f32 %v11655_v32, %v13358_v58  ;;  %v1270_v0 = vrot.slane %v1041_v41, 2  ;;  %v13449_v48 = vld [vmem:[#allocation2 + $0x210] sm:$0xff] }
 0x16d   :  { %11033 = vmatprep.mubr.msk.f32.mxu0 %vm38_vm1, %v3637_v53  ;;  %v2054_v1 = vadd.f32 %v1884_v49, %v1570_v56  ;;  %v786_v37 = vsel %vm693_vm4, %v784_v45, %v785_v62  ;;  %v2141_v60 = vmul.f32 %v11660_v33, %v13354_v47  ;;  %v2142_v57 = vmul.f32 %v11660_v33, %v13358_v58  ;;  %v13455_v45 = vld [vmem:[%s20164_s0 + $0x1b0] sm:$0xff]  ;;  %v13462_v56 = vld [vmem:[#allocation2 + $0x218] sm:$0xff] }
 0x16e   :  { %v954_v38 = vadd.f32 %v786_v37, %v405_v7  ;;  %v1885_v50 = vrot.slane %v1657_v55, 1  ;;  %v1886_v43 = vrot.slane %v1658_v20, 1  ;;  %v2984_v54 = vsel %vm693_vm4, %v2981_v19, %v2983_v44  ;;  %20458 = vst [vmem:[#allocation59_spill] sm:$0xff] %v13455_v45  ;;  %v13460_v7 = vld [vmem:[%s20164_s0 + $0x1b8] sm:$0xff]  ;;  %245 = vst.msk [vmem:[#allocation2 + $0x2d1] sm:$0xff] %vm38_vm1, %v13455_v45 }
 0x16f   :  { %v2538_v59 = vadd.f32 %v2368_v22, %v2054_v1  ;;  %v1271_v53 = vsel %vm1178_vm5, %v1269_v16, %v1270_v0  ;;  %v2369_v49 = vrot.slane %v2141_v60, 2  ;;  %20459 = vst [vmem:[#allocation60_spill] sm:$0xff] %v13460_v7  ;;  %v2370_v44 = vrot.slane %v2142_v57, 2  ;;  %246 = vst.msk [vmem:[#allocation2 + $0x2d9] sm:$0xff] %vm38_vm1, %v13460_v7 }
 0x170   :  { %v1439_v22 = vadd.f32 %v1271_v53, %v954_v38  ;;  %v1887_v19 = vsel %vm693_vm4, %v1885_v50, %v1886_v43  ;;  %v2757_v41 = vmul.f32 %v11692_v40, %v13449_v48  ;;  %v13473_v55 = vmul.f32 %v11692_v40, %v13462_v56 }
 0x171   :  { %v2670_v16 = vadd.f32 %v2606_v21, %v2538_v59  ;;  %v3241_v20 = vmul.f32 %v12994_v36, %v13449_v48  ;;  %v13479_v1 = vmul.f32 %v12994_v36, %v13462_v56  ;;  %v3468_v37 = vsel %vm1178_vm5, %v3465_v51, %v3467_v4 }
 0x172   :  { %v1571_v60 = vadd.f32 %v1507_v31, %v1439_v22  ;;  %v2371_v38 = vsel %vm1178_vm5, %v2369_v49, %v2370_v44  ;;  %v2607_v21 = vmul.f32 %v11708_v46, %v13449_v48  ;;  %v2985_v57 = vrot.slane %v2757_v41, 1  ;;  %v13499_v41 = vld [vmem:[#allocation2 + $0x220] sm:$0x3] }
 0x173   :  { %v3154_v50 = vadd.f32 %v2984_v54, %v2670_v16  ;;  %v2986_v59 = vrot.slane %v13473_v55, 1  ;;  %v406_v53 = vmul.f32 %v11621_v25, %v13262_v63  ;;  %v3469_v45 = vrot.slane %v3241_v20, 2 }
 0x174   :  { %v2055_v7 = vadd.f32 %v1887_v19, %v1571_v60  ;;  %v557_v14 = vmul.f32 %v11626_v26, %v13308_v52  ;;  %v1042_v51 = vmul.f32 %v11631_v27, %v13308_v52  ;;  %v3470_v31 = vrot.slane %v13479_v1, 2 }
 0x175   :  { %v3638_v4 = vadd.f32 %v3468_v37, %v3154_v50  ;;  %v1508_v54 = vmul.f32 %v11687_v39, %v13358_v58  ;;  %v1659_v49 = vmul.f32 %v11655_v32, %v13403_v15  ;;  %v2143_v16 = vmul.f32 %v11660_v33, %v13403_v15 }
 0x176   :  { %v2539_v22 = vadd.f32 %v2371_v38, %v2055_v7  ;;  %v787_v63 = vrot.slane %v557_v14, 1  ;;  %v1272_v19 = vrot.slane %v1042_v51, 2  ;;  %v2987_v52 = vsel %vm693_vm4, %v2985_v57, %v2986_v59 }
 0x177   :  { %11034 = vmatmul.mubr.msk.f32.gmra.mrb[34].mxu0 %vm38_vm1, %v3638_v4  ;;  %v1888_v55 = vrot.slane %v1659_v49, 1  ;;  %v2759_v20 = vmul.f32 %v11692_v40, %v13499_v41  ;;  %v3243_v1 = vmul.f32 %v12994_v36, %v13499_v41  ;;  %v2372_v38 = vrot.slane %v2143_v16, 2 }
 0x178   :  { %v2671_v37 = vadd.f32 %v2607_v21, %v2539_v22  ;;  %v788_v7 = vsel %vm693_vm4, %v785_v62, %v787_v63  ;;  %v1273_v60 = vsel %vm1178_vm5, %v1270_v0, %v1272_v19  ;;  %v3471_v50 = vsel %vm1178_vm5, %v3469_v45, %v3470_v31 }
 0x179   :  { %v955_v14 = vadd.f32 %v788_v7, %v406_v53  ;;  %v1889_v51 = vsel %vm693_vm4, %v1886_v43, %v1888_v55  ;;  %v2608_v57 = vmul.f32 %v11708_v46, %v13462_v56  ;;  %v2988_v49 = vrot.slane %v2759_v20, 1 }
 0x17a   :  { %v3155_v4 = vadd.f32 %v2987_v52, %v2671_v37  ;;  %v3472_v42 = vrot.slane %v3243_v1, 2  ;;  %v558_v61 = vmul.f32 %v11626_v26, %v13354_v47  ;;  %v2373_v62 = vsel %vm1178_vm5, %v2370_v44, %v2372_v38 }
 0x17b   :  { %v1440_v21 = vadd.f32 %v1273_v60, %v955_v14  ;;  %v407_v0 = vmul.f32 %v11621_v25, %v13354_v47  ;;  %v13522_v45 = vmul.f32 %v11626_v26, %v13358_v58  ;;  %v1043_v22 = vmul.f32 %v11631_v27, %v13354_v47  ;;  %v13543_v60 = vld [vmem:[#allocation2 + $0x228] sm:$0xff] }
 0x17c   :  { %v3639_v43 = vadd.f32 %v3471_v50, %v3155_v4  ;;  %v789_v53 = vrot.slane %v558_v61, 1  ;;  %v1044_v63 = vmul.f32 %v11631_v27, %v13358_v58  ;;  %v1509_v44 = vmul.f32 %v11687_v39, %v13449_v48 }
 0x17d   :  { %v1572_v19 = vadd.f32 %v1508_v54, %v1440_v21  ;;  %v790_v16 = vrot.slane %v13522_v45, 1  ;;  %v1660_v52 = vmul.f32 %v11655_v32, %v13449_v48  ;;  %v1274_v55 = vrot.slane %v1043_v22, 2  ;;  %v13555_v22 = vld [vmem:[%s20164_s0 + $0x1c0] sm:$0xff] }
 0x17e   :  { %11036 = vmatprep.mubr.msk.f32.mxu0 %vm38_vm1, %v3639_v43  ;;  %v1275_v20 = vrot.slane %v1044_v63, 2  ;;  %v1661_v61 = vmul.f32 %v11655_v32, %v13462_v56  ;;  %v2144_v47 = vmul.f32 %v11660_v33, %v13449_v48  ;;  %v13541_v7 = vmul.f32 %v11660_v33, %v13462_v56  ;;  %v13547_v43 = vld [vmem:[#allocation2 + $0x230] sm:$0xff]  ;;  %20460 = vst [vmem:[#allocation61_spill] sm:$0xff] %v13555_v22 }
 0x17f   :  { %v2056_v1 = vadd.f32 %v1889_v51, %v1572_v19  ;;  %v791_v54 = vsel %vm693_vm4, %v789_v53, %v790_v16  ;;  %v1890_v37 = vrot.slane %v1660_v52, 1  ;;  %v2989_v45 = vsel %vm693_vm4, %v2986_v59, %v2988_v49  ;;  %247 = vst.msk [vmem:[#allocation2 + $0x2e9] sm:$0xff] %vm38_vm1, %v13555_v22 }
 0x180   :  { %v956_v38 = vadd.f32 %v791_v54, %v407_v0  ;;  %v1276_v50 = vsel %vm1178_vm5, %v1274_v55, %v1275_v20  ;;  %v1891_v14 = vrot.slane %v1661_v61, 1  ;;  %v2374_v4 = vrot.slane %v2144_v47, 2  ;;  %v13560_v0 = vld [vmem:[%s20164_s0 + $0x1c8] sm:$0xff] }
 0x181   :  { %v2540_v21 = vadd.f32 %v2373_v62, %v2056_v1  ;;  %v2375_v51 = vrot.slane %v13541_v7, 2  ;;  %v2760_v53 = vmul.f32 %v11692_v40, %v13543_v60  ;;  %20461 = vst [vmem:[#allocation62_spill] sm:$0xff] %v13560_v0  ;;  %v3473_v62 = vsel %vm1178_vm5, %v3470_v31, %v3472_v42  ;;  %248 = vst.msk [vmem:[#allocation2 + $0x2f1] sm:$0xff] %vm38_vm1, %v13560_v0 }
 0x182   :  { %v1441_v59 = vadd.f32 %v1276_v50, %v956_v38  ;;  %v13565_v49 = vmul.f32 %v11692_v40, %v13547_v43  ;;  %v3244_v63 = vmul.f32 %v12994_v36, %v13543_v60  ;;  %v1892_v52 = vsel %vm693_vm4, %v1890_v37, %v1891_v14 }
 0x183   :  { %v2672_v19 = vadd.f32 %v2608_v57, %v2540_v21  ;;  %v2990_v55 = vrot.slane %v2760_v53, 1  ;;  %v13576_v42 = vmul.f32 %v12994_v36, %v13547_v43  ;;  %v2376_v61 = vsel %vm1178_vm5, %v2374_v4, %v2375_v51 }
 0x184   :  { %v1573_v31 = vadd.f32 %v1509_v44, %v1441_v59  ;;  %v2609_v47 = vmul.f32 %v11708_v46, %v13543_v60  ;;  %v2991_v1 = vrot.slane %v13565_v49, 1  ;;  %v3474_v7 = vrot.slane %v3244_v63, 2  ;;  %v13592_v49 = vld [vmem:[#allocation2 + $0x238] sm:$0x3] }
 0x185   :  { %v3156_v54 = vadd.f32 %v2989_v45, %v2672_v19  ;;  %v560_v57 = vmul.f32 %v11626_v26, %v13403_v15  ;;  %v1045_v37 = vmul.f32 %v11631_v27, %v13403_v15  ;;  %v3475_v36 = vrot.slane %v13576_v42, 2 }
 0x186   :  { %v2057_v38 = vadd.f32 %v1892_v52, %v1573_v31  ;;  %v408_v44 = vmul.f32 %v11621_v25, %v13358_v58  ;;  %v1662_v50 = vmul.f32 %v11655_v32, %v13499_v41  ;;  %v2992_v21 = vsel %vm693_vm4, %v2990_v55, %v2991_v1  ;;  %v13606_v55 = vld [vmem:[%s20165_s1 + $0x8] ss:$0 sm:$0xff] }
 0x187   :  { %v3640_v4 = vadd.f32 %v3473_v62, %v3156_v54  ;;  %v792_v45 = vrot.slane %v560_v57, 1  ;;  %v1277_v53 = vrot.slane %v1045_v37, 2  ;;  %v1510_v15 = vmul.f32 %v11687_v39, %v13462_v56 }
 0x188   :  { %v2541_v59 = vadd.f32 %v2376_v61, %v2057_v38  ;;  %v1893_v63 = vrot.slane %v1662_v50, 1  ;;  %v2146_v19 = vmul.f32 %v11660_v33, %v13499_v41  ;;  %v2762_v52 = vmul.f32 %v11692_v40, %v13592_v49 }
 0x189   :  { %11037 = vmatmul.mubr.msk.f32.gmra.mrb[36].mxu0 %vm38_vm1, %v3640_v4  ;;  %v793_v58 = vsel %vm693_vm4, %v790_v16, %v792_v45  ;;  %v1278_v62 = vsel %vm1178_vm5, %v1275_v20, %v1277_v53  ;;  %v3246_v31 = vmul.f32 %v13606_v55, %v13592_v49  ;;  %v3476_v54 = vsel %vm1178_vm5, %v3474_v7, %v3475_v36 }
 0x18a   :  { %v2673_v61 = vadd.f32 %v2609_v47, %v2541_v59  ;;  %v957_v57 = vadd.f32 %v793_v58, %v408_v44  ;;  %v2377_v16 = vrot.slane %v2146_v19, 2  ;;  %v1894_v20 = vsel %vm693_vm4, %v1891_v14, %v1893_v63 }
 0x18b   :  { %v2610_v37 = vmul.f32 %v11708_v46, %v13547_v43  ;;  %v2993_v38 = vrot.slane %v2762_v52, 1  ;;  %v561_v50 = vmul.f32 %v11626_v26, %v13449_v48  ;;  %v3477_v53 = vrot.slane %v3246_v31, 2 }
 0x18c   :  { %v3157_v4 = vadd.f32 %v2992_v21, %v2673_v61  ;;  %v1442_v45 = vadd.f32 %v1278_v62, %v957_v57  ;;  %v13620_v47 = vmul.f32 %v11626_v26, %v13462_v56  ;;  %v2378_v7 = vsel %vm1178_vm5, %v2375_v51, %v2377_v16 }
 0x18d   :  { %v409_v44 = vmul.f32 %v11621_v25, %v13449_v48  ;;  %v794_v14 = vrot.slane %v561_v50, 1  ;;  %v1046_v59 = vmul.f32 %v11631_v27, %v13449_v48  ;;  %v1047_v21 = vmul.f32 %v11631_v27, %v13462_v56 }
 0x18e   :  { %v3641_v63 = vadd.f32 %v3476_v54, %v3157_v4  ;;  %v1574_v19 = vadd.f32 %v1510_v15, %v1442_v45  ;;  %v795_v58 = vrot.slane %v13620_v47, 1  ;;  %v1511_v52 = vmul.f32 %v11687_v39, %v13543_v60 }
 0x18f   :  { %v1279_v62 = vrot.slane %v1046_v59, 2  ;;  %v1663_v51 = vmul.f32 %v11655_v32, %v13543_v60  ;;  %v1664_v31 = vmul.f32 %v11655_v32, %v13547_v43  ;;  %v1280_v61 = vrot.slane %v1047_v21, 2  ;;  %v13643_v59 = vld [vmem:[#allocation2 + $0x240] sm:$0xff] }
 0x190   :  { %11039 = vmatprep.mubr.msk.f32.mxu0 %vm38_vm1, %v3641_v63  ;;  %v2058_v48 = vadd.f32 %v1894_v20, %v1574_v19  ;;  %v796_v15 = vsel %vm693_vm4, %v794_v14, %v795_v58  ;;  %v2147_v54 = vmul.f32 %v11660_v33, %v13543_v60  ;;  %v2148_v4 = vmul.f32 %v11660_v33, %v13547_v43  ;;  %v13649_v14 = vld [vmem:[%s20164_s0 + $0x1d0] sm:$0xff]  ;;  %v13656_v19 = vld [vmem:[#allocation2 + $0x248] sm:$0xff] }
 0x191   :  { %v958_v57 = vadd.f32 %v796_v15, %v409_v44  ;;  %v1895_v16 = vrot.slane %v1663_v51, 1  ;;  %v1896_v50 = vrot.slane %v1664_v31, 1  ;;  %v2994_v47 = vsel %vm693_vm4, %v2991_v1, %v2993_v38  ;;  %20462 = vst [vmem:[#allocation63_spill] sm:$0xff] %v13649_v14  ;;  %v13654_v44 = vld [vmem:[%s20164_s0 + $0x1d8] sm:$0xff]  ;;  %249 = vst.msk [vmem:[#allocation2 + $0x301] sm:$0xff] %vm38_vm1, %v13649_v14 }
 0x192   :  { %v2542_v45 = vadd.f32 %v2378_v7, %v2058_v48  ;;  %v1281_v63 = vsel %vm1178_vm5, %v1279_v62, %v1280_v61  ;;  %v2379_v20 = vrot.slane %v2147_v54, 2  ;;  %20463 = vst [vmem:[#allocation64_spill] sm:$0xff] %v13654_v44  ;;  %v2380_v38 = vrot.slane %v2148_v4, 2  ;;  %250 = vst.msk [vmem:[#allocation2 + $0x309] sm:$0xff] %vm38_vm1, %v13654_v44 }
 0x193   :  { %v1443_v7 = vadd.f32 %v1281_v63, %v958_v57  ;;  %v1897_v1 = vsel %vm693_vm4, %v1895_v16, %v1896_v50  ;;  %v2763_v21 = vmul.f32 %v11692_v40, %v13643_v59  ;;  %v13667_v51 = vmul.f32 %v11692_v40, %v13656_v19 }
 0x194   :  { %v2674_v62 = vadd.f32 %v2610_v37, %v2542_v45  ;;  %v3247_v31 = vmul.f32 %v13606_v55, %v13643_v59  ;;  %v13673_v48 = vmul.f32 %v13606_v55, %v13656_v19  ;;  %v3478_v15 = vsel %vm1178_vm5, %v3475_v36, %v3477_v53 }
 0x195   :  { %v1575_v54 = vadd.f32 %v1511_v52, %v1443_v7  ;;  %v2381_v57 = vsel %vm1178_vm5, %v2379_v20, %v2380_v38  ;;  %v2611_v37 = vmul.f32 %v11708_v46, %v13643_v59  ;;  %v2995_v4 = vrot.slane %v2763_v21, 1  ;;  %v13693_v21 = vld [vmem:[#allocation2 + $0x250] sm:$0x3] }
 0x196   :  { %v3158_v16 = vadd.f32 %v2994_v47, %v2674_v62  ;;  %v2996_v45 = vrot.slane %v13667_v51, 1  ;;  %v410_v63 = vmul.f32 %v11621_v25, %v13462_v56  ;;  %v3479_v14 = vrot.slane %v3247_v31, 2 }
 0x197   :  { %v2059_v44 = vadd.f32 %v1897_v1, %v1575_v54  ;;  %v563_v42 = vmul.f32 %v11626_v26, %v13499_v41  ;;  %v1048_v36 = vmul.f32 %v11631_v27, %v13499_v41  ;;  %v3480_v52 = vrot.slane %v13673_v48, 2 }
 0x198   :  { %v3642_v53 = vadd.f32 %v3478_v15, %v3158_v16  ;;  %v1512_v47 = vmul.f32 %v11687_v39, %v13547_v43  ;;  %v1665_v20 = vmul.f32 %v11655_v32, %v13592_v49  ;;  %v2149_v62 = vmul.f32 %v11660_v33, %v13592_v49 }
 0x199   :  { %v2543_v7 = vadd.f32 %v2381_v57, %v2059_v44  ;;  %v797_v56 = vrot.slane %v563_v42, 1  ;;  %v1282_v1 = vrot.slane %v1048_v36, 2  ;;  %v2997_v41 = vsel %vm693_vm4, %v2995_v4, %v2996_v45 }
 0x19a   :  { %11040 = vmatmul.mubr.msk.f32.gmra.mrb[38].mxu0 %vm38_vm1, %v3642_v53  ;;  %v1898_v51 = vrot.slane %v1665_v20, 1  ;;  %v2765_v31 = vmul.f32 %v11692_v40, %v13693_v21  ;;  %v3249_v48 = vmul.f32 %v13606_v55, %v13693_v21  ;;  %v2382_v57 = vrot.slane %v2149_v62, 2 }
 0x19b   :  { %v2675_v15 = vadd.f32 %v2611_v37, %v2543_v7  ;;  %v798_v44 = vsel %vm693_vm4, %v795_v58, %v797_v56  ;;  %v1283_v54 = vsel %vm1178_vm5, %v1280_v61, %v1282_v1  ;;  %v3481_v16 = vsel %vm1178_vm5, %v3479_v14, %v3480_v52 }
 0x19c   :  { %v959_v42 = vadd.f32 %v798_v44, %v410_v63  ;;  %v1899_v36 = vsel %vm693_vm4, %v1896_v50, %v1898_v51  ;;  %v2612_v4 = vmul.f32 %v11708_v46, %v13656_v19  ;;  %v2998_v20 = vrot.slane %v2765_v31, 1 }
 0x19d   :  { %v3159_v53 = vadd.f32 %v2997_v41, %v2675_v15  ;;  %v3482_v0 = vrot.slane %v3249_v48, 2  ;;  %v564_v22 = vmul.f32 %v11626_v26, %v13543_v60  ;;  %v2383_v58 = vsel %vm1178_vm5, %v2380_v38, %v2382_v57 }
 0x19e   :  { %v1444_v37 = vadd.f32 %v1283_v54, %v959_v42  ;;  %v411_v61 = vmul.f32 %v11621_v25, %v13543_v60  ;;  %v13716_v14 = vmul.f32 %v11626_v26, %v13547_v43  ;;  %v1049_v7 = vmul.f32 %v11631_v27, %v13543_v60  ;;  %v13737_v54 = vld [vmem:[#allocation2 + $0x258] sm:$0xff] }
 0x19f   :  { %v3643_v50 = vadd.f32 %v3481_v16, %v3159_v53  ;;  %v799_v63 = vrot.slane %v564_v22, 1  ;;  %v1050_v56 = vmul.f32 %v11631_v27, %v13547_v43  ;;  %v1513_v38 = vmul.f32 %v11687_v39, %v13643_v59 }
 0x1a0   :  { %v1576_v1 = vadd.f32 %v1512_v47, %v1444_v37  ;;  %v800_v62 = vrot.slane %v13716_v14, 1  ;;  %v1666_v41 = vmul.f32 %v11655_v32, %v13643_v59  ;;  %v1284_v51 = vrot.slane %v1049_v7, 2 }
 0x1a1   :  { %11042 = vmatprep.mubr.msk.f32.mxu0 %vm38_vm1, %v3643_v50  ;;  %v1285_v31 = vrot.slane %v1050_v56, 2  ;;  %v1667_v22 = vmul.f32 %v11655_v32, %v13656_v19  ;;  %v2150_v60 = vmul.f32 %v11660_v33, %v13643_v59  ;;  %v13735_v44 = vmul.f32 %v11660_v33, %v13656_v19  ;;  %v13741_v50 = vld [vmem:[#allocation2 + $0x260] sm:$0xff] }
 0x1a2   :  { %v2060_v48 = vadd.f32 %v1899_v36, %v1576_v1  ;;  %v801_v47 = vsel %vm693_vm4, %v799_v63, %v800_v62  ;;  %v1900_v15 = vrot.slane %v1666_v41, 1  ;;  %v2999_v14 = vsel %vm693_vm4, %v2996_v45, %v2998_v20  ;;  %v13756_v45 = vld [vmem:[%s20164_s0 + $0x1e0] sm:$0xff]  ;;  %v13761_v20 = vld [vmem:[%s20164_s0 + $0x1e8] sm:$0xff] }
 0x1a3   :  { %v960_v57 = vadd.f32 %v801_v47, %v411_v61  ;;  %v1286_v16 = vsel %vm1178_vm5, %v1284_v51, %v1285_v31  ;;  %v1901_v42 = vrot.slane %v1667_v22, 1  ;;  %v2384_v53 = vrot.slane %v2150_v60, 2  ;;  %20464 = vst [vmem:[#allocation65_spill] sm:$0xff] %v13756_v45  ;;  %20465 = vst [vmem:[#allocation66_spill] sm:$0xff] %v13761_v20 }
 0x1a4   :  { %v2544_v37 = vadd.f32 %v2383_v58, %v2060_v48  ;;  %v2385_v36 = vrot.slane %v13735_v44, 2  ;;  %v2766_v63 = vmul.f32 %v11692_v40, %v13737_v54  ;;  %v3483_v7 = vsel %vm1178_vm5, %v3480_v52, %v3482_v0  ;;  %251 = vst.msk [vmem:[#allocation2 + $0x319] sm:$0xff] %vm38_vm1, %v13756_v45  ;;  %252 = vst.msk [vmem:[#allocation2 + $0x321] sm:$0xff] %vm38_vm1, %v13761_v20 }
 0x1a5   :  { %v1445_v56 = vadd.f32 %v1286_v16, %v960_v57  ;;  %v13749_v61 = vmul.f32 %v11692_v40, %v13741_v50  ;;  %v3250_v1 = vmul.f32 %v13606_v55, %v13737_v54  ;;  %v1902_v0 = vsel %vm693_vm4, %v1900_v15, %v1901_v42 }
 0x1a6   :  { %v2676_v58 = vadd.f32 %v2612_v4, %v2544_v37  ;;  %v3000_v52 = vrot.slane %v2766_v63, 1  ;;  %v13766_v41 = vmul.f32 %v13606_v55, %v13741_v50  ;;  %v2386_v22 = vsel %vm1178_vm5, %v2384_v53, %v2385_v36 }
 0x1a7   :  { %v1577_v51 = vadd.f32 %v1513_v38, %v1445_v56  ;;  %v2613_v60 = vmul.f32 %v11708_v46, %v13737_v54  ;;  %v3001_v4 = vrot.slane %v13749_v61, 1  ;;  %v3484_v47 = vrot.slane %v3250_v1, 2  ;;  %v13786_v1 = vld [vmem:[#allocation2 + $0x268] sm:$0x3] }
 0x1a8   :  { %v3160_v48 = vadd.f32 %v2999_v14, %v2676_v58  ;;  %v566_v15 = vmul.f32 %v11626_v26, %v13592_v49  ;;  %v1051_v44 = vmul.f32 %v11631_v27, %v13592_v49  ;;  %v20232_v16 = vrot.slane %v13766_v41, 2 }
 0x1a9   :  { %v2061_v57 = vadd.f32 %v1902_v0, %v1577_v51  ;;  %v412_v38 = vmul.f32 %v11621_v25, %v13547_v43  ;;  %v1668_v53 = vmul.f32 %v11655_v32, %v13693_v21  ;;  %v3002_v63 = vsel %vm693_vm4, %v3000_v52, %v3001_v4 }
 0x1aa   :  { %v3644_v37 = vadd.f32 %v3483_v7, %v3160_v48  ;;  %v802_v14 = vrot.slane %v566_v15, 1  ;;  %v1287_v56 = vrot.slane %v1051_v44, 2  ;;  %v1514_v49 = vmul.f32 %v11687_v39, %v13656_v19 }
 0x1ab   :  { %v2545_v61 = vadd.f32 %v2386_v22, %v2061_v57  ;;  %v1903_v58 = vrot.slane %v1668_v53, 1  ;;  %v2152_v0 = vmul.f32 %v11660_v33, %v13693_v21  ;;  %v2768_v52 = vmul.f32 %v11692_v40, %v13786_v1 }
 0x1ac   :  { %11043 = vmatmul.mubr.msk.f32.gmra.mrb[40].mxu0 %vm38_vm1, %v3644_v37  ;;  %v803_v43 = vsel %vm693_vm4, %v800_v62, %v802_v14  ;;  %v1288_v7 = vsel %vm1178_vm5, %v1285_v31, %v1287_v56  ;;  %v3252_v51 = vmul.f32 %v13606_v55, %v13786_v1  ;;  %v3486_v48 = vsel %vm1178_vm5, %v3484_v47, %v20232_v16 }
 0x1ad   :  { %v2677_v22 = vadd.f32 %v2613_v60, %v2545_v61  ;;  %v961_v15 = vadd.f32 %v803_v43, %v412_v38  ;;  %v2387_v44 = vrot.slane %v2152_v0, 2  ;;  %v1904_v57 = vsel %vm693_vm4, %v1901_v42, %v1903_v58 }
 0x1ae   :  { %v2614_v62 = vmul.f32 %v11708_v46, %v13741_v50  ;;  %v3003_v53 = vrot.slane %v2768_v52, 1  ;;  %v567_v31 = vmul.f32 %v11626_v26, %v13643_v59  ;;  %v3487_v56 = vrot.slane %v3252_v51, 2 }
 0x1af   :  { %v3161_v37 = vadd.f32 %v3002_v63, %v2677_v22  ;;  %v1446_v14 = vadd.f32 %v1288_v7, %v961_v15  ;;  %v13809_v60 = vmul.f32 %v11626_v26, %v13656_v19  ;;  %v2388_v47 = vsel %vm1178_vm5, %v2385_v36, %v2387_v44 }
 0x1b0   :  { %v413_v38 = vmul.f32 %v11621_v25, %v13643_v59  ;;  %v804_v42 = vrot.slane %v567_v31, 1  ;;  %v1052_v61 = vmul.f32 %v11631_v27, %v13643_v59  ;;  %v1053_v63 = vmul.f32 %v11631_v27, %v13656_v19 }
 0x1b1   :  { %v3645_v58 = vadd.f32 %v3486_v48, %v3161_v37  ;;  %v1578_v0 = vadd.f32 %v1514_v49, %v1446_v14  ;;  %v805_v43 = vrot.slane %v13809_v60, 1  ;;  %v1515_v52 = vmul.f32 %v11687_v39, %v13737_v54 }
 0x1b2   :  { %v1289_v7 = vrot.slane %v1052_v61, 2  ;;  %v1669_v36 = vmul.f32 %v11655_v32, %v13737_v54  ;;  %v1670_v51 = vmul.f32 %v11655_v32, %v13741_v50  ;;  %v1290_v22 = vrot.slane %v1053_v63, 2  ;;  %v13832_v61 = vld [vmem:[#allocation2 + $0x270] sm:$0xff] }
 0x1b3   :  { %11045 = vmatprep.mubr.msk.f32.mxu0 %vm38_vm1, %v3645_v58  ;;  %v2062_v59 = vadd.f32 %v1904_v57, %v1578_v0  ;;  %v806_v49 = vsel %vm693_vm4, %v804_v42, %v805_v43  ;;  %v2153_v48 = vmul.f32 %v11660_v33, %v13737_v54  ;;  %v2154_v37 = vmul.f32 %v11660_v33, %v13741_v50  ;;  %v13835_v0 = vld [vmem:[#allocation2 + $0x278] sm:$0xff] }
 0x1b4   :  { %v962_v15 = vadd.f32 %v806_v49, %v413_v38  ;;  %v1905_v44 = vrot.slane %v1669_v36, 1  ;;  %v1906_v31 = vrot.slane %v1670_v51, 1  ;;  %v3004_v60 = vsel %vm693_vm4, %v3001_v4, %v3003_v53 }
 0x1b5   :  { %v2546_v14 = vadd.f32 %v2388_v47, %v2062_v59  ;;  %v1291_v58 = vsel %vm1178_vm5, %v1289_v7, %v1290_v22  ;;  %v2389_v57 = vrot.slane %v2153_v48, 2  ;;  %v2390_v16 = vrot.slane %v2154_v37, 2  ;;  %v13859_v48 = vld [vmem:[%s20164_s0 + $0x1f0] sm:$0xff] }
 0x1b6   :  { %v1447_v42 = vadd.f32 %v1291_v58, %v962_v15  ;;  %v1907_v63 = vsel %vm693_vm4, %v1905_v44, %v1906_v31  ;;  %v2769_v38 = vmul.f32 %v11692_v40, %v13832_v61  ;;  %v13842_v47 = vmul.f32 %v11692_v40, %v13835_v0  ;;  %20467 = vst [vmem:[#allocation67_spill] sm:$0xff] %v13859_v48  ;;  %v13864_v15 = vld [vmem:[%s20164_s0 + $0x1f8] sm:$0xff] }
 0x1b7   :  { %v2678_v36 = vadd.f32 %v2614_v62, %v2546_v14  ;;  %v3253_v4 = vmul.f32 %v13606_v55, %v13832_v61  ;;  %v13848_v53 = vmul.f32 %v13606_v55, %v13835_v0  ;;  %v20466_v7 = vrot.slane %v13766_v41, 2  ;;  %20468 = vst [vmem:[#allocation68_spill] sm:$0xff] %v13864_v15  ;;  %253 = vst.msk [vmem:[#allocation2 + $0x331] sm:$0xff] %vm38_vm1, %v13859_v48 }
 0x1b8   :  { %v1579_v59 = vadd.f32 %v1515_v52, %v1447_v42  ;;  %v2391_v49 = vsel %vm1178_vm5, %v2389_v57, %v2390_v16  ;;  %v2615_v62 = vmul.f32 %v11708_v46, %v13832_v61  ;;  %v3005_v41 = vrot.slane %v2769_v38, 1  ;;  %254 = vst.msk [vmem:[#allocation2 + $0x339] sm:$0xff] %vm38_vm1, %v13864_v15 }
 0x1b9   :  { %v3488_v51 = vsel %vm1178_vm5, %v20466_v7, %v3487_v56  ;;  %v3162_v44 = vadd.f32 %v3004_v60, %v2678_v36  ;;  %v3006_v56 = vrot.slane %v13842_v47, 1  ;;  %v414_v52 = vmul.f32 %v11621_v25, %v13656_v19  ;;  %v13882_v47 = vld [vmem:[#allocation2 + $0x280] sm:$0x3] }
 0x1ba   :  { %v2063_v37 = vadd.f32 %v1907_v63, %v1579_v59  ;;  %v3489_v14 = vrot.slane %v3253_v4, 2  ;;  %v569_v58 = vmul.f32 %v11626_v26, %v13693_v21  ;;  %v1054_v60 = vmul.f32 %v11631_v27, %v13693_v21 }
 0x1bb   :  { %v3646_v57 = vadd.f32 %v3488_v51, %v3162_v44  ;;  %v3490_v42 = vrot.slane %v13848_v53, 2  ;;  %v1516_v19 = vmul.f32 %v11687_v39, %v13741_v50  ;;  %v1671_v38 = vmul.f32 %v11655_v32, %v13786_v1 }
 0x1bc   :  { %v2547_v36 = vadd.f32 %v2391_v49, %v2063_v37  ;;  %v807_v63 = vrot.slane %v569_v58, 1  ;;  %v1292_v4 = vrot.slane %v1054_v60, 2  ;;  %v2155_v7 = vmul.f32 %v11660_v33, %v13786_v1 }
 0x1bd   :  { %11046 = vmatmul.mubr.msk.f32.gmra.mrb[42].mxu0 %vm38_vm1, %v3646_v57  ;;  %v3007_v21 = vsel %vm693_vm4, %v3005_v41, %v3006_v56  ;;  %v1908_v51 = vrot.slane %v1671_v38, 1  ;;  %v2771_v53 = vmul.f32 %v11692_v40, %v13882_v47  ;;  %v3255_v59 = vmul.f32 %v13606_v55, %v13882_v47 }
 0x1be   :  { %v2679_v44 = vadd.f32 %v2615_v62, %v2547_v36  ;;  %v808_v49 = vsel %vm693_vm4, %v805_v43, %v807_v63  ;;  %v1293_v37 = vsel %vm1178_vm5, %v1290_v22, %v1292_v4  ;;  %v2392_v58 = vrot.slane %v2155_v7, 2 }
 0x1bf   :  { %v3491_v60 = vsel %vm1178_vm5, %v3489_v14, %v3490_v42  ;;  %v963_v15 = vadd.f32 %v808_v49, %v414_v52  ;;  %v1909_v57 = vsel %vm693_vm4, %v1906_v31, %v1908_v51  ;;  %v2616_v41 = vmul.f32 %v11708_v46, %v13835_v0  ;;  %v13921_v49 = vld [vmem:[#allocation2 + $0x288] sm:$0xff] }
 0x1c0   :  { %v3163_v38 = vadd.f32 %v3007_v21, %v2679_v44  ;;  %v3008_v48 = vrot.slane %v2771_v53, 1  ;;  %v3492_v20 = vrot.slane %v3255_v59, 2  ;;  %v570_v45 = vmul.f32 %v11626_v26, %v13737_v54 }
 0x1c1   :  { %v1448_v62 = vadd.f32 %v1293_v37, %v963_v15  ;;  %v2393_v43 = vsel %vm1178_vm5, %v2390_v16, %v2392_v58  ;;  %v415_v22 = vmul.f32 %v11621_v25, %v13737_v54  ;;  %v571_v52 = vmul.f32 %v11626_v26, %v13741_v50 }
 0x1c2   :  { %v3647_v14 = vadd.f32 %v3491_v60, %v3163_v38  ;;  %v809_v31 = vrot.slane %v570_v45, 1  ;;  %v1055_v36 = vmul.f32 %v11631_v27, %v13737_v54  ;;  %v1056_v63 = vmul.f32 %v11631_v27, %v13741_v50 }
 0x1c3   :  { %v1580_v4 = vadd.f32 %v1516_v19, %v1448_v62  ;;  %v810_v7 = vrot.slane %v571_v52, 1  ;;  %v1517_v15 = vmul.f32 %v11687_v39, %v13832_v61  ;;  %v1672_v16 = vmul.f32 %v11655_v32, %v13832_v61 }
 0x1c4   :  { %11048 = vmatprep.mubr.msk.f32.mxu0 %vm38_vm1, %v3647_v14  ;;  %v1294_v21 = vrot.slane %v1055_v36, 2  ;;  %v1295_v51 = vrot.slane %v1056_v63, 2  ;;  %v1673_v45 = vmul.f32 %v11655_v32, %v13835_v0  ;;  %v2156_v54 = vmul.f32 %v11660_v33, %v13832_v61  ;;  %v13925_v14 = vld [vmem:[#allocation2 + $0x290] sm:$0xff] }
 0x1c5   :  { %v2064_v53 = vadd.f32 %v1909_v57, %v1580_v4  ;;  %v811_v19 = vsel %vm693_vm4, %v809_v31, %v810_v7  ;;  %v1910_v59 = vrot.slane %v1672_v16, 1  ;;  %v2157_v44 = vmul.f32 %v11660_v33, %v13835_v0 }
 0x1c6   :  { %v964_v37 = vadd.f32 %v811_v19, %v415_v22  ;;  %v1296_v58 = vsel %vm1178_vm5, %v1294_v21, %v1295_v51  ;;  %v1911_v60 = vrot.slane %v1673_v45, 1  ;;  %v2394_v38 = vrot.slane %v2156_v54, 2 }
 0x1c7   :  { %v2548_v62 = vadd.f32 %v2393_v43, %v2064_v53  ;;  %v3009_v52 = vsel %vm693_vm4, %v3006_v56, %v3008_v48  ;;  %v2395_v36 = vrot.slane %v2157_v44, 2  ;;  %v2772_v57 = vmul.f32 %v11692_v40, %v13921_v49 }
 0x1c8   :  { %v3493_v31 = vsel %vm1178_vm5, %v3490_v42, %v3492_v20  ;;  %v1449_v63 = vadd.f32 %v1296_v58, %v964_v37  ;;  %v13932_v4 = vmul.f32 %v11692_v40, %v13925_v14  ;;  %v3256_v22 = vmul.f32 %v13606_v55, %v13921_v49 }
 0x1c9   :  { %v2680_v16 = vadd.f32 %v2616_v41, %v2548_v62  ;;  %v1912_v43 = vsel %vm693_vm4, %v1910_v59, %v1911_v60  ;;  %v3010_v48 = vrot.slane %v2772_v57, 1  ;;  %v13939_v56 = vmul.f32 %v13606_v55, %v13925_v14 }
 0x1ca   :  { %v1581_v21 = vadd.f32 %v1517_v15, %v1449_v63  ;;  %v2396_v45 = vsel %vm1178_vm5, %v2394_v38, %v2395_v36  ;;  %v2617_v20 = vmul.f32 %v11708_v46, %v13921_v49  ;;  %v3011_v42 = vrot.slane %v13932_v4, 1  ;;  %v13955_v63 = vld [vmem:[#allocation2 + $0x298] sm:$0x3] }
 0x1cb   :  { %v3164_v54 = vadd.f32 %v3009_v52, %v2680_v16  ;;  %v3494_v53 = vrot.slane %v3256_v22, 2  ;;  %v572_v41 = vmul.f32 %v11626_v26, %v13786_v1  ;;  %v1057_v19 = vmul.f32 %v11631_v27, %v13786_v1 }
 0x1cc   :  { %v2065_v59 = vadd.f32 %v1912_v43, %v1581_v21  ;;  %v3495_v44 = vrot.slane %v13939_v56, 2  ;;  %v416_v15 = vmul.f32 %v11621_v25, %v13741_v50  ;;  %v1674_v37 = vmul.f32 %v11655_v32, %v13882_v47 }
 0x1cd   :  { %v3648_v58 = vadd.f32 %v3493_v31, %v3164_v54  ;;  %v3012_v38 = vsel %vm693_vm4, %v3010_v48, %v3011_v42  ;;  %v812_v62 = vrot.slane %v572_v41, 1  ;;  %v1297_v52 = vrot.slane %v1057_v19, 2 }
 0x1ce   :  { %v2549_v57 = vadd.f32 %v2396_v45, %v2065_v59  ;;  %v1518_v1 = vmul.f32 %v11687_v39, %v13835_v0  ;;  %v1913_v4 = vrot.slane %v1674_v37, 1  ;;  %v2158_v22 = vmul.f32 %v11660_v33, %v13882_v47 }
 0x1cf   :  { %11049 = vmatmul.mubr.msk.f32.gmra.mrb[44].mxu0 %vm38_vm1, %v3648_v58  ;;  %v813_v50 = vsel %vm693_vm4, %v810_v7, %v812_v62  ;;  %v1298_v31 = vsel %vm1178_vm5, %v1295_v51, %v1297_v52  ;;  %v2774_v16 = vmul.f32 %v11692_v40, %v13955_v63  ;;  %v3258_v43 = vmul.f32 %v13606_v55, %v13955_v63 }
 0x1d0   :  { %v2681_v48 = vadd.f32 %v2617_v20, %v2549_v57  ;;  %v3496_v21 = vsel %vm1178_vm5, %v3494_v53, %v3495_v44  ;;  %v965_v45 = vadd.f32 %v813_v50, %v416_v15  ;;  %v2397_v54 = vrot.slane %v2158_v22, 2 }
 0x1d1   :  { %v1914_v41 = vsel %vm693_vm4, %v1911_v60, %v1913_v4  ;;  %v2618_v7 = vmul.f32 %v11708_v46, %v13925_v14  ;;  %v3013_v19 = vrot.slane %v2774_v16, 1  ;;  %v573_v51 = vmul.f32 %v11626_v26, %v13832_v61 }
 0x1d2   :  { %v3165_v59 = vadd.f32 %v3012_v38, %v2681_v48  ;;  %v1450_v37 = vadd.f32 %v1298_v31, %v965_v45  ;;  %v3497_v58 = vrot.slane %v3258_v43, 2  ;;  %v13978_v20 = vmul.f32 %v11626_v26, %v13835_v0 }
 0x1d3   :  { %v2398_v53 = vsel %vm1178_vm5, %v2395_v36, %v2397_v54  ;;  %v417_v15 = vmul.f32 %v11621_v25, %v13832_v61  ;;  %v814_v60 = vrot.slane %v573_v51, 1  ;;  %v1058_v62 = vmul.f32 %v11631_v27, %v13832_v61 }
 0x1d4   :  { %v3649_v52 = vadd.f32 %v3496_v21, %v3165_v59  ;;  %v1582_v57 = vadd.f32 %v1518_v1, %v1450_v37  ;;  %v815_v4 = vrot.slane %v13978_v20, 1  ;;  %v1059_v38 = vmul.f32 %v11631_v27, %v13835_v0  ;;  %v14001_v37 = vld [vmem:[#allocation2 + $0x2a0] sm:$0xff] }
 0x1d5   :  { %v1299_v22 = vrot.slane %v1058_v62, 2  ;;  %v1519_v50 = vmul.f32 %v11687_v39, %v13921_v49  ;;  %v1675_v36 = vmul.f32 %v11655_v32, %v13921_v49  ;;  %v1676_v31 = vmul.f32 %v11655_v32, %v13925_v14  ;;  %v14004_v62 = vld [vmem:[#allocation2 + $0x2a8] sm:$0xff] }
 0x1d6   :  { %11051 = vmatprep.mubr.msk.f32.mxu0 %vm38_vm1, %v3649_v52  ;;  %v2066_v61 = vadd.f32 %v1914_v41, %v1582_v57  ;;  %v816_v1 = vsel %vm693_vm4, %v814_v60, %v815_v4  ;;  %v1300_v16 = vrot.slane %v1059_v38, 2  ;;  %v2159_v43 = vmul.f32 %v11660_v33, %v13921_v49 }
 0x1d7   :  { %v966_v48 = vadd.f32 %v816_v1, %v417_v15  ;;  %v1915_v21 = vrot.slane %v1675_v36, 1  ;;  %v1916_v45 = vrot.slane %v1676_v31, 1  ;;  %v2160_v54 = vmul.f32 %v11660_v33, %v13925_v14 }
 0x1d8   :  { %v2550_v51 = vadd.f32 %v2398_v53, %v2066_v61  ;;  %v3014_v59 = vsel %vm693_vm4, %v3011_v42, %v3013_v19  ;;  %v1301_v20 = vsel %vm1178_vm5, %v1299_v22, %v1300_v16  ;;  %v2399_v41 = vrot.slane %v2159_v43, 2 }
 0x1d9   :  { %v1451_v60 = vadd.f32 %v1301_v20, %v966_v48  ;;  %v1917_v52 = vsel %vm693_vm4, %v1915_v21, %v1916_v45  ;;  %v2400_v57 = vrot.slane %v2160_v54, 2  ;;  %v2775_v15 = vmul.f32 %v11692_v40, %v14001_v37 }
 0x1da   :  { %v2682_v38 = vadd.f32 %v2618_v7, %v2550_v51  ;;  %v14011_v53 = vmul.f32 %v11692_v40, %v14004_v62  ;;  %v3259_v42 = vmul.f32 %v13606_v55, %v14001_v37  ;;  %v14017_v19 = vmul.f32 %v13606_v55, %v14004_v62 }
 0x1db   :  { %v3498_v22 = vsel %vm1178_vm5, %v3495_v44, %v3497_v58  ;;  %v1583_v36 = vadd.f32 %v1519_v50, %v1451_v60  ;;  %v2401_v31 = vsel %vm1178_vm5, %v2399_v41, %v2400_v57  ;;  %v2619_v7 = vmul.f32 %v11708_v46, %v14001_v37  ;;  %v14037_v41 = vld [vmem:[#allocation2 + $0x2b0] sm:$0x3] }
 0x1dc   :  { %v3166_v61 = vadd.f32 %v3014_v59, %v2682_v38  ;;  %v3015_v1 = vrot.slane %v2775_v15, 1  ;;  %v3016_v43 = vrot.slane %v14011_v53, 1  ;;  %v418_v48 = vmul.f32 %v11621_v25, %v13835_v0 }
 0x1dd   :  { %v2067_v21 = vadd.f32 %v1917_v52, %v1583_v36  ;;  %v3499_v54 = vrot.slane %v3259_v42, 2  ;;  %v575_v56 = vmul.f32 %v11626_v26, %v13882_v47  ;;  %v1060_v44 = vmul.f32 %v11631_v27, %v13882_v47 }
 0x1de   :  { %v3650_v58 = vadd.f32 %v3498_v22, %v3166_v61  ;;  %v3500_v50 = vrot.slane %v14017_v19, 2  ;;  %v1520_v51 = vmul.f32 %v11687_v39, %v13925_v14  ;;  %v1677_v59 = vmul.f32 %v11655_v32, %v13955_v63 }
 0x1df   :  { %v2551_v20 = vadd.f32 %v2401_v31, %v2067_v21  ;;  %v817_v0 = vrot.slane %v575_v56, 1  ;;  %v1302_v60 = vrot.slane %v1060_v44, 2  ;;  %v2161_v52 = vmul.f32 %v11660_v33, %v13955_v63 }
 0x1e0   :  { %11052 = vmatmul.mubr.msk.f32.gmra.mrb[46].mxu0 %vm38_vm1, %v3650_v58  ;;  %v3017_v47 = vsel %vm693_vm4, %v3015_v1, %v3016_v43  ;;  %v1918_v15 = vrot.slane %v1677_v59, 1  ;;  %v2777_v38 = vmul.f32 %v11692_v40, %v14037_v41  ;;  %v3261_v53 = vmul.f32 %v13606_v55, %v14037_v41 }
 0x1e1   :  { %v2683_v42 = vadd.f32 %v2619_v7, %v2551_v20  ;;  %v818_v19 = vsel %vm693_vm4, %v815_v4, %v817_v0  ;;  %v1303_v22 = vsel %vm1178_vm5, %v1300_v16, %v1302_v60  ;;  %v2402_v36 = vrot.slane %v2161_v52, 2 }
 0x1e2   :  { %v3501_v31 = vsel %vm1178_vm5, %v3499_v54, %v3500_v50  ;;  %v967_v61 = vadd.f32 %v818_v19, %v418_v48  ;;  %v1919_v21 = vsel %vm693_vm4, %v1916_v45, %v1918_v15  ;;  %v2620_v1 = vmul.f32 %v11708_v46, %v14004_v62 }
 0x1e3   :  { %v3167_v56 = vadd.f32 %v3017_v47, %v2683_v42  ;;  %v3018_v44 = vrot.slane %v2777_v38, 1  ;;  %v3502_v58 = vrot.slane %v3261_v53, 2  ;;  %v576_v59 = vmul.f32 %v11626_v26, %v13921_v49 }
 0x1e4   :  { %v1452_v7 = vadd.f32 %v1303_v22, %v967_v61  ;;  %v2403_v4 = vsel %vm1178_vm5, %v2400_v57, %v2402_v36  ;;  %v419_v16 = vmul.f32 %v11621_v25, %v13921_v49  ;;  %v14060_v48 = vmul.f32 %v11626_v26, %v13925_v14  ;;  %v14086_v36 = vld [vmem:[#allocation2 + $0x2b8] sm:$0xff] }
 0x1e5   :  { %v3651_v45 = vadd.f32 %v3501_v31, %v3167_v56  ;;  %v819_v54 = vrot.slane %v576_v59, 1  ;;  %v1061_v20 = vmul.f32 %v11631_v27, %v13921_v49  ;;  %v14066_v0 = vmul.f32 %v11631_v27, %v13925_v14 }
 0x1e6   :  { %v1584_v60 = vadd.f32 %v1520_v51, %v1452_v7  ;;  %v820_v52 = vrot.slane %v14060_v48, 1  ;;  %v1521_v57 = vmul.f32 %v11687_v39, %v14001_v37  ;;  %v1678_v47 = vmul.f32 %v11655_v32, %v14001_v37 }
 0x1e7   :  { %11054 = vmatprep.mubr.msk.f32.mxu0 %vm38_vm1, %v3651_v45  ;;  %v1304_v15 = vrot.slane %v1061_v20, 2  ;;  %v1305_v38 = vrot.slane %v14066_v0, 2  ;;  %v14077_v49 = vmul.f32 %v11655_v32, %v14004_v62  ;;  %v2162_v51 = vmul.f32 %v11660_v33, %v14001_v37  ;;  %v14091_v45 = vld [vmem:[#allocation2 + $0x2c0] sm:$0xff] }
 0x1e8   :  { %v2068_v53 = vadd.f32 %v1919_v21, %v1584_v60  ;;  %v821_v42 = vsel %vm693_vm4, %v819_v54, %v820_v52  ;;  %v1920_v19 = vrot.slane %v1678_v47, 1  ;;  %v14084_v22 = vmul.f32 %v11660_v33, %v14004_v62 }
 0x1e9   :  { %v968_v31 = vadd.f32 %v821_v42, %v419_v16  ;;  %v1306_v61 = vsel %vm1178_vm5, %v1304_v15, %v1305_v38  ;;  %v1921_v56 = vrot.slane %v14077_v49, 1  ;;  %v2404_v59 = vrot.slane %v2162_v51, 2  ;;  %v14108_v15 = vpop.f32.mrb[0].mxu0 }
 0x1ea   :  { %v2552_v7 = vadd.f32 %v2403_v4, %v2068_v53  ;;  %v3019_v48 = vsel %vm693_vm4, %v3016_v43, %v3018_v44  ;;  %v2405_v21 = vrot.slane %v14084_v22, 2  ;;  %v2778_v54 = vmul.f32 %v11692_v40, %v14086_v36  ;;  %v14114_v53 = vpop.f32.mrb[1].mxu0 }
 0x1eb   :  { %v3503_v20 = vsel %vm1178_vm5, %v3500_v50, %v3502_v58  ;;  %v1453_v0 = vadd.f32 %v1306_v61, %v968_v31  ;;  %v14099_v16 = vmul.f32 %v11692_v40, %v14091_v45  ;;  %v3262_v60 = vmul.f32 %v13606_v55, %v14086_v36  ;;  %v14120_v31 = vpop.f32.mrb[2].mxu0 }
 0x1ec   :  { %v2684_v4 = vadd.f32 %v2620_v1, %v2552_v7  ;;  %v1922_v43 = vsel %vm693_vm4, %v1920_v19, %v1921_v56  ;;  %v3020_v44 = vrot.slane %v2778_v54, 1  ;;  %v14106_v47 = vmul.f32 %v13606_v55, %v14091_v45  ;;  %v14127_v54 = vpop.f32.mrb[3].mxu0 }
 0x1ed   :  { %v1585_v49 = vadd.f32 %v1521_v57, %v1453_v0  ;;  %v2406_v50 = vsel %vm1178_vm5, %v2404_v59, %v2405_v21  ;;  %v2621_v58 = vmul.f32 %v11708_v46, %v14086_v36  ;;  %v20239_v51 = vrot.slane %v14099_v16, 1 }
 0x1ee   :  { %v3168_v1 = vadd.f32 %v3019_v48, %v2684_v4  ;;  %v3504_v42 = vrot.slane %v3262_v60, 2  ;;  %v578_v19 = vmul.f32 %v11626_v26, %v13955_v63  ;;  %v1063_v22 = vmul.f32 %v11631_v27, %v13955_v63  ;;  %v14132_v4 = vpop.f32.mrb[4].mxu0 }
 0x1ef   :  { %v2069_v57 = vadd.f32 %v1922_v43, %v1585_v49  ;;  %v420_v59 = vmul.f32 %v11621_v25, %v13925_v14  ;;  %v1680_v7 = vmul.f32 %v11655_v32, %v14037_v41  ;;  %v3022_v0 = vsel %vm693_vm4, %v3020_v44, %v20239_v51  ;;  %v14134_v49 = vld [vmem:[#allocation2 + $0x2c8] sm:$0x3]  ;;  %v14140_v34 = vpop.f32.mrb[5].mxu0 }
 0x1f0   :  { %v3652_v48 = vadd.f32 %v3503_v20, %v3168_v1  ;;  %v822_v60 = vrot.slane %v578_v19, 1  ;;  %v1307_v63 = vrot.slane %v1063_v22, 2  ;;  %v1522_v14 = vmul.f32 %v11687_v39, %v14004_v62  ;;  %v14149_v19 = vpop.f32.mrb[6].mxu0 }
 0x1f1   :  { %v2553_v43 = vadd.f32 %v2406_v50, %v2069_v57  ;;  %v1923_v61 = vrot.slane %v1680_v7, 1  ;;  %v2164_v35 = vmul.f32 %v11660_v33, %v14037_v41  ;;  %v2780_v50 = vmul.f32 %v11692_v40, %v14134_v49 }
 0x1f2   :  { %11055 = vmatmul.mubr.msk.f32.gmra.mrb[48].mxu0 %vm38_vm1, %v3652_v48  ;;  %v823_v20 = vsel %vm693_vm4, %v820_v52, %v822_v60  ;;  %v1308_v44 = vsel %vm1178_vm5, %v1305_v38, %v1307_v63  ;;  %v3264_v1 = vmul.f32 %v13606_v55, %v14134_v49  ;;  %v20469_v57 = vrot.slane %v14106_v47, 2  ;;  %v14154_v48 = vpop.f32.mrb[7].mxu0 }
 0x1f3   :  { %v2685_v22 = vadd.f32 %v2621_v58, %v2553_v43  ;;  %v969_v51 = vadd.f32 %v823_v20, %v420_v59  ;;  %v2407_v30 = vrot.slane %v2164_v35, 2  ;;  %v1924_v52 = vsel %vm693_vm4, %v1921_v56, %v1923_v61  ;;  %v14161_v63 = vpop.f32.mrb[8].mxu0 }
 0x1f4   :  { %v3506_v7 = vsel %vm1178_vm5, %v3504_v42, %v20469_v57  ;;  %v2622_v38 = vmul.f32 %v11708_v46, %v14091_v45  ;;  %v3023_v60 = vrot.slane %v2780_v50, 1  ;;  %v579_v55 = vmul.f32 %v11626_v26, %v14001_v37  ;;  %v14167_v35 = vpop.f32.mrb[9].mxu0 }
 0x1f5   :  { %v3169_v58 = vadd.f32 %v3022_v0, %v2685_v22  ;;  %v1454_v43 = vadd.f32 %v1308_v44, %v969_v51  ;;  %v3507_v29 = vrot.slane %v3264_v1, 2  ;;  %v14165_v42 = vmul.f32 %v11626_v26, %v14004_v62  ;;  %v14174_v50 = vpop.f32.mrb[10].mxu0 }
 0x1f6   :  { %v2408_v56 = vsel %vm1178_vm5, %v2405_v21, %v2407_v30  ;;  %v421_v61 = vmul.f32 %v11621_v25, %v14001_v37  ;;  %v824_v59 = vrot.slane %v579_v55, 1  ;;  %v1064_v20 = vmul.f32 %v11631_v27, %v14001_v37  ;;  %v14181_v22 = vpop.f32.mrb[11].mxu0 }
 0x1f7   :  { %v3653_v0 = vadd.f32 %v3506_v7, %v3169_v58  ;;  %v1586_v51 = vadd.f32 %v1522_v14, %v1454_v43  ;;  %v20246_v44 = vrot.slane %v14165_v42, 1  ;;  %v14179_v1 = vmul.f32 %v11631_v27, %v14004_v62  ;;  %v14191_v14 = vpop.f32.mrb[12].mxu0 }
 0x1f8   :  { %v1309_v30 = vrot.slane %v1064_v20, 2  ;;  %v1523_v21 = vmul.f32 %v11687_v39, %v14086_v36  ;;  %v1681_v57 = vmul.f32 %v11655_v32, %v14086_v36  ;;  %v14189_v37 = vmul.f32 %v11655_v32, %v14091_v45  ;;  %v14200_v20 = vpop.f32.mrb[13].mxu0 }
 0x1f9   :  { %11057 = vmatprep.mubr.msk.f32.mxu0 %vm38_vm1, %v3653_v0  ;;  %v2070_v7 = vadd.f32 %v1924_v52, %v1586_v51  ;;  %v826_v55 = vsel %vm693_vm4, %v824_v59, %v20246_v44  ;;  %v1310_v58 = vrot.slane %v14179_v1, 2  ;;  %v2165_v43 = vmul.f32 %v11660_v33, %v14086_v36  ;;  %v14207_v52 = vpop.f32.mrb[14].mxu0  ;;  %v14212_v1 = vld [vmem:[#allocation2 + $0x2d0] sm:$0xff] }
 0x1fa   :  { %v970_v28 = vadd.f32 %v826_v55, %v421_v61  ;;  %v1925_v24 = vrot.slane %v1681_v57, 1  ;;  %v1926_v23 = vrot.slane %v14189_v37, 1  ;;  %v14205_v18 = vmul.f32 %v11660_v33, %v14091_v45  ;;  %v14215_v61 = vpop.f32.mrb[15].mxu0  ;;  %v14217_v57 = vld [vmem:[#allocation2 + $0x2d8] sm:$0xff] }
 0x1fb   :  { %v2554_v0 = vadd.f32 %v2408_v56, %v2070_v7  ;;  %v20470_v59 = vrot.slane %v14099_v16, 1  ;;  %v1311_v44 = vsel %vm1178_vm5, %v1309_v30, %v1310_v58  ;;  %v2409_v17 = vrot.slane %v2165_v43, 2  ;;  %v14230_v30 = vld [vmem:[%s20165_s1 + $0x8] ss:$0 sm:$0xff] }
 0x1fc   :  { %v1455_v37 = vadd.f32 %v1311_v44, %v970_v28  ;;  %v1927_v55 = vsel %vm693_vm4, %v1925_v24, %v1926_v23  ;;  %v2410_v12 = vrot.slane %v14205_v18, 2  ;;  %v2781_v56 = vmul.f32 %v11692_v40, %v14212_v1  ;;  %v14238_v18 = vpop.f32.mrb[16].mxu0 }
 0x1fd   :  { %v3024_v51 = vsel %vm693_vm4, %v20470_v59, %v3023_v60  ;;  %v2686_v16 = vadd.f32 %v2622_v38, %v2554_v0  ;;  %v14225_v60 = vmul.f32 %v11692_v40, %v14217_v57  ;;  %v3265_v28 = vmul.f32 %v14230_v30, %v14212_v1  ;;  %v14246_v59 = vpop.f32.mrb[17].mxu0 }
 0x1fe   :  { %v14236_v24 = vmul.f32 %v14230_v30, %v14217_v57  ;;  %v20471_v38 = vrot.slane %v14106_v47, 2  ;;  %v1587_v7 = vadd.f32 %v1523_v21, %v1455_v37  ;;  %v2411_v43 = vsel %vm1178_vm5, %v2409_v17, %v2410_v12 }
 0x1ff   :  { %v2623_v0 = vmul.f32 %v11708_v46, %v14212_v1  ;;  %v3170_v11 = vadd.f32 %v3024_v51, %v2686_v16  ;;  %v3025_v10 = vrot.slane %v2781_v56, 1  ;;  %v20258_v9 = vrot.slane %v14225_v60, 1  ;;  %v14260_v56 = vpop.f32.mrb[18].mxu0 }
 0x200   :  { %v3508_v44 = vsel %vm1178_vm5, %v20471_v38, %v3507_v29  ;;  %v422_v6 = vmul.f32 %v11621_v25, %v14004_v62  ;;  %v2071_v5 = vadd.f32 %v1927_v55, %v1587_v7  ;;  %v3509_v3 = vrot.slane %v3265_v28, 2  ;;  %20472 = vst [vmem:[#allocation69_spill] sm:$0xff] %v14260_v56  ;;  %v14262_v55 = vld [vmem:[#allocation2 + $0x2e0] sm:$0x3] }
 0x201   :  { %v581_v29 = vmul.f32 %v11626_v26, %v14037_v41  ;;  %v1066_v17 = vmul.f32 %v11631_v27, %v14037_v41  ;;  %v3654_v47 = vadd.f32 %v3508_v44, %v3170_v11  ;;  %v1524_v51 = vmul.f32 %v11687_v39, %v14091_v45  ;;  %v14266_v41 = vpop.f32.mrb[19].mxu0 }
 0x202   :  { %v1683_v37 = vmul.f32 %v11655_v32, %v14134_v49  ;;  %v2555_v62 = vadd.f32 %v2411_v43, %v2071_v5  ;;  %v2167_v38 = vmul.f32 %v11660_v33, %v14134_v49  ;;  %v3027_v11 = vsel %vm693_vm4, %v3025_v10, %v20258_v9  ;;  %v14286_v8 = vpop.f32.mrb[20].mxu0 }
 0x203   :  { %v827_v16 = vrot.slane %v581_v29, 1  ;;  %v1312_v28 = vrot.slane %v1066_v17, 2  ;;  %11058 = vmatmul.mubr.msk.f32.gmra.mrb[50].mxu0 %vm38_vm1, %v3654_v47  ;;  %v2783_v7 = vmul.f32 %v11692_v40, %v14262_v55  ;;  %v3267_v5 = vmul.f32 %v14230_v30, %v14262_v55  ;;  %20475 = vst [vmem:[#allocation70_spill] sm:$0xff] %v14286_v8 }
 0x204   :  { %v1928_v44 = vrot.slane %v1683_v37, 1  ;;  %v2687_v43 = vadd.f32 %v2623_v0, %v2555_v62  ;;  %v20473_v29 = vrot.slane %v14165_v42, 1  ;;  %v2412_v2 = vrot.slane %v2167_v38, 2 }
 0x205   :  { %v1313_v21 = vsel %vm1178_vm5, %v1310_v58, %v1312_v28  ;;  %v20474_v47 = vrot.slane %v14236_v24, 2  ;;  %v2624_v9 = vmul.f32 %v11708_v46, %v14217_v57  ;;  %v3028_v62 = vrot.slane %v2783_v7, 1  ;;  %v14290_v58 = vpop.f32.mrb[21].mxu0 }
 0x206   :  { %v828_v17 = vsel %vm693_vm4, %v20473_v29, %v827_v16  ;;  %v1929_v37 = vsel %vm693_vm4, %v1926_v23, %v1928_v44  ;;  %v3171_v0 = vadd.f32 %v3027_v11, %v2687_v43  ;;  %v3512_v42 = vrot.slane %v3267_v5, 2  ;;  %20476 = vst [vmem:[#allocation71_spill] sm:$0xff] %v14290_v58  ;;  %v14310_v43 = vpop.f32.mrb[22].mxu0 }
 0x207   :  { %v3511_v13 = vsel %vm1178_vm5, %v3509_v3, %v20474_v47  ;;  %v971_v10 = vadd.f32 %v828_v17, %v422_v6  ;;  %v582_v16 = vmul.f32 %v11626_v26, %v14086_v36  ;;  %v2413_v38 = vsel %vm1178_vm5, %v2410_v12, %v2412_v2  ;;  %20477 = vst [vmem:[#allocation72_spill] sm:$0xff] %v14310_v43  ;;  %v14318_v17 = vpop.f32.mrb[23].mxu0 }
 0x208   :  { %v423_v3 = vmul.f32 %v11621_v25, %v14086_v36  ;;  %v14297_v6 = vmul.f32 %v11626_v26, %v14091_v45  ;;  %v3655_v23 = vadd.f32 %v3511_v13, %v3171_v0  ;;  %v1067_v11 = vmul.f32 %v11631_v27, %v14086_v36  ;;  %20478 = vst [vmem:[#allocation73_spill] sm:$0xff] %v14318_v17 }
 0x209   :  { %v1456_v28 = vadd.f32 %v1313_v21, %v971_v10  ;;  %v829_v44 = vrot.slane %v582_v16, 1  ;;  %v14303_v7 = vmul.f32 %v11631_v27, %v14091_v45  ;;  %v1525_v2 = vmul.f32 %v11687_v39, %v14212_v1 }
 0x20a   :  { %v830_v21 = vrot.slane %v14297_v6, 1  ;;  %v1684_v12 = vmul.f32 %v11655_v32, %v14212_v1  ;;  %11060 = vmatprep.mubr.msk.f32.mxu0 %vm38_vm1, %v3655_v23  ;;  %v1314_v13 = vrot.slane %v1067_v11, 2  ;;  %v1685_v29 = vmul.f32 %v11655_v32, %v14217_v57 }
 0x20b   :  { %v1588_v5 = vadd.f32 %v1524_v51, %v1456_v28  ;;  %v1315_v36 = vrot.slane %v14303_v7, 2  ;;  %v2168_v51 = vmul.f32 %v11660_v33, %v14212_v1  ;;  %v14323_v16 = vmul.f32 %v11660_v33, %v14217_v57  ;;  %v14325_v28 = vld [vmem:[#allocation2 + $0x2e8] sm:$0xff] }
 0x20c   :  { %v831_v10 = vsel %vm693_vm4, %v829_v44, %v830_v21  ;;  %v1930_v0 = vrot.slane %v1684_v12, 1  ;;  %v1931_v11 = vrot.slane %v1685_v29, 1  ;;  %v20479_v8 = vrot.slane %v14225_v60, 1  ;;  %v14336_v12 = vpop.f32.mrb[24].mxu0 }
 0x20d   :  { %v2072_v47 = vadd.f32 %v1929_v37, %v1588_v5  ;;  %v972_v6 = vadd.f32 %v831_v10, %v423_v3  ;;  %v1316_v23 = vsel %vm1178_vm5, %v1314_v13, %v1315_v36  ;;  %v2414_v7 = vrot.slane %v2168_v51, 2  ;;  %v14331_v37 = vld [vmem:[#allocation2 + $0x2f0] sm:$0xff]  ;;  %20480 = vst [vmem:[#allocation74_spill] sm:$0xff] %v14336_v12  ;;  %v14347_v60 = vpop.f32.mrb[25].mxu0 }
 0x20e   :  { %v3029_v17 = vsel %vm693_vm4, %v20479_v8, %v3028_v62  ;;  %v2415_v44 = vrot.slane %v14323_v16, 2  ;;  %v2784_v5 = vmul.f32 %v11692_v40, %v14325_v28  ;;  %v20481_v3 = vrot.slane %v14236_v24, 2  ;;  %20482 = vst [vmem:[#allocation75_spill] sm:$0xff] %v14347_v60 }
 0x20f   :  { %v2556_v43 = vadd.f32 %v2413_v38, %v2072_v47  ;;  %v1457_v29 = vadd.f32 %v1316_v23, %v972_v6  ;;  %v14343_v38 = vmul.f32 %v11692_v40, %v14331_v37  ;;  %v3268_v8 = vmul.f32 %v14230_v30, %v14325_v28 }
 0x210   :  { %v3513_v13 = vsel %vm1178_vm5, %v20481_v3, %v3512_v42  ;;  %v1932_v51 = vsel %vm693_vm4, %v1930_v0, %v1931_v11  ;;  %v3030_v47 = vrot.slane %v2784_v5, 1  ;;  %v14352_v10 = vmul.f32 %v14230_v30, %v14331_v37  ;;  %v14362_v0 = vpop.f32.mrb[26].mxu0 }
 0x211   :  { %v2688_v62 = vadd.f32 %v2624_v9, %v2556_v43  ;;  %v1589_v24 = vadd.f32 %v1525_v2, %v1457_v29  ;;  %v2416_v42 = vsel %vm1178_vm5, %v2414_v7, %v2415_v44  ;;  %v2625_v16 = vmul.f32 %v11708_v46, %v14325_v28  ;;  %20483 = vst [vmem:[#allocation76_spill] sm:$0xff] %v14362_v0 }
 0x212   :  { %v3031_v6 = vrot.slane %v14343_v38, 1  ;;  %v3514_v3 = vrot.slane %v3268_v8, 2  ;;  %v584_v9 = vmul.f32 %v11626_v26, %v14134_v49  ;;  %v1069_v43 = vmul.f32 %v11631_v27, %v14134_v49  ;;  %v14369_v38 = vpop.f32.mrb[27].mxu0  ;;  %v14372_v49 = vld [vmem:[#allocation2 + $0x2f8] sm:$0x3] }
 0x213   :  { %v3172_v23 = vadd.f32 %v3029_v17, %v2688_v62  ;;  %v2073_v5 = vadd.f32 %v1932_v51, %v1589_v24  ;;  %v424_v7 = vmul.f32 %v11621_v25, %v14091_v45  ;;  %v1686_v29 = vmul.f32 %v11655_v32, %v14262_v55  ;;  %20484 = vst [vmem:[#allocation77_spill] sm:$0xff] %v14369_v38 }
 0x214   :  { %v3032_v8 = vsel %vm693_vm4, %v3030_v47, %v3031_v6  ;;  %v832_v62 = vrot.slane %v584_v9, 1  ;;  %v1317_v12 = vrot.slane %v1069_v43, 2  ;;  %v1526_v51 = vmul.f32 %v11687_v39, %v14217_v57 }
 0x215   :  { %v3656_v17 = vadd.f32 %v3513_v13, %v3172_v23  ;;  %v2557_v60 = vadd.f32 %v2416_v42, %v2073_v5  ;;  %v1933_v24 = vrot.slane %v1686_v29, 1  ;;  %v2170_v45 = vmul.f32 %v11660_v33, %v14262_v55 }
 0x216   :  { %v833_v2 = vsel %vm693_vm4, %v830_v21, %v832_v62  ;;  %v1318_v13 = vsel %vm1178_vm5, %v1315_v36, %v1317_v12  ;;  %v2786_v47 = vmul.f32 %v11692_v40, %v14372_v49  ;;  %v3270_v42 = vmul.f32 %v14230_v30, %v14372_v49  ;;  %v14388_v0 = vpop.f32.mrb[28].mxu0 }
 0x217   :  { %11061 = vmatmul.mubr.msk.f32.gmra.mrb[52].mxu0 %vm38_vm1, %v3656_v17  ;;  %v2689_v23 = vadd.f32 %v2625_v16, %v2557_v60  ;;  %v20485_v9 = vrot.slane %v14352_v10, 2  ;;  %v973_v5 = vadd.f32 %v833_v2, %v424_v7  ;;  %v2417_v29 = vrot.slane %v2170_v45, 2  ;;  %20486 = vst [vmem:[#allocation78_spill] sm:$0xff] %v14388_v0  ;;  %v14395_v62 = vpop.f32.mrb[29].mxu0  ;;  %v14422_v0 = vld [vmem:[#allocation2 + $0x300] sm:$0xff] }
 0x218   :  { %v1934_v17 = vsel %vm693_vm4, %v1931_v11, %v1933_v24  ;;  %v2626_v21 = vmul.f32 %v11708_v46, %v14331_v37  ;;  %v3033_v36 = vrot.slane %v2786_v47, 1  ;;  %v585_v12 = vmul.f32 %v11626_v26, %v14212_v1  ;;  %20487 = vst [vmem:[#allocation79_spill] sm:$0xff] %v14395_v62 }
 0x219   :  { %v3516_v43 = vsel %vm1178_vm5, %v3514_v3, %v20485_v9  ;;  %v3173_v60 = vadd.f32 %v3032_v8, %v2689_v23  ;;  %v1458_v16 = vadd.f32 %v1318_v13, %v973_v5  ;;  %v3517_v38 = vrot.slane %v3270_v42, 2 }
 0x21a   :  { %v14399_v3 = vmul.f32 %v11626_v26, %v14217_v57  ;;  %v2418_v2 = vsel %vm1178_vm5, %v2415_v44, %v2417_v29  ;;  %v425_v11 = vmul.f32 %v11621_v25, %v14212_v1  ;;  %v834_v7 = vrot.slane %v585_v12, 1 }
 0x21b   :  { %v1070_v24 = vmul.f32 %v11631_v27, %v14212_v1  ;;  %v3657_v45 = vadd.f32 %v3516_v43, %v3173_v60  ;;  %v1590_v47 = vadd.f32 %v1526_v51, %v1458_v16  ;;  %v1071_v8 = vmul.f32 %v11631_v27, %v14217_v57 }
 0x21c   :  { %v835_v9 = vrot.slane %v14399_v3, 1  ;;  %v1527_v42 = vmul.f32 %v11687_v39, %v14325_v28  ;;  %v1687_v44 = vmul.f32 %v11655_v32, %v14325_v28  ;;  %v1688_v23 = vmul.f32 %v11655_v32, %v14331_v37 }
 0x21d   :  { %v1319_v13 = vrot.slane %v1070_v24, 2  ;;  %11063 = vmatprep.mubr.msk.f32.mxu0 %vm38_vm1, %v3657_v45  ;;  %v2074_v1 = vadd.f32 %v1934_v17, %v1590_v47  ;;  %v1320_v43 = vrot.slane %v1071_v8, 2  ;;  %v2171_v5 = vmul.f32 %v11660_v33, %v14325_v28  ;;  %v14425_v47 = vld [vmem:[#allocation2 + $0x308] sm:$0xff] }
 0x21e   :  { %v836_v51 = vsel %vm693_vm4, %v834_v7, %v835_v9  ;;  %v1935_v12 = vrot.slane %v1687_v44, 1  ;;  %v1936_v60 = vrot.slane %v1688_v23, 1  ;;  %v2172_v16 = vmul.f32 %v11660_v33, %v14331_v37 }
 0x21f   :  { %v974_v29 = vadd.f32 %v836_v51, %v425_v11  ;;  %v2558_v3 = vadd.f32 %v2418_v2, %v2074_v1  ;;  %v3034_v24 = vsel %vm693_vm4, %v3031_v6, %v3033_v36  ;;  %v1321_v45 = vsel %vm1178_vm5, %v1319_v13, %v1320_v43 }
 0x220   :  { %v2419_v17 = vrot.slane %v2171_v5, 2  ;;  %v1937_v8 = vsel %vm693_vm4, %v1935_v12, %v1936_v60  ;;  %v2420_v62 = vrot.slane %v2172_v16, 2  ;;  %v2787_v11 = vmul.f32 %v11692_v40, %v14422_v0 }
 0x221   :  { %v1459_v7 = vadd.f32 %v1321_v45, %v974_v29  ;;  %v2690_v44 = vadd.f32 %v2626_v21, %v2558_v3  ;;  %v14432_v2 = vmul.f32 %v11692_v40, %v14425_v47  ;;  %v3271_v6 = vmul.f32 %v14230_v30, %v14422_v0 }
 0x222   :  { %v14438_v36 = vmul.f32 %v14230_v30, %v14425_v47  ;;  %v20488_v13 = vrot.slane %v14352_v10, 2  ;;  %v2421_v51 = vsel %vm1178_vm5, %v2419_v17, %v2420_v62  ;;  %v2627_v21 = vmul.f32 %v11708_v46, %v14422_v0 }
 0x223   :  { %v1591_v1 = vadd.f32 %v1527_v42, %v1459_v7  ;;  %v3174_v5 = vadd.f32 %v3034_v24, %v2690_v44  ;;  %v3035_v29 = vrot.slane %v2787_v11, 1  ;;  %v3036_v12 = vrot.slane %v14432_v2, 1  ;;  %v14458_v44 = vld [vmem:[#allocation2 + $0x310] sm:$0x3] }
 0x224   :  { %v3518_v23 = vsel %vm1178_vm5, %v20488_v13, %v3517_v38  ;;  %v426_v16 = vmul.f32 %v11621_v25, %v14217_v57  ;;  %v3519_v45 = vrot.slane %v3271_v6, 2  ;;  %v587_v10 = vmul.f32 %v11626_v26, %v14262_v55 }
 0x225   :  { %v2075_v3 = vadd.f32 %v1937_v8, %v1591_v1  ;;  %v1072_v38 = vmul.f32 %v11631_v27, %v14262_v55  ;;  %v3658_v42 = vadd.f32 %v3518_v23, %v3174_v5  ;;  %v3520_v17 = vrot.slane %v14438_v36, 2 }
 0x226   :  { %v1528_v24 = vmul.f32 %v11687_v39, %v14331_v37  ;;  %v1689_v7 = vmul.f32 %v11655_v32, %v14372_v49  ;;  %v837_v57 = vrot.slane %v587_v10, 1  ;;  %v2173_v2 = vmul.f32 %v11660_v33, %v14372_v49 }
 0x227   :  { %v2559_v11 = vadd.f32 %v2421_v51, %v2075_v3  ;;  %v1322_v8 = vrot.slane %v1072_v38, 2  ;;  %11064 = vmatmul.mubr.msk.f32.gmra.mrb[54].mxu0 %vm38_vm1, %v3658_v42  ;;  %v3037_v55 = vsel %vm693_vm4, %v3035_v29, %v3036_v12  ;;  %v2789_v36 = vmul.f32 %v11692_v40, %v14458_v44  ;;  %v14470_v3 = vpop.f32.mrb[30].mxu0 }
 0x228   :  { %v1938_v6 = vrot.slane %v1689_v7, 1  ;;  %v3273_v13 = vmul.f32 %v14230_v30, %v14458_v44  ;;  %v838_v1 = vsel %vm693_vm4, %v835_v9, %v837_v57  ;;  %v2422_v5 = vrot.slane %v2173_v2, 2  ;;  %20489 = vst [vmem:[#allocation80_spill] sm:$0xff] %v14470_v3  ;;  %v14476_v7 = vpop.f32.mrb[31].mxu0 }
 0x229   :  { %v2691_v23 = vadd.f32 %v2627_v21, %v2559_v11  ;;  %v1323_v51 = vsel %vm1178_vm5, %v1320_v43, %v1322_v8  ;;  %v3521_v10 = vsel %vm1178_vm5, %v3519_v45, %v3520_v17  ;;  %v975_v38 = vadd.f32 %v838_v1, %v426_v16 }
 0x22a   :  { %v1939_v29 = vsel %vm693_vm4, %v1936_v60, %v1938_v6  ;;  %v2628_v42 = vmul.f32 %v11708_v46, %v14425_v47  ;;  %v3038_v56 = vrot.slane %v2789_v36, 1  ;;  %v3522_v21 = vrot.slane %v3273_v13, 2 }
 0x22b   :  { %v3175_v58 = vadd.f32 %v3037_v55, %v2691_v23  ;;  %v588_v9 = vmul.f32 %v11626_v26, %v14325_v28  ;;  %v1460_v43 = vadd.f32 %v1323_v51, %v975_v38  ;;  %v2423_v11 = vsel %vm1178_vm5, %v2420_v62, %v2422_v5 }
 0x22c   :  { %v427_v45 = vmul.f32 %v11621_v25, %v14325_v28  ;;  %v589_v60 = vmul.f32 %v11626_v26, %v14331_v37  ;;  %v1073_v8 = vmul.f32 %v11631_v27, %v14325_v28  ;;  %v1074_v2 = vmul.f32 %v11631_v27, %v14331_v37 }
 0x22d   :  { %v3659_v16 = vadd.f32 %v3521_v10, %v3175_v58  ;;  %v839_v57 = vrot.slane %v588_v9, 1  ;;  %v1592_v55 = vadd.f32 %v1528_v24, %v1460_v43  ;;  %v1529_v36 = vmul.f32 %v11687_v39, %v14422_v0  ;;  %v14501_v10 = vld [vmem:[#allocation2 + $0x318] sm:$0xff] }
 0x22e   :  { %v840_v6 = vrot.slane %v589_v60, 1  ;;  %v1690_v62 = vmul.f32 %v11655_v32, %v14422_v0  ;;  %v1324_v13 = vrot.slane %v1073_v8, 2  ;;  %v1325_v23 = vrot.slane %v1074_v2, 2  ;;  %v14505_v2 = vld [vmem:[#allocation2 + $0x320] sm:$0xff] }
 0x22f   :  { %11066 = vmatprep.mubr.msk.f32.mxu1 %vm38_vm1, %v3659_v16  ;;  %v1691_v58 = vmul.f32 %v11655_v32, %v14425_v47  ;;  %v2174_v28 = vmul.f32 %v11660_v33, %v14422_v0  ;;  %v2076_v1 = vadd.f32 %v1939_v29, %v1592_v55  ;;  %v2175_v5 = vmul.f32 %v11660_v33, %v14425_v47 }
 0x230   :  { %v841_v24 = vsel %vm693_vm4, %v839_v57, %v840_v6  ;;  %v1940_v51 = vrot.slane %v1690_v62, 1  ;;  %v1326_v9 = vsel %vm1178_vm5, %v1324_v13, %v1325_v23  ;;  %v3039_v8 = vsel %vm693_vm4, %v3036_v12, %v3038_v56 }
 0x231   :  { %v976_v38 = vadd.f32 %v841_v24, %v427_v45  ;;  %v1941_v43 = vrot.slane %v1691_v58, 1  ;;  %v2424_v60 = vrot.slane %v2174_v28, 2  ;;  %v2560_v16 = vadd.f32 %v2423_v11, %v2076_v1 }
 0x232   :  { %v2425_v3 = vrot.slane %v2175_v5, 2  ;;  %v2790_v29 = vmul.f32 %v11692_v40, %v14501_v10  ;;  %v3523_v57 = vsel %vm1178_vm5, %v3520_v17, %v3522_v21  ;;  %v14512_v62 = vmul.f32 %v11692_v40, %v14505_v2 }
 0x233   :  { %v1461_v55 = vadd.f32 %v1326_v9, %v976_v38  ;;  %v3274_v45 = vmul.f32 %v14230_v30, %v14501_v10  ;;  %v2692_v13 = vadd.f32 %v2628_v42, %v2560_v16  ;;  %v1942_v11 = vsel %vm693_vm4, %v1940_v51, %v1941_v43 }
 0x234   :  { %v3040_v56 = vrot.slane %v2790_v29, 1  ;;  %v14519_v12 = vmul.f32 %v14230_v30, %v14505_v2  ;;  %v2426_v28 = vsel %vm1178_vm5, %v2424_v60, %v2425_v3  ;;  %v2629_v17 = vmul.f32 %v11708_v46, %v14501_v10 }
 0x235   :  { %v1593_v58 = vadd.f32 %v1529_v36, %v1461_v55  ;;  %v3041_v21 = vrot.slane %v14512_v62, 1  ;;  %v3176_v1 = vadd.f32 %v3039_v8, %v2692_v13  ;;  %v3524_v24 = vrot.slane %v3274_v45, 2  ;;  %v14535_v62 = vld [vmem:[#allocation2 + $0x328] sm:$0x3] }
 0x236   :  { %v590_v42 = vmul.f32 %v11626_v26, %v14372_v49  ;;  %v1075_v51 = vmul.f32 %v11631_v27, %v14372_v49  ;;  %v20273_v38 = vrot.slane %v14519_v12, 2  ;;  %v428_v36 = vmul.f32 %v11621_v25, %v14331_v37 }
 0x237   :  { %v2077_v5 = vadd.f32 %v1942_v11, %v1593_v58  ;;  %v1692_v9 = vmul.f32 %v11655_v32, %v14458_v44  ;;  %v3660_v60 = vadd.f32 %v3523_v57, %v3176_v1  ;;  %v3042_v16 = vsel %vm693_vm4, %v3040_v56, %v3041_v21 }
 0x238   :  { %v842_v8 = vrot.slane %v590_v42, 1  ;;  %v1327_v29 = vrot.slane %v1075_v51, 2  ;;  %v1530_v49 = vmul.f32 %v11687_v39, %v14425_v47  ;;  %v2176_v13 = vmul.f32 %v11660_v33, %v14458_v44 }
 0x239   :  { %v2561_v55 = vadd.f32 %v2426_v28, %v2077_v5  ;;  %v1943_v45 = vrot.slane %v1692_v9, 1  ;;  %11067 = vmatmul.mubr.msk.f32.vlgmr.msra.gmra.mrb[0].mxu1 %vm38_vm1, %v3660_v60  ;;  %v2792_v11 = vmul.f32 %v11692_v40, %v14535_v62  ;;  %v3276_v56 = vmul.f32 %v14230_v30, %v14535_v62 }
 0x23a   :  { %v843_v37 = vsel %vm693_vm4, %v840_v6, %v842_v8  ;;  %v1328_v57 = vsel %vm1178_vm5, %v1325_v23, %v1327_v29  ;;  %v3526_v28 = vsel %vm1178_vm5, %v3524_v24, %v20273_v38  ;;  %v2427_v42 = vrot.slane %v2176_v13, 2  ;;  %v14551_v51 = vpop.f32.mrb[32].mxu0  ;;  %v14587_v38 = vld [vmem:[#allocation2 + $0x330] sm:$0xff] }
 0x23b   :  { %v2693_v58 = vadd.f32 %v2629_v17, %v2561_v55  ;;  %v977_v1 = vadd.f32 %v843_v37, %v428_v36  ;;  %20490 = vst [vmem:[#allocation81_spill] sm:$0xff] %v14551_v51  ;;  %v1944_v5 = vsel %vm693_vm4, %v1941_v43, %v1943_v45  ;;  %v2630_v6 = vmul.f32 %v11708_v46, %v14505_v2  ;;  %v14558_v60 = vpop.f32.mrb[33].mxu0 }
 0x23c   :  { %v3043_v23 = vrot.slane %v2792_v11, 1  ;;  %v591_v9 = vmul.f32 %v11626_v26, %v14422_v0  ;;  %v3527_v29 = vrot.slane %v3276_v56, 2  ;;  %v14562_v24 = vmul.f32 %v11626_v26, %v14425_v47 }
 0x23d   :  { %v3177_v17 = vadd.f32 %v3042_v16, %v2693_v58  ;;  %v1462_v8 = vadd.f32 %v1328_v57, %v977_v1  ;;  %v2428_v36 = vsel %vm1178_vm5, %v2425_v3, %v2427_v42  ;;  %v429_v43 = vmul.f32 %v11621_v25, %v14422_v0 }
 0x23e   :  { %v844_v55 = vrot.slane %v591_v9, 1  ;;  %v1076_v45 = vmul.f32 %v11631_v27, %v14422_v0  ;;  %v845_v11 = vrot.slane %v14562_v24, 1  ;;  %v1077_v16 = vmul.f32 %v11631_v27, %v14425_v47 }
 0x23f   :  { %v3661_v13 = vadd.f32 %v3526_v28, %v3177_v17  ;;  %v1594_v37 = vadd.f32 %v1530_v49, %v1462_v8  ;;  %v1531_v56 = vmul.f32 %v11687_v39, %v14501_v10  ;;  %v1693_v3 = vmul.f32 %v11655_v32, %v14501_v10 }
 0x240   :  { %v1329_v57 = vrot.slane %v1076_v45, 2  ;;  %v1694_v58 = vmul.f32 %v11655_v32, %v14505_v2  ;;  %v846_v49 = vsel %vm693_vm4, %v844_v55, %v845_v11  ;;  %v1330_v28 = vrot.slane %v1077_v16, 2  ;;  %v14590_v55 = vld [vmem:[#allocation2 + $0x338] sm:$0xff] }
 0x241   :  { %11069 = vmatprep.mubr.msk.f32.mxu1 %vm38_vm1, %v3661_v13  ;;  %v2078_v0 = vadd.f32 %v1944_v5, %v1594_v37  ;;  %v2177_v1 = vmul.f32 %v11660_v33, %v14501_v10  ;;  %v978_v42 = vadd.f32 %v846_v49, %v429_v43  ;;  %v1945_v9 = vrot.slane %v1693_v3, 1 }
 0x242   :  { %v1946_v17 = vrot.slane %v1694_v58, 1  ;;  %v14584_v8 = vmul.f32 %v11660_v33, %v14505_v2  ;;  %v3044_v45 = vsel %vm693_vm4, %v3041_v21, %v3043_v23  ;;  %v1331_v5 = vsel %vm1178_vm5, %v1329_v57, %v1330_v28 }
 0x243   :  { %v2562_v24 = vadd.f32 %v2428_v36, %v2078_v0  ;;  %v2429_v13 = vrot.slane %v2177_v1, 2  ;;  %v1463_v37 = vadd.f32 %v1331_v5, %v978_v42  ;;  %v2793_v3 = vmul.f32 %v11692_v40, %v14587_v38 }
 0x244   :  { %v1947_v16 = vsel %vm693_vm4, %v1945_v9, %v1946_v17  ;;  %v2430_v43 = vrot.slane %v14584_v8, 2  ;;  %v14598_v36 = vmul.f32 %v11692_v40, %v14590_v55  ;;  %v3277_v21 = vmul.f32 %v14230_v30, %v14587_v38 }
 0x245   :  { %v2694_v58 = vadd.f32 %v2630_v6, %v2562_v24  ;;  %v14604_v23 = vmul.f32 %v14230_v30, %v14590_v55  ;;  %v20491_v57 = vrot.slane %v14519_v12, 2  ;;  %v1595_v49 = vadd.f32 %v1531_v56, %v1463_v37 }
 0x246   :  { %v2631_v1 = vmul.f32 %v11708_v46, %v14587_v38  ;;  %v2431_v42 = vsel %vm1178_vm5, %v2429_v13, %v2430_v43  ;;  %v3045_v9 = vrot.slane %v2793_v3, 1  ;;  %v20275_v8 = vrot.slane %v14598_v36, 1  ;;  %v14622_v3 = vld [vmem:[#allocation2 + $0x340] sm:$0x3] }
 0x247   :  { %v3528_v0 = vsel %vm1178_vm5, %v20491_v57, %v3527_v29  ;;  %v3178_v6 = vadd.f32 %v3044_v45, %v2694_v58  ;;  %v2079_v24 = vadd.f32 %v1947_v16, %v1595_v49  ;;  %v430_v5 = vmul.f32 %v11621_v25, %v14425_v47 }
 0x248   :  { %v593_v51 = vmul.f32 %v11626_v26, %v14458_v44  ;;  %v1078_v12 = vmul.f32 %v11631_v27, %v14458_v44  ;;  %v3529_v56 = vrot.slane %v3277_v21, 2  ;;  %v20277_v37 = vrot.slane %v14604_v23, 2 }
 0x249   :  { %v3662_v29 = vadd.f32 %v3528_v0, %v3178_v6  ;;  %v1695_v45 = vmul.f32 %v11655_v32, %v14535_v62  ;;  %v2563_v13 = vadd.f32 %v2431_v42, %v2079_v24  ;;  %v2179_v47 = vmul.f32 %v11660_v33, %v14535_v62 }
 0x24a   :  { %v847_v16 = vrot.slane %v593_v51, 1  ;;  %v1332_v58 = vrot.slane %v1078_v12, 2  ;;  %v3047_v44 = vsel %vm693_vm4, %v3045_v9, %v20275_v8  ;;  %v2795_v57 = vmul.f32 %v11692_v40, %v14622_v3  ;;  %v14638_v24 = vpop.f32.mrb[34].mxu0 }
 0x24b   :  { %11070 = vmatmul.mubr.msk.f32.gmra.mrb[2].mxu1 %vm38_vm1, %v3662_v29  ;;  %v1948_v21 = vrot.slane %v1695_v45, 1  ;;  %v3279_v0 = vmul.f32 %v14230_v30, %v14622_v3  ;;  %v2695_v49 = vadd.f32 %v2631_v1, %v2563_v13  ;;  %v1532_v42 = vmul.f32 %v11687_v39, %v14505_v2  ;;  %20492 = vst [vmem:[#allocation82_spill] sm:$0xff] %v14638_v24  ;;  %v14645_v8 = vpop.f32.mrb[35].mxu0 }
 0x24c   :  { %v848_v51 = vsel %vm693_vm4, %v845_v11, %v847_v16  ;;  %v1333_v6 = vsel %vm1178_vm5, %v1330_v28, %v1332_v58  ;;  %v3531_v9 = vsel %vm1178_vm5, %v3529_v56, %v20277_v37  ;;  %v2432_v29 = vrot.slane %v2179_v47, 2  ;;  %20493 = vst [vmem:[#allocation83_spill] sm:$0xff] %v14645_v8 }
 0x24d   :  { %v979_v12 = vadd.f32 %v848_v51, %v430_v5  ;;  %v2632_v45 = vmul.f32 %v11708_v46, %v14590_v55  ;;  %v3179_v1 = vadd.f32 %v3047_v44, %v2695_v49  ;;  %v1949_v11 = vsel %vm693_vm4, %v1946_v17, %v1948_v21  ;;  %v360_v49 = vld [vmem:[#allocation2 + $0x348] sm:$0xff] }
 0x24e   :  { %v3048_v28 = vrot.slane %v2795_v57, 1  ;;  %v594_v13 = vmul.f32 %v11626_v26, %v14501_v10  ;;  %v3532_v58 = vrot.slane %v3279_v0, 2  ;;  %v431_v24 = vmul.f32 %v11621_v25, %v14501_v10 }
 0x24f   :  { %v1464_v16 = vadd.f32 %v1333_v6, %v979_v12  ;;  %v595_v5 = vmul.f32 %v11626_v26, %v14505_v2  ;;  %v3663_v56 = vadd.f32 %v3531_v9, %v3179_v1  ;;  %v1079_v51 = vmul.f32 %v11631_v27, %v14501_v10 }
 0x250   :  { %v849_v47 = vrot.slane %v594_v13, 1  ;;  %v1080_v17 = vmul.f32 %v11631_v27, %v14505_v2  ;;  %v2433_v21 = vsel %vm1178_vm5, %v2430_v43, %v2432_v29  ;;  %v1696_v0 = vmul.f32 %v11655_v32, %v14587_v38 }
 0x251   :  { %v1596_v44 = vadd.f32 %v1532_v42, %v1464_v16  ;;  %v850_v57 = vrot.slane %v595_v5, 1  ;;  %11072 = vmatprep.mubr.msk.f32.mxu1 %vm38_vm1, %v3663_v56  ;;  %v1334_v6 = vrot.slane %v1079_v51, 2  ;;  %v14664_v9 = vmul.f32 %v11655_v32, %v14590_v55  ;;  %v361_v42 = vld [vmem:[#allocation2 + $0x350] sm:$0xff] }
 0x252   :  { %v1335_v12 = vrot.slane %v1080_v17, 2  ;;  %v2180_v10 = vmul.f32 %v11660_v33, %v14587_v38  ;;  %v1950_v29 = vrot.slane %v1696_v0, 1  ;;  %v14671_v13 = vmul.f32 %v11660_v33, %v14590_v55 }
 0x253   :  { %v2080_v1 = vadd.f32 %v1949_v11, %v1596_v44  ;;  %v851_v43 = vsel %vm693_vm4, %v849_v47, %v850_v57  ;;  %v1533_v56 = vmul.f32 %v11687_v39, %v14587_v38  ;;  %v1951_v51 = vrot.slane %v14664_v9, 1 }
 0x254   :  { %v980_v16 = vadd.f32 %v851_v43, %v431_v24  ;;  %v1336_v5 = vsel %vm1178_vm5, %v1334_v6, %v1335_v12  ;;  %v2434_v37 = vrot.slane %v2180_v10, 2  ;;  %v2435_v11 = vrot.slane %v14671_v13, 2 }
 0x255   :  { %v2564_v17 = vadd.f32 %v2433_v21, %v2080_v1  ;;  %v2796_v44 = vmul.f32 %v11692_v40, %v360_v49  ;;  %v20494_v47 = vrot.slane %v14598_v36, 1  ;;  %v14683_v24 = vmul.f32 %v11692_v40, %v361_v42 }
 0x256   :  { %v1465_v8 = vadd.f32 %v1336_v5, %v980_v16  ;;  %v3280_v6 = vmul.f32 %v14230_v30, %v360_v49  ;;  %v20495_v38 = vrot.slane %v14604_v23, 2  ;;  %v1952_v9 = vsel %vm693_vm4, %v1950_v29, %v1951_v51 }
 0x257   :  { %v3049_v0 = vsel %vm693_vm4, %v20494_v47, %v3048_v28  ;;  %v2696_v43 = vadd.f32 %v2632_v45, %v2564_v17  ;;  %v14691_v10 = vmul.f32 %v14230_v30, %v361_v42  ;;  %v2633_v36 = vmul.f32 %v11708_v46, %v360_v49  ;;  %v362_v17 = vld [vmem:[#allocation2 + $0x358] sm:$0x3] }
 0x258   :  { %v3533_v21 = vsel %vm1178_vm5, %v20495_v38, %v3532_v58  ;;  %v1597_v1 = vadd.f32 %v1533_v56, %v1465_v8  ;;  %v3050_v28 = vrot.slane %v2796_v44, 1  ;;  %v3051_v13 = vrot.slane %v14683_v24, 1 }
 0x259   :  { %v3180_v16 = vadd.f32 %v3049_v0, %v2696_v43  ;;  %v2436_v5 = vsel %vm1178_vm5, %v2434_v37, %v2435_v11  ;;  %v596_v45 = vmul.f32 %v11626_v26, %v14535_v62  ;;  %v1081_v23 = vmul.f32 %v11631_v27, %v14535_v62 }
 0x25a   :  { %v2081_v58 = vadd.f32 %v1952_v9, %v1597_v1  ;;  %v3534_v29 = vrot.slane %v3280_v6, 2  ;;  %v432_v8 = vmul.f32 %v11621_v25, %v14505_v2  ;;  %v1698_v49 = vmul.f32 %v11655_v32, %v14622_v3 }
 0x25b   :  { %v3664_v56 = vadd.f32 %v3533_v21, %v3180_v16  ;;  %v3535_v44 = vrot.slane %v14691_v10, 2  ;;  %v852_v47 = vrot.slane %v596_v45, 1  ;;  %v1337_v37 = vrot.slane %v1081_v23, 2 }
 0x25c   :  { %v2565_v0 = vadd.f32 %v2436_v5, %v2081_v58  ;;  %v3052_v26 = vsel %vm693_vm4, %v3050_v28, %v3051_v13  ;;  %v2182_v27 = vmul.f32 %v11660_v33, %v14622_v3  ;;  %v1953_v2 = vrot.slane %v1698_v49, 1  ;;  %v14714_v38 = vpop.f32.mrb[36].mxu0 }
 0x25d   :  { %11073 = vmatmul.mubr.msk.f32.gmra.mrb[4].mxu1 %vm38_vm1, %v3664_v56  ;;  %v853_v62 = vsel %vm693_vm4, %v850_v57, %v852_v47  ;;  %v1338_v25 = vsel %vm1178_vm5, %v1335_v12, %v1337_v37  ;;  %v2798_v32 = vmul.f32 %v11692_v40, %v362_v17  ;;  %v1534_v43 = vmul.f32 %v11687_v39, %v14590_v55  ;;  %v14721_v57 = vpop.f32.mrb[37].mxu0 }
 0x25e   :  { %v2697_v24 = vadd.f32 %v2633_v36, %v2565_v0  ;;  %v981_v6 = vadd.f32 %v853_v62, %v432_v8  ;;  %20496 = vst [vmem:[#allocation84_spill] sm:$0xff] %v14714_v38  ;;  %v3536_v21 = vsel %vm1178_vm5, %v3534_v29, %v3535_v44  ;;  %v2437_v9 = vrot.slane %v2182_v27, 2  ;;  %20497 = vst [vmem:[#allocation85_spill] sm:$0xff] %v14721_v57 }
 0x25f   :  { %v4252_v33 = vsel %vm38_vm1, %v14108_v15, 0.0  ;;  %v4386_v3 = vmul.f32 %v14108_v15, %v14108_v15  ;;  %v3282_v10 = vmul.f32 %v14230_v30, %v362_v17  ;;  %v4251_v39 = vsel %vm38_vm1, %v14114_v53, 0.0 }
 0x260   :  { %v3181_v12 = vadd.f32 %v3052_v26, %v2697_v24  ;;  %v1466_v40 = vadd.f32 %v1338_v25, %v981_v6  ;;  %v1954_v55 = vsel %vm693_vm4, %v1951_v51, %v1953_v2  ;;  %v2634_v1 = vmul.f32 %v11708_v46, %v361_v42 }
 0x261   :  { %v3053_v36 = vrot.slane %v2798_v32, 1  ;;  %v4253_v28 = vadd.f32 %v4252_v33, %v4251_v39  ;;  %v4450_v45 = vsel %vm38_vm1, %v4386_v3, 0.0  ;;  %v4385_v23 = vmul.f32 %v14114_v53, %v14114_v53 }
 0x262   :  { %v3665_v16 = vadd.f32 %v3536_v21, %v3181_v12  ;;  %v1598_v5 = vadd.f32 %v1534_v43, %v1466_v40  ;;  %v2438_v58 = vsel %vm1178_vm5, %v2435_v11, %v2437_v9  ;;  %v4388_v30 = vmul.f32 %v14120_v31, %v14120_v31 }
 0x263   :  { %v4254_v29 = vsel %vm38_vm1, %v14127_v54, 0.0  ;;  %v4387_v46 = vmul.f32 %v14127_v54, %v14127_v54  ;;  %v3537_v51 = vrot.slane %v3282_v10, 2  ;;  %v4449_v17 = vsel %vm38_vm1, %v4385_v23, 0.0 }
 0x264   :  { %11075 = vmatprep.mubr.msk.f32.mxu1 %vm38_vm1, %v3665_v16  ;;  %v2082_v42 = vadd.f32 %v1954_v55, %v1598_v5  ;;  %v4255_v8 = vadd.f32 %v4254_v29, %v4253_v28  ;;  %v4451_v49 = vadd.f32 %v4450_v45, %v4449_v17  ;;  %v4256_v11 = vsel %vm38_vm1, %v14120_v31, 0.0 }
 0x265   :  { %v4452_v56 = vsel %vm38_vm1, %v4387_v46, 0.0  ;;  %v4258_v47 = vsel %vm38_vm1, %v14140_v34, 0.0  ;;  %v4389_v26 = vmul.f32 %v14140_v34, %v14140_v34  ;;  %v3054_v27 = vsel %vm693_vm4, %v3051_v13, %v3053_v36 }
 0x266   :  { %v2566_v37 = vadd.f32 %v2438_v58, %v2082_v42  ;;  %v4257_v0 = vadd.f32 %v4256_v11, %v4255_v8  ;;  %v4454_v62 = vsel %vm38_vm1, %v4388_v30, 0.0  ;;  %v4453_v25 = vadd.f32 %v4452_v56, %v4451_v49 }
 0x267   :  { %v4390_v2 = vmul.f32 %v14132_v4, %v14132_v4  ;;  %v4456_v6 = vsel %vm38_vm1, %v4389_v26, 0.0  ;;  %v4391_v43 = vmul.f32 %v14154_v48, %v14154_v48  ;;  %v3538_v21 = vsel %vm1178_vm5, %v3535_v44, %v3537_v51 }
 0x268   :  { %v2698_v32 = vadd.f32 %v2634_v1, %v2566_v37  ;;  %v4259_v24 = vadd.f32 %v4258_v47, %v4257_v0  ;;  %v4455_v9 = vadd.f32 %v4454_v62, %v4453_v25  ;;  %v4260_v33 = vsel %vm38_vm1, %v14132_v4, 0.0 }
 0x269   :  { %v4262_v13 = vsel %vm38_vm1, %v14154_v48, 0.0  ;;  %v4458_v40 = vsel %vm38_vm1, %v4390_v2, 0.0  ;;  %v4392_v39 = vmul.f32 %v14149_v19, %v14149_v19  ;;  %v4460_v36 = vsel %vm38_vm1, %v4391_v43, 0.0 }
 0x26a   :  { %v3182_v3 = vadd.f32 %v3054_v27, %v2698_v32  ;;  %v4261_v12 = vadd.f32 %v4260_v33, %v4259_v24  ;;  %v4457_v10 = vadd.f32 %v4456_v6, %v4455_v9  ;;  %v4393_v44 = vmul.f32 %v14167_v35, %v14167_v35 }
 0x26b   :  { %v4264_v28 = vsel %vm38_vm1, %v14149_v19, 0.0  ;;  %v4266_v5 = vsel %vm38_vm1, %v14167_v35, 0.0  ;;  %v4462_v23 = vsel %vm38_vm1, %v4392_v39, 0.0  ;;  %v4394_v29 = vmul.f32 %v14161_v63, %v14161_v63 }
 0x26c   :  { %v3666_v55 = vadd.f32 %v3538_v21, %v3182_v3  ;;  %v4263_v1 = vadd.f32 %v4262_v13, %v4261_v12  ;;  %v4459_v16 = vadd.f32 %v4458_v40, %v4457_v10  ;;  %v4464_v42 = vsel %vm38_vm1, %v4393_v44, 0.0 }
 0x26d   :  { %v14771_v30 = vpop.f32.mrb[38].mxu0  ;;  %v4395_v51 = vmul.f32 %v14181_v22, %v14181_v22  ;;  %v4268_v8 = vsel %vm38_vm1, %v14161_v63, 0.0  ;;  %v4270_v11 = vsel %vm38_vm1, %v14181_v22, 0.0  ;;  %v4396_v37 = vmul.f32 %v14174_v50, %v14174_v50 }
 0x26e   :  { %11076 = vmatmul.mubr.msk.f32.gmra.mrb[6].mxu1 %vm38_vm1, %v3666_v55  ;;  %v4265_v45 = vadd.f32 %v4264_v28, %v4263_v1  ;;  %v4461_v58 = vadd.f32 %v4460_v36, %v4459_v16  ;;  %20498 = vst [vmem:[#allocation86_spill] sm:$0xff] %v14771_v30  ;;  %v14778_v17 = vpop.f32.mrb[39].mxu0  ;;  %v4466_v0 = vsel %vm38_vm1, %v4394_v29, 0.0  ;;  %v4397_v62 = vmul.f32 %v14200_v20, %v14200_v20 }
 0x26f   :  { %20499 = vst [vmem:[#allocation87_spill] sm:$0xff] %v14778_v17  ;;  %v4468_v27 = vsel %vm38_vm1, %v4395_v51, 0.0  ;;  %v4272_v25 = vsel %vm38_vm1, %v14174_v50, 0.0  ;;  %v4274_v32 = vsel %vm38_vm1, %v14200_v20, 0.0  ;;  %v4470_v6 = vsel %vm38_vm1, %v4396_v37, 0.0 }
 0x270   :  { %v4267_v46 = vadd.f32 %v4266_v5, %v4265_v45  ;;  %v4463_v49 = vadd.f32 %v4462_v23, %v4461_v58  ;;  %v4398_v21 = vmul.f32 %v14191_v14, %v14191_v14  ;;  %v4472_v33 = vsel %vm38_vm1, %v4397_v62, 0.0 }
 0x271   :  { %v4399_v13 = vmul.f32 %v14215_v61, %v14215_v61  ;;  %v4276_v3 = vsel %vm38_vm1, %v14191_v14, 0.0  ;;  %v4278_v40 = vsel %vm38_vm1, %v14215_v61, 0.0  ;;  %v4400_v55 = vmul.f32 %v14207_v52, %v14207_v52 }
 0x272   :  { %v4269_v56 = vadd.f32 %v4268_v8, %v4267_v46  ;;  %v4465_v47 = vadd.f32 %v4464_v42, %v4463_v49  ;;  %v4474_v1 = vsel %vm38_vm1, %v4398_v21, 0.0  ;;  %v4401_v28 = vmul.f32 %v14246_v59, %v14246_v59 }
 0x273   :  { %v4476_v44 = vsel %vm38_vm1, %v4399_v13, 0.0  ;;  %v4280_v16 = vsel %vm38_vm1, %v14207_v52, 0.0  ;;  %v4282_v45 = vsel %vm38_vm1, %v14246_v59, 0.0  ;;  %v4478_v58 = vsel %vm38_vm1, %v4400_v55, 0.0  ;;  %v20505_v55 = vld [vmem:[#allocation73_spill] sm:$0xff] }
 0x274   :  { %v4271_v26 = vadd.f32 %v4270_v11, %v4269_v56  ;;  %v4467_v2 = vadd.f32 %v4466_v0, %v4465_v47  ;;  %v4402_v46 = vmul.f32 %v14238_v18, %v14238_v18  ;;  %v4480_v51 = vsel %vm38_vm1, %v4401_v28, 0.0 }
 0x275   :  { %v4403_v8 = vmul.f32 %v14266_v41, %v14266_v41  ;;  %v4284_v49 = vsel %vm38_vm1, %v14238_v18, 0.0  ;;  %v4286_v56 = vsel %vm38_vm1, %v14266_v41, 0.0  ;;  %v4294_v28 = vsel %vm38_vm1, %v20505_v55, 0.0 }
 0x276   :  { %v4273_v24 = vadd.f32 %v4272_v25, %v4271_v26  ;;  %v4469_v43 = vadd.f32 %v4468_v27, %v4467_v2  ;;  %v20502_v27 = vld [vmem:[#allocation69_spill] sm:$0xff]  ;;  %v4482_v25 = vsel %vm38_vm1, %v4402_v46, 0.0 }
 0x277   :  { %v4404_v62 = vmul.f32 %v20502_v27, %v20502_v27 }
 0x278   :  { %v4275_v9 = vadd.f32 %v4274_v32, %v4273_v24  ;;  %v4471_v12 = vadd.f32 %v4470_v6, %v4469_v43  ;;  %v4484_v32 = vsel %vm38_vm1, %v4403_v8, 0.0  ;;  %v20503_v24 = vld [vmem:[#allocation71_spill] sm:$0xff]  ;;  %v4288_v43 = vsel %vm38_vm1, %v20502_v27, 0.0 }
 0x279   :  { %v4405_v6 = vmul.f32 %v20503_v24, %v20503_v24  ;;  %v4486_v13 = vsel %vm38_vm1, %v4404_v62, 0.0  ;;  %v20508_v62 = vld [vmem:[#allocation74_spill] sm:$0xff] }
 0x27a   :  { %v4277_v10 = vadd.f32 %v4276_v3, %v4275_v9  ;;  %v4473_v39 = vadd.f32 %v4472_v33, %v4471_v12  ;;  %v4290_v9 = vsel %vm38_vm1, %v20503_v24, 0.0  ;;  %v20504_v12 = vld [vmem:[#allocation70_spill] sm:$0xff] }
 0x27c   :  { %v4279_v36 = vadd.f32 %v4278_v40, %v4277_v10  ;;  %v4475_v5 = vadd.f32 %v4474_v1, %v4473_v39  ;;  %v4406_v40 = vmul.f32 %v20504_v12, %v20504_v12  ;;  %v4488_v39 = vsel %vm38_vm1, %v4405_v6, 0.0  ;;  %v20509_v6 = vld [vmem:[#allocation77_spill] sm:$0xff] }
 0x27d   :  { %v4407_v1 = vmul.f32 %v20505_v55, %v20505_v55 }
 0x27e   :  { %v4281_v23 = vadd.f32 %v4280_v16, %v4279_v36  ;;  %v4477_v29 = vadd.f32 %v4476_v44, %v4475_v5  ;;  %v4292_v36 = vsel %vm38_vm1, %v20504_v12, 0.0 }
 0x27f   :  { %v14824_v47 = vpop.f32.mrb[40].mxu0  ;;  %v4492_v46 = vsel %vm38_vm1, %v4407_v1, 0.0 }
 0x280   :  { %v4283_v42 = vadd.f32 %v4282_v45, %v4281_v23  ;;  %v4479_v11 = vadd.f32 %v4478_v58, %v4477_v29  ;;  %20500 = vst [vmem:[#allocation88_spill] sm:$0xff] %v14824_v47  ;;  %v14826_v0 = vpop.f32.mrb[41].mxu0  ;;  %v20506_v45 = vld [vmem:[#allocation72_spill] sm:$0xff]  ;;  %v4490_v58 = vsel %vm38_vm1, %v4406_v40, 0.0 }
 0x281   :  { %20501 = vst [vmem:[#allocation89_spill] sm:$0xff] %v14826_v0  ;;  %v4408_v23 = vmul.f32 %v20506_v45, %v20506_v45  ;;  %v4296_v8 = vsel %vm38_vm1, %v20506_v45, 0.0 }
 0x282   :  { %v4285_v37 = vadd.f32 %v4284_v49, %v4283_v42  ;;  %v4481_v26 = vadd.f32 %v4480_v51, %v4479_v11  ;;  %v20507_v42 = vld [vmem:[#allocation75_spill] sm:$0xff] }
 0x283   :  { %v4409_v51 = vmul.f32 %v20507_v42, %v20507_v42  ;;  %v4298_v11 = vsel %vm38_vm1, %v20507_v42, 0.0 }
 0x284   :  { %v4287_v2 = vadd.f32 %v4286_v56, %v4285_v37  ;;  %v4483_v21 = vadd.f32 %v4482_v25, %v4481_v26  ;;  %v4494_v37 = vsel %vm38_vm1, %v4408_v23, 0.0  ;;  %v4410_v25 = vmul.f32 %v20508_v62, %v20508_v62 }
 0x286   :  { %v4289_v33 = vadd.f32 %v4288_v43, %v4287_v2  ;;  %v4485_v3 = vadd.f32 %v4484_v32, %v4483_v21  ;;  %v4496_v32 = vsel %vm38_vm1, %v4409_v51, 0.0  ;;  %v4411_v43 = vmul.f32 %v20509_v6, %v20509_v6 }
 0x287   :  { %v4300_v21 = vsel %vm38_vm1, %v20508_v62, 0.0 }
 0x288   :  { %v4291_v10 = vadd.f32 %v4290_v9, %v4289_v33  ;;  %v4487_v44 = vadd.f32 %v4486_v13, %v4485_v3  ;;  %v4302_v33 = vsel %vm38_vm1, %v20509_v6, 0.0 }
 0x28a   :  { %v4293_v16 = vadd.f32 %v4292_v36, %v4291_v10  ;;  %v4489_v5 = vadd.f32 %v4488_v39, %v4487_v44  ;;  %v20511_v10 = vld [vmem:[#allocation76_spill] sm:$0xff]  ;;  %v4498_v36 = vsel %vm38_vm1, %v4410_v25, 0.0 }
 0x28b   :  { %v4412_v39 = vmul.f32 %v20511_v10, %v20511_v10  ;;  %v4304_v23 = vsel %vm38_vm1, %v20511_v10, 0.0 }
 0x28c   :  { %v4295_v29 = vadd.f32 %v4294_v28, %v4293_v16  ;;  %v4491_v49 = vadd.f32 %v4490_v58, %v4489_v5  ;;  %v4500_v28 = vsel %vm38_vm1, %v4411_v43, 0.0  ;;  %v20513_v16 = vld [vmem:[#allocation79_spill] sm:$0xff] }
 0x28d   :  { %v4413_v5 = vmul.f32 %v20513_v16, %v20513_v16  ;;  %v4502_v51 = vsel %vm38_vm1, %v4412_v39, 0.0 }
 0x28e   :  { %v4297_v56 = vadd.f32 %v4296_v8, %v4295_v29  ;;  %v4493_v26 = vadd.f32 %v4492_v46, %v4491_v49  ;;  %v4306_v29 = vsel %vm38_vm1, %v20513_v16, 0.0  ;;  %v20514_v49 = vld [vmem:[#allocation78_spill] sm:$0xff] }
 0x28f   :  { %v4308_v25 = vsel %vm38_vm1, %v20514_v49, 0.0 }
 0x290   :  { %v4299_v2 = vadd.f32 %v4298_v11, %v4297_v56  ;;  %v4495_v9 = vadd.f32 %v4494_v37, %v4493_v26  ;;  %v14868_v3 = vpop.f32.mrb[42].mxu0  ;;  %v4414_v11 = vmul.f32 %v20514_v49, %v20514_v49  ;;  %v4504_v37 = vsel %vm38_vm1, %v4413_v5, 0.0 }
 0x291   :  { %20510 = vst [vmem:[#allocation69_spill] sm:$0xff] %v14868_v3  ;;  %v14872_v1 = vpop.f32.mrb[43].mxu0  ;;  %v4415_v26 = vmul.f32 %v14476_v7, %v14476_v7  ;;  %v4314_v5 = vsel %vm38_vm1, %v14558_v60, 0.0 }
 0x292   :  { %v4301_v13 = vadd.f32 %v4300_v21, %v4299_v2  ;;  %v4497_v40 = vadd.f32 %v4496_v32, %v4495_v9  ;;  %20512 = vst [vmem:[#allocation71_spill] sm:$0xff] %v14872_v1  ;;  %v4310_v32 = vsel %vm38_vm1, %v14476_v7, 0.0  ;;  %v20515_v9 = vld [vmem:[#allocation80_spill] sm:$0xff] }
 0x293   :  { %v4508_v39 = vsel %vm38_vm1, %v4415_v26, 0.0 }
 0x294   :  { %v4303_v44 = vadd.f32 %v4302_v33, %v4301_v13  ;;  %v4499_v58 = vadd.f32 %v4498_v36, %v4497_v40  ;;  %v4416_v33 = vmul.f32 %v20515_v9, %v20515_v9  ;;  %v4506_v13 = vsel %vm38_vm1, %v4414_v11, 0.0 }
 0x295   :  { %v4417_v36 = vmul.f32 %v14558_v60, %v14558_v60 }
 0x296   :  { %v4305_v46 = vadd.f32 %v4304_v23, %v4303_v44  ;;  %v4501_v8 = vadd.f32 %v4500_v28, %v4499_v58  ;;  %v4312_v44 = vsel %vm38_vm1, %v20515_v9, 0.0  ;;  %v4510_v58 = vsel %vm38_vm1, %v4416_v33, 0.0 }
 0x297   :  { %v4512_v11 = vsel %vm38_vm1, %v4417_v36, 0.0  ;;  %v4421_v36 = vmul.f32 %v14721_v57, %v14721_v57 }
 0x298   :  { %v4307_v56 = vadd.f32 %v4306_v29, %v4305_v46  ;;  %v4503_v2 = vadd.f32 %v4502_v51, %v4501_v8  ;;  %v20516_v46 = vld [vmem:[#allocation81_spill] sm:$0xff] }
 0x299   :  { %v4418_v51 = vmul.f32 %v20516_v46, %v20516_v46  ;;  %v4316_v26 = vsel %vm38_vm1, %v20516_v46, 0.0 }
 0x29a   :  { %v4309_v43 = vadd.f32 %v4308_v25, %v4307_v56  ;;  %v4505_v21 = vadd.f32 %v4504_v37, %v4503_v2  ;;  %v20517_v56 = vld [vmem:[#allocation83_spill] sm:$0xff] }
 0x29b   :  { %v4419_v37 = vmul.f32 %v20517_v56, %v20517_v56  ;;  %v4318_v2 = vsel %vm38_vm1, %v20517_v56, 0.0 }
 0x29c   :  { %v4311_v40 = vadd.f32 %v4310_v32, %v4309_v43  ;;  %v4507_v28 = vadd.f32 %v4506_v13, %v4505_v21  ;;  %v20518_v21 = vld [vmem:[#allocation82_spill] sm:$0xff]  ;;  %v4514_v13 = vsel %vm38_vm1, %v4418_v51, 0.0 }
 0x29d   :  { %v4420_v33 = vmul.f32 %v20518_v21, %v20518_v21 }
 0x29e   :  { %v4313_v23 = vadd.f32 %v4312_v44, %v4311_v40  ;;  %v4509_v29 = vadd.f32 %v4508_v39, %v4507_v28  ;;  %v4516_v39 = vsel %vm38_vm1, %v4419_v37, 0.0  ;;  %v4320_v28 = vsel %vm38_vm1, %v20518_v21, 0.0 }
 0x29f   :  { %v4518_v51 = vsel %vm38_vm1, %v4420_v33, 0.0  ;;  %v4424_v33 = vmul.f32 %v14771_v30, %v14771_v30 }
 0x2a0   :  { %v4315_v8 = vadd.f32 %v4314_v5, %v4313_v23  ;;  %v4511_v25 = vadd.f32 %v4510_v58, %v4509_v29  ;;  %v4322_v23 = vsel %vm38_vm1, %v14721_v57, 0.0 }
 0x2a2   :  { %v4317_v32 = vadd.f32 %v4316_v26, %v4315_v8  ;;  %v4513_v43 = vadd.f32 %v4512_v11, %v4511_v25  ;;  %v14918_v44 = vpop.f32.mrb[44].mxu0  ;;  %v4422_v11 = vmul.f32 %v14714_v38, %v14714_v38  ;;  %v4520_v26 = vsel %vm38_vm1, %v4421_v36, 0.0 }
 0x2a3   :  { %20519 = vst [vmem:[#allocation70_spill] sm:$0xff] %v14918_v44  ;;  %v14924_v58 = vpop.f32.mrb[45].mxu0  ;;  %v4423_v25 = vmul.f32 %v14778_v17, %v14778_v17 }
 0x2a4   :  { %v4319_v40 = vadd.f32 %v4318_v2, %v4317_v32  ;;  %v4515_v5 = vadd.f32 %v4514_v13, %v4513_v43  ;;  %20520 = vst [vmem:[#allocation73_spill] sm:$0xff] %v14924_v58  ;;  %v4324_v2 = vsel %vm38_vm1, %v14714_v38, 0.0  ;;  %v4326_v43 = vsel %vm38_vm1, %v14778_v17, 0.0 }
 0x2a5   :  { %v4524_v36 = vsel %vm38_vm1, %v4423_v25, 0.0 }
 0x2a6   :  { %v4321_v29 = vadd.f32 %v4320_v28, %v4319_v40  ;;  %v4517_v8 = vadd.f32 %v4516_v39, %v4515_v5  ;;  %v4522_v39 = vsel %vm38_vm1, %v4422_v11, 0.0  ;;  %v4425_v5 = vmul.f32 %v14826_v0, %v14826_v0 }
 0x2a7   :  { %v4426_v11 = vmul.f32 %v14824_v47, %v14824_v47 }
 0x2a8   :  { %v4323_v37 = vadd.f32 %v4322_v23, %v4321_v29  ;;  %v4519_v32 = vadd.f32 %v4518_v51, %v4517_v8  ;;  %v4328_v23 = vsel %vm38_vm1, %v14771_v30, 0.0  ;;  %v4330_v51 = vsel %vm38_vm1, %v14826_v0, 0.0  ;;  %v3668_v0 = vld [vmem:[%s20168_s3] sm:$0x1] }
 0x2a9   :  { %v4528_v25 = vsel %vm38_vm1, %v4425_v5, 0.0 }
 0x2aa   :  { %v4325_v13 = vadd.f32 %v4324_v2, %v4323_v37  ;;  %v4521_v40 = vadd.f32 %v4520_v26, %v4519_v32  ;;  %v4526_v37 = vsel %vm38_vm1, %v4424_v33, 0.0  ;;  %v4427_v32 = vmul.f32 %v14872_v1, %v14872_v1 }
 0x2ab   :  { %v4428_v33 = vmul.f32 %v14868_v3, %v14868_v3 }
 0x2ac   :  { %v4327_v28 = vadd.f32 %v4326_v43, %v4325_v13  ;;  %v4523_v29 = vadd.f32 %v4522_v39, %v4521_v40  ;;  %v4332_v43 = vsel %vm38_vm1, %v14824_v47, 0.0  ;;  %v4334_v40 = vsel %vm38_vm1, %v14872_v1, 0.0 }
 0x2ad   :  { %v4532_v5 = vsel %vm38_vm1, %v4427_v32, 0.0  ;;  %v4430_v32 = vmul.f32 %v14918_v44, %v14918_v44 }
 0x2ae   :  { %v4329_v8 = vadd.f32 %v4328_v23, %v4327_v28  ;;  %v4525_v26 = vadd.f32 %v4524_v36, %v4523_v29  ;;  %v4530_v36 = vsel %vm38_vm1, %v4426_v11, 0.0  ;;  %v4429_v29 = vmul.f32 %v14924_v58, %v14924_v58 }
 0x2af   :  { %v4534_v11 = vsel %vm38_vm1, %v4428_v33, 0.0  ;;  %v4538_v33 = vsel %vm38_vm1, %v4430_v32, 0.0 }
 0x2b0   :  { %v4331_v2 = vadd.f32 %v4330_v51, %v4329_v8  ;;  %v4527_v13 = vadd.f32 %v4526_v37, %v4525_v26  ;;  %v4336_v51 = vsel %vm38_vm1, %v14868_v3, 0.0  ;;  %v4338_v37 = vsel %vm38_vm1, %v14924_v58, 0.0 }
 0x2b2   :  { %v4333_v39 = vadd.f32 %v4332_v43, %v4331_v2  ;;  %v4529_v28 = vadd.f32 %v4528_v25, %v4527_v13 }
 0x2b3   :  { %v14966_v26 = vpop.f32.mrb[46].mxu0 }
 0x2b4   :  { %v4335_v23 = vadd.f32 %v4334_v40, %v4333_v39  ;;  %v4531_v8 = vadd.f32 %v4530_v36, %v4529_v28  ;;  %20521 = vst [vmem:[#allocation72_spill] sm:$0xff] %v14966_v26  ;;  %v14968_v25 = vpop.f32.mrb[47].mxu0  ;;  %v4536_v40 = vsel %vm38_vm1, %v4429_v29, 0.0  ;;  %v4340_v28 = vsel %vm38_vm1, %v14918_v44, 0.0 }
 0x2b5   :  { %20522 = vst [vmem:[#allocation75_spill] sm:$0xff] %v14968_v25  ;;  %v4431_v39 = vmul.f32 %v14968_v25, %v14968_v25 }
 0x2b6   :  { %v4337_v2 = vadd.f32 %v4336_v51, %v4335_v23  ;;  %v4533_v43 = vadd.f32 %v4532_v5, %v4531_v8  ;;  %v4342_v23 = vsel %vm38_vm1, %v14968_v25, 0.0  ;;  %v4432_v5 = vmul.f32 %v14966_v26, %v14966_v26 }
 0x2b7   :  { %v4540_v29 = vsel %vm38_vm1, %v4431_v39, 0.0 }
 0x2b8   :  { %v4339_v13 = vadd.f32 %v4338_v37, %v4337_v2  ;;  %v4535_v36 = vadd.f32 %v4534_v11, %v4533_v43  ;;  %v4344_v37 = vsel %vm38_vm1, %v14966_v26, 0.0  ;;  %v4542_v11 = vsel %vm38_vm1, %v4432_v5, 0.0 }
 0x2ba   :  { %v4341_v51 = vadd.f32 %v4340_v28, %v4339_v13  ;;  %v4537_v58 = vadd.f32 %v4536_v40, %v4535_v36 }
 0x2bc   :  { %v4343_v8 = vadd.f32 %v4342_v23, %v4341_v51  ;;  %v4539_v2 = vadd.f32 %v4538_v33, %v4537_v58 }
 0x2be   :  { %v4345_v3 = vadd.f32 %v4344_v37, %v4343_v8  ;;  %v4541_v44 = vadd.f32 %v4540_v29, %v4539_v2 }
 0x2c0   :  { %v4543_v43 = vadd.f32 %v4542_v11, %v4541_v44 }
 0x2c5   :  { %v14987_v25 = vpop.f32.mrb[48].mxu0 }
 0x2c6   :  { %20523 = vst [vmem:[#allocation74_spill] sm:$0xff] %v14987_v25  ;;  %v14989_v13 = vpop.f32.mrb[49].mxu0  ;;  %v4434_v32 = vmul.f32 %v14987_v25, %v14987_v25  ;;  %v4348_v58 = vsel %vm38_vm1, %v14987_v25, 0.0 }
 0x2c7   :  { %20524 = vst [vmem:[#allocation77_spill] sm:$0xff] %v14989_v13  ;;  %v4346_v40 = vsel %vm38_vm1, %v14989_v13, 0.0  ;;  %v4433_v39 = vmul.f32 %v14989_v13, %v14989_v13 }
 0x2c8   :  { %v4347_v28 = vadd.f32 %v4346_v40, %v4345_v3  ;;  %v4546_v51 = vsel %vm38_vm1, %v4434_v32, 0.0 }
 0x2c9   :  { %v4544_v36 = vsel %vm38_vm1, %v4433_v39, 0.0 }
 0x2ca   :  { %v4545_v44 = vadd.f32 %v4544_v36, %v4543_v43  ;;  %v4349_v23 = vadd.f32 %v4348_v58, %v4347_v28 }
 0x2cc   :  { %v4547_v33 = vadd.f32 %v4546_v51, %v4545_v44 }
 0x2d6   :  { %v15001_v5 = vpop.f32.mrb[50].mxu0 }
 0x2d7   :  { %20525 = vst [vmem:[#allocation76_spill] sm:$0xff] %v15001_v5  ;;  %v15003_v8 = vpop.f32.mrb[51].mxu0  ;;  %v4436_v29 = vmul.f32 %v15001_v5, %v15001_v5  ;;  %v4352_v11 = vsel %vm38_vm1, %v15001_v5, 0.0 }
 0x2d8   :  { %20526 = vst [vmem:[#allocation79_spill] sm:$0xff] %v15003_v8  ;;  %v4350_v3 = vsel %vm38_vm1, %v15003_v8, 0.0  ;;  %v4435_v37 = vmul.f32 %v15003_v8, %v15003_v8 }
 0x2d9   :  { %v4351_v2 = vadd.f32 %v4350_v3, %v4349_v23  ;;  %v4550_v39 = vsel %vm38_vm1, %v4436_v29, 0.0 }
 0x2da   :  { %v4548_v43 = vsel %vm38_vm1, %v4435_v37, 0.0 }
 0x2db   :  { %v4549_v32 = vadd.f32 %v4548_v43, %v4547_v33  ;;  %v4353_v40 = vadd.f32 %v4352_v11, %v4351_v2 }
 0x2dd   :  { %v4551_v28 = vadd.f32 %v4550_v39, %v4549_v32 }
 0x2ea   :  { %v15015_v58 = vpop.f32.mrb[52].mxu0 }
 0x2eb   :  { %20527 = vst [vmem:[#allocation78_spill] sm:$0xff] %v15015_v58  ;;  %v15017_v36 = vpop.f32.mrb[53].mxu0  ;;  %v4438_v44 = vmul.f32 %v15015_v58, %v15015_v58  ;;  %v4356_v33 = vsel %vm38_vm1, %v15015_v58, 0.0 }
 0x2ec   :  { %20528 = vst [vmem:[#allocation80_spill] sm:$0xff] %v15017_v36  ;;  %v4354_v23 = vsel %vm38_vm1, %v15017_v36, 0.0  ;;  %v4437_v51 = vmul.f32 %v15017_v36, %v15017_v36 }
 0x2ed   :  { %v4355_v3 = vadd.f32 %v4354_v23, %v4353_v40  ;;  %v4554_v11 = vsel %vm38_vm1, %v4438_v44, 0.0 }
 0x2ee   :  { %v4552_v29 = vsel %vm38_vm1, %v4437_v51, 0.0 }
 0x2ef   :  { %v4553_v37 = vadd.f32 %v4552_v29, %v4551_v28  ;;  %v4357_v2 = vadd.f32 %v4356_v33, %v4355_v3 }
 0x2f1   :  { %v4555_v43 = vadd.f32 %v4554_v11, %v4553_v37 }
 0x2fa   :  { %v15029_v32 = vpop.f32.mrb[54].mxu0 }
 0x2fb   :  { %20529 = vst [vmem:[#allocation81_spill] sm:$0xff] %v15029_v32  ;;  %v15031_v39 = vpop.f32.mrb[55].mxu0  ;;  %v4440_v5 = vmul.f32 %v15029_v32, %v15029_v32  ;;  %v4360_v28 = vsel %vm38_vm1, %v15029_v32, 0.0 }
 0x2fc   :  { %20530 = vst [vmem:[#allocation83_spill] sm:$0xff] %v15031_v39  ;;  %v4358_v40 = vsel %vm38_vm1, %v15031_v39, 0.0  ;;  %v4439_v23 = vmul.f32 %v15031_v39, %v15031_v39 }
 0x2fd   :  { %v4359_v58 = vadd.f32 %v4358_v40, %v4357_v2  ;;  %v4558_v33 = vsel %vm38_vm1, %v4440_v5, 0.0 }
 0x2fe   :  { %v4556_v44 = vsel %vm38_vm1, %v4439_v23, 0.0 }
 0x2ff   :  { %v4557_v51 = vadd.f32 %v4556_v44, %v4555_v43  ;;  %v4361_v3 = vadd.f32 %v4360_v28, %v4359_v58 }
 0x301   :  { %v4559_v29 = vadd.f32 %v4558_v33, %v4557_v51  ;;  %v8268_v51 = vld [vmem:[%s20166_s6] sm:$0xf] }
 0x302   :  { %11078 = vmatprep.subr.msk.mxu1 %vm3862_vm0, %v8268_v51 }
 0x303   :  { %11079 = vmatpush3.msk.msra.mxu1 %vm3862_vm0, %v8268_v51 }
 0x30c   :  { %v15043_v37 = vpop.f32.mrb[0].mxu1 }
 0x30d   :  { %20531 = vst [vmem:[#allocation82_spill] sm:$0xff] %v15043_v37  ;;  %v15045_v11 = vpop.f32.mrb[1].mxu1  ;;  %v4442_v36 = vmul.f32 %v15043_v37, %v15043_v37  ;;  %v4364_v58 = vsel %vm38_vm1, %v15043_v37, 0.0 }
 0x30e   :  { %20532 = vst [vmem:[#allocation90_spill] sm:$0xff] %v15045_v11  ;;  %v4362_v2 = vsel %vm38_vm1, %v15045_v11, 0.0  ;;  %v4441_v40 = vmul.f32 %v15045_v11, %v15045_v11 }
 0x30f   :  { %v4363_v32 = vadd.f32 %v4362_v2, %v4361_v3  ;;  %v4562_v28 = vsel %vm38_vm1, %v4442_v36, 0.0 }
 0x310   :  { %v4560_v5 = vsel %vm38_vm1, %v4441_v40, 0.0 }
 0x311   :  { %v4561_v43 = vadd.f32 %v4560_v5, %v4559_v29  ;;  %v4365_v23 = vadd.f32 %v4364_v58, %v4363_v32 }
 0x313   :  { %v4563_v44 = vadd.f32 %v4562_v28, %v4561_v43 }
 0x31e   :  { %v15060_v33 = vpop.f32.mrb[2].mxu1 }
 0x31f   :  { %20533 = vst [vmem:[#allocation91_spill] sm:$0xff] %v15060_v33  ;;  %v15063_v11 = vpop.f32.mrb[3].mxu1  ;;  %v4444_v3 = vmul.f32 %v15060_v33, %v15060_v33  ;;  %v4368_v2 = vsel %vm38_vm1, %v15060_v33, 0.0 }
 0x320   :  { %20534 = vst [vmem:[#allocation92_spill] sm:$0xff] %v15063_v11  ;;  %v4366_v32 = vsel %vm38_vm1, %v15063_v11, 0.0  ;;  %v4443_v36 = vmul.f32 %v15063_v11, %v15063_v11 }
 0x321   :  { %v4367_v29 = vadd.f32 %v4366_v32, %v4365_v23  ;;  %v4566_v43 = vsel %vm38_vm1, %v4444_v3, 0.0 }
 0x322   :  { %v4564_v40 = vsel %vm38_vm1, %v4443_v36, 0.0 }
 0x323   :  { %v4565_v58 = vadd.f32 %v4564_v40, %v4563_v44  ;;  %v4369_v5 = vadd.f32 %v4368_v2, %v4367_v29 }
 0x325   :  { %v4567_v28 = vadd.f32 %v4566_v43, %v4565_v58 }
 0x330   :  { %v15076_v51 = vpop.f32.mrb[4].mxu1 }
 0x331   :  { %20535 = vst [vmem:[#allocation93_spill] sm:$0xff] %v15076_v51  ;;  %v15078_v37 = vpop.f32.mrb[5].mxu1  ;;  %v4446_v39 = vmul.f32 %v15076_v51, %v15076_v51  ;;  %v4372_v44 = vsel %vm38_vm1, %v15076_v51, 0.0 }
 0x332   :  { %20536 = vst [vmem:[#allocation94_spill] sm:$0xff] %v15078_v37  ;;  %v4370_v23 = vsel %vm38_vm1, %v15078_v37, 0.0  ;;  %v4445_v32 = vmul.f32 %v15078_v37, %v15078_v37 }
 0x333   :  { %v4371_v33 = vadd.f32 %v4370_v23, %v4369_v5  ;;  %v4570_v2 = vsel %vm38_vm1, %v4446_v39, 0.0 }
 0x334   :  { %v4568_v3 = vsel %vm38_vm1, %v4445_v32, 0.0 }
 0x335   :  { %v4569_v36 = vadd.f32 %v4568_v3, %v4567_v28  ;;  %v4373_v29 = vadd.f32 %v4372_v44, %v4371_v33 }
 0x337   :  { %v4571_v40 = vadd.f32 %v4570_v2, %v4569_v36 }
 0x341   :  { %v15090_v58 = vpop.f32.mrb[6].mxu1 }
 0x342   :  { %20537 = vst [vmem:[#allocation95_spill] sm:$0xff] %v15090_v58  ;;  %v15092_v43 = vpop.f32.mrb[7].mxu1  ;;  %v4448_v11 = vmul.f32 %v15090_v58, %v15090_v58  ;;  %v4376_v33 = vsel %vm38_vm1, %v15090_v58, 0.0 }
 0x343   :  { %v4374_v5 = vsel %vm38_vm1, %v15092_v43, 0.0  ;;  %v4447_v23 = vmul.f32 %v15092_v43, %v15092_v43 }
 0x344   :  { %v4375_v51 = vadd.f32 %v4374_v5, %v4373_v29  ;;  %v4574_v44 = vsel %vm38_vm1, %v4448_v11, 0.0 }
 0x345   :  { %v4572_v39 = vsel %vm38_vm1, %v4447_v23, 0.0  ;;  %v4966_v23 = vld [vmem:[%s20167_s5] sm:$0xff] }
 0x346   :  { %v4377_v28 = vadd.f32 %v4376_v33, %v4375_v51  ;;  %v4573_v32 = vadd.f32 %v4572_v39, %v4571_v40  ;;  %v20538_v39 = vld [vmem:[#allocation7_spill] sm:$0xff] }
 0x347   :  { %v20549_v38 = vsub.s32 6, %v20538_v39 }
 0x348   :  { %v4378_v3 = vrot.slane %v4377_v28, 4  ;;  %v4575_v36 = vadd.f32 %v4574_v44, %v4573_v32  ;;  %v20539_v32 = vsub.s32 1, %v20538_v39 }
 0x349   :  { %v15145_v57 = vrot.slane %v4966_v23, %v20549_v38 }
 0x34a   :  { %v4379_v2 = vadd.f32 %v4378_v3, %v4377_v28  ;;  %v4576_v37 = vrot.slane %v4575_v36, 4  ;;  %v15109_v28 = vrot.slane %v4966_v23, %v20539_v32 }
 0x34b   :  { %20550 = vst [vmem:[#allocation102_spill] sm:$0xff] %v15145_v57  ;;  %v20572_v57 = vld [vmem:[#allocation74_spill] sm:$0xff] }
 0x34c   :  { %v4380_v8 = vrot.slane %v4379_v2, 2  ;;  %v4577_v25 = vadd.f32 %v4576_v37, %v4575_v36  ;;  %20540 = vst [vmem:[#allocation96_spill] sm:$0xff] %v15109_v28  ;;  %v4858_v37 = vld [vmem:[#allocation2] sm:$0xff]  ;;  %v4860_v36 = vld [vmem:[#allocation2 + $0x10] sm:$0x3] }
 0x34e   :  { %v4381_v13 = vadd.f32 %v4380_v8, %v4379_v2  ;;  %v4578_v26 = vrot.slane %v4577_v25, 2  ;;  %v4859_v8 = vld [vmem:[#allocation2 + $0x8] sm:$0xff] }
 0x350   :  { %v4382_v1 = vrot.slane %v4381_v13, 1  ;;  %v4579_v47 = vadd.f32 %v4578_v26, %v4577_v25  ;;  %v5105_v26 = vmul.f32 %v15109_v28, %v4859_v8  ;;  %v20541_v25 = vsub.s32 2, %v20538_v39 }
 0x352   :  { %v4383_v29 = vadd.f32 %v4382_v1, %v4381_v13  ;;  %v4580_v5 = vrot.slane %v4579_v47, 1  ;;  %v5104_v1 = vmul.f32 %v15109_v28, %v4858_v37  ;;  %v15115_v13 = vrot.slane %v4966_v23, %v20541_v25 }
 0x354   :  { %v4384_v51 = vmul.f32 0.001953125, %v4383_v29  ;;  %v4581_v40 = vadd.f32 %v4580_v5, %v4579_v47  ;;  %20542 = vst [vmem:[#allocation97_spill] sm:$0xff] %v15115_v13  ;;  %v20543_v47 = vld [vmem:[#allocation12_spill] sm:$0xff]  ;;  %v5106_v29 = vmul.f32 %v15109_v28, %v4860_v36  ;;  %v5296_v5 = vrot.slane %v5104_v1, 1 }
 0x355   :  { %v15118_v2 = vrot.slane %v4966_v23, %v20543_v47  ;;  %v15132_v1 = vmul.f32 %v15115_v13, %v4860_v36 }
 0x356   :  { %v4582_v33 = vmul.f32 0.001953125, %v4581_v40  ;;  %v4583_v11 = vmul.f32 %v4384_v51, %v4384_v51  ;;  %v5297_v40 = vrot.slane %v5105_v26, 1  ;;  %v5299_v58 = vrot.slane %v5106_v29, 1 }
 0x357   :  { %20544 = vst [vmem:[#allocation98_spill] sm:$0xff] %v15118_v2  ;;  %v4972_v32 = vmul.f32 %v15118_v2, %v4858_v37  ;;  %20546 = vst [vmem:[#allocation100_spill] sm:$0xff] %v15132_v1  ;;  %v4973_v28 = vmul.f32 %v15118_v2, %v4859_v8  ;;  %v20570_v2 = vld [vmem:[#allocation72_spill] sm:$0xff]  ;;  %v20578_v1 = vld [vmem:[#allocation78_spill] sm:$0xff] }
 0x358   :  { %v4584_v44 = vsub.f32 %v4582_v33, %v4583_v11  ;;  %v5588_v33 = vmul.f32 %v15115_v13, %v4858_v37  ;;  %v15123_v11 = vmul.f32 %v15115_v13, %v4859_v8  ;;  %v5300_v37 = vsel %vm693_vm4, %v5297_v40, %v5299_v58  ;;  %v3669_v8 = vld [vmem:[%s20169_s4] sm:$0x1]  ;;  %v20566_v58 = vld [vmem:[#allocation69_spill] sm:$0xff] }
 0x359   :  { %v20569_v13 = vld [vmem:[#allocation75_spill] sm:$0xff] }
 0x35a   :  { %v4585_v3 = vadd.f32 1e-05, %v4584_v44  ;;  %20545 = vst [vmem:[#allocation99_spill] sm:$0xff] %v15123_v11  ;;  %v5298_v44 = vsel %vm693_vm4, %v5296_v5, %v5297_v40  ;;  %v5780_v25 = vrot.slane %v5588_v33, 2  ;;  %v20547_v5 = vsub.s32 3, %v20538_v39 }
 0x35b   :  { %v5520_v30 = vadd.f32 %v5298_v44, %v4972_v32  ;;  %v20551_v40 = vsub.s32 4, %v20538_v39 }
 0x35c   :  { %11270 = vrsqrt.f32 %v4585_v3  ;;  %v20308_v3 = vrot.slane %v15123_v11, 2  ;;  %v15141_v33 = vrot.slane %v4966_v23, %v20547_v5  ;;  %v20576_v11 = vld [vmem:[#allocation80_spill] sm:$0xff] }
 0x35d   :  { %v15156_v32 = vrot.slane %v4966_v23, %v20551_v40 }
 0x35e   :  { %v5782_v29 = vsel %vm1178_vm5, %v5780_v25, %v20308_v3  ;;  %20548 = vst [vmem:[#allocation101_spill] sm:$0xff] %v15141_v33  ;;  %v20554_v25 = vsub.s32 5, %v20538_v39  ;;  %v20584_v33 = vld [vmem:[#allocation90_spill] sm:$0xff] }
 0x35f   :  { %20552 = vst [vmem:[#allocation103_spill] sm:$0xff] %v15156_v32  ;;  %v15158_v44 = vadd.f32 %v5782_v29, %v5520_v30  ;;  %v20582_v32 = vld [vmem:[#allocation81_spill] sm:$0xff] }
 0x360   :  { %v15162_v38 = vrot.slane %v4966_v23, %v20554_v25  ;;  %v20561_v25 = vld [vmem:[#allocation87_spill] sm:$0xff] }
 0x361   :  { %20553 = vst [vmem:[#allocation104_spill] sm:$0xff] %v15158_v44  ;;  %v20574_v44 = vld [vmem:[#allocation76_spill] sm:$0xff] }
 0x362   :  { %20555 = vst [vmem:[#allocation105_spill] sm:$0xff] %v15162_v38  ;;  %v20580_v38 = vld [vmem:[#allocation83_spill] sm:$0xff] }
 0x366   :  { %v11271_v26 = vpop.eup %11270 }
 0x367   :  { %v4587_v17 = vmul.f32 %v11271_v26, %v3668_v0  ;;  %v20556_v26 = vsub.s32 7, %v20538_v39  ;;  %v20568_v39 = vld [vmem:[#allocation70_spill] sm:$0xff] }
 0x369   :  { %v4588_v36 = vmul.f32 %v4587_v17, %v4384_v51  ;;  %v15151_v0 = vrot.slane %v4587_v17, %v20543_v47  ;;  %v15166_v5 = vrot.slane %v4966_v23, %v20556_v26  ;;  %v15168_v51 = vadd.f32 %v5300_v37, %v4973_v28  ;;  %v20562_v26 = vld [vmem:[#allocation86_spill] sm:$0xff] }
 0x36b   :  { %20557 = vst [vmem:[#allocation106_spill] sm:$0xff] %v15166_v5  ;;  %20558 = vst [vmem:[#allocation107_spill] sm:$0xff] %v15168_v51  ;;  %v4589_v17 = vsub.f32 %v3669_v8, %v4588_v36  ;;  %v4658_v3 = vmul.f32 %v15151_v0, %v15092_v43  ;;  %v15174_v40 = vmul.f32 %v15151_v0, %v14114_v53  ;;  %v20559_v8 = vld [vmem:[#allocation85_spill] sm:$0xff]  ;;  %v20560_v36 = vld [vmem:[#allocation84_spill] sm:$0xff] }
 0x36c   :  { %v15178_v30 = vmul.f32 %v14108_v15, %v15151_v0  ;;  %v15182_v29 = vmul.f32 %v15151_v0, %v14127_v54  ;;  %v15186_v23 = vmul.f32 %v14120_v31, %v15151_v0  ;;  %v15190_v28 = vmul.f32 %v15151_v0, %v14140_v34  ;;  %v20571_v51 = vld [vmem:[#allocation77_spill] sm:$0xff]  ;;  %v20573_v5 = vld [vmem:[#allocation79_spill] sm:$0xff] }
 0x36d   :  { %v15194_v53 = vmul.f32 %v14132_v4, %v15151_v0  ;;  %v15197_v43 = vrot.slane %v4589_v17, %v20543_v47  ;;  %v15201_v15 = vmul.f32 %v15151_v0, %v14154_v48  ;;  %v15205_v54 = vmul.f32 %v14149_v19, %v15151_v0  ;;  %v20563_v17 = vld [vmem:[#allocation89_spill] sm:$0xff] }
 0x36e   :  { %v15209_v31 = vmul.f32 %v15151_v0, %v14167_v35  ;;  %v15213_v34 = vmul.f32 %v14161_v63, %v15151_v0  ;;  %v15217_v4 = vmul.f32 %v15151_v0, %v14181_v22  ;;  %v15221_v48 = vmul.f32 %v14174_v50, %v15151_v0  ;;  %v20567_v47 = vld [vmem:[#allocation73_spill] sm:$0xff] }
 0x36f   :  { %v15225_v19 = vmul.f32 %v15151_v0, %v14200_v20  ;;  %v4728_v37 = vadd.f32 %v15197_v43, %v4658_v3  ;;  %v15230_v35 = vmul.f32 %v14191_v14, %v15151_v0  ;;  %v15234_v63 = vmul.f32 %v15151_v0, %v14215_v61 }
 0x370   :  { %v15238_v22 = vmul.f32 %v14207_v52, %v15151_v0  ;;  %v15242_v50 = vmul.f32 %v15151_v0, %v14246_v59  ;;  %v15246_v20 = vmul.f32 %v14238_v18, %v15151_v0  ;;  %v15250_v14 = vmul.f32 %v15151_v0, %v14266_v41 }
 0x371   :  { %v15254_v61 = vmul.f32 %v20502_v27, %v15151_v0  ;;  %v4792_v3 = vmax.f32 %v4728_v37, 0.0  ;;  %v15258_v52 = vmul.f32 %v15151_v0, %v20503_v24  ;;  %v15262_v59 = vmul.f32 %v20504_v12, %v15151_v0  ;;  %v20564_v37 = vld [vmem:[#allocation88_spill] sm:$0xff] }
 0x372   :  { %v15266_v18 = vmul.f32 %v15151_v0, %v20505_v55  ;;  %v15270_v41 = vmul.f32 %v20506_v45, %v15151_v0  ;;  %v15274_v27 = vmul.f32 %v15151_v0, %v20507_v42  ;;  %v15278_v24 = vmul.f32 %v20508_v62, %v15151_v0 }
 0x373   :  { %v15282_v12 = vmul.f32 %v15151_v0, %v20509_v6  ;;  %4856 = vst.msk [vmem:[#allocation2 + $0x331] sm:$0xff] %vm38_vm1, %v4792_v3  ;;  %v15287_v55 = vmul.f32 %v20511_v10, %v15151_v0  ;;  %v15291_v45 = vmul.f32 %v15151_v0, %v20513_v16  ;;  %v15295_v42 = vmul.f32 %v20514_v49, %v15151_v0 }
 0x374   :  { %v15299_v62 = vmul.f32 %v15151_v0, %v14476_v7  ;;  %v15303_v6 = vmul.f32 %v20515_v9, %v15151_v0  ;;  %v15307_v10 = vmul.f32 %v15151_v0, %v14558_v60  ;;  %v15311_v16 = vmul.f32 %v20516_v46, %v15151_v0 }
 0x375   :  { %v15315_v49 = vmul.f32 %v15151_v0, %v20517_v56  ;;  %v15319_v7 = vmul.f32 %v20518_v21, %v15151_v0  ;;  %v15323_v9 = vmul.f32 %v15151_v0, %v20559_v8  ;;  %v15327_v60 = vmul.f32 %v20560_v36, %v15151_v0  ;;  %v20565_v8 = vld [vmem:[#allocation71_spill] sm:$0xff] }
 0x376   :  { %v15331_v46 = vmul.f32 %v15151_v0, %v20561_v25  ;;  %v15335_v56 = vmul.f32 %v20562_v26, %v15151_v0  ;;  %v15339_v21 = vmul.f32 %v15151_v0, %v20563_v17  ;;  %v15343_v3 = vmul.f32 %v20564_v37, %v15151_v0 }
 0x377   :  { %v15347_v36 = vmul.f32 %v15151_v0, %v20565_v8  ;;  %v15351_v25 = vmul.f32 %v20566_v58, %v15151_v0  ;;  %v15355_v26 = vmul.f32 %v15151_v0, %v20567_v47  ;;  %v15359_v17 = vmul.f32 %v20568_v39, %v15151_v0 }
 0x378   :  { %v15363_v37 = vmul.f32 %v15151_v0, %v20569_v13  ;;  %v15367_v8 = vmul.f32 %v20570_v2, %v15151_v0  ;;  %v15371_v58 = vmul.f32 %v15151_v0, %v20571_v51  ;;  %v15375_v47 = vmul.f32 %v20572_v57, %v15151_v0 }
 0x379   :  { %v15379_v39 = vmul.f32 %v15151_v0, %v20573_v5  ;;  %v15383_v13 = vmul.f32 %v20574_v44, %v15151_v0  ;;  %v15387_v2 = vmul.f32 %v15151_v0, %v20576_v11  ;;  %v15391_v51 = vmul.f32 %v20578_v1, %v15151_v0 }
 0x37a   :  { %v15395_v57 = vmul.f32 %v15151_v0, %v20580_v38  ;;  %v15399_v5 = vmul.f32 %v20582_v32, %v15151_v0  ;;  %v15403_v44 = vmul.f32 %v15151_v0, %v20584_v33 }
 0x37b   :  { %20575 = vst [vmem:[#allocation85_spill] sm:$0xff] %v15383_v13  ;;  %20577 = vst [vmem:[#allocation84_spill] sm:$0xff] %v15387_v2  ;;  %v20586_v13 = vld [vmem:[#allocation82_spill] sm:$0xff]  ;;  %v20587_v2 = vld [vmem:[#allocation92_spill] sm:$0xff] }
 0x37c   :  { %20579 = vst [vmem:[#allocation87_spill] sm:$0xff] %v15391_v51  ;;  %20581 = vst [vmem:[#allocation86_spill] sm:$0xff] %v15395_v57  ;;  %v15407_v11 = vmul.f32 %v20586_v13, %v15151_v0  ;;  %v15411_v1 = vmul.f32 %v15151_v0, %v20587_v2  ;;  %v20588_v51 = vld [vmem:[#allocation91_spill] sm:$0xff]  ;;  %v20589_v57 = vld [vmem:[#allocation94_spill] sm:$0xff]  ;;  %v15431_v2 = vadd.f32 %v15197_v43, %v15174_v40 }
 0x37d   :  { %20583 = vst [vmem:[#allocation89_spill] sm:$0xff] %v15399_v5  ;;  %20585 = vst [vmem:[#allocation88_spill] sm:$0xff] %v15403_v44  ;;  %v15415_v38 = vmul.f32 %v20588_v51, %v15151_v0  ;;  %v15419_v32 = vmul.f32 %v15151_v0, %v20589_v57  ;;  %v20590_v5 = vld [vmem:[#allocation93_spill] sm:$0xff]  ;;  %v20591_v44 = vld [vmem:[#allocation95_spill] sm:$0xff]  ;;  %v15435_v51 = vadd.f32 %v15197_v43, %v15178_v30 }
 0x37e   :  { %v15423_v33 = vmul.f32 %v20590_v5, %v15151_v0  ;;  %v15427_v13 = vmul.f32 %v20591_v44, %v15151_v0  ;;  %v15439_v57 = vadd.f32 %v15197_v43, %v15182_v29  ;;  %v15443_v5 = vadd.f32 %v15197_v43, %v15186_v23 }
 0x37f   :  { %v15447_v0 = vadd.f32 %v15197_v43, %v15190_v28  ;;  %v15451_v40 = vadd.f32 %v15197_v43, %v15194_v53  ;;  %v15455_v30 = vadd.f32 %v15197_v43, %v15201_v15  ;;  %v15459_v29 = vadd.f32 %v15197_v43, %v15205_v54 }
 0x380   :  { %v15463_v23 = vadd.f32 %v15197_v43, %v15209_v31  ;;  %v15467_v28 = vadd.f32 %v15197_v43, %v15213_v34  ;;  %v15471_v53 = vadd.f32 %v15197_v43, %v15217_v4  ;;  %v15475_v15 = vadd.f32 %v15197_v43, %v15221_v48 }
 0x381   :  { %v15479_v54 = vadd.f32 %v15197_v43, %v15225_v19  ;;  %v15483_v31 = vadd.f32 %v15197_v43, %v15230_v35  ;;  %v15487_v34 = vadd.f32 %v15197_v43, %v15234_v63  ;;  %v15491_v4 = vadd.f32 %v15197_v43, %v15238_v22 }
 0x382   :  { %v15495_v48 = vadd.f32 %v15197_v43, %v15242_v50  ;;  %v15499_v19 = vadd.f32 %v15197_v43, %v15246_v20  ;;  %v15503_v35 = vadd.f32 %v15197_v43, %v15250_v14  ;;  %v15507_v63 = vadd.f32 %v15197_v43, %v15254_v61  ;;  %v20597_v44 = vld [vmem:[#allocation85_spill] sm:$0xff] }
 0x383   :  { %v15511_v22 = vadd.f32 %v15197_v43, %v15258_v52  ;;  %v15515_v50 = vadd.f32 %v15197_v43, %v15262_v59  ;;  %v15519_v20 = vadd.f32 %v15197_v43, %v15266_v18  ;;  %v15523_v14 = vadd.f32 %v15197_v43, %v15270_v41 }
 0x384   :  { %v15527_v61 = vadd.f32 %v15197_v43, %v15274_v27  ;;  %v15531_v52 = vadd.f32 %v15197_v43, %v15278_v24  ;;  %v15535_v59 = vadd.f32 %v15197_v43, %v15282_v12  ;;  %v15539_v18 = vadd.f32 %v15197_v43, %v15287_v55 }
 0x385   :  { %v15543_v41 = vadd.f32 %v15197_v43, %v15291_v45  ;;  %v15547_v27 = vadd.f32 %v15197_v43, %v15295_v42  ;;  %v15551_v24 = vadd.f32 %v15197_v43, %v15299_v62  ;;  %v15555_v12 = vadd.f32 %v15197_v43, %v15303_v6 }
 0x386   :  { %v15559_v55 = vadd.f32 %v15197_v43, %v15307_v10  ;;  %v15563_v45 = vadd.f32 %v15197_v43, %v15311_v16  ;;  %v15567_v42 = vadd.f32 %v15197_v43, %v15315_v49  ;;  %v15571_v62 = vadd.f32 %v15197_v43, %v15319_v7 }
 0x387   :  { %v15575_v6 = vadd.f32 %v15197_v43, %v15323_v9  ;;  %v15579_v10 = vadd.f32 %v15197_v43, %v15327_v60  ;;  %v15583_v16 = vadd.f32 %v15197_v43, %v15331_v46  ;;  %v15587_v49 = vadd.f32 %v15197_v43, %v15335_v56 }
 0x388   :  { %v15591_v7 = vadd.f32 %v15197_v43, %v15339_v21  ;;  %v15595_v9 = vadd.f32 %v15197_v43, %v15343_v3  ;;  %v15599_v60 = vadd.f32 %v15197_v43, %v15347_v36  ;;  %v15603_v46 = vadd.f32 %v15197_v43, %v15351_v25 }
 0x389   :  { %v15607_v56 = vadd.f32 %v15197_v43, %v15355_v26  ;;  %v15611_v21 = vadd.f32 %v15197_v43, %v15359_v17  ;;  %v15615_v3 = vadd.f32 %v15197_v43, %v15363_v37  ;;  %v15619_v36 = vadd.f32 %v15197_v43, %v15367_v8 }
 0x38a   :  { %v15623_v25 = vadd.f32 %v15197_v43, %v15371_v58  ;;  %v15627_v26 = vadd.f32 %v15197_v43, %v15375_v47  ;;  %v15631_v17 = vadd.f32 %v15197_v43, %v15379_v39  ;;  %v15635_v37 = vadd.f32 %v15197_v43, %v20597_v44 }
 0x38b   :  { %20592 = vst [vmem:[#allocation71_spill] sm:$0xff] %v15615_v3  ;;  %20593 = vst [vmem:[#allocation69_spill] sm:$0xff] %v15619_v36  ;;  %v20598_v3 = vld [vmem:[#allocation84_spill] sm:$0xff]  ;;  %v20599_v36 = vld [vmem:[#allocation87_spill] sm:$0xff] }
 0x38c   :  { %20594 = vst [vmem:[#allocation73_spill] sm:$0xff] %v15623_v25  ;;  %20595 = vst [vmem:[#allocation70_spill] sm:$0xff] %v15627_v26  ;;  %v15639_v8 = vadd.f32 %v15197_v43, %v20598_v3  ;;  %v15643_v58 = vadd.f32 %v15197_v43, %v20599_v36  ;;  %v20600_v25 = vld [vmem:[#allocation86_spill] sm:$0xff]  ;;  %v20601_v26 = vld [vmem:[#allocation89_spill] sm:$0xff]  ;;  %v15659_v3 = vadd.f32 %v15197_v43, %v15407_v11 }
 0x38d   :  { %20596 = vst [vmem:[#allocation75_spill] sm:$0xff] %v15631_v17  ;;  %v15647_v47 = vadd.f32 %v15197_v43, %v20600_v25  ;;  %v15651_v39 = vadd.f32 %v15197_v43, %v20601_v26  ;;  %v20602_v17 = vld [vmem:[#allocation88_spill] sm:$0xff]  ;;  %v15663_v36 = vadd.f32 %v15197_v43, %v15411_v1  ;;  %v15667_v25 = vadd.f32 %v15197_v43, %v15415_v38 }
 0x38e   :  { %v15655_v44 = vadd.f32 %v15197_v43, %v20602_v17  ;;  %20603 = vst [vmem:[#allocation72_spill] sm:$0xff] %v15659_v3  ;;  %v15671_v26 = vadd.f32 %v15197_v43, %v15419_v32  ;;  %v15675_v17 = vadd.f32 %v15197_v43, %v15423_v33  ;;  %v15679_v11 = vadd.f32 %v15197_v43, %v15427_v13 }
 0x38f   :  { %20604 = vst [vmem:[#allocation77_spill] sm:$0xff] %v15663_v36  ;;  %20605 = vst [vmem:[#allocation74_spill] sm:$0xff] %v15667_v25  ;;  %v4730_v3 = vmax.f32 %v15431_v2, 0.0  ;;  %v4731_v1 = vmax.f32 %v15435_v51, 0.0  ;;  %v4732_v36 = vmax.f32 %v15439_v57, 0.0  ;;  %v4733_v38 = vmax.f32 %v15443_v5, 0.0 }
 0x390   :  { %20606 = vst [vmem:[#allocation79_spill] sm:$0xff] %v15671_v26  ;;  %20607 = vst [vmem:[#allocation76_spill] sm:$0xff] %v15675_v17  ;;  %v4734_v25 = vmax.f32 %v15447_v0, 0.0  ;;  %v4735_v32 = vmax.f32 %v15451_v40, 0.0  ;;  %v4736_v26 = vmax.f32 %v15455_v30, 0.0  ;;  %v4737_v33 = vmax.f32 %v15459_v29, 0.0 }
 0x391   :  { %v4738_v17 = vmax.f32 %v15463_v23, 0.0  ;;  %4794 = vst.msk [vmem:[#allocation2 + $0x19] sm:$0xff] %vm38_vm1, %v4730_v3  ;;  %v4739_v43 = vmax.f32 %v15467_v28, 0.0  ;;  %v4740_v13 = vmax.f32 %v15471_v53, 0.0  ;;  %v4741_v2 = vmax.f32 %v15475_v15, 0.0  ;;  %4795 = vst.msk [vmem:[#allocation2 + $0x21] sm:$0xff] %vm38_vm1, %v4731_v1 }
 0x392   :  { %v4742_v51 = vmax.f32 %v15479_v54, 0.0  ;;  %4796 = vst.msk [vmem:[#allocation2 + $0x31] sm:$0xff] %vm38_vm1, %v4732_v36  ;;  %4797 = vst.msk [vmem:[#allocation2 + $0x39] sm:$0xff] %vm38_vm1, %v4733_v38  ;;  %v4743_v57 = vmax.f32 %v15483_v31, 0.0  ;;  %v4744_v5 = vmax.f32 %v15487_v34, 0.0  ;;  %v4745_v0 = vmax.f32 %v15491_v4, 0.0 }
 0x393   :  { %4798 = vst.msk [vmem:[#allocation2 + $0x49] sm:$0xff] %vm38_vm1, %v4734_v25  ;;  %v4746_v40 = vmax.f32 %v15495_v48, 0.0  ;;  %4799 = vst.msk [vmem:[#allocation2 + $0x51] sm:$0xff] %vm38_vm1, %v4735_v32  ;;  %v4747_v30 = vmax.f32 %v15499_v19, 0.0  ;;  %v4748_v29 = vmax.f32 %v15503_v35, 0.0  ;;  %v4749_v23 = vmax.f32 %v15507_v63, 0.0 }
 0x394   :  { %4800 = vst.msk [vmem:[#allocation2 + $0x61] sm:$0xff] %vm38_vm1, %v4736_v26  ;;  %4801 = vst.msk [vmem:[#allocation2 + $0x69] sm:$0xff] %vm38_vm1, %v4737_v33  ;;  %v4750_v28 = vmax.f32 %v15511_v22, 0.0  ;;  %v4751_v53 = vmax.f32 %v15515_v50, 0.0  ;;  %v4752_v15 = vmax.f32 %v15519_v20, 0.0  ;;  %v4753_v54 = vmax.f32 %v15523_v14, 0.0 }
 0x395   :  { %4802 = vst.msk [vmem:[#allocation2 + $0x79] sm:$0xff] %vm38_vm1, %v4738_v17  ;;  %4803 = vst.msk [vmem:[#allocation2 + $0x81] sm:$0xff] %vm38_vm1, %v4739_v43  ;;  %v4754_v31 = vmax.f32 %v15527_v61, 0.0  ;;  %v4755_v34 = vmax.f32 %v15531_v52, 0.0  ;;  %v4756_v4 = vmax.f32 %v15535_v59, 0.0  ;;  %v4757_v48 = vmax.f32 %v15539_v18, 0.0 }
 0x396   :  { %4804 = vst.msk [vmem:[#allocation2 + $0x91] sm:$0xff] %vm38_vm1, %v4740_v13  ;;  %4805 = vst.msk [vmem:[#allocation2 + $0x99] sm:$0xff] %vm38_vm1, %v4741_v2  ;;  %v4758_v19 = vmax.f32 %v15543_v41, 0.0  ;;  %v4759_v35 = vmax.f32 %v15547_v27, 0.0  ;;  %v4760_v63 = vmax.f32 %v15551_v24, 0.0  ;;  %v4761_v22 = vmax.f32 %v15555_v12, 0.0 }
 0x397   :  { %4806 = vst.msk [vmem:[#allocation2 + $0xa9] sm:$0xff] %vm38_vm1, %v4742_v51  ;;  %4807 = vst.msk [vmem:[#allocation2 + $0xb1] sm:$0xff] %vm38_vm1, %v4743_v57  ;;  %v4762_v50 = vmax.f32 %v15559_v55, 0.0  ;;  %v4763_v20 = vmax.f32 %v15563_v45, 0.0  ;;  %v4764_v14 = vmax.f32 %v15567_v42, 0.0  ;;  %v4765_v61 = vmax.f32 %v15571_v62, 0.0 }
 0x398   :  { %4808 = vst.msk [vmem:[#allocation2 + $0xc1] sm:$0xff] %vm38_vm1, %v4744_v5  ;;  %4809 = vst.msk [vmem:[#allocation2 + $0xc9] sm:$0xff] %vm38_vm1, %v4745_v0  ;;  %v4766_v52 = vmax.f32 %v15575_v6, 0.0  ;;  %v4767_v59 = vmax.f32 %v15579_v10, 0.0  ;;  %v4768_v18 = vmax.f32 %v15583_v16, 0.0  ;;  %v4769_v41 = vmax.f32 %v15587_v49, 0.0 }
 0x399   :  { %4810 = vst.msk [vmem:[#allocation2 + $0xd9] sm:$0xff] %vm38_vm1, %v4746_v40  ;;  %4811 = vst.msk [vmem:[#allocation2 + $0xe1] sm:$0xff] %vm38_vm1, %v4747_v30  ;;  %v4770_v27 = vmax.f32 %v15591_v7, 0.0  ;;  %v4771_v24 = vmax.f32 %v15595_v9, 0.0  ;;  %v4772_v12 = vmax.f32 %v15599_v60, 0.0  ;;  %v4773_v55 = vmax.f32 %v15603_v46, 0.0 }
 0x39a   :  { %4812 = vst.msk [vmem:[#allocation2 + $0xf1] sm:$0xff] %vm38_vm1, %v4748_v29  ;;  %4813 = vst.msk [vmem:[#allocation2 + $0xf9] sm:$0xff] %vm38_vm1, %v4749_v23  ;;  %v4774_v45 = vmax.f32 %v15607_v56, 0.0  ;;  %v4775_v42 = vmax.f32 %v15611_v21, 0.0  ;;  %v20608_v62 = vld [vmem:[#allocation71_spill] sm:$0xff]  ;;  %v20609_v10 = vld [vmem:[#allocation69_spill] sm:$0xff] }
 0x39b   :  { %4814 = vst.msk [vmem:[#allocation2 + $0x109] sm:$0xff] %vm38_vm1, %v4750_v28  ;;  %4815 = vst.msk [vmem:[#allocation2 + $0x111] sm:$0xff] %vm38_vm1, %v4751_v53  ;;  %v4776_v6 = vmax.f32 %v20608_v62, 0.0  ;;  %v4777_v16 = vmax.f32 %v20609_v10, 0.0  ;;  %v20610_v49 = vld [vmem:[#allocation73_spill] sm:$0xff]  ;;  %v20611_v9 = vld [vmem:[#allocation70_spill] sm:$0xff] }
 0x39c   :  { %4816 = vst.msk [vmem:[#allocation2 + $0x121] sm:$0xff] %vm38_vm1, %v4752_v15  ;;  %4817 = vst.msk [vmem:[#allocation2 + $0x129] sm:$0xff] %vm38_vm1, %v4753_v54  ;;  %v4778_v7 = vmax.f32 %v20610_v49, 0.0  ;;  %v4779_v60 = vmax.f32 %v20611_v9, 0.0  ;;  %v20612_v46 = vld [vmem:[#allocation75_spill] sm:$0xff]  ;;  %v4781_v21 = vmax.f32 %v15635_v37, 0.0 }
 0x39d   :  { %4818 = vst.msk [vmem:[#allocation2 + $0x139] sm:$0xff] %vm38_vm1, %v4754_v31  ;;  %4819 = vst.msk [vmem:[#allocation2 + $0x141] sm:$0xff] %vm38_vm1, %v4755_v34  ;;  %v4780_v56 = vmax.f32 %v20612_v46, 0.0  ;;  %v4782_v3 = vmax.f32 %v15639_v8, 0.0  ;;  %v15779_v36 = vld [vmem:[#allocation2 + $0x18] sm:$0xff]  ;;  %v15781_v25 = vld [vmem:[#allocation2 + $0x20] sm:$0xff] }
 0x39e   :  { %4820 = vst.msk [vmem:[#allocation2 + $0x151] sm:$0xff] %vm38_vm1, %v4756_v4  ;;  %4821 = vst.msk [vmem:[#allocation2 + $0x159] sm:$0xff] %vm38_vm1, %v4757_v48  ;;  %v4783_v26 = vmax.f32 %v15643_v58, 0.0  ;;  %v4784_v17 = vmax.f32 %v15647_v47, 0.0  ;;  %v4785_v37 = vmax.f32 %v15651_v39, 0.0  ;;  %v4786_v8 = vmax.f32 %v15655_v44, 0.0 }
 0x39f   :  { %4822 = vst.msk [vmem:[#allocation2 + $0x169] sm:$0xff] %vm38_vm1, %v4758_v19  ;;  %4823 = vst.msk [vmem:[#allocation2 + $0x171] sm:$0xff] %vm38_vm1, %v4759_v35  ;;  %v15791_v1 = vld [vmem:[#allocation2 + $0x28] sm:$0x3]  ;;  %v20614_v33 = vld [vmem:[#allocation77_spill] sm:$0xff]  ;;  %v4793_v51 = vmax.f32 %v15679_v11, 0.0 }
 0x3a0   :  { %4824 = vst.msk [vmem:[#allocation2 + $0x181] sm:$0xff] %vm38_vm1, %v4760_v63  ;;  %4825 = vst.msk [vmem:[#allocation2 + $0x189] sm:$0xff] %vm38_vm1, %v4761_v22  ;;  %v20613_v38 = vld [vmem:[#allocation72_spill] sm:$0xff]  ;;  %v4788_v58 = vmax.f32 %v20614_v33, 0.0  ;;  %v20615_v43 = vld [vmem:[#allocation74_spill] sm:$0xff] }
 0x3a1   :  { %4826 = vst.msk [vmem:[#allocation2 + $0x1c9] sm:$0xff] %vm38_vm1, %v4762_v50  ;;  %4827 = vst.msk [vmem:[#allocation2 + $0x1d1] sm:$0xff] %vm38_vm1, %v4763_v20  ;;  %v4787_v32 = vmax.f32 %v20613_v38, 0.0  ;;  %v4789_v47 = vmax.f32 %v20615_v43, 0.0  ;;  %v20616_v13 = vld [vmem:[#allocation79_spill] sm:$0xff]  ;;  %v20617_v44 = vld [vmem:[#allocation76_spill] sm:$0xff] }
 0x3a2   :  { %4828 = vst.msk [vmem:[#allocation2 + $0x1e1] sm:$0xff] %vm38_vm1, %v4764_v14  ;;  %4829 = vst.msk [vmem:[#allocation2 + $0x1e9] sm:$0xff] %vm38_vm1, %v4765_v61  ;;  %v4790_v39 = vmax.f32 %v20616_v13, 0.0  ;;  %v4791_v2 = vmax.f32 %v20617_v44, 0.0  ;;  %v20618_v57 = vld [vmem:[#allocation101_spill] sm:$0xff]  ;;  %v20619_v0 = vld [vmem:[#allocation103_spill] sm:$0xff] }
 0x3a3   :  { %4830 = vst.msk [vmem:[#allocation2 + $0x1f9] sm:$0xff] %vm38_vm1, %v4766_v52  ;;  %4831 = vst.msk [vmem:[#allocation2 + $0x201] sm:$0xff] %vm38_vm1, %v4767_v59  ;;  %v6072_v5 = vmul.f32 %v20618_v57, %v15779_v36  ;;  %v6204_v40 = vmul.f32 %v20619_v0, %v15779_v36  ;;  %v15815_v11 = vld [vmem:[#allocation2 + $0x30] sm:$0xff]  ;;  %v15817_v30 = vld [vmem:[#allocation2 + $0x38] sm:$0xff]  ;;  %v6205_v23 = vmul.f32 %v20619_v0, %v15781_v25 }
 0x3a4   :  { %4832 = vst.msk [vmem:[#allocation2 + $0x211] sm:$0xff] %vm38_vm1, %v4768_v18  ;;  %4833 = vst.msk [vmem:[#allocation2 + $0x219] sm:$0xff] %vm38_vm1, %v4769_v41  ;;  %v15819_v29 = vld [vmem:[#allocation2 + $0x40] sm:$0x3]  ;;  %v6206_v28 = vmul.f32 %v20619_v0, %v15791_v1  ;;  %v20620_v53 = vld [vmem:[#allocation105_spill] sm:$0xff] }
 0x3a5   :  { %4834 = vst.msk [vmem:[#allocation2 + $0x229] sm:$0xff] %vm38_vm1, %v4770_v27  ;;  %4835 = vst.msk [vmem:[#allocation2 + $0x231] sm:$0xff] %vm38_vm1, %v4771_v24  ;;  %v6688_v15 = vmul.f32 %v20620_v53, %v15779_v36  ;;  %v6689_v54 = vmul.f32 %v20620_v53, %v15781_v25  ;;  %v15834_v31 = vld [vmem:[%s20167_s5 + $0x8] ss:$0 sm:$0xff]  ;;  %v20623_v48 = vld [vmem:[#allocation99_spill] sm:$0xff]  ;;  %v6396_v50 = vrot.slane %v6204_v40, 1  ;;  %v6690_v20 = vmul.f32 %v20620_v53, %v15791_v1 }
 0x3a6   :  { %4836 = vst.msk [vmem:[#allocation2 + $0x241] sm:$0xff] %vm38_vm1, %v4772_v12  ;;  %4837 = vst.msk [vmem:[#allocation2 + $0x249] sm:$0xff] %vm38_vm1, %v4773_v55  ;;  %v20621_v34 = vld [vmem:[#allocation100_spill] sm:$0xff]  ;;  %v20624_v19 = vrot.slane %v20623_v48, 2  ;;  %v6397_v14 = vrot.slane %v6205_v23, 1  ;;  %v6399_v61 = vrot.slane %v6206_v28, 1  ;;  %v7788_v62 = vmul.f32 %v15834_v31, %v15815_v11 }
 0x3a7   :  { %4838 = vst.msk [vmem:[#allocation2 + $0x259] sm:$0xff] %vm38_vm1, %v4774_v45  ;;  %4839 = vst.msk [vmem:[#allocation2 + $0x261] sm:$0xff] %vm38_vm1, %v4775_v42  ;;  %v20622_v4 = vrot.slane %v20621_v34, 2  ;;  %v20625_v63 = vld [vmem:[#allocation104_spill] sm:$0xff]  ;;  %v6880_v52 = vrot.slane %v6688_v15, 2  ;;  %v6881_v59 = vrot.slane %v6689_v54, 2 }
 0x3a8   :  { %4840 = vst.msk [vmem:[#allocation2 + $0x271] sm:$0xff] %vm38_vm1, %v4776_v6  ;;  %4841 = vst.msk [vmem:[#allocation2 + $0x279] sm:$0xff] %vm38_vm1, %v4777_v16  ;;  %v6136_v22 = vadd.f32 %v6072_v5, %v20625_v63  ;;  %v6883_v18 = vrot.slane %v6690_v20, 2  ;;  %v20626_v41 = vld [vmem:[#allocation106_spill] sm:$0xff]  ;;  %v6398_v55 = vsel %vm693_vm4, %v6396_v50, %v6397_v14  ;;  %v20628_v6 = vld [vmem:[#allocation107_spill] sm:$0xff]  ;;  %v6400_v16 = vsel %vm693_vm4, %v6397_v14, %v6399_v61 }
 0x3a9   :  { %4842 = vst.msk [vmem:[#allocation2 + $0x289] sm:$0xff] %vm38_vm1, %v4778_v7  ;;  %4843 = vst.msk [vmem:[#allocation2 + $0x291] sm:$0xff] %vm38_vm1, %v4779_v60  ;;  %v5784_v35 = vsel %vm1178_vm5, %v20624_v19, %v20622_v4  ;;  %v7304_v27 = vmul.f32 %v20626_v41, %v15815_v11  ;;  %v7305_v24 = vmul.f32 %v20626_v41, %v15817_v30  ;;  %v20627_v45 = vld [vmem:[#allocation102_spill] sm:$0xff]  ;;  %v20631_v5 = vld [vmem:[#allocation97_spill] sm:$0xff] }
 0x3aa   :  { %4844 = vst.msk [vmem:[#allocation2 + $0x2a1] sm:$0xff] %vm38_vm1, %v4780_v56  ;;  %4845 = vst.msk [vmem:[#allocation2 + $0x2a9] sm:$0xff] %vm38_vm1, %v4781_v21  ;;  %v7306_v12 = vmul.f32 %v20626_v41, %v15819_v29  ;;  %v7172_v42 = vmul.f32 %v20627_v45, %v15815_v11  ;;  %v6005_v10 = vadd.f32 %v5784_v35, %v20628_v6  ;;  %v15890_v50 = vld [vmem:[#allocation2 + $0x50] sm:$0xff] }
 0x3ab   :  { %4846 = vst.msk [vmem:[#allocation2 + $0x2b9] sm:$0xff] %vm38_vm1, %v4782_v3  ;;  %4847 = vst.msk [vmem:[#allocation2 + $0x2c1] sm:$0xff] %vm38_vm1, %v4783_v26  ;;  %v6620_v49 = vadd.f32 %v6398_v55, %v6136_v22  ;;  %v7496_v7 = vrot.slane %v7304_v27, 1  ;;  %v7497_v9 = vrot.slane %v7305_v24, 1  ;;  %v6882_v60 = vsel %vm1178_vm5, %v6880_v52, %v6881_v59 }
 0x3ac   :  { %4848 = vst.msk [vmem:[#allocation2 + $0x2d1] sm:$0xff] %vm38_vm1, %v4784_v17  ;;  %4849 = vst.msk [vmem:[#allocation2 + $0x2d9] sm:$0xff] %vm38_vm1, %v4785_v37  ;;  %v7499_v46 = vrot.slane %v7306_v12, 1  ;;  %v7789_v56 = vmul.f32 %v15834_v31, %v15817_v30  ;;  %v7790_v21 = vmul.f32 %v15834_v31, %v15819_v29  ;;  %v6884_v3 = vsel %vm1178_vm5, %v6881_v59, %v6883_v18 }
 0x3ad   :  { %4850 = vst.msk [vmem:[#allocation2 + $0x2e9] sm:$0xff] %vm38_vm1, %v4786_v8  ;;  %4851 = vst.msk [vmem:[#allocation2 + $0x2f1] sm:$0xff] %vm38_vm1, %v4787_v32  ;;  %v7104_v26 = vadd.f32 %v6882_v60, %v6620_v49  ;;  %v7980_v17 = vrot.slane %v7788_v62, 2  ;;  %v6073_v37 = vmul.f32 %v20618_v57, %v15781_v25  ;;  %v7498_v8 = vsel %vm693_vm4, %v7496_v7, %v7497_v9 }
 0x3ae   :  { %4852 = vst.msk [vmem:[#allocation2 + $0x301] sm:$0xff] %vm38_vm1, %v4788_v58  ;;  %4853 = vst.msk [vmem:[#allocation2 + $0x309] sm:$0xff] %vm38_vm1, %v4789_v47  ;;  %v7500_v38 = vsel %vm693_vm4, %v7497_v9, %v7499_v46  ;;  %v7981_v32 = vrot.slane %v7789_v56, 2  ;;  %v7173_v33 = vmul.f32 %v20627_v45, %v15817_v30  ;;  %v20629_v47 = vld [vmem:[#allocation96_spill] sm:$0xff]  ;;  %v7983_v44 = vrot.slane %v7790_v21, 2 }
 0x3af   :  { %4854 = vst.msk [vmem:[#allocation2 + $0x319] sm:$0xff] %vm38_vm1, %v4790_v39  ;;  %4855 = vst.msk [vmem:[#allocation2 + $0x321] sm:$0xff] %vm38_vm1, %v4791_v2  ;;  %v7236_v58 = vadd.f32 %v7172_v42, %v7104_v26  ;;  %v6137_v43 = vadd.f32 %v6073_v37, %v6005_v10  ;;  %v5107_v13 = vmul.f32 %v20629_v47, %v15779_v36  ;;  %v20630_v2 = vld [vmem:[#allocation98_spill] sm:$0xff] }
 0x3b0   :  { %4857 = vst.msk [vmem:[#allocation2 + $0x339] sm:$0xff] %vm38_vm1, %v4793_v51  ;;  %v15873_v39 = vmul.f32 %v20629_v47, %v15781_v25  ;;  %v4974_v51 = vmul.f32 %v20630_v2, %v15779_v36  ;;  %v5591_v40 = vmul.f32 %v20631_v5, %v15779_v36  ;;  %v15881_v23 = vmul.f32 %v20631_v5, %v15781_v25  ;;  %v15888_v36 = vld [vmem:[#allocation2 + $0x48] sm:$0xff] }
 0x3b1   :  { %v7720_v28 = vadd.f32 %v7498_v8, %v7236_v58  ;;  %v6621_v15 = vadd.f32 %v6400_v16, %v6137_v43  ;;  %v5301_v54 = vrot.slane %v5107_v13, 1  ;;  %v7982_v4 = vsel %vm1178_vm5, %v7980_v17, %v7981_v32 }
 0x3b2   :  { %v5302_v34 = vrot.slane %v15873_v39, 1  ;;  %v5785_v48 = vrot.slane %v5591_v40, 2  ;;  %v5786_v19 = vrot.slane %v15881_v23, 2  ;;  %v6207_v35 = vmul.f32 %v20619_v0, %v15815_v11 }
 0x3b3   :  { %v8204_v63 = vadd.f32 %v7982_v4, %v7720_v28  ;;  %v7105_v22 = vadd.f32 %v6884_v3, %v6621_v15  ;;  %v6208_v14 = vmul.f32 %v20619_v0, %v15817_v30  ;;  %v7984_v61 = vsel %vm1178_vm5, %v7981_v32, %v7983_v44  ;;  %v15921_v32 = vld [vmem:[#allocation2 + $0x58] sm:$0x3] }
 0x3b4   :  { %v5303_v20 = vsel %vm693_vm4, %v5301_v54, %v5302_v34  ;;  %v5787_v59 = vsel %vm1178_vm5, %v5785_v48, %v5786_v19  ;;  %v6691_v18 = vmul.f32 %v20620_v53, %v15815_v11  ;;  %v6401_v24 = vrot.slane %v6207_v35, 1 }
 0x3b5   :  { %v5522_v52 = vadd.f32 %v5303_v20, %v4974_v51  ;;  %11080 = vmatprep.mubr.msk.f32.mxu1 %vm38_vm1, %v8204_v63  ;;  %v7237_v27 = vadd.f32 %v7173_v33, %v7105_v22  ;;  %v6402_v12 = vrot.slane %v6208_v14, 1  ;;  %v6692_v55 = vmul.f32 %v20620_v53, %v15817_v30 }
 0x3b6   :  { %v6074_v62 = vmul.f32 %v20618_v57, %v15815_v11  ;;  %v7307_v6 = vmul.f32 %v20626_v41, %v15888_v36  ;;  %v15908_v10 = vmul.f32 %v20626_v41, %v15890_v50  ;;  %v6885_v49 = vrot.slane %v6691_v18, 2 }
 0x3b7   :  { %v6006_v42 = vadd.f32 %v5787_v59, %v5522_v52  ;;  %v7721_v16 = vadd.f32 %v7500_v38, %v7237_v27  ;;  %v6886_v7 = vrot.slane %v6692_v55, 2  ;;  %v7791_v9 = vmul.f32 %v15834_v31, %v15888_v36 }
 0x3b8   :  { %v7501_v46 = vrot.slane %v7307_v6, 1  ;;  %v7502_v56 = vrot.slane %v15908_v10, 1  ;;  %v15915_v21 = vmul.f32 %v15834_v31, %v15890_v50  ;;  %v6403_v26 = vsel %vm693_vm4, %v6401_v24, %v6402_v12 }
 0x3b9   :  { %v6138_v60 = vadd.f32 %v6074_v62, %v6006_v42  ;;  %v8205_v3 = vadd.f32 %v7984_v61, %v7721_v16  ;;  %v7985_v17 = vrot.slane %v7791_v9, 2  ;;  %v7174_v8 = vmul.f32 %v20627_v45, %v15888_v36 }
 0x3ba   :  { %v7986_v38 = vrot.slane %v15915_v21, 2  ;;  %v5109_v33 = vmul.f32 %v20629_v47, %v15791_v1  ;;  %v6887_v58 = vsel %vm1178_vm5, %v6885_v49, %v6886_v7  ;;  %v5593_v43 = vmul.f32 %v20631_v5, %v15791_v1 }
 0x3bb   :  { %v6622_v37 = vadd.f32 %v6403_v26, %v6138_v60  ;;  %11081 = vmatmul.mubr.msk.f32.vlgmr.msra.gmra.mrb[8].mxu1 %vm38_vm1, %v8205_v3  ;;  %v6209_v13 = vmul.f32 %v20619_v0, %v15819_v29  ;;  %v6693_v39 = vmul.f32 %v20620_v53, %v15819_v29  ;;  %v7503_v51 = vsel %vm693_vm4, %v7501_v46, %v7502_v56  ;;  %v15965_v46 = vld [vmem:[#allocation2 + $0x60] sm:$0xff] }
 0x3bc   :  { %v4975_v40 = vmul.f32 %v20630_v2, %v15781_v25  ;;  %v5304_v23 = vrot.slane %v5109_v33, 1  ;;  %v7987_v28 = vsel %vm1178_vm5, %v7985_v17, %v7986_v38  ;;  %v5788_v15 = vrot.slane %v5593_v43, 2  ;;  %v15974_v17 = vld [vmem:[#allocation2 + $0x68] sm:$0xff] }
 0x3bd   :  { %v7106_v44 = vadd.f32 %v6887_v58, %v6622_v37  ;;  %v6075_v1 = vmul.f32 %v20618_v57, %v15817_v30  ;;  %v7309_v54 = vmul.f32 %v20626_v41, %v15921_v32  ;;  %v6404_v35 = vrot.slane %v6209_v13, 1 }
 0x3be   :  { %v5305_v48 = vsel %vm693_vm4, %v5302_v34, %v5304_v23  ;;  %v6888_v63 = vrot.slane %v6693_v39, 2  ;;  %v7175_v25 = vmul.f32 %v20627_v45, %v15890_v50  ;;  %v7793_v20 = vmul.f32 %v15834_v31, %v15921_v32 }
 0x3bf   :  { %v7238_v4 = vadd.f32 %v7174_v8, %v7106_v44  ;;  %v5523_v22 = vadd.f32 %v5305_v48, %v4975_v40  ;;  %v4976_v14 = vmul.f32 %v20630_v2, %v15815_v11  ;;  %v5789_v52 = vsel %vm1178_vm5, %v5786_v19, %v5788_v15 }
 0x3c0   :  { %v7504_v59 = vrot.slane %v7309_v54, 1  ;;  %v5110_v18 = vmul.f32 %v20629_v47, %v15815_v11  ;;  %v5111_v27 = vmul.f32 %v20629_v47, %v15817_v30  ;;  %v5594_v24 = vmul.f32 %v20631_v5, %v15815_v11 }
 0x3c1   :  { %v7722_v61 = vadd.f32 %v7503_v51, %v7238_v4  ;;  %v6007_v34 = vadd.f32 %v5789_v52, %v5523_v22  ;;  %v15959_v55 = vmul.f32 %v20631_v5, %v15817_v30  ;;  %v6405_v62 = vsel %vm693_vm4, %v6402_v12, %v6404_v35 }
 0x3c2   :  { %v6889_v19 = vsel %vm1178_vm5, %v6886_v7, %v6888_v63  ;;  %v5306_v6 = vrot.slane %v5110_v18, 1  ;;  %v5307_v16 = vrot.slane %v5111_v27, 1  ;;  %v5790_v49 = vrot.slane %v5594_v24, 2  ;;  %v16010_v18 = vld [vmem:[#allocation2 + $0x70] sm:$0x3] }
 0x3c3   :  { %v8206_v42 = vadd.f32 %v7987_v28, %v7722_v61  ;;  %v6139_v10 = vadd.f32 %v6075_v1, %v6007_v34  ;;  %v5791_v9 = vrot.slane %v15959_v55, 2  ;;  %v7988_v60 = vrot.slane %v7793_v20, 2 }
 0x3c4   :  { %v6210_v11 = vmul.f32 %v20619_v0, %v15888_v36  ;;  %v6211_v3 = vmul.f32 %v20619_v0, %v15890_v50  ;;  %v6694_v12 = vmul.f32 %v20620_v53, %v15888_v36  ;;  %v7505_v26 = vsel %vm693_vm4, %v7502_v56, %v7504_v59 }
 0x3c5   :  { %11083 = vmatprep.mubr.msk.f32.mxu1 %vm38_vm1, %v8206_v42  ;;  %v6623_v7 = vadd.f32 %v6405_v62, %v6139_v10  ;;  %v5308_v37 = vsel %vm693_vm4, %v5306_v6, %v5307_v16  ;;  %v15979_v8 = vmul.f32 %v20620_v53, %v15890_v50  ;;  %v5792_v58 = vsel %vm1178_vm5, %v5790_v49, %v5791_v9 }
 0x3c6   :  { %v5524_v33 = vadd.f32 %v5308_v37, %v4976_v14  ;;  %v6406_v43 = vrot.slane %v6210_v11, 1  ;;  %v6407_v13 = vrot.slane %v6211_v3, 1  ;;  %v6890_v44 = vrot.slane %v6694_v12, 2 }
 0x3c7   :  { %v7107_v39 = vadd.f32 %v6889_v19, %v6623_v7  ;;  %v6891_v51 = vrot.slane %v15979_v8, 2  ;;  %v7310_v56 = vmul.f32 %v20626_v41, %v15965_v46  ;;  %v6076_v23 = vmul.f32 %v20618_v57, %v15888_v36 }
 0x3c8   :  { %v6008_v40 = vadd.f32 %v5792_v58, %v5524_v33  ;;  %v15989_v28 = vmul.f32 %v20626_v41, %v15974_v17  ;;  %v7794_v15 = vmul.f32 %v15834_v31, %v15965_v46  ;;  %v7989_v54 = vsel %vm1178_vm5, %v7986_v38, %v7988_v60 }
 0x3c9   :  { %v7239_v1 = vadd.f32 %v7175_v25, %v7107_v39  ;;  %v7176_v4 = vmul.f32 %v20627_v45, %v15965_v46  ;;  %v16000_v48 = vmul.f32 %v15834_v31, %v15974_v17  ;;  %v6408_v63 = vsel %vm693_vm4, %v6406_v43, %v6407_v13 }
 0x3ca   :  { %v6140_v35 = vadd.f32 %v6076_v23, %v6008_v40  ;;  %v7506_v22 = vrot.slane %v7310_v56, 1  ;;  %v7507_v20 = vrot.slane %v15989_v28, 1  ;;  %v6892_v25 = vsel %vm1178_vm5, %v6890_v44, %v6891_v51 }
 0x3cb   :  { %v7723_v14 = vadd.f32 %v7505_v26, %v7239_v1  ;;  %v5112_v21 = vmul.f32 %v20629_v47, %v15819_v29  ;;  %v5596_v38 = vmul.f32 %v20631_v5, %v15819_v29  ;;  %v7990_v52 = vrot.slane %v7794_v15, 2 }
 0x3cc   :  { %v6624_v61 = vadd.f32 %v6408_v63, %v6140_v35  ;;  %v7991_v59 = vrot.slane %v16000_v48, 2  ;;  %v6212_v34 = vmul.f32 %v20619_v0, %v15921_v32  ;;  %v4977_v24 = vmul.f32 %v20630_v2, %v15817_v30 }
 0x3cd   :  { %v8207_v27 = vadd.f32 %v7989_v54, %v7723_v14  ;;  %v5309_v55 = vrot.slane %v5112_v21, 1  ;;  %v5793_v42 = vrot.slane %v5596_v38, 2  ;;  %v7508_v19 = vsel %vm693_vm4, %v7506_v22, %v7507_v20  ;;  %v16058_v21 = vld [vmem:[#allocation2 + $0x80] sm:$0xff] }
 0x3ce   :  { %v7108_v62 = vadd.f32 %v6892_v25, %v6624_v61  ;;  %v6409_v6 = vrot.slane %v6212_v34, 1  ;;  %v6696_v29 = vmul.f32 %v20620_v53, %v15921_v32  ;;  %v6077_v49 = vmul.f32 %v20618_v57, %v15890_v50 }
 0x3cf   :  { %11084 = vmatmul.mubr.msk.f32.gmra.mrb[10].mxu1 %vm38_vm1, %v8207_v27  ;;  %v5310_v10 = vsel %vm693_vm4, %v5307_v16, %v5309_v55  ;;  %v7312_v60 = vmul.f32 %v20626_v41, %v16010_v18  ;;  %v7796_v30 = vmul.f32 %v15834_v31, %v16010_v18  ;;  %v7992_v3 = vsel %vm1178_vm5, %v7990_v52, %v7991_v59 }
 0x3d0   :  { %v7240_v11 = vadd.f32 %v7176_v4, %v7108_v62  ;;  %v5525_v12 = vadd.f32 %v5310_v10, %v4977_v24  ;;  %v7177_v7 = vmul.f32 %v20627_v45, %v15974_v17  ;;  %v5794_v16 = vsel %vm1178_vm5, %v5791_v9, %v5793_v42 }
 0x3d1   :  { %v6410_v26 = vsel %vm693_vm4, %v6407_v13, %v6409_v6  ;;  %v6893_v37 = vrot.slane %v6696_v29, 2  ;;  %v5113_v8 = vmul.f32 %v20629_v47, %v15888_v36  ;;  %v7509_v43 = vrot.slane %v7312_v60, 1 }
 0x3d2   :  { %v7724_v33 = vadd.f32 %v7508_v19, %v7240_v11  ;;  %v6009_v58 = vadd.f32 %v5794_v16, %v5525_v12  ;;  %v16038_v39 = vmul.f32 %v20629_v47, %v15890_v50  ;;  %v7993_v44 = vrot.slane %v7796_v30, 2 }
 0x3d3   :  { %v4978_v56 = vmul.f32 %v20630_v2, %v15888_v36  ;;  %v5311_v40 = vrot.slane %v5113_v8, 1  ;;  %v5597_v9 = vmul.f32 %v20631_v5, %v15888_v36  ;;  %v5598_v15 = vmul.f32 %v20631_v5, %v15890_v50  ;;  %v16053_v36 = vld [vmem:[#allocation2 + $0x78] sm:$0xff] }
 0x3d4   :  { %v8208_v13 = vadd.f32 %v7992_v3, %v7724_v33  ;;  %v6141_v23 = vadd.f32 %v6077_v49, %v6009_v58  ;;  %v5312_v28 = vrot.slane %v16038_v39, 1  ;;  %v6894_v1 = vsel %vm1178_vm5, %v6891_v51, %v6893_v37  ;;  %v16085_v33 = vld [vmem:[#allocation2 + $0x88] sm:$0x3] }
 0x3d5   :  { %v5795_v54 = vrot.slane %v5597_v9, 2  ;;  %v6213_v4 = vmul.f32 %v20619_v0, %v15965_v46  ;;  %v6214_v35 = vmul.f32 %v20619_v0, %v15974_v17  ;;  %v5796_v14 = vrot.slane %v5598_v15, 2 }
 0x3d6   :  { %11086 = vmatprep.mubr.msk.f32.mxu1 %vm38_vm1, %v8208_v13  ;;  %v6625_v63 = vadd.f32 %v6410_v26, %v6141_v23  ;;  %v5313_v22 = vsel %vm693_vm4, %v5311_v40, %v5312_v28  ;;  %v6697_v25 = vmul.f32 %v20620_v53, %v15965_v46  ;;  %v6698_v52 = vmul.f32 %v20620_v53, %v15974_v17 }
 0x3d7   :  { %v5526_v51 = vadd.f32 %v5313_v22, %v4978_v56  ;;  %v6411_v38 = vrot.slane %v6213_v4, 1  ;;  %v6412_v61 = vrot.slane %v6214_v35, 1  ;;  %v7510_v27 = vsel %vm693_vm4, %v7507_v20, %v7509_v43 }
 0x3d8   :  { %v7109_v34 = vadd.f32 %v6894_v1, %v6625_v63  ;;  %v5797_v24 = vsel %vm1178_vm5, %v5795_v54, %v5796_v14  ;;  %v6895_v55 = vrot.slane %v6697_v25, 2  ;;  %v6078_v62 = vmul.f32 %v20618_v57, %v15965_v46 }
 0x3d9   :  { %v6010_v42 = vadd.f32 %v5797_v24, %v5526_v51  ;;  %v6896_v19 = vrot.slane %v6698_v52, 2  ;;  %v7313_v6 = vmul.f32 %v20626_v41, %v16053_v36  ;;  %v7314_v10 = vmul.f32 %v20626_v41, %v16058_v21 }
 0x3da   :  { %v7241_v29 = vadd.f32 %v7177_v7, %v7109_v34  ;;  %v7797_v49 = vmul.f32 %v15834_v31, %v16053_v36  ;;  %v16074_v20 = vmul.f32 %v15834_v31, %v16058_v21  ;;  %v7994_v60 = vsel %vm1178_vm5, %v7991_v59, %v7993_v44 }
 0x3db   :  { %v6142_v30 = vadd.f32 %v6078_v62, %v6010_v42  ;;  %v6413_v11 = vsel %vm693_vm4, %v6411_v38, %v6412_v61  ;;  %v7178_v3 = vmul.f32 %v20627_v45, %v16053_v36  ;;  %v6897_v7 = vsel %vm1178_vm5, %v6895_v55, %v6896_v19 }
 0x3dc   :  { %v7725_v12 = vadd.f32 %v7510_v27, %v7241_v29  ;;  %v7511_v16 = vrot.slane %v7313_v6, 1  ;;  %v4979_v26 = vmul.f32 %v20630_v2, %v15890_v50  ;;  %v7512_v8 = vrot.slane %v7314_v10, 1 }
 0x3dd   :  { %v6626_v37 = vadd.f32 %v6413_v11, %v6142_v30  ;;  %v5115_v48 = vmul.f32 %v20629_v47, %v15921_v32  ;;  %v5599_v59 = vmul.f32 %v20631_v5, %v15921_v32  ;;  %v7995_v43 = vrot.slane %v7797_v49, 2 }
 0x3de   :  { %v8209_v58 = vadd.f32 %v7994_v60, %v7725_v12  ;;  %v7996_v39 = vrot.slane %v16074_v20, 2  ;;  %v6215_v44 = vmul.f32 %v20619_v0, %v16010_v18  ;;  %v6699_v9 = vmul.f32 %v20620_v53, %v16010_v18  ;;  %v16126_v20 = vld [vmem:[#allocation2 + $0x90] sm:$0xff] }
 0x3df   :  { %v7110_v56 = vadd.f32 %v6897_v7, %v6626_v37  ;;  %v5314_v40 = vrot.slane %v5115_v48, 1  ;;  %v5798_v50 = vrot.slane %v5599_v59, 2  ;;  %v6079_v13 = vmul.f32 %v20618_v57, %v15974_v17  ;;  %v16134_v7 = vld [vmem:[#allocation2 + $0x98] sm:$0xff] }
 0x3e0   :  { %11087 = vmatmul.mubr.msk.f32.gmra.mrb[12].mxu1 %vm38_vm1, %v8209_v58  ;;  %v6414_v23 = vrot.slane %v6215_v44, 1  ;;  %v7315_v32 = vmul.f32 %v20626_v41, %v16085_v33  ;;  %v7799_v15 = vmul.f32 %v15834_v31, %v16085_v33  ;;  %v7513_v54 = vsel %vm693_vm4, %v7511_v16, %v7512_v8 }
 0x3e1   :  { %v7242_v1 = vadd.f32 %v7178_v3, %v7110_v56  ;;  %v5315_v4 = vsel %vm693_vm4, %v5312_v28, %v5314_v40  ;;  %v6898_v35 = vrot.slane %v6699_v9, 2  ;;  %v7997_v63 = vsel %vm1178_vm5, %v7995_v43, %v7996_v39 }
 0x3e2   :  { %v5527_v22 = vadd.f32 %v5315_v4, %v4979_v26  ;;  %v5799_v25 = vsel %vm1178_vm5, %v5796_v14, %v5798_v50  ;;  %v7179_v51 = vmul.f32 %v20627_v45, %v16058_v21  ;;  %v6415_v52 = vsel %vm693_vm4, %v6412_v61, %v6414_v23 }
 0x3e3   :  { %v7726_v38 = vadd.f32 %v7513_v54, %v7242_v1  ;;  %v7514_v34 = vrot.slane %v7315_v32, 1  ;;  %v5116_v27 = vmul.f32 %v20629_v47, %v15965_v46  ;;  %v6899_v55 = vsel %vm1178_vm5, %v6896_v19, %v6898_v35 }
 0x3e4   :  { %v6011_v24 = vadd.f32 %v5799_v25, %v5527_v22  ;;  %v7998_v28 = vrot.slane %v7799_v15, 2  ;;  %v5117_v42 = vmul.f32 %v20629_v47, %v15974_v17  ;;  %v5600_v14 = vmul.f32 %v20631_v5, %v15965_v46 }
 0x3e5   :  { %v8210_v62 = vadd.f32 %v7997_v63, %v7726_v38  ;;  %v5316_v6 = vrot.slane %v5116_v27, 1  ;;  %v16119_v29 = vmul.f32 %v20631_v5, %v15974_v17  ;;  %v4980_v10 = vmul.f32 %v20630_v2, %v15965_v46  ;;  %v16168_v27 = vld [vmem:[#allocation2 + $0xa0] sm:$0x3] }
 0x3e6   :  { %v6143_v61 = vadd.f32 %v6079_v13, %v6011_v24  ;;  %v5317_v49 = vrot.slane %v5117_v42, 1  ;;  %v6216_v19 = vmul.f32 %v20619_v0, %v16053_v36  ;;  %v5800_v60 = vrot.slane %v5600_v14, 2 }
 0x3e7   :  { %11089 = vmatprep.mubr.msk.f32.mxu1 %vm38_vm1, %v8210_v62  ;;  %v5801_v30 = vrot.slane %v16119_v29, 2  ;;  %v6217_v11 = vmul.f32 %v20619_v0, %v16058_v21  ;;  %v6700_v3 = vmul.f32 %v20620_v53, %v16053_v36  ;;  %v7515_v46 = vsel %vm693_vm4, %v7512_v8, %v7514_v34 }
 0x3e8   :  { %v6627_v12 = vadd.f32 %v6415_v52, %v6143_v61  ;;  %v5318_v16 = vsel %vm693_vm4, %v5316_v6, %v5317_v49  ;;  %v16139_v26 = vmul.f32 %v20620_v53, %v16058_v21  ;;  %v6416_v59 = vrot.slane %v6216_v19, 1 }
 0x3e9   :  { %v5528_v37 = vadd.f32 %v5318_v16, %v4980_v10  ;;  %v5802_v48 = vsel %vm1178_vm5, %v5800_v60, %v5801_v30  ;;  %v6417_v58 = vrot.slane %v6217_v11, 1  ;;  %v6900_v44 = vrot.slane %v6700_v3, 2 }
 0x3ea   :  { %v7111_v43 = vadd.f32 %v6899_v55, %v6627_v12  ;;  %v6901_v56 = vrot.slane %v16139_v26, 2  ;;  %v7316_v8 = vmul.f32 %v20626_v41, %v16126_v20  ;;  %v6080_v50 = vmul.f32 %v20618_v57, %v16053_v36 }
 0x3eb   :  { %v6012_v40 = vadd.f32 %v5802_v48, %v5528_v37  ;;  %v16149_v9 = vmul.f32 %v20626_v41, %v16134_v7  ;;  %v7800_v13 = vmul.f32 %v15834_v31, %v16126_v20  ;;  %v7999_v32 = vsel %vm1178_vm5, %v7996_v39, %v7998_v28 }
 0x3ec   :  { %v7243_v23 = vadd.f32 %v7179_v51, %v7111_v43  ;;  %v7180_v15 = vmul.f32 %v20627_v45, %v16126_v20  ;;  %v16158_v1 = vmul.f32 %v15834_v31, %v16134_v7  ;;  %v6418_v4 = vsel %vm693_vm4, %v6416_v59, %v6417_v58 }
 0x3ed   :  { %v6144_v54 = vadd.f32 %v6080_v50, %v6012_v40  ;;  %v7516_v35 = vrot.slane %v7316_v8, 1  ;;  %v7517_v63 = vrot.slane %v16149_v9, 1  ;;  %v6902_v25 = vsel %vm1178_vm5, %v6900_v44, %v6901_v56 }
 0x3ee   :  { %v7727_v22 = vadd.f32 %v7515_v46, %v7243_v23  ;;  %v5118_v51 = vmul.f32 %v20629_v47, %v16010_v18  ;;  %v5602_v39 = vmul.f32 %v20631_v5, %v16010_v18  ;;  %v8000_v52 = vrot.slane %v7800_v13, 2 }
 0x3ef   :  { %v6628_v38 = vadd.f32 %v6418_v4, %v6144_v54  ;;  %v8001_v34 = vrot.slane %v16158_v1, 2  ;;  %v6218_v24 = vmul.f32 %v20619_v0, %v16085_v33  ;;  %v4981_v28 = vmul.f32 %v20630_v2, %v15974_v17 }
 0x3f0   :  { %v8211_v55 = vadd.f32 %v7999_v32, %v7727_v22  ;;  %v5319_v42 = vrot.slane %v5118_v51, 1  ;;  %v5803_v62 = vrot.slane %v5602_v39, 2  ;;  %v7518_v14 = vsel %vm693_vm4, %v7516_v35, %v7517_v63  ;;  %v16216_v51 = vld [vmem:[#allocation2 + $0xb0] sm:$0xff] }
 0x3f1   :  { %v7112_v6 = vadd.f32 %v6902_v25, %v6628_v38  ;;  %v6419_v29 = vrot.slane %v6218_v24, 1  ;;  %v6702_v18 = vmul.f32 %v20620_v53, %v16085_v33  ;;  %v6081_v10 = vmul.f32 %v20618_v57, %v16058_v21 }
 0x3f2   :  { %11090 = vmatmul.mubr.msk.f32.gmra.mrb[14].mxu1 %vm38_vm1, %v8211_v55  ;;  %v5320_v61 = vsel %vm693_vm4, %v5317_v49, %v5319_v42  ;;  %v7318_v19 = vmul.f32 %v20626_v41, %v16168_v27  ;;  %v7802_v17 = vmul.f32 %v15834_v31, %v16168_v27  ;;  %v8002_v11 = vsel %vm1178_vm5, %v8000_v52, %v8001_v34 }
 0x3f3   :  { %v7244_v60 = vadd.f32 %v7180_v15, %v7112_v6  ;;  %v5529_v3 = vadd.f32 %v5320_v61, %v4981_v28  ;;  %v7181_v12 = vmul.f32 %v20627_v45, %v16134_v7  ;;  %v5804_v49 = vsel %vm1178_vm5, %v5801_v30, %v5803_v62 }
 0x3f4   :  { %v6420_v46 = vsel %vm693_vm4, %v6417_v58, %v6419_v29  ;;  %v6903_v16 = vrot.slane %v6702_v18, 2  ;;  %v5119_v26 = vmul.f32 %v20629_v47, %v16053_v36  ;;  %v7519_v59 = vrot.slane %v7318_v19, 1 }
 0x3f5   :  { %v7728_v37 = vadd.f32 %v7518_v14, %v7244_v60  ;;  %v6013_v48 = vadd.f32 %v5804_v49, %v5529_v3  ;;  %v16196_v43 = vmul.f32 %v20629_v47, %v16058_v21  ;;  %v8003_v44 = vrot.slane %v7802_v17, 2 }
 0x3f6   :  { %v4982_v8 = vmul.f32 %v20630_v2, %v16053_v36  ;;  %v5321_v40 = vrot.slane %v5119_v26, 1  ;;  %v5603_v30 = vmul.f32 %v20631_v5, %v16053_v36  ;;  %v5604_v13 = vmul.f32 %v20631_v5, %v16058_v21  ;;  %v16211_v36 = vld [vmem:[#allocation2 + $0xa8] sm:$0xff] }
 0x3f7   :  { %v8212_v58 = vadd.f32 %v8002_v11, %v7728_v37  ;;  %v6145_v50 = vadd.f32 %v6081_v10, %v6013_v48  ;;  %v5322_v9 = vrot.slane %v16196_v43, 1  ;;  %v6904_v23 = vsel %vm1178_vm5, %v6901_v56, %v6903_v16  ;;  %v16243_v37 = vld [vmem:[#allocation2 + $0xb8] sm:$0x3] }
 0x3f8   :  { %v5805_v32 = vrot.slane %v5603_v30, 2  ;;  %v6219_v15 = vmul.f32 %v20619_v0, %v16126_v20  ;;  %v6220_v54 = vmul.f32 %v20619_v0, %v16134_v7  ;;  %v5806_v22 = vrot.slane %v5604_v13, 2 }
 0x3f9   :  { %11092 = vmatprep.mubr.msk.f32.mxu1 %vm38_vm1, %v8212_v58  ;;  %v6629_v4 = vadd.f32 %v6420_v46, %v6145_v50  ;;  %v5323_v35 = vsel %vm693_vm4, %v5321_v40, %v5322_v9  ;;  %v6703_v25 = vmul.f32 %v20620_v53, %v16126_v20  ;;  %v6704_v52 = vmul.f32 %v20620_v53, %v16134_v7 }
 0x3fa   :  { %v5530_v56 = vadd.f32 %v5323_v35, %v4982_v8  ;;  %v6421_v39 = vrot.slane %v6219_v15, 1  ;;  %v6422_v38 = vrot.slane %v6220_v54, 1  ;;  %v7520_v55 = vsel %vm693_vm4, %v7517_v63, %v7519_v59 }
 0x3fb   :  { %v7113_v24 = vadd.f32 %v6904_v23, %v6629_v4  ;;  %v5807_v28 = vsel %vm1178_vm5, %v5805_v32, %v5806_v22  ;;  %v6905_v42 = vrot.slane %v6703_v25, 2  ;;  %v6082_v6 = vmul.f32 %v20618_v57, %v16126_v20 }
 0x3fc   :  { %v6014_v62 = vadd.f32 %v5807_v28, %v5530_v56  ;;  %v6906_v14 = vrot.slane %v6704_v52, 2  ;;  %v7319_v29 = vmul.f32 %v20626_v41, %v16211_v36  ;;  %v7320_v61 = vmul.f32 %v20626_v41, %v16216_v51 }
 0x3fd   :  { %v7245_v18 = vadd.f32 %v7181_v12, %v7113_v24  ;;  %v7803_v10 = vmul.f32 %v15834_v31, %v16211_v36  ;;  %v16232_v63 = vmul.f32 %v15834_v31, %v16216_v51  ;;  %v8004_v19 = vsel %vm1178_vm5, %v8001_v34, %v8003_v44 }
 0x3fe   :  { %v6146_v17 = vadd.f32 %v6082_v6, %v6014_v62  ;;  %v6423_v60 = vsel %vm693_vm4, %v6421_v39, %v6422_v38  ;;  %v7182_v11 = vmul.f32 %v20627_v45, %v16211_v36  ;;  %v6907_v12 = vsel %vm1178_vm5, %v6905_v42, %v6906_v14 }
 0x3ff   :  { %v7729_v3 = vadd.f32 %v7520_v55, %v7245_v18  ;;  %v7521_v49 = vrot.slane %v7319_v29, 1  ;;  %v4983_v46 = vmul.f32 %v20630_v2, %v16058_v21  ;;  %v7522_v26 = vrot.slane %v7320_v61, 1 }
 0x400   :  { %v6630_v16 = vadd.f32 %v6423_v60, %v6146_v17  ;;  %v5121_v1 = vmul.f32 %v20629_v47, %v16085_v33  ;;  %v5605_v34 = vmul.f32 %v20631_v5, %v16085_v33  ;;  %v8005_v59 = vrot.slane %v7803_v10, 2 }
 0x401   :  { %v8213_v48 = vadd.f32 %v8004_v19, %v7729_v3  ;;  %v8006_v43 = vrot.slane %v16232_v63, 2  ;;  %v6221_v44 = vmul.f32 %v20619_v0, %v16168_v27  ;;  %v6705_v30 = vmul.f32 %v20620_v53, %v16168_v27  ;;  %v16284_v63 = vld [vmem:[#allocation2 + $0xc0] sm:$0xff] }
 0x402   :  { %v7114_v8 = vadd.f32 %v6907_v12, %v6630_v16  ;;  %v5324_v40 = vrot.slane %v5121_v1, 1  ;;  %v5808_v21 = vrot.slane %v5605_v34, 2  ;;  %v6083_v58 = vmul.f32 %v20618_v57, %v16134_v7  ;;  %v16292_v12 = vld [vmem:[#allocation2 + $0xc8] sm:$0xff] }
 0x403   :  { %11093 = vmatmul.mubr.msk.f32.gmra.mrb[16].mxu1 %vm38_vm1, %v8213_v48  ;;  %v6424_v50 = vrot.slane %v6221_v44, 1  ;;  %v7321_v33 = vmul.f32 %v20626_v41, %v16243_v37  ;;  %v7805_v13 = vmul.f32 %v15834_v31, %v16243_v37  ;;  %v7523_v32 = vsel %vm693_vm4, %v7521_v49, %v7522_v26 }
 0x404   :  { %v7246_v23 = vadd.f32 %v7182_v11, %v7114_v8  ;;  %v5325_v15 = vsel %vm693_vm4, %v5322_v9, %v5324_v40  ;;  %v6908_v54 = vrot.slane %v6705_v30, 2  ;;  %v8007_v4 = vsel %vm1178_vm5, %v8005_v59, %v8006_v43 }
 0x405   :  { %v5531_v35 = vadd.f32 %v5325_v15, %v4983_v46  ;;  %v5809_v25 = vsel %vm1178_vm5, %v5806_v22, %v5808_v21  ;;  %v7183_v56 = vmul.f32 %v20627_v45, %v16216_v51  ;;  %v6425_v52 = vsel %vm693_vm4, %v6422_v38, %v6424_v50 }
 0x406   :  { %v7730_v39 = vadd.f32 %v7523_v32, %v7246_v23  ;;  %v7524_v24 = vrot.slane %v7321_v33, 1  ;;  %v5122_v55 = vmul.f32 %v20629_v47, %v16126_v20  ;;  %v6909_v42 = vsel %vm1178_vm5, %v6906_v14, %v6908_v54 }
 0x407   :  { %v6015_v28 = vadd.f32 %v5809_v25, %v5531_v35  ;;  %v8008_v9 = vrot.slane %v7805_v13, 2  ;;  %v5123_v62 = vmul.f32 %v20629_v47, %v16134_v7  ;;  %v5606_v22 = vmul.f32 %v20631_v5, %v16126_v20 }
 0x408   :  { %v8214_v6 = vadd.f32 %v8007_v4, %v7730_v39  ;;  %v5326_v29 = vrot.slane %v5122_v55, 1  ;;  %v16277_v18 = vmul.f32 %v20631_v5, %v16134_v7  ;;  %v4984_v61 = vmul.f32 %v20630_v2, %v16126_v20  ;;  %v16326_v55 = vld [vmem:[#allocation2 + $0xd0] sm:$0x3] }
 0x409   :  { %v6147_v38 = vadd.f32 %v6083_v58, %v6015_v28  ;;  %v5327_v10 = vrot.slane %v5123_v62, 1  ;;  %v6222_v14 = vmul.f32 %v20619_v0, %v16211_v36  ;;  %v5810_v19 = vrot.slane %v5606_v22, 2 }
 0x40a   :  { %11095 = vmatprep.mubr.msk.f32.mxu1 %vm38_vm1, %v8214_v6  ;;  %v5811_v17 = vrot.slane %v16277_v18, 2  ;;  %v6223_v60 = vmul.f32 %v20619_v0, %v16216_v51  ;;  %v6706_v11 = vmul.f32 %v20620_v53, %v16211_v36  ;;  %v7525_v20 = vsel %vm693_vm4, %v7522_v26, %v7524_v24 }
 0x40b   :  { %v6631_v3 = vadd.f32 %v6425_v52, %v6147_v38  ;;  %v5328_v49 = vsel %vm693_vm4, %v5326_v29, %v5327_v10  ;;  %v16297_v46 = vmul.f32 %v20620_v53, %v16216_v51  ;;  %v6426_v34 = vrot.slane %v6222_v14, 1 }
 0x40c   :  { %v5532_v16 = vadd.f32 %v5328_v49, %v4984_v61  ;;  %v5812_v1 = vsel %vm1178_vm5, %v5810_v19, %v5811_v17  ;;  %v6427_v48 = vrot.slane %v6223_v60, 1  ;;  %v6910_v44 = vrot.slane %v6706_v11, 2 }
 0x40d   :  { %v7115_v59 = vadd.f32 %v6909_v42, %v6631_v3  ;;  %v6911_v8 = vrot.slane %v16297_v46, 2  ;;  %v7322_v26 = vmul.f32 %v20626_v41, %v16284_v63  ;;  %v6084_v21 = vmul.f32 %v20618_v57, %v16211_v36 }
 0x40e   :  { %v6016_v40 = vadd.f32 %v5812_v1, %v5532_v16  ;;  %v16307_v30 = vmul.f32 %v20626_v41, %v16292_v12  ;;  %v7806_v58 = vmul.f32 %v15834_v31, %v16284_v63  ;;  %v8009_v33 = vsel %vm1178_vm5, %v8006_v43, %v8008_v9 }
 0x40f   :  { %v7247_v50 = vadd.f32 %v7183_v56, %v7115_v59  ;;  %v7184_v13 = vmul.f32 %v20627_v45, %v16284_v63  ;;  %v16316_v23 = vmul.f32 %v15834_v31, %v16292_v12  ;;  %v6428_v15 = vsel %vm693_vm4, %v6426_v34, %v6427_v48 }
 0x410   :  { %v6148_v32 = vadd.f32 %v6084_v21, %v6016_v40  ;;  %v7526_v54 = vrot.slane %v7322_v26, 1  ;;  %v7527_v4 = vrot.slane %v16307_v30, 1  ;;  %v6912_v25 = vsel %vm1178_vm5, %v6910_v44, %v6911_v8 }
 0x411   :  { %v7731_v35 = vadd.f32 %v7525_v20, %v7247_v50  ;;  %v5124_v56 = vmul.f32 %v20629_v47, %v16168_v27  ;;  %v5608_v43 = vmul.f32 %v20631_v5, %v16168_v27  ;;  %v8010_v52 = vrot.slane %v7806_v58, 2 }
 0x412   :  { %v6632_v39 = vadd.f32 %v6428_v15, %v6148_v32  ;;  %v8011_v24 = vrot.slane %v16316_v23, 2  ;;  %v6224_v28 = vmul.f32 %v20619_v0, %v16243_v37  ;;  %v4985_v9 = vmul.f32 %v20630_v2, %v16134_v7  ;;  %v16371_v32 = vld [vmem:[#allocation2 + $0xd8] sm:$0xff] }
 0x413   :  { %v8215_v42 = vadd.f32 %v8009_v33, %v7731_v35  ;;  %v5329_v62 = vrot.slane %v5124_v56, 1  ;;  %v5813_v6 = vrot.slane %v5608_v43, 2  ;;  %v7528_v22 = vsel %vm693_vm4, %v7526_v54, %v7527_v4 }
 0x414   :  { %v7116_v29 = vadd.f32 %v6912_v25, %v6632_v39  ;;  %v6429_v18 = vrot.slane %v6224_v28, 1  ;;  %v6708_v27 = vmul.f32 %v20620_v53, %v16243_v37  ;;  %v6085_v61 = vmul.f32 %v20618_v57, %v16216_v51 }
 0x415   :  { %11096 = vmatmul.mubr.msk.f32.gmra.mrb[18].mxu1 %vm38_vm1, %v8215_v42  ;;  %v5330_v38 = vsel %vm693_vm4, %v5327_v10, %v5329_v62  ;;  %v7324_v14 = vmul.f32 %v20626_v41, %v16326_v55  ;;  %v7808_v7 = vmul.f32 %v15834_v31, %v16326_v55  ;;  %v8012_v60 = vsel %vm1178_vm5, %v8010_v52, %v8011_v24 }
 0x416   :  { %v7248_v19 = vadd.f32 %v7184_v13, %v7116_v29  ;;  %v5533_v11 = vadd.f32 %v5330_v38, %v4985_v9  ;;  %v7185_v3 = vmul.f32 %v20627_v45, %v16292_v12  ;;  %v5814_v10 = vsel %vm1178_vm5, %v5811_v17, %v5813_v6 }
 0x417   :  { %v6430_v20 = vsel %vm693_vm4, %v6427_v48, %v6429_v18  ;;  %v6913_v49 = vrot.slane %v6708_v27, 2  ;;  %v5125_v46 = vmul.f32 %v20629_v47, %v16211_v36  ;;  %v7529_v31 = vrot.slane %v7324_v14, 1 }
 0x418   :  { %v7732_v16 = vadd.f32 %v7528_v22, %v7248_v19  ;;  %v6017_v1 = vadd.f32 %v5814_v10, %v5533_v11  ;;  %v16354_v34 = vmul.f32 %v20629_v47, %v16216_v51  ;;  %v8013_v59 = vrot.slane %v7808_v7, 2 }
 0x419   :  { %v4986_v44 = vmul.f32 %v20630_v2, %v16211_v36  ;;  %v5331_v26 = vrot.slane %v5125_v46, 1  ;;  %v5609_v17 = vmul.f32 %v20631_v5, %v16211_v36  ;;  %v16363_v30 = vmul.f32 %v20631_v5, %v16216_v51 }
 0x41a   :  { %v8216_v48 = vadd.f32 %v8012_v60, %v7732_v16  ;;  %v6149_v40 = vadd.f32 %v6085_v61, %v6017_v1  ;;  %v5332_v21 = vrot.slane %v16354_v34, 1  ;;  %v6914_v58 = vsel %vm1178_vm5, %v6911_v8, %v6913_v49  ;;  %v16377_v8 = vld [vmem:[#allocation2 + $0xe0] sm:$0xff]  ;;  %v16412_v16 = vld [vmem:[#allocation2 + $0xe8] sm:$0x3] }
 0x41b   :  { %v5815_v50 = vrot.slane %v5609_v17, 2  ;;  %v6225_v33 = vmul.f32 %v20619_v0, %v16284_v63  ;;  %v6226_v13 = vmul.f32 %v20619_v0, %v16292_v12  ;;  %v5816_v54 = vrot.slane %v16363_v30, 2 }
 0x41c   :  { %11098 = vmatprep.mubr.msk.f32.mxu1 %vm38_vm1, %v8216_v48  ;;  %v6633_v36 = vadd.f32 %v6430_v20, %v6149_v40  ;;  %v5333_v15 = vsel %vm693_vm4, %v5331_v26, %v5332_v21  ;;  %v6709_v35 = vmul.f32 %v20620_v53, %v16284_v63  ;;  %v6710_v39 = vmul.f32 %v20620_v53, %v16292_v12 }
 0x41d   :  { %v5534_v25 = vadd.f32 %v5333_v15, %v4986_v44  ;;  %v6431_v56 = vrot.slane %v6225_v33, 1  ;;  %v6432_v43 = vrot.slane %v6226_v13, 1  ;;  %v7530_v28 = vsel %vm693_vm4, %v7527_v4, %v7529_v31  ;;  %v16394_v4 = vld [vmem:[%s20167_s5 + $0x8] ss:$0 sm:$0xff] }
 0x41e   :  { %v7117_v52 = vadd.f32 %v6914_v58, %v6633_v36  ;;  %v5817_v42 = vsel %vm1178_vm5, %v5815_v50, %v5816_v54  ;;  %v6915_v9 = vrot.slane %v6709_v35, 2  ;;  %v6086_v6 = vmul.f32 %v20618_v57, %v16284_v63 }
 0x41f   :  { %v6018_v62 = vadd.f32 %v5817_v42, %v5534_v25  ;;  %v6916_v29 = vrot.slane %v6710_v39, 2  ;;  %v7325_v22 = vmul.f32 %v20626_v41, %v16371_v32  ;;  %v16389_v27 = vmul.f32 %v20626_v41, %v16377_v8 }
 0x420   :  { %v7249_v18 = vadd.f32 %v7185_v3, %v7117_v52  ;;  %v7809_v38 = vmul.f32 %v16394_v4, %v16371_v32  ;;  %v16400_v61 = vmul.f32 %v16394_v4, %v16377_v8  ;;  %v8014_v14 = vsel %vm1178_vm5, %v8011_v24, %v8013_v59 }
 0x421   :  { %v6150_v7 = vadd.f32 %v6086_v6, %v6018_v62  ;;  %v6433_v19 = vsel %vm693_vm4, %v6431_v56, %v6432_v43  ;;  %v7186_v60 = vmul.f32 %v20627_v45, %v16371_v32  ;;  %v6917_v3 = vsel %vm1178_vm5, %v6915_v9, %v6916_v29 }
 0x422   :  { %v7733_v11 = vadd.f32 %v7530_v28, %v7249_v18  ;;  %v7531_v10 = vrot.slane %v7325_v22, 1  ;;  %v4987_v20 = vmul.f32 %v20630_v2, %v16216_v51  ;;  %v7532_v46 = vrot.slane %v16389_v27, 1 }
 0x423   :  { %v6634_v49 = vadd.f32 %v6433_v19, %v6150_v7  ;;  %v5127_v23 = vmul.f32 %v20629_v47, %v16243_v37  ;;  %v5611_v24 = vmul.f32 %v20631_v5, %v16243_v37  ;;  %v8015_v31 = vrot.slane %v7809_v38, 2 }
 0x424   :  { %v8217_v1 = vadd.f32 %v8014_v14, %v7733_v11  ;;  %v8016_v34 = vrot.slane %v16400_v61, 2  ;;  %v6227_v59 = vmul.f32 %v20619_v0, %v16326_v55  ;;  %v6711_v17 = vmul.f32 %v20620_v53, %v16326_v55  ;;  %v16453_v61 = vld [vmem:[#allocation2 + $0xf0] sm:$0xff] }
 0x425   :  { %v7118_v44 = vadd.f32 %v6917_v3, %v6634_v49  ;;  %v5334_v51 = vrot.slane %v5127_v23, 1  ;;  %v5818_v26 = vrot.slane %v5611_v24, 2  ;;  %v6087_v48 = vmul.f32 %v20618_v57, %v16292_v12  ;;  %v16461_v3 = vld [vmem:[#allocation2 + $0xf8] sm:$0xff] }
 0x426   :  { %11099 = vmatmul.mubr.msk.f32.gmra.mrb[20].mxu1 %vm38_vm1, %v8217_v1  ;;  %v6434_v40 = vrot.slane %v6227_v59, 1  ;;  %v7327_v37 = vmul.f32 %v20626_v41, %v16412_v16  ;;  %v7811_v30 = vmul.f32 %v16394_v4, %v16412_v16  ;;  %v7533_v50 = vsel %vm693_vm4, %v7531_v10, %v7532_v46 }
 0x427   :  { %v7250_v58 = vadd.f32 %v7186_v60, %v7118_v44  ;;  %v5335_v33 = vsel %vm693_vm4, %v5332_v21, %v5334_v51  ;;  %v6918_v13 = vrot.slane %v6711_v17, 2  ;;  %v8017_v36 = vsel %vm1178_vm5, %v8015_v31, %v8016_v34 }
 0x428   :  { %v5535_v15 = vadd.f32 %v5335_v33, %v4987_v20  ;;  %v5819_v35 = vsel %vm1178_vm5, %v5816_v54, %v5818_v26  ;;  %v7187_v25 = vmul.f32 %v20627_v45, %v16377_v8  ;;  %v6435_v39 = vsel %vm693_vm4, %v6432_v43, %v6434_v40 }
 0x429   :  { %v7734_v56 = vadd.f32 %v7533_v50, %v7250_v58  ;;  %v7534_v52 = vrot.slane %v7327_v37, 1  ;;  %v5128_v28 = vmul.f32 %v20629_v47, %v16284_v63  ;;  %v6919_v9 = vsel %vm1178_vm5, %v6916_v29, %v6918_v13 }
 0x42a   :  { %v6019_v42 = vadd.f32 %v5819_v35, %v5535_v15  ;;  %v8018_v21 = vrot.slane %v7811_v30, 2  ;;  %v5129_v62 = vmul.f32 %v20629_v47, %v16292_v12  ;;  %v5612_v54 = vmul.f32 %v20631_v5, %v16284_v63 }
 0x42b   :  { %v8218_v6 = vadd.f32 %v8017_v36, %v7734_v56  ;;  %v5336_v22 = vrot.slane %v5128_v28, 1  ;;  %v16446_v18 = vmul.f32 %v20631_v5, %v16292_v12  ;;  %v4988_v27 = vmul.f32 %v20630_v2, %v16284_v63  ;;  %v16495_v28 = vld [vmem:[#allocation2 + $0x100] sm:$0x3] }
 0x42c   :  { %v6151_v43 = vadd.f32 %v6087_v48, %v6019_v42  ;;  %v5337_v38 = vrot.slane %v5129_v62, 1  ;;  %v6228_v29 = vmul.f32 %v20619_v0, %v16371_v32  ;;  %v5820_v14 = vrot.slane %v5612_v54, 2 }
 0x42d   :  { %11101 = vmatprep.mubr.msk.f32.mxu1 %vm38_vm1, %v8218_v6  ;;  %v5821_v7 = vrot.slane %v16446_v18, 2  ;;  %v6229_v19 = vmul.f32 %v20619_v0, %v16377_v8  ;;  %v6712_v60 = vmul.f32 %v20620_v53, %v16371_v32  ;;  %v7535_v63 = vsel %vm693_vm4, %v7532_v46, %v7534_v52 }
 0x42e   :  { %v6635_v11 = vadd.f32 %v6435_v39, %v6151_v43  ;;  %v5338_v10 = vsel %vm693_vm4, %v5336_v22, %v5337_v38  ;;  %v16466_v20 = vmul.f32 %v20620_v53, %v16377_v8  ;;  %v6436_v24 = vrot.slane %v6228_v29, 1 }
 0x42f   :  { %v5536_v49 = vadd.f32 %v5338_v10, %v4988_v27  ;;  %v5822_v23 = vsel %vm1178_vm5, %v5820_v14, %v5821_v7  ;;  %v6437_v1 = vrot.slane %v6229_v19, 1  ;;  %v6920_v59 = vrot.slane %v6712_v60, 2 }
 0x430   :  { %v7119_v31 = vadd.f32 %v6919_v9, %v6635_v11  ;;  %v6921_v44 = vrot.slane %v16466_v20, 2  ;;  %v7328_v46 = vmul.f32 %v20626_v41, %v16453_v61  ;;  %v6088_v26 = vmul.f32 %v20618_v57, %v16371_v32 }
 0x431   :  { %v6020_v51 = vadd.f32 %v5822_v23, %v5536_v49  ;;  %v16476_v17 = vmul.f32 %v20626_v41, %v16461_v3  ;;  %v7812_v48 = vmul.f32 %v16394_v4, %v16453_v61  ;;  %v8019_v37 = vsel %vm1178_vm5, %v8016_v34, %v8018_v21 }
 0x432   :  { %v7251_v40 = vadd.f32 %v7187_v25, %v7119_v31  ;;  %v7188_v30 = vmul.f32 %v20627_v45, %v16453_v61  ;;  %v16485_v58 = vmul.f32 %v16394_v4, %v16461_v3  ;;  %v6438_v33 = vsel %vm693_vm4, %v6436_v24, %v6437_v1 }
 0x433   :  { %v6152_v50 = vadd.f32 %v6088_v26, %v6020_v51  ;;  %v7536_v13 = vrot.slane %v7328_v46, 1  ;;  %v7537_v36 = vrot.slane %v16476_v17, 1  ;;  %v6922_v35 = vsel %vm1178_vm5, %v6920_v59, %v6921_v44 }
 0x434   :  { %v7735_v15 = vadd.f32 %v7535_v63, %v7251_v40  ;;  %v5130_v25 = vmul.f32 %v20629_v47, %v16326_v55  ;;  %v5614_v34 = vmul.f32 %v20631_v5, %v16326_v55  ;;  %v8020_v39 = vrot.slane %v7812_v48, 2 }
 0x435   :  { %v6636_v56 = vadd.f32 %v6438_v33, %v6152_v50  ;;  %v8021_v52 = vrot.slane %v16485_v58, 2  ;;  %v6230_v42 = vmul.f32 %v20619_v0, %v16412_v16  ;;  %v4989_v21 = vmul.f32 %v20630_v2, %v16292_v12 }
 0x436   :  { %v8219_v9 = vadd.f32 %v8019_v37, %v7735_v15  ;;  %v5339_v62 = vrot.slane %v5130_v25, 1  ;;  %v5823_v6 = vrot.slane %v5614_v34, 2  ;;  %v7538_v54 = vsel %vm693_vm4, %v7536_v13, %v7537_v36  ;;  %v16543_v25 = vld [vmem:[#allocation2 + $0x110] sm:$0xff] }
 0x437   :  { %v7120_v22 = vadd.f32 %v6922_v35, %v6636_v56  ;;  %v6439_v18 = vrot.slane %v6230_v42, 1  ;;  %v6714_v55 = vmul.f32 %v20620_v53, %v16412_v16  ;;  %v6089_v27 = vmul.f32 %v20618_v57, %v16377_v8 }
 0x438   :  { %11102 = vmatmul.mubr.msk.f32.gmra.mrb[22].mxu1 %vm38_vm1, %v8219_v9  ;;  %v5340_v43 = vsel %vm693_vm4, %v5337_v38, %v5339_v62  ;;  %v7330_v29 = vmul.f32 %v20626_v41, %v16495_v28  ;;  %v7814_v12 = vmul.f32 %v16394_v4, %v16495_v28  ;;  %v8022_v19 = vsel %vm1178_vm5, %v8020_v39, %v8021_v52 }
 0x439   :  { %v7252_v14 = vadd.f32 %v7188_v30, %v7120_v22  ;;  %v5537_v60 = vadd.f32 %v5340_v43, %v4989_v21  ;;  %v7189_v11 = vmul.f32 %v20627_v45, %v16461_v3  ;;  %v5824_v38 = vsel %vm1178_vm5, %v5821_v7, %v5823_v6 }
 0x43a   :  { %v6440_v63 = vsel %vm693_vm4, %v6437_v1, %v6439_v18  ;;  %v6923_v10 = vrot.slane %v6714_v55, 2  ;;  %v5131_v20 = vmul.f32 %v20629_v47, %v16371_v32  ;;  %v7539_v24 = vrot.slane %v7330_v29, 1 }
 0x43b   :  { %v7736_v49 = vadd.f32 %v7538_v54, %v7252_v14  ;;  %v6021_v23 = vadd.f32 %v5824_v38, %v5537_v60  ;;  %v16523_v31 = vmul.f32 %v20629_v47, %v16377_v8  ;;  %v8023_v59 = vrot.slane %v7814_v12, 2 }
 0x43c   :  { %v4990_v46 = vmul.f32 %v20630_v2, %v16371_v32  ;;  %v5341_v51 = vrot.slane %v5131_v20, 1  ;;  %v5615_v7 = vmul.f32 %v20631_v5, %v16371_v32  ;;  %v5616_v48 = vmul.f32 %v20631_v5, %v16377_v8  ;;  %v16538_v32 = vld [vmem:[#allocation2 + $0x108] sm:$0xff] }
 0x43d   :  { %v8220_v1 = vadd.f32 %v8022_v19, %v7736_v49  ;;  %v6153_v26 = vadd.f32 %v6089_v27, %v6021_v23  ;;  %v5342_v17 = vrot.slane %v16523_v31, 1  ;;  %v6924_v40 = vsel %vm1178_vm5, %v6921_v44, %v6923_v10  ;;  %v16570_v49 = vld [vmem:[#allocation2 + $0x118] sm:$0x3] }
 0x43e   :  { %v5825_v37 = vrot.slane %v5615_v7, 2  ;;  %v6231_v30 = vmul.f32 %v20619_v0, %v16453_v61  ;;  %v6232_v50 = vmul.f32 %v20619_v0, %v16461_v3  ;;  %v5826_v15 = vrot.slane %v5616_v48, 2 }
 0x43f   :  { %11104 = vmatprep.mubr.msk.f32.mxu1 %vm38_vm1, %v8220_v1  ;;  %v6637_v33 = vadd.f32 %v6440_v63, %v6153_v26  ;;  %v5343_v13 = vsel %vm693_vm4, %v5341_v51, %v5342_v17  ;;  %v6715_v35 = vmul.f32 %v20620_v53, %v16453_v61  ;;  %v6716_v39 = vmul.f32 %v20620_v53, %v16461_v3 }
 0x440   :  { %v5538_v44 = vadd.f32 %v5343_v13, %v4990_v46  ;;  %v6441_v34 = vrot.slane %v6231_v30, 1  ;;  %v6442_v56 = vrot.slane %v6232_v50, 1  ;;  %v7540_v9 = vsel %vm693_vm4, %v7537_v36, %v7539_v24 }
 0x441   :  { %v7121_v42 = vadd.f32 %v6924_v40, %v6637_v33  ;;  %v5827_v21 = vsel %vm1178_vm5, %v5825_v37, %v5826_v15  ;;  %v6925_v62 = vrot.slane %v6715_v35, 2  ;;  %v6090_v22 = vmul.f32 %v20618_v57, %v16453_v61 }
 0x442   :  { %v6022_v6 = vadd.f32 %v5827_v21, %v5538_v44  ;;  %v6926_v54 = vrot.slane %v6716_v39, 2  ;;  %v7331_v18 = vmul.f32 %v20626_v41, %v16538_v32  ;;  %v7332_v43 = vmul.f32 %v20626_v41, %v16543_v25 }
 0x443   :  { %v7253_v55 = vadd.f32 %v7189_v11, %v7121_v42  ;;  %v7815_v27 = vmul.f32 %v16394_v4, %v16538_v32  ;;  %v16559_v36 = vmul.f32 %v16394_v4, %v16543_v25  ;;  %v8024_v29 = vsel %vm1178_vm5, %v8021_v52, %v8023_v59 }
 0x444   :  { %v6154_v12 = vadd.f32 %v6090_v22, %v6022_v6  ;;  %v6443_v14 = vsel %vm693_vm4, %v6441_v34, %v6442_v56  ;;  %v7190_v19 = vmul.f32 %v20627_v45, %v16538_v32  ;;  %v6927_v11 = vsel %vm1178_vm5, %v6925_v62, %v6926_v54 }
 0x445   :  { %v7737_v60 = vadd.f32 %v7540_v9, %v7253_v55  ;;  %v7541_v38 = vrot.slane %v7331_v18, 1  ;;  %v4991_v63 = vmul.f32 %v20630_v2, %v16377_v8  ;;  %v7542_v20 = vrot.slane %v7332_v43, 1 }
 0x446   :  { %v6638_v10 = vadd.f32 %v6443_v14, %v6154_v12  ;;  %v5133_v58 = vmul.f32 %v20629_v47, %v16412_v16  ;;  %v5617_v52 = vmul.f32 %v20631_v5, %v16412_v16  ;;  %v8025_v24 = vrot.slane %v7815_v27, 2 }
 0x447   :  { %v8221_v23 = vadd.f32 %v8024_v29, %v7737_v60  ;;  %v8026_v31 = vrot.slane %v16559_v36, 2  ;;  %v6233_v59 = vmul.f32 %v20619_v0, %v16495_v28  ;;  %v6717_v7 = vmul.f32 %v20620_v53, %v16495_v28  ;;  %v16611_v36 = vld [vmem:[#allocation2 + $0x120] sm:$0xff] }
 0x448   :  { %v7122_v46 = vadd.f32 %v6927_v11, %v6638_v10  ;;  %v5344_v51 = vrot.slane %v5133_v58, 1  ;;  %v5828_v8 = vrot.slane %v5617_v52, 2  ;;  %v6091_v1 = vmul.f32 %v20618_v57, %v16461_v3  ;;  %v16619_v11 = vld [vmem:[#allocation2 + $0x128] sm:$0xff] }
 0x449   :  { %11105 = vmatmul.mubr.msk.f32.gmra.mrb[24].mxu1 %vm38_vm1, %v8221_v23  ;;  %v6444_v26 = vrot.slane %v6233_v59, 1  ;;  %v7333_v16 = vmul.f32 %v20626_v41, %v16570_v49  ;;  %v7817_v48 = vmul.f32 %v16394_v4, %v16570_v49  ;;  %v7543_v37 = vsel %vm693_vm4, %v7541_v38, %v7542_v20 }
 0x44a   :  { %v7254_v40 = vadd.f32 %v7190_v19, %v7122_v46  ;;  %v5345_v30 = vsel %vm693_vm4, %v5342_v17, %v5344_v51  ;;  %v6928_v50 = vrot.slane %v6717_v7, 2  ;;  %v8027_v33 = vsel %vm1178_vm5, %v8025_v24, %v8026_v31 }
 0x44b   :  { %v5539_v13 = vadd.f32 %v5345_v30, %v4991_v63  ;;  %v5829_v35 = vsel %vm1178_vm5, %v5826_v15, %v5828_v8  ;;  %v7191_v44 = vmul.f32 %v20627_v45, %v16543_v25  ;;  %v6445_v39 = vsel %vm693_vm4, %v6442_v56, %v6444_v26 }
 0x44c   :  { %v7738_v34 = vadd.f32 %v7543_v37, %v7254_v40  ;;  %v7544_v42 = vrot.slane %v7333_v16, 1  ;;  %v5134_v9 = vmul.f32 %v20629_v47, %v16453_v61  ;;  %v6929_v62 = vsel %vm1178_vm5, %v6926_v54, %v6928_v50 }
 0x44d   :  { %v6023_v21 = vadd.f32 %v5829_v35, %v5539_v13  ;;  %v8028_v17 = vrot.slane %v7817_v48, 2  ;;  %v5135_v6 = vmul.f32 %v20629_v47, %v16461_v3  ;;  %v5618_v15 = vmul.f32 %v20631_v5, %v16453_v61 }
 0x44e   :  { %v8222_v22 = vadd.f32 %v8027_v33, %v7738_v34  ;;  %v5346_v18 = vrot.slane %v5134_v9, 1  ;;  %v16604_v55 = vmul.f32 %v20631_v5, %v16461_v3  ;;  %v4992_v43 = vmul.f32 %v20630_v2, %v16453_v61  ;;  %v16653_v9 = vld [vmem:[#allocation2 + $0x130] sm:$0x3] }
 0x44f   :  { %v6155_v56 = vadd.f32 %v6091_v1, %v6023_v21  ;;  %v5347_v27 = vrot.slane %v5135_v6, 1  ;;  %v6234_v54 = vmul.f32 %v20619_v0, %v16538_v32  ;;  %v5830_v29 = vrot.slane %v5618_v15, 2 }
 0x450   :  { %11107 = vmatprep.mubr.msk.f32.mxu1 %vm38_vm1, %v8222_v22  ;;  %v5831_v12 = vrot.slane %v16604_v55, 2  ;;  %v6235_v14 = vmul.f32 %v20619_v0, %v16543_v25  ;;  %v6718_v19 = vmul.f32 %v20620_v53, %v16538_v32  ;;  %v7545_v61 = vsel %vm693_vm4, %v7542_v20, %v7544_v42 }
 0x451   :  { %v6639_v60 = vadd.f32 %v6445_v39, %v6155_v56  ;;  %v5348_v38 = vsel %vm693_vm4, %v5346_v18, %v5347_v27  ;;  %v16624_v63 = vmul.f32 %v20620_v53, %v16543_v25  ;;  %v6446_v52 = vrot.slane %v6234_v54, 1 }
 0x452   :  { %v5540_v10 = vadd.f32 %v5348_v38, %v4992_v43  ;;  %v5832_v58 = vsel %vm1178_vm5, %v5830_v29, %v5831_v12  ;;  %v6447_v23 = vrot.slane %v6235_v14, 1  ;;  %v6930_v59 = vrot.slane %v6718_v19, 2 }
 0x453   :  { %v7123_v24 = vadd.f32 %v6929_v62, %v6639_v60  ;;  %v6931_v46 = vrot.slane %v16624_v63, 2  ;;  %v7334_v20 = vmul.f32 %v20626_v41, %v16611_v36  ;;  %v6092_v8 = vmul.f32 %v20618_v57, %v16538_v32 }
 0x454   :  { %v6024_v51 = vadd.f32 %v5832_v58, %v5540_v10  ;;  %v16634_v7 = vmul.f32 %v20626_v41, %v16619_v11  ;;  %v7818_v1 = vmul.f32 %v16394_v4, %v16611_v36  ;;  %v8029_v16 = vsel %vm1178_vm5, %v8026_v31, %v8028_v17 }
 0x455   :  { %v7255_v26 = vadd.f32 %v7191_v44, %v7123_v24  ;;  %v7192_v48 = vmul.f32 %v20627_v45, %v16611_v36  ;;  %v16643_v40 = vmul.f32 %v16394_v4, %v16619_v11  ;;  %v6448_v30 = vsel %vm693_vm4, %v6446_v52, %v6447_v23 }
 0x456   :  { %v6156_v37 = vadd.f32 %v6092_v8, %v6024_v51  ;;  %v7546_v50 = vrot.slane %v7334_v20, 1  ;;  %v7547_v33 = vrot.slane %v16634_v7, 1  ;;  %v6932_v35 = vsel %vm1178_vm5, %v6930_v59, %v6931_v46 }
 0x457   :  { %v7739_v13 = vadd.f32 %v7545_v61, %v7255_v26  ;;  %v5136_v44 = vmul.f32 %v20629_v47, %v16495_v28  ;;  %v5620_v31 = vmul.f32 %v20631_v5, %v16495_v28  ;;  %v8030_v39 = vrot.slane %v7818_v1, 2 }
 0x458   :  { %v6640_v34 = vadd.f32 %v6448_v30, %v6156_v37  ;;  %v8031_v42 = vrot.slane %v16643_v40, 2  ;;  %v6236_v21 = vmul.f32 %v20619_v0, %v16570_v49  ;;  %v4993_v17 = vmul.f32 %v20630_v2, %v16461_v3 }
 0x459   :  { %v8223_v62 = vadd.f32 %v8029_v16, %v7739_v13  ;;  %v5349_v6 = vrot.slane %v5136_v44, 1  ;;  %v5833_v22 = vrot.slane %v5620_v31, 2  ;;  %v7548_v15 = vsel %vm693_vm4, %v7546_v50, %v7547_v33  ;;  %v16701_v44 = vld [vmem:[#allocation2 + $0x140] sm:$0xff] }
 0x45a   :  { %v7124_v18 = vadd.f32 %v6932_v35, %v6640_v34  ;;  %v6449_v55 = vrot.slane %v6236_v21, 1  ;;  %v6720_v28 = vmul.f32 %v20620_v53, %v16570_v49  ;;  %v6093_v43 = vmul.f32 %v20618_v57, %v16543_v25 }
 0x45b   :  { %11108 = vmatmul.mubr.msk.f32.gmra.mrb[26].mxu1 %vm38_vm1, %v8223_v62  ;;  %v5350_v56 = vsel %vm693_vm4, %v5347_v27, %v5349_v6  ;;  %v7336_v54 = vmul.f32 %v20626_v41, %v16653_v9  ;;  %v7820_v3 = vmul.f32 %v16394_v4, %v16653_v9  ;;  %v8032_v14 = vsel %vm1178_vm5, %v8030_v39, %v8031_v42 }
 0x45c   :  { %v7256_v29 = vadd.f32 %v7192_v48, %v7124_v18  ;;  %v5541_v19 = vadd.f32 %v5350_v56, %v4993_v17  ;;  %v7193_v60 = vmul.f32 %v20627_v45, %v16619_v11  ;;  %v5834_v27 = vsel %vm1178_vm5, %v5831_v12, %v5833_v22 }
 0x45d   :  { %v6450_v61 = vsel %vm693_vm4, %v6447_v23, %v6449_v55  ;;  %v6933_v38 = vrot.slane %v6720_v28, 2  ;;  %v5137_v63 = vmul.f32 %v20629_v47, %v16538_v32  ;;  %v7549_v52 = vrot.slane %v7336_v54, 1 }
 0x45e   :  { %v7740_v10 = vadd.f32 %v7548_v15, %v7256_v29  ;;  %v6025_v58 = vadd.f32 %v5834_v27, %v5541_v19  ;;  %v16681_v24 = vmul.f32 %v20629_v47, %v16543_v25  ;;  %v8033_v59 = vrot.slane %v7820_v3, 2 }
 0x45f   :  { %v4994_v20 = vmul.f32 %v20630_v2, %v16538_v32  ;;  %v5351_v51 = vrot.slane %v5137_v63, 1  ;;  %v5621_v12 = vmul.f32 %v20631_v5, %v16538_v32  ;;  %v5622_v1 = vmul.f32 %v20631_v5, %v16543_v25  ;;  %v16696_v32 = vld [vmem:[#allocation2 + $0x138] sm:$0xff] }
 0x460   :  { %v8224_v23 = vadd.f32 %v8032_v14, %v7740_v10  ;;  %v6157_v8 = vadd.f32 %v6093_v43, %v6025_v58  ;;  %v5352_v7 = vrot.slane %v16681_v24, 1  ;;  %v6934_v26 = vsel %vm1178_vm5, %v6931_v46, %v6933_v38  ;;  %v16728_v10 = vld [vmem:[#allocation2 + $0x148] sm:$0x3] }
 0x461   :  { %v5835_v16 = vrot.slane %v5621_v12, 2  ;;  %v6237_v48 = vmul.f32 %v20619_v0, %v16611_v36  ;;  %v6238_v37 = vmul.f32 %v20619_v0, %v16619_v11  ;;  %v5836_v13 = vrot.slane %v5622_v1, 2 }
 0x462   :  { %11110 = vmatprep.mubr.msk.f32.mxu1 %vm38_vm1, %v8224_v23  ;;  %v6641_v30 = vadd.f32 %v6450_v61, %v6157_v8  ;;  %v5353_v50 = vsel %vm693_vm4, %v5351_v51, %v5352_v7  ;;  %v6721_v35 = vmul.f32 %v20620_v53, %v16611_v36  ;;  %v6722_v39 = vmul.f32 %v20620_v53, %v16619_v11 }
 0x463   :  { %v5542_v46 = vadd.f32 %v5353_v50, %v4994_v20  ;;  %v6451_v31 = vrot.slane %v6237_v48, 1  ;;  %v6452_v34 = vrot.slane %v6238_v37, 1  ;;  %v7550_v62 = vsel %vm693_vm4, %v7547_v33, %v7549_v52 }
 0x464   :  { %v7125_v21 = vadd.f32 %v6934_v26, %v6641_v30  ;;  %v5837_v17 = vsel %vm1178_vm5, %v5835_v16, %v5836_v13  ;;  %v6935_v6 = vrot.slane %v6721_v35, 2  ;;  %v6094_v18 = vmul.f32 %v20618_v57, %v16611_v36 }
 0x465   :  { %v6026_v22 = vadd.f32 %v5837_v17, %v5542_v46  ;;  %v6936_v15 = vrot.slane %v6722_v39, 2  ;;  %v7337_v55 = vmul.f32 %v20626_v41, %v16696_v32  ;;  %v7338_v56 = vmul.f32 %v20626_v41, %v16701_v44 }
 0x466   :  { %v7257_v28 = vadd.f32 %v7193_v60, %v7125_v21  ;;  %v7821_v43 = vmul.f32 %v16394_v4, %v16696_v32  ;;  %v16717_v33 = vmul.f32 %v16394_v4, %v16701_v44  ;;  %v8034_v54 = vsel %vm1178_vm5, %v8031_v42, %v8033_v59 }
 0x467   :  { %v6158_v3 = vadd.f32 %v6094_v18, %v6026_v22  ;;  %v6453_v29 = vsel %vm693_vm4, %v6451_v31, %v6452_v34  ;;  %v7194_v14 = vmul.f32 %v20627_v45, %v16696_v32  ;;  %v6937_v60 = vsel %vm1178_vm5, %v6935_v6, %v6936_v15 }
 0x468   :  { %v7741_v19 = vadd.f32 %v7550_v62, %v7257_v28  ;;  %v7551_v27 = vrot.slane %v7337_v55, 1  ;;  %v4995_v61 = vmul.f32 %v20630_v2, %v16543_v25  ;;  %v7552_v63 = vrot.slane %v7338_v56, 1 }
 0x469   :  { %v6642_v38 = vadd.f32 %v6453_v29, %v6158_v3  ;;  %v5139_v40 = vmul.f32 %v20629_v47, %v16570_v49  ;;  %v5623_v42 = vmul.f32 %v20631_v5, %v16570_v49  ;;  %v8035_v52 = vrot.slane %v7821_v43, 2 }
 0x46a   :  { %v8225_v58 = vadd.f32 %v8034_v54, %v7741_v19  ;;  %v8036_v24 = vrot.slane %v16717_v33, 2  ;;  %v6239_v59 = vmul.f32 %v20619_v0, %v16653_v9  ;;  %v6723_v12 = vmul.f32 %v20620_v53, %v16653_v9  ;;  %v16769_v33 = vld [vmem:[#allocation2 + $0x150] sm:$0xff] }
 0x46b   :  { %v7126_v20 = vadd.f32 %v6937_v60, %v6642_v38  ;;  %v5354_v51 = vrot.slane %v5139_v40, 1  ;;  %v5838_v25 = vrot.slane %v5623_v42, 2  ;;  %v6095_v23 = vmul.f32 %v20618_v57, %v16619_v11  ;;  %v16777_v60 = vld [vmem:[#allocation2 + $0x158] sm:$0xff] }
 0x46c   :  { %11111 = vmatmul.mubr.msk.f32.gmra.mrb[28].mxu1 %vm38_vm1, %v8225_v58  ;;  %v6454_v8 = vrot.slane %v6239_v59, 1  ;;  %v7339_v49 = vmul.f32 %v20626_v41, %v16728_v10  ;;  %v7823_v1 = vmul.f32 %v16394_v4, %v16728_v10  ;;  %v7553_v16 = vsel %vm693_vm4, %v7551_v27, %v7552_v63 }
 0x46d   :  { %v7258_v26 = vadd.f32 %v7194_v14, %v7126_v20  ;;  %v5355_v48 = vsel %vm693_vm4, %v5352_v7, %v5354_v51  ;;  %v6938_v37 = vrot.slane %v6723_v12, 2  ;;  %v8037_v30 = vsel %vm1178_vm5, %v8035_v52, %v8036_v24 }
 0x46e   :  { %v5543_v50 = vadd.f32 %v5355_v48, %v4995_v61  ;;  %v5839_v35 = vsel %vm1178_vm5, %v5836_v13, %v5838_v25  ;;  %v7195_v46 = vmul.f32 %v20627_v45, %v16701_v44  ;;  %v6455_v39 = vsel %vm693_vm4, %v6452_v34, %v6454_v8 }
 0x46f   :  { %v7742_v31 = vadd.f32 %v7553_v16, %v7258_v26  ;;  %v7554_v21 = vrot.slane %v7339_v49, 1  ;;  %v5140_v62 = vmul.f32 %v20629_v47, %v16611_v36  ;;  %v6939_v6 = vsel %vm1178_vm5, %v6936_v15, %v6938_v37 }
 0x470   :  { %v6027_v17 = vadd.f32 %v5839_v35, %v5543_v50  ;;  %v8038_v7 = vrot.slane %v7823_v1, 2  ;;  %v5141_v22 = vmul.f32 %v20629_v47, %v16619_v11  ;;  %v5624_v13 = vmul.f32 %v20631_v5, %v16611_v36 }
 0x471   :  { %v8226_v18 = vadd.f32 %v8037_v30, %v7742_v31  ;;  %v5356_v55 = vrot.slane %v5140_v62, 1  ;;  %v16762_v28 = vmul.f32 %v20631_v5, %v16619_v11  ;;  %v4996_v56 = vmul.f32 %v20630_v2, %v16611_v36  ;;  %v16811_v62 = vld [vmem:[#allocation2 + $0x160] sm:$0x3] }
 0x472   :  { %v6159_v34 = vadd.f32 %v6095_v23, %v6027_v17  ;;  %v5357_v43 = vrot.slane %v5141_v22, 1  ;;  %v6240_v15 = vmul.f32 %v20619_v0, %v16696_v32  ;;  %v5840_v54 = vrot.slane %v5624_v13, 2 }
 0x473   :  { %11113 = vmatprep.mubr.msk.f32.mxu1 %vm38_vm1, %v8226_v18  ;;  %v5841_v3 = vrot.slane %v16762_v28, 2  ;;  %v6241_v29 = vmul.f32 %v20619_v0, %v16701_v44  ;;  %v6724_v14 = vmul.f32 %v20620_v53, %v16696_v32  ;;  %v7555_v36 = vsel %vm693_vm4, %v7552_v63, %v7554_v21 }
 0x474   :  { %v6643_v19 = vadd.f32 %v6455_v39, %v6159_v34  ;;  %v5358_v27 = vsel %vm693_vm4, %v5356_v55, %v5357_v43  ;;  %v16782_v61 = vmul.f32 %v20620_v53, %v16701_v44  ;;  %v6456_v42 = vrot.slane %v6240_v15, 1 }
 0x475   :  { %v5544_v38 = vadd.f32 %v5358_v27, %v4996_v56  ;;  %v5842_v40 = vsel %vm1178_vm5, %v5840_v54, %v5841_v3  ;;  %v6457_v58 = vrot.slane %v6241_v29, 1  ;;  %v6940_v59 = vrot.slane %v6724_v14, 2 }
 0x476   :  { %v7127_v52 = vadd.f32 %v6939_v6, %v6643_v19  ;;  %v6941_v20 = vrot.slane %v16782_v61, 2  ;;  %v7340_v63 = vmul.f32 %v20626_v41, %v16769_v33  ;;  %v6096_v25 = vmul.f32 %v20618_v57, %v16696_v32 }
 0x477   :  { %v6028_v51 = vadd.f32 %v5842_v40, %v5544_v38  ;;  %v16792_v12 = vmul.f32 %v20626_v41, %v16777_v60  ;;  %v7824_v23 = vmul.f32 %v16394_v4, %v16769_v33  ;;  %v8039_v49 = vsel %vm1178_vm5, %v8036_v24, %v8038_v7 }
 0x478   :  { %v7259_v8 = vadd.f32 %v7195_v46, %v7127_v52  ;;  %v7196_v1 = vmul.f32 %v20627_v45, %v16769_v33  ;;  %v16801_v26 = vmul.f32 %v16394_v4, %v16777_v60  ;;  %v6458_v48 = vsel %vm693_vm4, %v6456_v42, %v6457_v58 }
 0x479   :  { %v6160_v16 = vadd.f32 %v6096_v25, %v6028_v51  ;;  %v7556_v37 = vrot.slane %v7340_v63, 1  ;;  %v7557_v30 = vrot.slane %v16792_v12, 1  ;;  %v6942_v35 = vsel %vm1178_vm5, %v6940_v59, %v6941_v20 }
 0x47a   :  { %v7743_v50 = vadd.f32 %v7555_v36, %v7259_v8  ;;  %v5142_v46 = vmul.f32 %v20629_v47, %v16653_v9  ;;  %v5626_v24 = vmul.f32 %v20631_v5, %v16653_v9  ;;  %v8040_v39 = vrot.slane %v7824_v23, 2 }
 0x47b   :  { %v6644_v31 = vadd.f32 %v6458_v48, %v6160_v16  ;;  %v8041_v21 = vrot.slane %v16801_v26, 2  ;;  %v6242_v17 = vmul.f32 %v20619_v0, %v16728_v10  ;;  %v4997_v7 = vmul.f32 %v20630_v2, %v16619_v11 }
 0x47c   :  { %v8227_v6 = vadd.f32 %v8039_v49, %v7743_v50  ;;  %v5359_v22 = vrot.slane %v5142_v46, 1  ;;  %v5843_v18 = vrot.slane %v5626_v24, 2  ;;  %v7558_v13 = vsel %vm693_vm4, %v7556_v37, %v7557_v30  ;;  %v16859_v46 = vld [vmem:[#allocation2 + $0x170] sm:$0xff] }
 0x47d   :  { %v7128_v55 = vadd.f32 %v6942_v35, %v6644_v31  ;;  %v6459_v28 = vrot.slane %v6242_v17, 1  ;;  %v6726_v9 = vmul.f32 %v20620_v53, %v16728_v10  ;;  %v6097_v56 = vmul.f32 %v20618_v57, %v16701_v44 }
 0x47e   :  { %11114 = vmatmul.mubr.msk.f32.gmra.mrb[30].mxu1 %vm38_vm1, %v8227_v6  ;;  %v5360_v34 = vsel %vm693_vm4, %v5357_v43, %v5359_v22  ;;  %v7342_v15 = vmul.f32 %v20626_v41, %v16811_v62  ;;  %v7826_v11 = vmul.f32 %v16394_v4, %v16811_v62  ;;  %v8042_v29 = vsel %vm1178_vm5, %v8040_v39, %v8041_v21 }
 0x47f   :  { %v7260_v54 = vadd.f32 %v7196_v1, %v7128_v55  ;;  %v5545_v14 = vadd.f32 %v5360_v34, %v4997_v7  ;;  %v7197_v19 = vmul.f32 %v20627_v45, %v16777_v60  ;;  %v5844_v43 = vsel %vm1178_vm5, %v5841_v3, %v5843_v18 }
 0x480   :  { %v6460_v36 = vsel %vm693_vm4, %v6457_v58, %v6459_v28  ;;  %v6943_v27 = vrot.slane %v6726_v9, 2  ;;  %v5143_v61 = vmul.f32 %v20629_v47, %v16696_v32  ;;  %v7559_v42 = vrot.slane %v7342_v15, 1 }
 0x481   :  { %v7744_v38 = vadd.f32 %v7558_v13, %v7260_v54  ;;  %v6029_v40 = vadd.f32 %v5844_v43, %v5545_v14  ;;  %v16839_v52 = vmul.f32 %v20629_v47, %v16701_v44  ;;  %v8043_v59 = vrot.slane %v7826_v11, 2 }
 0x482   :  { %v4998_v63 = vmul.f32 %v20630_v2, %v16696_v32  ;;  %v5361_v51 = vrot.slane %v5143_v61, 1  ;;  %v5627_v3 = vmul.f32 %v20631_v5, %v16696_v32  ;;  %v5628_v23 = vmul.f32 %v20631_v5, %v16701_v44  ;;  %v16854_v32 = vld [vmem:[#allocation2 + $0x168] sm:$0xff] }
 0x483   :  { %v8228_v58 = vadd.f32 %v8042_v29, %v7744_v38  ;;  %v6161_v25 = vadd.f32 %v6097_v56, %v6029_v40  ;;  %v5362_v12 = vrot.slane %v16839_v52, 1  ;;  %v6944_v8 = vsel %vm1178_vm5, %v6941_v20, %v6943_v27  ;;  %v16886_v38 = vld [vmem:[#allocation2 + $0x178] sm:$0x3] }
 0x484   :  { %v5845_v49 = vrot.slane %v5627_v3, 2  ;;  %v6243_v1 = vmul.f32 %v20619_v0, %v16769_v33  ;;  %v6244_v16 = vmul.f32 %v20619_v0, %v16777_v60  ;;  %v5846_v50 = vrot.slane %v5628_v23, 2 }
 0x485   :  { %11116 = vmatprep.mubr.msk.f32.mxu1 %vm38_vm1, %v8228_v58  ;;  %v6645_v48 = vadd.f32 %v6460_v36, %v6161_v25  ;;  %v5363_v37 = vsel %vm693_vm4, %v5361_v51, %v5362_v12  ;;  %v6727_v35 = vmul.f32 %v20620_v53, %v16769_v33  ;;  %v6728_v39 = vmul.f32 %v20620_v53, %v16777_v60 }
 0x486   :  { %v5546_v20 = vadd.f32 %v5363_v37, %v4998_v63  ;;  %v6461_v24 = vrot.slane %v6243_v1, 1  ;;  %v6462_v31 = vrot.slane %v6244_v16, 1  ;;  %v7560_v6 = vsel %vm693_vm4, %v7557_v30, %v7559_v42 }
 0x487   :  { %v7129_v17 = vadd.f32 %v6944_v8, %v6645_v48  ;;  %v5847_v7 = vsel %vm1178_vm5, %v5845_v49, %v5846_v50  ;;  %v6945_v22 = vrot.slane %v6727_v35, 2  ;;  %v6098_v55 = vmul.f32 %v20618_v57, %v16769_v33 }
 0x488   :  { %v6030_v18 = vadd.f32 %v5847_v7, %v5546_v20  ;;  %v6946_v13 = vrot.slane %v6728_v39, 2  ;;  %v7343_v28 = vmul.f32 %v20626_v41, %v16854_v32  ;;  %v7344_v34 = vmul.f32 %v20626_v41, %v16859_v46 }
 0x489   :  { %v7261_v9 = vadd.f32 %v7197_v19, %v7129_v17  ;;  %v7827_v56 = vmul.f32 %v16394_v4, %v16854_v32  ;;  %v16875_v30 = vmul.f32 %v16394_v4, %v16859_v46  ;;  %v8044_v15 = vsel %vm1178_vm5, %v8041_v21, %v8043_v59 }
 0x48a   :  { %v6162_v11 = vadd.f32 %v6098_v55, %v6030_v18  ;;  %v6463_v54 = vsel %vm693_vm4, %v6461_v24, %v6462_v31  ;;  %v7198_v29 = vmul.f32 %v20627_v45, %v16854_v32  ;;  %v6947_v19 = vsel %vm1178_vm5, %v6945_v22, %v6946_v13 }
 0x48b   :  { %v7745_v14 = vadd.f32 %v7560_v6, %v7261_v9  ;;  %v7561_v43 = vrot.slane %v7343_v28, 1  ;;  %v4999_v36 = vmul.f32 %v20630_v2, %v16701_v44  ;;  %v7562_v61 = vrot.slane %v7344_v34, 1 }
 0x48c   :  { %v6646_v27 = vadd.f32 %v6463_v54, %v6162_v11  ;;  %v5145_v26 = vmul.f32 %v20629_v47, %v16728_v10  ;;  %v5629_v21 = vmul.f32 %v20631_v5, %v16728_v10  ;;  %v8045_v42 = vrot.slane %v7827_v56, 2  ;;  %v16927_v56 = vld [vmem:[#allocation2 + $0x180] sm:$0xff] }
 0x48d   :  { %v8229_v40 = vadd.f32 %v8044_v15, %v7745_v14  ;;  %v8046_v52 = vrot.slane %v16875_v30, 2  ;;  %v6245_v59 = vmul.f32 %v20619_v0, %v16811_v62  ;;  %v6729_v3 = vmul.f32 %v20620_v53, %v16811_v62  ;;  %v16935_v14 = vld [vmem:[#allocation2 + $0x188] sm:$0xff] }
 0x48e   :  { %v7130_v63 = vadd.f32 %v6947_v19, %v6646_v27  ;;  %v5364_v51 = vrot.slane %v5145_v26, 1  ;;  %v5848_v44 = vrot.slane %v5629_v21, 2  ;;  %v6099_v58 = vmul.f32 %v20618_v57, %v16777_v60 }
 0x48f   :  { %11117 = vmatmul.mubr.msk.f32.gmra.mrb[32].mxu1 %vm38_vm1, %v8229_v40  ;;  %v6464_v25 = vrot.slane %v6245_v59, 1  ;;  %v7345_v10 = vmul.f32 %v20626_v41, %v16886_v38  ;;  %v7829_v23 = vmul.f32 %v16394_v4, %v16886_v38  ;;  %v7563_v49 = vsel %vm693_vm4, %v7561_v43, %v7562_v61 }
 0x490   :  { %v7262_v8 = vadd.f32 %v7198_v29, %v7130_v63  ;;  %v5365_v1 = vsel %vm693_vm4, %v5362_v12, %v5364_v51  ;;  %v6948_v16 = vrot.slane %v6729_v3, 2  ;;  %v8047_v48 = vsel %vm1178_vm5, %v8045_v42, %v8046_v52  ;;  %v16955_v3 = vld [vmem:[%s20167_s5 + $0x8] ss:$0 sm:$0xff] }
 0x491   :  { %v5547_v37 = vadd.f32 %v5365_v1, %v4999_v36  ;;  %v5849_v35 = vsel %vm1178_vm5, %v5846_v50, %v5848_v44  ;;  %v7199_v20 = vmul.f32 %v20627_v45, %v16859_v46  ;;  %v6465_v39 = vsel %vm693_vm4, %v6462_v31, %v6464_v25 }
 0x492   :  { %v7746_v24 = vadd.f32 %v7563_v49, %v7262_v8  ;;  %v7564_v17 = vrot.slane %v7345_v10, 1  ;;  %v5146_v4 = vmul.f32 %v20629_v47, %v16769_v33  ;;  %v6949_v7 = vsel %vm1178_vm5, %v6946_v13, %v6948_v16 }
 0x493   :  { %v6031_v6 = vadd.f32 %v5849_v35, %v5547_v37  ;;  %v8048_v12 = vrot.slane %v7829_v23, 2  ;;  %v5147_v22 = vmul.f32 %v20629_v47, %v16777_v60  ;;  %v5630_v50 = vmul.f32 %v20631_v5, %v16769_v33 }
 0x494   :  { %v8230_v18 = vadd.f32 %v8047_v48, %v7746_v24  ;;  %v5366_v55 = vrot.slane %v5146_v4, 1  ;;  %v16920_v28 = vmul.f32 %v20631_v5, %v16777_v60  ;;  %v5000_v9 = vmul.f32 %v20630_v2, %v16769_v33  ;;  %v16974_v4 = vld [vmem:[#allocation2 + $0x190] sm:$0x3] }
 0x495   :  { %v6163_v31 = vadd.f32 %v6099_v58, %v6031_v6  ;;  %v5367_v34 = vrot.slane %v5147_v22, 1  ;;  %v6246_v13 = vmul.f32 %v20619_v0, %v16854_v32  ;;  %v5850_v30 = vrot.slane %v5630_v50, 2 }
 0x496   :  { %11119 = vmatprep.mubr.msk.f32.mxu1 %vm38_vm1, %v8230_v18  ;;  %v5851_v15 = vrot.slane %v16920_v28, 2  ;;  %v6247_v11 = vmul.f32 %v20619_v0, %v16859_v46  ;;  %v6730_v54 = vmul.f32 %v20620_v53, %v16854_v32  ;;  %v7565_v33 = vsel %vm693_vm4, %v7562_v61, %v7564_v17 }
 0x497   :  { %v6647_v29 = vadd.f32 %v6465_v39, %v6163_v31  ;;  %v5368_v19 = vsel %vm693_vm4, %v5366_v55, %v5367_v34  ;;  %v16940_v43 = vmul.f32 %v20620_v53, %v16859_v46  ;;  %v6466_v26 = vrot.slane %v6246_v13, 1 }
 0x498   :  { %v5548_v36 = vadd.f32 %v5368_v19, %v5000_v9  ;;  %v5852_v27 = vsel %vm1178_vm5, %v5850_v30, %v5851_v15  ;;  %v6467_v21 = vrot.slane %v6247_v11, 1  ;;  %v6950_v42 = vrot.slane %v6730_v54, 2 }
 0x499   :  { %v7131_v40 = vadd.f32 %v6949_v7, %v6647_v29  ;;  %v6951_v59 = vrot.slane %v16940_v43, 2  ;;  %v7346_v61 = vmul.f32 %v20626_v41, %v16927_v56  ;;  %v6100_v51 = vmul.f32 %v20618_v57, %v16854_v32 }
 0x49a   :  { %v6032_v63 = vadd.f32 %v5852_v27, %v5548_v36  ;;  %v16950_v44 = vmul.f32 %v20626_v41, %v16935_v14  ;;  %v7830_v58 = vmul.f32 %v16955_v3, %v16927_v56  ;;  %v8049_v10 = vsel %vm1178_vm5, %v8046_v52, %v8048_v12 }
 0x49b   :  { %v7263_v25 = vadd.f32 %v7199_v20, %v7131_v40  ;;  %v7200_v23 = vmul.f32 %v20627_v45, %v16927_v56  ;;  %v16964_v8 = vmul.f32 %v16955_v3, %v16935_v14  ;;  %v6468_v1 = vsel %vm693_vm4, %v6466_v26, %v6467_v21 }
 0x49c   :  { %v6164_v49 = vadd.f32 %v6100_v51, %v6032_v63  ;;  %v7566_v16 = vrot.slane %v7346_v61, 1  ;;  %v7567_v48 = vrot.slane %v16950_v44, 1  ;;  %v6952_v35 = vsel %vm1178_vm5, %v6950_v42, %v6951_v59 }
 0x49d   :  { %v7747_v37 = vadd.f32 %v7565_v33, %v7263_v25  ;;  %v5148_v20 = vmul.f32 %v20629_v47, %v16811_v62  ;;  %v5632_v52 = vmul.f32 %v20631_v5, %v16811_v62  ;;  %v8050_v39 = vrot.slane %v7830_v58, 2 }
 0x49e   :  { %v6648_v24 = vadd.f32 %v6468_v1, %v6164_v49  ;;  %v8051_v17 = vrot.slane %v16964_v8, 2  ;;  %v6248_v6 = vmul.f32 %v20619_v0, %v16886_v38  ;;  %v5001_v12 = vmul.f32 %v20630_v2, %v16777_v60  ;;  %v4909_v1 = vld [vmem:[#allocation2 + $0x198] sm:$0xff] }
 0x49f   :  { %v8231_v7 = vadd.f32 %v8049_v10, %v7747_v37  ;;  %v5369_v22 = vrot.slane %v5148_v20, 1  ;;  %v5853_v18 = vrot.slane %v5632_v52, 2  ;;  %v7568_v50 = vsel %vm693_vm4, %v7566_v16, %v7567_v48 }
 0x4a0   :  { %v7132_v55 = vadd.f32 %v6952_v35, %v6648_v24  ;;  %v6469_v28 = vrot.slane %v6248_v6, 1  ;;  %v6732_v62 = vmul.f32 %v20620_v53, %v16886_v38  ;;  %v6101_v9 = vmul.f32 %v20618_v57, %v16859_v46 }
 0x4a1   :  { %11120 = vmatmul.mubr.msk.f32.gmra.mrb[34].mxu1 %vm38_vm1, %v8231_v7  ;;  %v5370_v31 = vsel %vm693_vm4, %v5367_v34, %v5369_v22  ;;  %v7348_v13 = vmul.f32 %v20626_v41, %v16974_v4  ;;  %v7832_v60 = vmul.f32 %v16955_v3, %v16974_v4  ;;  %v8052_v11 = vsel %vm1178_vm5, %v8050_v39, %v8051_v17 }
 0x4a2   :  { %v7264_v30 = vadd.f32 %v7200_v23, %v7132_v55  ;;  %v5549_v54 = vadd.f32 %v5370_v31, %v5001_v12  ;;  %v7201_v29 = vmul.f32 %v20627_v45, %v16935_v14  ;;  %v5854_v34 = vsel %vm1178_vm5, %v5851_v15, %v5853_v18 }
 0x4a3   :  { %v6470_v33 = vsel %vm693_vm4, %v6467_v21, %v6469_v28  ;;  %v6953_v19 = vrot.slane %v6732_v62, 2  ;;  %v5149_v43 = vmul.f32 %v20629_v47, %v16854_v32  ;;  %v7569_v26 = vrot.slane %v7348_v13, 1 }
 0x4a4   :  { %v7748_v36 = vadd.f32 %v7568_v50, %v7264_v30  ;;  %v6033_v27 = vadd.f32 %v5854_v34, %v5549_v54  ;;  %v17002_v40 = vmul.f32 %v20629_v47, %v16859_v46  ;;  %v8053_v42 = vrot.slane %v7832_v60, 2 }
 0x4a5   :  { %v5002_v61 = vmul.f32 %v20630_v2, %v16854_v32  ;;  %v5371_v63 = vrot.slane %v5149_v43, 1  ;;  %v5633_v15 = vmul.f32 %v20631_v5, %v16854_v32  ;;  %v17011_v58 = vmul.f32 %v20631_v5, %v16859_v46  ;;  %v4911_v43 = vld [vmem:[#allocation2 + $0x1a8] sm:$0x3] }
 0x4a6   :  { %v8232_v21 = vadd.f32 %v8052_v11, %v7748_v36  ;;  %v6165_v51 = vadd.f32 %v6101_v9, %v6033_v27  ;;  %v5372_v44 = vrot.slane %v17002_v40, 1  ;;  %v6954_v25 = vsel %vm1178_vm5, %v6951_v59, %v6953_v19  ;;  %v4910_v59 = vld [vmem:[#allocation2 + $0x1a0] sm:$0xff] }
 0x4a7   :  { %v5855_v10 = vrot.slane %v5633_v15, 2  ;;  %v6249_v23 = vmul.f32 %v20619_v0, %v16927_v56  ;;  %v17018_v49 = vmul.f32 %v20619_v0, %v16935_v14  ;;  %v5856_v37 = vrot.slane %v17011_v58, 2  ;;  %v4912_v58 = vld [vmem:[#allocation2 + $0x1b0] sm:$0xff] }
 0x4a8   :  { %11122 = vmatprep.mubr.msk.f32.mxu1 %vm38_vm1, %v8232_v21  ;;  %v6649_v32 = vadd.f32 %v6470_v33, %v6165_v51  ;;  %v5373_v16 = vsel %vm693_vm4, %v5371_v63, %v5372_v44  ;;  %v6733_v35 = vmul.f32 %v20620_v53, %v16927_v56  ;;  %v17028_v39 = vmul.f32 %v20620_v53, %v16935_v14 }
 0x4a9   :  { %v5550_v20 = vadd.f32 %v5373_v16, %v5002_v61  ;;  %v6471_v52 = vrot.slane %v6249_v23, 1  ;;  %v6472_v24 = vrot.slane %v17018_v49, 1  ;;  %v7570_v7 = vsel %vm693_vm4, %v7567_v48, %v7569_v26  ;;  %v17073_v49 = vld [vmem:[#allocation2 + $0x1b8] sm:$0xff] }
 0x4aa   :  { %v7133_v6 = vadd.f32 %v6954_v25, %v6649_v32  ;;  %v5857_v12 = vsel %vm1178_vm5, %v5855_v10, %v5856_v37  ;;  %v6102_v22 = vmul.f32 %v20618_v57, %v16927_v56  ;;  %v6955_v55 = vrot.slane %v6733_v35, 2 }
 0x4ab   :  { %v6034_v18 = vadd.f32 %v5857_v12, %v5550_v20  ;;  %v6956_v50 = vrot.slane %v17028_v39, 2  ;;  %v7349_v28 = vmul.f32 %v20626_v41, %v4909_v1  ;;  %v17037_v31 = vmul.f32 %v20626_v41, %v4910_v59 }
 0x4ac   :  { %v7265_v62 = vadd.f32 %v7201_v29, %v7133_v6  ;;  %v7833_v9 = vmul.f32 %v16955_v3, %v4909_v1  ;;  %v17041_v13 = vmul.f32 %v16955_v3, %v4910_v59  ;;  %v8054_v48 = vsel %vm1178_vm5, %v8051_v17, %v8053_v42  ;;  %v17078_v6 = vld [vmem:[#allocation2 + $0x1c8] sm:$0xff] }
 0x4ad   :  { %v6166_v56 = vadd.f32 %v6102_v22, %v6034_v18  ;;  %v6473_v60 = vsel %vm693_vm4, %v6471_v52, %v6472_v24  ;;  %v7202_v30 = vmul.f32 %v20627_v45, %v4909_v1  ;;  %v7571_v54 = vrot.slane %v7349_v28, 1  ;;  %v17081_v22 = vld [vmem:[#allocation2 + $0x1d0] sm:$0xff] }
 0x4ae   :  { %v7749_v11 = vadd.f32 %v7570_v7, %v7265_v62  ;;  %v7572_v29 = vrot.slane %v17037_v31, 1  ;;  %v8055_v34 = vrot.slane %v7833_v9, 2  ;;  %v8056_v19 = vrot.slane %v17041_v13, 2 }
 0x4af   :  { %v6650_v33 = vadd.f32 %v6473_v60, %v6166_v56  ;;  %v5151_v36 = vmul.f32 %v20629_v47, %v16886_v38  ;;  %v5635_v8 = vmul.f32 %v20631_v5, %v16886_v38  ;;  %v6957_v27 = vsel %vm1178_vm5, %v6955_v55, %v6956_v50  ;;  %v17093_v56 = vld [vmem:[#allocation2 + $0x1e0] sm:$0xff] }
 0x4b0   :  { %v8233_v17 = vadd.f32 %v8054_v48, %v7749_v11  ;;  %v5003_v26 = vmul.f32 %v20630_v2, %v16859_v46  ;;  %v6251_v40 = vmul.f32 %v20619_v0, %v16974_v4  ;;  %v6735_v15 = vmul.f32 %v20620_v53, %v16974_v4 }
 0x4b1   :  { %v7134_v42 = vadd.f32 %v6957_v27, %v6650_v33  ;;  %v5374_v61 = vrot.slane %v5151_v36, 1  ;;  %v5858_v63 = vrot.slane %v5635_v8, 2  ;;  %v7573_v38 = vsel %vm693_vm4, %v7571_v54, %v7572_v29  ;;  %v17099_v33 = vld [vmem:[#allocation2 + $0x1e8] sm:$0xff] }
 0x4b2   :  { %11123 = vmatmul.mubr.msk.f32.gmra.mrb[36].mxu1 %vm38_vm1, %v8233_v17  ;;  %v6474_v21 = vrot.slane %v6251_v40, 1  ;;  %v7351_v51 = vmul.f32 %v20626_v41, %v4911_v43  ;;  %v7835_v46 = vmul.f32 %v16955_v3, %v4911_v43  ;;  %v8057_v10 = vsel %vm1178_vm5, %v8055_v34, %v8056_v19 }
 0x4b3   :  { %v7266_v25 = vadd.f32 %v7202_v30, %v7134_v42  ;;  %v5375_v23 = vsel %vm693_vm4, %v5372_v44, %v5374_v61  ;;  %v6103_v4 = vmul.f32 %v20618_v57, %v16935_v14  ;;  %v5859_v1 = vsel %vm1178_vm5, %v5856_v37, %v5858_v63 }
 0x4b4   :  { %v5551_v32 = vadd.f32 %v5375_v23, %v5003_v26  ;;  %v6958_v16 = vrot.slane %v6735_v15, 2  ;;  %v7203_v35 = vmul.f32 %v20627_v45, %v4910_v59  ;;  %v6475_v52 = vsel %vm693_vm4, %v6472_v24, %v6474_v21 }
 0x4b5   :  { %v7750_v20 = vadd.f32 %v7573_v38, %v7266_v25  ;;  %v7574_v39 = vrot.slane %v7351_v51, 1  ;;  %v5152_v7 = vmul.f32 %v20629_v47, %v4912_v58  ;;  %v8058_v12 = vrot.slane %v7835_v46, 2  ;;  %v4914_v46 = vld [vmem:[#allocation2 + $0x1c0] sm:$0x3] }
 0x4b6   :  { %v6035_v44 = vadd.f32 %v5859_v1, %v5551_v32  ;;  %v5004_v14 = vmul.f32 %v20630_v2, %v4912_v58  ;;  %v5153_v37 = vmul.f32 %v20629_v47, %v17073_v49  ;;  %v5636_v59 = vmul.f32 %v20631_v5, %v4912_v58  ;;  %v17129_v58 = vld [vmem:[#allocation2 + $0x1d8] sm:$0x3] }
 0x4b7   :  { %v8234_v18 = vadd.f32 %v8057_v10, %v7750_v20  ;;  %v5376_v55 = vrot.slane %v5152_v7, 1  ;;  %v5637_v24 = vmul.f32 %v20631_v5, %v17073_v49  ;;  %v6959_v62 = vsel %vm1178_vm5, %v6956_v50, %v6958_v16 }
 0x4b8   :  { %v6167_v28 = vadd.f32 %v6103_v4, %v6035_v44  ;;  %v5377_v9 = vrot.slane %v5153_v37, 1  ;;  %v6252_v48 = vmul.f32 %v20619_v0, %v17078_v6  ;;  %v5860_v60 = vrot.slane %v5636_v59, 2 }
 0x4b9   :  { %11125 = vmatprep.mubr.msk.f32.mxu1 %vm38_vm1, %v8234_v18  ;;  %v5861_v30 = vrot.slane %v5637_v24, 2  ;;  %v6253_v11 = vmul.f32 %v20619_v0, %v17081_v22  ;;  %v6736_v54 = vmul.f32 %v20620_v53, %v17078_v6  ;;  %v17104_v36 = vmul.f32 %v20620_v53, %v17081_v22 }
 0x4ba   :  { %v6651_v34 = vadd.f32 %v6475_v52, %v6167_v28  ;;  %v5378_v50 = vsel %vm693_vm4, %v5376_v55, %v5377_v9  ;;  %v6476_v43 = vrot.slane %v6252_v48, 1  ;;  %v6104_v27 = vmul.f32 %v20618_v57, %v17078_v6 }
 0x4bb   :  { %v5552_v8 = vadd.f32 %v5378_v50, %v5004_v14  ;;  %v5862_v17 = vsel %vm1178_vm5, %v5860_v60, %v5861_v30  ;;  %v6477_v26 = vrot.slane %v6253_v11, 1  ;;  %v7575_v42 = vsel %vm693_vm4, %v7572_v29, %v7574_v39  ;;  %v17137_v39 = vld [vmem:[#allocation2 + $0x1f0] sm:$0x3] }
 0x4bc   :  { %v7135_v40 = vadd.f32 %v6959_v62, %v6651_v34  ;;  %v8059_v61 = vsel %vm1178_vm5, %v8056_v19, %v8058_v12  ;;  %v7352_v63 = vmul.f32 %v20626_v41, %v17093_v56  ;;  %v6960_v38 = vrot.slane %v6736_v54, 2 }
 0x4bd   :  { %v6036_v15 = vadd.f32 %v5862_v17, %v5552_v8  ;;  %v17119_v21 = vmul.f32 %v20626_v41, %v17099_v33  ;;  %v7836_v51 = vmul.f32 %v16955_v3, %v17093_v56  ;;  %v6478_v29 = vsel %vm693_vm4, %v6476_v43, %v6477_v26 }
 0x4be   :  { %v7267_v31 = vadd.f32 %v7203_v35, %v7135_v40  ;;  %v6961_v13 = vrot.slane %v17104_v36, 2  ;;  %v17127_v19 = vmul.f32 %v16955_v3, %v17099_v33  ;;  %v7204_v10 = vmul.f32 %v20627_v45, %v17093_v56 }
 0x4bf   :  { %v6168_v25 = vadd.f32 %v6104_v27, %v6036_v15  ;;  %v7576_v23 = vrot.slane %v7352_v63, 1  ;;  %v7577_v4 = vrot.slane %v17119_v21, 1  ;;  %v8060_v1 = vrot.slane %v7836_v51, 2 }
 0x4c0   :  { %v7751_v32 = vadd.f32 %v7575_v42, %v7267_v31  ;;  %v5154_v16 = vmul.f32 %v20629_v47, %v4914_v46  ;;  %v5638_v35 = vmul.f32 %v20631_v5, %v4914_v46  ;;  %v8061_v52 = vrot.slane %v17127_v19, 2 }
 0x4c1   :  { %v6652_v20 = vadd.f32 %v6478_v29, %v6168_v25  ;;  %v5005_v7 = vmul.f32 %v20630_v2, %v17073_v49  ;;  %v6254_v44 = vmul.f32 %v20619_v0, %v17129_v58  ;;  %v6962_v14 = vsel %vm1178_vm5, %v6960_v38, %v6961_v13 }
 0x4c2   :  { %v8235_v12 = vadd.f32 %v8059_v61, %v7751_v32  ;;  %v5379_v37 = vrot.slane %v5154_v16, 1  ;;  %v5863_v18 = vrot.slane %v5638_v35, 2  ;;  %v7578_v59 = vsel %vm693_vm4, %v7576_v23, %v7577_v4  ;;  %v17186_v16 = vld [vmem:[#allocation2 + $0x200] sm:$0xff] }
 0x4c3   :  { %v7136_v55 = vadd.f32 %v6962_v14, %v6652_v20  ;;  %v6479_v24 = vrot.slane %v6254_v44, 1  ;;  %v6738_v28 = vmul.f32 %v20620_v53, %v17129_v58  ;;  %v7354_v48 = vmul.f32 %v20626_v41, %v17137_v39 }
 0x4c4   :  { %11126 = vmatmul.mubr.msk.f32.gmra.mrb[38].mxu1 %vm38_vm1, %v8235_v12  ;;  %v5380_v62 = vsel %vm693_vm4, %v5377_v9, %v5379_v37  ;;  %v5864_v49 = vsel %vm1178_vm5, %v5861_v30, %v5863_v18  ;;  %v7838_v60 = vmul.f32 %v16955_v3, %v17137_v39  ;;  %v8062_v54 = vsel %vm1178_vm5, %v8060_v1, %v8061_v52 }
 0x4c5   :  { %v7268_v11 = vadd.f32 %v7204_v10, %v7136_v55  ;;  %v5553_v34 = vadd.f32 %v5380_v62, %v5005_v7  ;;  %v6105_v50 = vmul.f32 %v20618_v57, %v17081_v22  ;;  %v6480_v43 = vsel %vm693_vm4, %v6477_v26, %v6479_v24 }
 0x4c6   :  { %v6963_v9 = vrot.slane %v6738_v28, 2  ;;  %v7205_v30 = vmul.f32 %v20627_v45, %v17099_v33  ;;  %v5155_v36 = vmul.f32 %v20629_v47, %v17078_v6  ;;  %v7579_v27 = vrot.slane %v7354_v48, 1 }
 0x4c7   :  { %v7752_v8 = vadd.f32 %v7578_v59, %v7268_v11  ;;  %v6037_v17 = vadd.f32 %v5864_v49, %v5553_v34  ;;  %v17166_v40 = vmul.f32 %v20629_v47, %v17081_v22  ;;  %v8063_v42 = vrot.slane %v7838_v60, 2 }
 0x4c8   :  { %v5006_v61 = vmul.f32 %v20630_v2, %v17078_v6  ;;  %v5381_v63 = vrot.slane %v5155_v36, 1  ;;  %v5639_v26 = vmul.f32 %v20631_v5, %v17078_v6  ;;  %v5640_v51 = vmul.f32 %v20631_v5, %v17081_v22  ;;  %v17181_v6 = vld [vmem:[#allocation2 + $0x1f8] sm:$0xff] }
 0x4c9   :  { %v8236_v15 = vadd.f32 %v8062_v54, %v7752_v8  ;;  %v6169_v38 = vadd.f32 %v6105_v50, %v6037_v17  ;;  %v5382_v21 = vrot.slane %v17166_v40, 1  ;;  %v6964_v46 = vsel %vm1178_vm5, %v6961_v13, %v6963_v9  ;;  %v17213_v8 = vld [vmem:[#allocation2 + $0x208] sm:$0x3] }
 0x4ca   :  { %v5865_v31 = vrot.slane %v5639_v26, 2  ;;  %v6255_v29 = vmul.f32 %v20619_v0, %v17093_v56  ;;  %v6256_v25 = vmul.f32 %v20619_v0, %v17099_v33  ;;  %v5866_v32 = vrot.slane %v5640_v51, 2 }
 0x4cb   :  { %11128 = vmatprep.mubr.msk.f32.mxu1 %vm38_vm1, %v8236_v15  ;;  %v6653_v10 = vadd.f32 %v6480_v43, %v6169_v38  ;;  %v5383_v23 = vsel %vm693_vm4, %v5381_v63, %v5382_v21  ;;  %v6739_v1 = vmul.f32 %v20620_v53, %v17093_v56  ;;  %v6740_v7 = vmul.f32 %v20620_v53, %v17099_v33 }
 0x4cc   :  { %v5554_v13 = vadd.f32 %v5383_v23, %v5006_v61  ;;  %v6481_v35 = vrot.slane %v6255_v29, 1  ;;  %v6482_v20 = vrot.slane %v6256_v25, 1  ;;  %v7580_v12 = vsel %vm693_vm4, %v7577_v4, %v7579_v27 }
 0x4cd   :  { %v7137_v44 = vadd.f32 %v6964_v46, %v6653_v10  ;;  %v5867_v14 = vsel %vm1178_vm5, %v5865_v31, %v5866_v32  ;;  %v6965_v37 = vrot.slane %v6739_v1, 2  ;;  %v6106_v55 = vmul.f32 %v20618_v57, %v17093_v56 }
 0x4ce   :  { %v6038_v18 = vadd.f32 %v5867_v14, %v5554_v13  ;;  %v6966_v59 = vrot.slane %v6740_v7, 2  ;;  %v7355_v24 = vmul.f32 %v20626_v41, %v17181_v6  ;;  %v7356_v62 = vmul.f32 %v20626_v41, %v17186_v16 }
 0x4cf   :  { %v7269_v28 = vadd.f32 %v7205_v30, %v7137_v44  ;;  %v7839_v49 = vmul.f32 %v16955_v3, %v17181_v6  ;;  %v17202_v4 = vmul.f32 %v16955_v3, %v17186_v16  ;;  %v8064_v48 = vsel %vm1178_vm5, %v8061_v52, %v8063_v42 }
 0x4d0   :  { %v6170_v60 = vadd.f32 %v6106_v55, %v6038_v18  ;;  %v6483_v11 = vsel %vm693_vm4, %v6481_v35, %v6482_v20  ;;  %v7206_v54 = vmul.f32 %v20627_v45, %v17181_v6  ;;  %v6967_v50 = vsel %vm1178_vm5, %v6965_v37, %v6966_v59 }
 0x4d1   :  { %v7753_v34 = vadd.f32 %v7580_v12, %v7269_v28  ;;  %v7581_v43 = vrot.slane %v7355_v24, 1  ;;  %v5007_v9 = vmul.f32 %v20630_v2, %v17081_v22  ;;  %v7582_v36 = vrot.slane %v7356_v62, 1 }
 0x4d2   :  { %v6654_v30 = vadd.f32 %v6483_v11, %v6170_v60  ;;  %v5157_v19 = vmul.f32 %v20629_v47, %v17129_v58  ;;  %v5641_v52 = vmul.f32 %v20631_v5, %v17129_v58  ;;  %v8065_v27 = vrot.slane %v7839_v49, 2 }
 0x4d3   :  { %v8237_v17 = vadd.f32 %v8064_v48, %v7753_v34  ;;  %v8066_v40 = vrot.slane %v17202_v4, 2  ;;  %v6257_v42 = vmul.f32 %v20619_v0, %v17137_v39  ;;  %v6741_v26 = vmul.f32 %v20620_v53, %v17137_v39  ;;  %v17254_v4 = vld [vmem:[#allocation2 + $0x210] sm:$0xff] }
 0x4d4   :  { %v7138_v61 = vadd.f32 %v6967_v50, %v6654_v30  ;;  %v5384_v63 = vrot.slane %v5157_v19, 1  ;;  %v5868_v22 = vrot.slane %v5641_v52, 2  ;;  %v6107_v15 = vmul.f32 %v20618_v57, %v17099_v33  ;;  %v17262_v50 = vld [vmem:[#allocation2 + $0x218] sm:$0xff] }
 0x4d5   :  { %11129 = vmatmul.mubr.msk.f32.gmra.mrb[40].mxu1 %vm38_vm1, %v8237_v17  ;;  %v6484_v38 = vrot.slane %v6257_v42, 1  ;;  %v7357_v58 = vmul.f32 %v20626_v41, %v17213_v8  ;;  %v7841_v51 = vmul.f32 %v16955_v3, %v17213_v8  ;;  %v7583_v31 = vsel %vm693_vm4, %v7581_v43, %v7582_v36 }
 0x4d6   :  { %v7270_v46 = vadd.f32 %v7206_v54, %v7138_v61  ;;  %v5385_v29 = vsel %vm693_vm4, %v5382_v21, %v5384_v63  ;;  %v6968_v25 = vrot.slane %v6741_v26, 2  ;;  %v8067_v10 = vsel %vm1178_vm5, %v8065_v27, %v8066_v40 }
 0x4d7   :  { %v5555_v23 = vadd.f32 %v5385_v29, %v5007_v9  ;;  %v5869_v1 = vsel %vm1178_vm5, %v5866_v32, %v5868_v22  ;;  %v7207_v13 = vmul.f32 %v20627_v45, %v17186_v16  ;;  %v6485_v7 = vsel %vm693_vm4, %v6482_v20, %v6484_v38 }
 0x4d8   :  { %v7754_v35 = vadd.f32 %v7583_v31, %v7270_v46  ;;  %v7584_v44 = vrot.slane %v7357_v58, 1  ;;  %v5158_v12 = vmul.f32 %v20629_v47, %v17093_v56  ;;  %v6969_v37 = vsel %vm1178_vm5, %v6966_v59, %v6968_v25 }
 0x4d9   :  { %v6039_v14 = vadd.f32 %v5869_v1, %v5555_v23  ;;  %v8068_v21 = vrot.slane %v7841_v51, 2  ;;  %v5159_v18 = vmul.f32 %v20629_v47, %v17099_v33  ;;  %v5642_v32 = vmul.f32 %v20631_v5, %v17093_v56 }
 0x4da   :  { %v8238_v55 = vadd.f32 %v8067_v10, %v7754_v35  ;;  %v5386_v24 = vrot.slane %v5158_v12, 1  ;;  %v17247_v28 = vmul.f32 %v20631_v5, %v17099_v33  ;;  %v5008_v62 = vmul.f32 %v20630_v2, %v17093_v56  ;;  %v17296_v12 = vld [vmem:[#allocation2 + $0x220] sm:$0x3] }
 0x4db   :  { %v6171_v20 = vadd.f32 %v6107_v15, %v6039_v14  ;;  %v5387_v49 = vrot.slane %v5159_v18, 1  ;;  %v6258_v59 = vmul.f32 %v20619_v0, %v17181_v6  ;;  %v5870_v48 = vrot.slane %v5642_v32, 2 }
 0x4dc   :  { %11131 = vmatprep.mubr.msk.f32.mxu1 %vm38_vm1, %v8238_v55  ;;  %v5871_v60 = vrot.slane %v17247_v28, 2  ;;  %v6259_v11 = vmul.f32 %v20619_v0, %v17186_v16  ;;  %v6742_v54 = vmul.f32 %v20620_v53, %v17181_v6  ;;  %v7585_v56 = vsel %vm693_vm4, %v7582_v36, %v7584_v44 }
 0x4dd   :  { %v6655_v34 = vadd.f32 %v6485_v7, %v6171_v20  ;;  %v5388_v43 = vsel %vm693_vm4, %v5386_v24, %v5387_v49  ;;  %v17267_v9 = vmul.f32 %v20620_v53, %v17186_v16  ;;  %v6486_v52 = vrot.slane %v6258_v59, 1 }
 0x4de   :  { %v5556_v30 = vadd.f32 %v5388_v43, %v5008_v62  ;;  %v5872_v19 = vsel %vm1178_vm5, %v5870_v48, %v5871_v60  ;;  %v6487_v17 = vrot.slane %v6259_v11, 1  ;;  %v6970_v42 = vrot.slane %v6742_v54, 2 }
 0x4df   :  { %v7139_v27 = vadd.f32 %v6969_v37, %v6655_v34  ;;  %v6971_v61 = vrot.slane %v17267_v9, 2  ;;  %v7358_v36 = vmul.f32 %v20626_v41, %v17254_v4  ;;  %v6108_v22 = vmul.f32 %v20618_v57, %v17181_v6 }
 0x4e0   :  { %v6040_v63 = vadd.f32 %v5872_v19, %v5556_v30  ;;  %v17277_v26 = vmul.f32 %v20626_v41, %v17262_v50  ;;  %v7842_v15 = vmul.f32 %v16955_v3, %v17254_v4  ;;  %v8069_v58 = vsel %vm1178_vm5, %v8066_v40, %v8068_v21 }
 0x4e1   :  { %v7271_v38 = vadd.f32 %v7207_v13, %v7139_v27  ;;  %v7208_v51 = vmul.f32 %v20627_v45, %v17254_v4  ;;  %v17286_v46 = vmul.f32 %v16955_v3, %v17262_v50  ;;  %v6488_v29 = vsel %vm693_vm4, %v6486_v52, %v6487_v17 }
 0x4e2   :  { %v6172_v31 = vadd.f32 %v6108_v22, %v6040_v63  ;;  %v7586_v25 = vrot.slane %v7358_v36, 1  ;;  %v7587_v10 = vrot.slane %v17277_v26, 1  ;;  %v6972_v1 = vsel %vm1178_vm5, %v6970_v42, %v6971_v61 }
 0x4e3   :  { %v7755_v23 = vadd.f32 %v7585_v56, %v7271_v38  ;;  %v5160_v13 = vmul.f32 %v20629_v47, %v17137_v39  ;;  %v5644_v40 = vmul.f32 %v20631_v5, %v17137_v39  ;;  %v8070_v7 = vrot.slane %v7842_v15, 2 }
 0x4e4   :  { %v6656_v35 = vadd.f32 %v6488_v29, %v6172_v31  ;;  %v8071_v44 = vrot.slane %v17286_v46, 2  ;;  %v6260_v14 = vmul.f32 %v20619_v0, %v17213_v8  ;;  %v5009_v21 = vmul.f32 %v20630_v2, %v17099_v33 }
 0x4e5   :  { %v8239_v37 = vadd.f32 %v8069_v58, %v7755_v23  ;;  %v5389_v18 = vrot.slane %v5160_v13, 1  ;;  %v5873_v55 = vrot.slane %v5644_v40, 2  ;;  %v7588_v32 = vsel %vm693_vm4, %v7586_v25, %v7587_v10  ;;  %v17344_v13 = vld [vmem:[#allocation2 + $0x230] sm:$0xff] }
 0x4e6   :  { %v7140_v24 = vadd.f32 %v6972_v1, %v6656_v35  ;;  %v6489_v28 = vrot.slane %v6260_v14, 1  ;;  %v6744_v39 = vmul.f32 %v20620_v53, %v17213_v8  ;;  %v6109_v62 = vmul.f32 %v20618_v57, %v17186_v16 }
 0x4e7   :  { %11132 = vmatmul.mubr.msk.f32.gmra.mrb[42].mxu1 %vm38_vm1, %v8239_v37  ;;  %v5390_v20 = vsel %vm693_vm4, %v5387_v49, %v5389_v18  ;;  %v7360_v59 = vmul.f32 %v20626_v41, %v17296_v12  ;;  %v7844_v33 = vmul.f32 %v16955_v3, %v17296_v12  ;;  %v8072_v11 = vsel %vm1178_vm5, %v8070_v7, %v8071_v44 }
 0x4e8   :  { %v7272_v48 = vadd.f32 %v7208_v51, %v7140_v24  ;;  %v5557_v54 = vadd.f32 %v5390_v20, %v5009_v21  ;;  %v7209_v34 = vmul.f32 %v20627_v45, %v17262_v50  ;;  %v5874_v49 = vsel %vm1178_vm5, %v5871_v60, %v5873_v55 }
 0x4e9   :  { %v6490_v56 = vsel %vm693_vm4, %v6487_v17, %v6489_v28  ;;  %v6973_v43 = vrot.slane %v6744_v39, 2  ;;  %v5161_v9 = vmul.f32 %v20629_v47, %v17181_v6  ;;  %v7589_v52 = vrot.slane %v7360_v59, 1 }
 0x4ea   :  { %v7756_v30 = vadd.f32 %v7588_v32, %v7272_v48  ;;  %v6041_v19 = vadd.f32 %v5874_v49, %v5557_v54  ;;  %v17324_v27 = vmul.f32 %v20629_v47, %v17186_v16  ;;  %v8073_v42 = vrot.slane %v7844_v33, 2 }
 0x4eb   :  { %v5010_v36 = vmul.f32 %v20630_v2, %v17181_v6  ;;  %v5391_v63 = vrot.slane %v5161_v9, 1  ;;  %v5645_v60 = vmul.f32 %v20631_v5, %v17181_v6  ;;  %v5646_v15 = vmul.f32 %v20631_v5, %v17186_v16  ;;  %v17339_v6 = vld [vmem:[#allocation2 + $0x228] sm:$0xff] }
 0x4ec   :  { %v8240_v17 = vadd.f32 %v8072_v11, %v7756_v30  ;;  %v6173_v22 = vadd.f32 %v6109_v62, %v6041_v19  ;;  %v5392_v26 = vrot.slane %v17324_v27, 1  ;;  %v6974_v38 = vsel %vm1178_vm5, %v6971_v61, %v6973_v43  ;;  %v17371_v30 = vld [vmem:[#allocation2 + $0x238] sm:$0x3] }
 0x4ed   :  { %v5875_v58 = vrot.slane %v5645_v60, 2  ;;  %v6261_v51 = vmul.f32 %v20619_v0, %v17254_v4  ;;  %v6262_v31 = vmul.f32 %v20619_v0, %v17262_v50  ;;  %v5876_v23 = vrot.slane %v5646_v15, 2 }
 0x4ee   :  { %11134 = vmatprep.mubr.msk.f32.mxu1 %vm38_vm1, %v8240_v17  ;;  %v6657_v29 = vadd.f32 %v6490_v56, %v6173_v22  ;;  %v5393_v25 = vsel %vm693_vm4, %v5391_v63, %v5392_v26  ;;  %v6745_v1 = vmul.f32 %v20620_v53, %v17254_v4  ;;  %v6746_v7 = vmul.f32 %v20620_v53, %v17262_v50 }
 0x4ef   :  { %v5558_v61 = vadd.f32 %v5393_v25, %v5010_v36  ;;  %v6491_v40 = vrot.slane %v6261_v51, 1  ;;  %v6492_v35 = vrot.slane %v6262_v31, 1  ;;  %v7590_v37 = vsel %vm693_vm4, %v7587_v10, %v7589_v52 }
 0x4f0   :  { %v7141_v14 = vadd.f32 %v6974_v38, %v6657_v29  ;;  %v5877_v21 = vsel %vm1178_vm5, %v5875_v58, %v5876_v23  ;;  %v6975_v18 = vrot.slane %v6745_v1, 2  ;;  %v6110_v24 = vmul.f32 %v20618_v57, %v17254_v4 }
 0x4f1   :  { %v6042_v55 = vadd.f32 %v5877_v21, %v5558_v61  ;;  %v6976_v32 = vrot.slane %v6746_v7, 2  ;;  %v7361_v28 = vmul.f32 %v20626_v41, %v17339_v6  ;;  %v7362_v20 = vmul.f32 %v20626_v41, %v17344_v13 }
 0x4f2   :  { %v7273_v39 = vadd.f32 %v7209_v34, %v7141_v14  ;;  %v7845_v62 = vmul.f32 %v16955_v3, %v17339_v6  ;;  %v17360_v10 = vmul.f32 %v16955_v3, %v17344_v13  ;;  %v8074_v59 = vsel %vm1178_vm5, %v8071_v44, %v8073_v42 }
 0x4f3   :  { %v6174_v33 = vadd.f32 %v6110_v24, %v6042_v55  ;;  %v6493_v48 = vsel %vm693_vm4, %v6491_v40, %v6492_v35  ;;  %v7210_v11 = vmul.f32 %v20627_v45, %v17339_v6  ;;  %v6977_v34 = vsel %vm1178_vm5, %v6975_v18, %v6976_v32 }
 0x4f4   :  { %v7757_v54 = vadd.f32 %v7590_v37, %v7273_v39  ;;  %v7591_v49 = vrot.slane %v7361_v28, 1  ;;  %v5011_v56 = vmul.f32 %v20630_v2, %v17186_v16  ;;  %v7592_v9 = vrot.slane %v7362_v20, 1 }
 0x4f5   :  { %v6658_v43 = vadd.f32 %v6493_v48, %v6174_v33  ;;  %v5163_v46 = vmul.f32 %v20629_v47, %v17213_v8  ;;  %v5647_v44 = vmul.f32 %v20631_v5, %v17213_v8  ;;  %v8075_v52 = vrot.slane %v7845_v62, 2 }
 0x4f6   :  { %v8241_v19 = vadd.f32 %v8074_v59, %v7757_v54  ;;  %v8076_v27 = vrot.slane %v17360_v10, 2  ;;  %v6263_v42 = vmul.f32 %v20619_v0, %v17296_v12  ;;  %v6747_v60 = vmul.f32 %v20620_v53, %v17296_v12  ;;  %v17412_v10 = vld [vmem:[#allocation2 + $0x240] sm:$0xff] }
 0x4f7   :  { %v7142_v36 = vadd.f32 %v6977_v34, %v6658_v43  ;;  %v5394_v63 = vrot.slane %v5163_v46, 1  ;;  %v5878_v16 = vrot.slane %v5647_v44, 2  ;;  %v6111_v17 = vmul.f32 %v20618_v57, %v17262_v50  ;;  %v17420_v34 = vld [vmem:[#allocation2 + $0x248] sm:$0xff] }
 0x4f8   :  { %11135 = vmatmul.mubr.msk.f32.gmra.mrb[44].mxu1 %vm38_vm1, %v8241_v19  ;;  %v6494_v22 = vrot.slane %v6263_v42, 1  ;;  %v7363_v8 = vmul.f32 %v20626_v41, %v17371_v30  ;;  %v7847_v15 = vmul.f32 %v16955_v3, %v17371_v30  ;;  %v7593_v58 = vsel %vm693_vm4, %v7591_v49, %v7592_v9 }
 0x4f9   :  { %v7274_v38 = vadd.f32 %v7210_v11, %v7142_v36  ;;  %v5395_v51 = vsel %vm693_vm4, %v5392_v26, %v5394_v63  ;;  %v6978_v31 = vrot.slane %v6747_v60, 2  ;;  %v8077_v29 = vsel %vm1178_vm5, %v8075_v52, %v8076_v27 }
 0x4fa   :  { %v5559_v25 = vadd.f32 %v5395_v51, %v5011_v56  ;;  %v5879_v1 = vsel %vm1178_vm5, %v5876_v23, %v5878_v16  ;;  %v7211_v61 = vmul.f32 %v20627_v45, %v17344_v13  ;;  %v6495_v7 = vsel %vm693_vm4, %v6492_v35, %v6494_v22 }
 0x4fb   :  { %v7758_v40 = vadd.f32 %v7593_v58, %v7274_v38  ;;  %v7594_v14 = vrot.slane %v7363_v8, 1  ;;  %v5164_v37 = vmul.f32 %v20629_v47, %v17254_v4  ;;  %v6979_v18 = vsel %vm1178_vm5, %v6976_v32, %v6978_v31 }
 0x4fc   :  { %v6043_v21 = vadd.f32 %v5879_v1, %v5559_v25  ;;  %v8078_v26 = vrot.slane %v7847_v15, 2  ;;  %v5165_v55 = vmul.f32 %v20629_v47, %v17262_v50  ;;  %v5648_v23 = vmul.f32 %v20631_v5, %v17254_v4 }
 0x4fd   :  { %v8242_v24 = vadd.f32 %v8077_v29, %v7758_v40  ;;  %v5396_v28 = vrot.slane %v5164_v37, 1  ;;  %v17405_v39 = vmul.f32 %v20631_v5, %v17262_v50  ;;  %v5012_v20 = vmul.f32 %v20630_v2, %v17254_v4  ;;  %v17454_v37 = vld [vmem:[#allocation2 + $0x250] sm:$0x3] }
 0x4fe   :  { %v6175_v35 = vadd.f32 %v6111_v17, %v6043_v21  ;;  %v5397_v62 = vrot.slane %v5165_v55, 1  ;;  %v6264_v32 = vmul.f32 %v20619_v0, %v17339_v6  ;;  %v5880_v59 = vrot.slane %v5648_v23, 2 }
 0x4ff   :  { %11137 = vmatprep.mubr.msk.f32.mxu1 %vm38_vm1, %v8242_v24  ;;  %v5881_v33 = vrot.slane %v17405_v39, 2  ;;  %v6265_v48 = vmul.f32 %v20619_v0, %v17344_v13  ;;  %v6748_v11 = vmul.f32 %v20620_v53, %v17339_v6  ;;  %v7595_v4 = vsel %vm693_vm4, %v7592_v9, %v7594_v14 }
 0x500   :  { %v6659_v54 = vadd.f32 %v6495_v7, %v6175_v35  ;;  %v5398_v49 = vsel %vm693_vm4, %v5396_v28, %v5397_v62  ;;  %v17425_v56 = vmul.f32 %v20620_v53, %v17344_v13  ;;  %v6496_v44 = vrot.slane %v6264_v32, 1 }
 0x501   :  { %v5560_v43 = vadd.f32 %v5398_v49, %v5012_v20  ;;  %v5882_v46 = vsel %vm1178_vm5, %v5880_v59, %v5881_v33  ;;  %v6497_v19 = vrot.slane %v6265_v48, 1  ;;  %v6980_v42 = vrot.slane %v6748_v11, 2 }
 0x502   :  { %v7143_v52 = vadd.f32 %v6979_v18, %v6659_v54  ;;  %v6981_v36 = vrot.slane %v17425_v56, 2  ;;  %v7364_v9 = vmul.f32 %v20626_v41, %v17412_v10  ;;  %v6112_v16 = vmul.f32 %v20618_v57, %v17339_v6 }
 0x503   :  { %v6044_v63 = vadd.f32 %v5882_v46, %v5560_v43  ;;  %v17435_v60 = vmul.f32 %v20626_v41, %v17420_v34  ;;  %v7848_v17 = vmul.f32 %v16955_v3, %v17412_v10  ;;  %v8079_v8 = vsel %vm1178_vm5, %v8076_v27, %v8078_v26 }
 0x504   :  { %v7275_v22 = vadd.f32 %v7211_v61, %v7143_v52  ;;  %v7212_v15 = vmul.f32 %v20627_v45, %v17412_v10  ;;  %v17444_v38 = vmul.f32 %v16955_v3, %v17420_v34  ;;  %v6498_v51 = vsel %vm693_vm4, %v6496_v44, %v6497_v19 }
 0x505   :  { %v6176_v58 = vadd.f32 %v6112_v16, %v6044_v63  ;;  %v7596_v31 = vrot.slane %v7364_v9, 1  ;;  %v7597_v29 = vrot.slane %v17435_v60, 1  ;;  %v6982_v1 = vsel %vm1178_vm5, %v6980_v42, %v6981_v36 }
 0x506   :  { %v7759_v25 = vadd.f32 %v7595_v4, %v7275_v22  ;;  %v5166_v61 = vmul.f32 %v20629_v47, %v17296_v12  ;;  %v5650_v27 = vmul.f32 %v20631_v5, %v17296_v12  ;;  %v8080_v7 = vrot.slane %v7848_v17, 2 }
 0x507   :  { %v6660_v40 = vadd.f32 %v6498_v51, %v6176_v58  ;;  %v8081_v14 = vrot.slane %v17444_v38, 2  ;;  %v6266_v21 = vmul.f32 %v20619_v0, %v17371_v30  ;;  %v5013_v26 = vmul.f32 %v20630_v2, %v17262_v50  ;;  %v17499_v58 = vld [vmem:[#allocation2 + $0x258] sm:$0xff] }
 0x508   :  { %v8243_v18 = vadd.f32 %v8079_v8, %v7759_v25  ;;  %v5399_v55 = vrot.slane %v5166_v61, 1  ;;  %v5883_v24 = vrot.slane %v5650_v27, 2  ;;  %v7598_v23 = vsel %vm693_vm4, %v7596_v31, %v7597_v29 }
 0x509   :  { %v7144_v28 = vadd.f32 %v6982_v1, %v6660_v40  ;;  %v6499_v39 = vrot.slane %v6266_v21, 1  ;;  %v6750_v12 = vmul.f32 %v20620_v53, %v17371_v30  ;;  %v6113_v20 = vmul.f32 %v20618_v57, %v17344_v13 }
 0x50a   :  { %11138 = vmatmul.mubr.msk.f32.gmra.mrb[46].mxu1 %vm38_vm1, %v8243_v18  ;;  %v5400_v35 = vsel %vm693_vm4, %v5397_v62, %v5399_v55  ;;  %v7366_v32 = vmul.f32 %v20626_v41, %v17454_v37  ;;  %v7850_v50 = vmul.f32 %v16955_v3, %v17454_v37  ;;  %v8082_v48 = vsel %vm1178_vm5, %v8080_v7, %v8081_v14 }
 0x50b   :  { %v7276_v59 = vadd.f32 %v7212_v15, %v7144_v28  ;;  %v5561_v11 = vadd.f32 %v5400_v35, %v5013_v26  ;;  %v7213_v54 = vmul.f32 %v20627_v45, %v17420_v34  ;;  %v5884_v62 = vsel %vm1178_vm5, %v5881_v33, %v5883_v24 }
 0x50c   :  { %v6500_v4 = vsel %vm693_vm4, %v6497_v19, %v6499_v39  ;;  %v6983_v49 = vrot.slane %v6750_v12, 2  ;;  %v5167_v56 = vmul.f32 %v20629_v47, %v17339_v6  ;;  %v7599_v3 = vrot.slane %v7366_v32, 1 }
 0x50d   :  { %v7760_v43 = vadd.f32 %v7598_v23, %v7276_v59  ;;  %v6045_v46 = vadd.f32 %v5884_v62, %v5561_v11  ;;  %v17482_v44 = vmul.f32 %v20629_v47, %v17344_v13  ;;  %v8083_v52 = vrot.slane %v7850_v50, 2 }
 0x50e   :  { %v5014_v42 = vmul.f32 %v20630_v2, %v17339_v6  ;;  %v5401_v9 = vrot.slane %v5167_v56, 1  ;;  %v5651_v33 = vmul.f32 %v20631_v5, %v17339_v6  ;;  %v17491_v60 = vmul.f32 %v20631_v5, %v17344_v13 }
 0x50f   :  { %v8244_v19 = vadd.f32 %v8082_v48, %v7760_v43  ;;  %v6177_v63 = vadd.f32 %v6113_v20, %v6045_v46  ;;  %v5402_v16 = vrot.slane %v17482_v44, 1  ;;  %v6984_v17 = vsel %vm1178_vm5, %v6981_v36, %v6983_v49  ;;  %v17505_v36 = vld [vmem:[#allocation2 + $0x260] sm:$0xff]  ;;  %v17540_v43 = vld [vmem:[#allocation2 + $0x268] sm:$0x3] }
 0x510   :  { %v5885_v22 = vrot.slane %v5651_v33, 2  ;;  %v6267_v8 = vmul.f32 %v20619_v0, %v17412_v10  ;;  %v6268_v15 = vmul.f32 %v20619_v0, %v17420_v34  ;;  %v5886_v31 = vrot.slane %v17491_v60, 2 }
 0x511   :  { %11140 = vmatprep.mubr.msk.f32.mxu1 %vm38_vm1, %v8244_v19  ;;  %v6661_v6 = vadd.f32 %v6500_v4, %v6177_v63  ;;  %v5403_v51 = vsel %vm693_vm4, %v5401_v9, %v5402_v16  ;;  %v6751_v25 = vmul.f32 %v20620_v53, %v17412_v10  ;;  %v6752_v40 = vmul.f32 %v20620_v53, %v17420_v34 }
 0x512   :  { %v5562_v1 = vadd.f32 %v5403_v51, %v5014_v42  ;;  %v6501_v61 = vrot.slane %v6267_v8, 1  ;;  %v6502_v27 = vrot.slane %v6268_v15, 1  ;;  %v7600_v21 = vsel %vm693_vm4, %v7597_v29, %v7599_v3  ;;  %v17522_v29 = vld [vmem:[%s20167_s5 + $0x8] ss:$0 sm:$0xff] }
 0x513   :  { %v7145_v7 = vadd.f32 %v6984_v17, %v6661_v6  ;;  %v5887_v18 = vsel %vm1178_vm5, %v5885_v22, %v5886_v31  ;;  %v6985_v26 = vrot.slane %v6751_v25, 2  ;;  %v6114_v24 = vmul.f32 %v20618_v57, %v17412_v10 }
 0x514   :  { %v6046_v55 = vadd.f32 %v5887_v18, %v5562_v1  ;;  %v6986_v28 = vrot.slane %v6752_v40, 2  ;;  %v7367_v23 = vmul.f32 %v20626_v41, %v17499_v58  ;;  %v17517_v12 = vmul.f32 %v20626_v41, %v17505_v36 }
 0x515   :  { %v7277_v39 = vadd.f32 %v7213_v54, %v7145_v7  ;;  %v7851_v35 = vmul.f32 %v17522_v29, %v17499_v58  ;;  %v17528_v20 = vmul.f32 %v17522_v29, %v17505_v36  ;;  %v8084_v32 = vsel %vm1178_vm5, %v8081_v14, %v8083_v52 }
 0x516   :  { %v6178_v50 = vadd.f32 %v6114_v24, %v6046_v55  ;;  %v6503_v59 = vsel %vm693_vm4, %v6501_v61, %v6502_v27  ;;  %v7214_v48 = vmul.f32 %v20627_v45, %v17499_v58  ;;  %v6987_v54 = vsel %vm1178_vm5, %v6985_v26, %v6986_v28 }
 0x517   :  { %v7761_v11 = vadd.f32 %v7600_v21, %v7277_v39  ;;  %v7601_v62 = vrot.slane %v7367_v23, 1  ;;  %v5015_v4 = vmul.f32 %v20630_v2, %v17344_v13  ;;  %v7602_v56 = vrot.slane %v17517_v12, 1 }
 0x518   :  { %v6662_v49 = vadd.f32 %v6503_v59, %v6178_v50  ;;  %v5169_v38 = vmul.f32 %v20629_v47, %v17371_v30  ;;  %v5653_v14 = vmul.f32 %v20631_v5, %v17371_v30  ;;  %v8085_v3 = vrot.slane %v7851_v35, 2 }
 0x519   :  { %v8245_v46 = vadd.f32 %v8084_v32, %v7761_v11  ;;  %v8086_v44 = vrot.slane %v17528_v20, 2  ;;  %v6269_v52 = vmul.f32 %v20619_v0, %v17454_v37  ;;  %v6753_v33 = vmul.f32 %v20620_v53, %v17454_v37  ;;  %v17581_v20 = vld [vmem:[#allocation2 + $0x270] sm:$0xff] }
 0x51a   :  { %v7146_v42 = vadd.f32 %v6987_v54, %v6662_v49  ;;  %v5404_v13 = vrot.slane %v5169_v38, 1  ;;  %v5888_v9 = vrot.slane %v5653_v14, 2  ;;  %v6115_v19 = vmul.f32 %v20618_v57, %v17420_v34  ;;  %v17589_v54 = vld [vmem:[#allocation2 + $0x278] sm:$0xff] }
 0x51b   :  { %11141 = vmatmul.mubr.msk.f32.gmra.mrb[48].mxu1 %vm38_vm1, %v8245_v46  ;;  %v6504_v63 = vrot.slane %v6269_v52, 1  ;;  %v7369_v30 = vmul.f32 %v20626_v41, %v17540_v43  ;;  %v7853_v60 = vmul.f32 %v17522_v29, %v17540_v43  ;;  %v7603_v22 = vsel %vm693_vm4, %v7601_v62, %v7602_v56 }
 0x51c   :  { %v7278_v17 = vadd.f32 %v7214_v48, %v7146_v42  ;;  %v5405_v8 = vsel %vm693_vm4, %v5402_v16, %v5404_v13  ;;  %v6988_v15 = vrot.slane %v6753_v33, 2  ;;  %v8087_v6 = vsel %vm1178_vm5, %v8085_v3, %v8086_v44 }
 0x51d   :  { %v5563_v51 = vadd.f32 %v5405_v8, %v5015_v4  ;;  %v5889_v25 = vsel %vm1178_vm5, %v5886_v31, %v5888_v9  ;;  %v7215_v1 = vmul.f32 %v20627_v45, %v17505_v36  ;;  %v6505_v40 = vsel %vm693_vm4, %v6502_v27, %v6504_v63 }
 0x51e   :  { %v7762_v61 = vadd.f32 %v7603_v22, %v7278_v17  ;;  %v7604_v7 = vrot.slane %v7369_v30, 1  ;;  %v5170_v21 = vmul.f32 %v20629_v47, %v17412_v10  ;;  %v6989_v26 = vsel %vm1178_vm5, %v6986_v28, %v6988_v15 }
 0x51f   :  { %v6047_v18 = vadd.f32 %v5889_v25, %v5563_v51  ;;  %v8088_v16 = vrot.slane %v7853_v60, 2  ;;  %v5171_v55 = vmul.f32 %v20629_v47, %v17420_v34  ;;  %v5654_v31 = vmul.f32 %v20631_v5, %v17412_v10 }
 0x520   :  { %v8246_v24 = vadd.f32 %v8087_v6, %v7762_v61  ;;  %v5406_v23 = vrot.slane %v5170_v21, 1  ;;  %v17574_v39 = vmul.f32 %v20631_v5, %v17420_v34  ;;  %v5016_v12 = vmul.f32 %v20630_v2, %v17412_v10  ;;  %v17623_v21 = vld [vmem:[#allocation2 + $0x280] sm:$0x3] }
 0x521   :  { %v6179_v27 = vadd.f32 %v6115_v19, %v6047_v18  ;;  %v5407_v35 = vrot.slane %v5171_v55, 1  ;;  %v6270_v28 = vmul.f32 %v20619_v0, %v17499_v58  ;;  %v5890_v32 = vrot.slane %v5654_v31, 2 }
 0x522   :  { %11143 = vmatprep.mubr.msk.f32.mxu1 %vm38_vm1, %v8246_v24  ;;  %v5891_v50 = vrot.slane %v17574_v39, 2  ;;  %v6271_v59 = vmul.f32 %v20619_v0, %v17505_v36  ;;  %v6754_v48 = vmul.f32 %v20620_v53, %v17499_v58  ;;  %v7605_v10 = vsel %vm693_vm4, %v7602_v56, %v7604_v7 }
 0x523   :  { %v6663_v11 = vadd.f32 %v6505_v40, %v6179_v27  ;;  %v5408_v62 = vsel %vm693_vm4, %v5406_v23, %v5407_v35  ;;  %v17594_v4 = vmul.f32 %v20620_v53, %v17505_v36  ;;  %v6506_v14 = vrot.slane %v6270_v28, 1 }
 0x524   :  { %v5564_v49 = vadd.f32 %v5408_v62, %v5016_v12  ;;  %v5892_v38 = vsel %vm1178_vm5, %v5890_v32, %v5891_v50  ;;  %v6507_v46 = vrot.slane %v6271_v59, 1  ;;  %v6990_v52 = vrot.slane %v6754_v48, 2 }
 0x525   :  { %v7147_v3 = vadd.f32 %v6989_v26, %v6663_v11  ;;  %v6991_v42 = vrot.slane %v17594_v4, 2  ;;  %v7370_v56 = vmul.f32 %v20626_v41, %v17581_v20  ;;  %v6116_v9 = vmul.f32 %v20618_v57, %v17499_v58 }
 0x526   :  { %v6048_v13 = vadd.f32 %v5892_v38, %v5564_v49  ;;  %v17604_v33 = vmul.f32 %v20626_v41, %v17589_v54  ;;  %v7854_v19 = vmul.f32 %v17522_v29, %v17581_v20  ;;  %v8089_v30 = vsel %vm1178_vm5, %v8086_v44, %v8088_v16 }
 0x527   :  { %v7279_v63 = vadd.f32 %v7215_v1, %v7147_v3  ;;  %v7216_v60 = vmul.f32 %v20627_v45, %v17581_v20  ;;  %v17613_v17 = vmul.f32 %v17522_v29, %v17589_v54  ;;  %v6508_v8 = vsel %vm693_vm4, %v6506_v14, %v6507_v46 }
 0x528   :  { %v6180_v22 = vadd.f32 %v6116_v9, %v6048_v13  ;;  %v7606_v15 = vrot.slane %v7370_v56, 1  ;;  %v7607_v6 = vrot.slane %v17604_v33, 1  ;;  %v6992_v25 = vsel %vm1178_vm5, %v6990_v52, %v6991_v42 }
 0x529   :  { %v7763_v51 = vadd.f32 %v7605_v10, %v7279_v63  ;;  %v5172_v1 = vmul.f32 %v20629_v47, %v17454_v37  ;;  %v5656_v44 = vmul.f32 %v20631_v5, %v17454_v37  ;;  %v8090_v40 = vrot.slane %v7854_v19, 2 }
 0x52a   :  { %v6664_v61 = vadd.f32 %v6508_v8, %v6180_v22  ;;  %v8091_v7 = vrot.slane %v17613_v17, 2  ;;  %v6272_v18 = vmul.f32 %v20619_v0, %v17540_v43  ;;  %v5017_v16 = vmul.f32 %v20630_v2, %v17420_v34 }
 0x52b   :  { %v8247_v26 = vadd.f32 %v8089_v30, %v7763_v51  ;;  %v5409_v55 = vrot.slane %v5172_v1, 1  ;;  %v5893_v24 = vrot.slane %v5656_v44, 2  ;;  %v7608_v31 = vsel %vm693_vm4, %v7606_v15, %v7607_v6  ;;  %v17671_v1 = vld [vmem:[#allocation2 + $0x290] sm:$0xff] }
 0x52c   :  { %v7148_v23 = vadd.f32 %v6992_v25, %v6664_v61  ;;  %v6509_v39 = vrot.slane %v6272_v18, 1  ;;  %v6756_v37 = vmul.f32 %v20620_v53, %v17540_v43  ;;  %v6117_v12 = vmul.f32 %v20618_v57, %v17505_v36 }
 0x52d   :  { %11144 = vmatmul.mubr.msk.f32.gmra.mrb[50].mxu1 %vm38_vm1, %v8247_v26  ;;  %v5410_v27 = vsel %vm693_vm4, %v5407_v35, %v5409_v55  ;;  %v7372_v28 = vmul.f32 %v20626_v41, %v17623_v21  ;;  %v7856_v34 = vmul.f32 %v17522_v29, %v17623_v21  ;;  %v8092_v59 = vsel %vm1178_vm5, %v8090_v40, %v8091_v7 }
 0x52e   :  { %v7280_v32 = vadd.f32 %v7216_v60, %v7148_v23  ;;  %v5565_v48 = vadd.f32 %v5410_v27, %v5017_v16  ;;  %v7217_v11 = vmul.f32 %v20627_v45, %v17589_v54  ;;  %v5894_v35 = vsel %vm1178_vm5, %v5891_v50, %v5893_v24 }
 0x52f   :  { %v6510_v10 = vsel %vm693_vm4, %v6507_v46, %v6509_v39  ;;  %v6993_v62 = vrot.slane %v6756_v37, 2  ;;  %v5173_v4 = vmul.f32 %v20629_v47, %v17499_v58  ;;  %v7609_v14 = vrot.slane %v7372_v28, 1 }
 0x530   :  { %v7764_v49 = vadd.f32 %v7608_v31, %v7280_v32  ;;  %v6049_v38 = vadd.f32 %v5894_v35, %v5565_v48  ;;  %v17651_v3 = vmul.f32 %v20629_v47, %v17505_v36  ;;  %v8093_v52 = vrot.slane %v7856_v34, 2 }
 0x531   :  { %v5018_v56 = vmul.f32 %v20630_v2, %v17499_v58  ;;  %v5411_v13 = vrot.slane %v5173_v4, 1  ;;  %v5657_v50 = vmul.f32 %v20631_v5, %v17499_v58  ;;  %v5658_v19 = vmul.f32 %v20631_v5, %v17505_v36  ;;  %v17666_v58 = vld [vmem:[#allocation2 + $0x288] sm:$0xff] }
 0x532   :  { %v8248_v46 = vadd.f32 %v8092_v59, %v7764_v49  ;;  %v6181_v9 = vadd.f32 %v6117_v12, %v6049_v38  ;;  %v5412_v33 = vrot.slane %v17651_v3, 1  ;;  %v6994_v63 = vsel %vm1178_vm5, %v6991_v42, %v6993_v62  ;;  %v17698_v49 = vld [vmem:[#allocation2 + $0x298] sm:$0x3] }
 0x533   :  { %v5895_v30 = vrot.slane %v5657_v50, 2  ;;  %v6273_v60 = vmul.f32 %v20619_v0, %v17581_v20  ;;  %v6274_v22 = vmul.f32 %v20619_v0, %v17589_v54  ;;  %v5896_v51 = vrot.slane %v5658_v19, 2 }
 0x534   :  { %11146 = vmatprep.mubr.msk.f32.mxu1 %vm38_vm1, %v8248_v46  ;;  %v6665_v8 = vadd.f32 %v6510_v10, %v6181_v9  ;;  %v5413_v15 = vsel %vm693_vm4, %v5411_v13, %v5412_v33  ;;  %v6757_v25 = vmul.f32 %v20620_v53, %v17581_v20  ;;  %v6758_v40 = vmul.f32 %v20620_v53, %v17589_v54 }
 0x535   :  { %v5566_v42 = vadd.f32 %v5413_v15, %v5018_v56  ;;  %v6511_v44 = vrot.slane %v6273_v60, 1  ;;  %v6512_v61 = vrot.slane %v6274_v22, 1  ;;  %v7610_v26 = vsel %vm693_vm4, %v7607_v6, %v7609_v14 }
 0x536   :  { %v7149_v18 = vadd.f32 %v6994_v63, %v6665_v8  ;;  %v5897_v16 = vsel %vm1178_vm5, %v5895_v30, %v5896_v51  ;;  %v6995_v55 = vrot.slane %v6757_v25, 2  ;;  %v6118_v23 = vmul.f32 %v20618_v57, %v17581_v20 }
 0x537   :  { %v6050_v24 = vadd.f32 %v5897_v16, %v5566_v42  ;;  %v6996_v31 = vrot.slane %v6758_v40, 2  ;;  %v7373_v39 = vmul.f32 %v20626_v41, %v17666_v58  ;;  %v7374_v27 = vmul.f32 %v20626_v41, %v17671_v1 }
 0x538   :  { %v7281_v37 = vadd.f32 %v7217_v11, %v7149_v18  ;;  %v7857_v12 = vmul.f32 %v17522_v29, %v17666_v58  ;;  %v17687_v6 = vmul.f32 %v17522_v29, %v17671_v1  ;;  %v8094_v28 = vsel %vm1178_vm5, %v8091_v7, %v8093_v52 }
 0x539   :  { %v6182_v34 = vadd.f32 %v6118_v23, %v6050_v24  ;;  %v6513_v32 = vsel %vm693_vm4, %v6511_v44, %v6512_v61  ;;  %v7218_v59 = vmul.f32 %v20627_v45, %v17666_v58  ;;  %v6997_v11 = vsel %vm1178_vm5, %v6995_v55, %v6996_v31 }
 0x53a   :  { %v7765_v48 = vadd.f32 %v7610_v26, %v7281_v37  ;;  %v7611_v35 = vrot.slane %v7373_v39, 1  ;;  %v5019_v10 = vmul.f32 %v20630_v2, %v17505_v36  ;;  %v7612_v4 = vrot.slane %v7374_v27, 1 }
 0x53b   :  { %v6666_v62 = vadd.f32 %v6513_v32, %v6182_v34  ;;  %v5175_v17 = vmul.f32 %v20629_v47, %v17540_v43  ;;  %v5659_v7 = vmul.f32 %v20631_v5, %v17540_v43  ;;  %v8095_v14 = vrot.slane %v7857_v12, 2 }
 0x53c   :  { %v8249_v38 = vadd.f32 %v8094_v28, %v7765_v48  ;;  %v8096_v3 = vrot.slane %v17687_v6, 2  ;;  %v6275_v52 = vmul.f32 %v20619_v0, %v17623_v21  ;;  %v6759_v50 = vmul.f32 %v20620_v53, %v17623_v21  ;;  %v17739_v6 = vld [vmem:[#allocation2 + $0x2a0] sm:$0xff] }
 0x53d   :  { %v7150_v56 = vadd.f32 %v6997_v11, %v6666_v62  ;;  %v5414_v13 = vrot.slane %v5175_v17, 1  ;;  %v5898_v36 = vrot.slane %v5659_v7, 2  ;;  %v6119_v46 = vmul.f32 %v20618_v57, %v17589_v54  ;;  %v17747_v11 = vld [vmem:[#allocation2 + $0x2a8] sm:$0xff] }
 0x53e   :  { %11147 = vmatmul.mubr.msk.f32.gmra.mrb[52].mxu1 %vm38_vm1, %v8249_v38  ;;  %v6514_v9 = vrot.slane %v6275_v52, 1  ;;  %v7375_v43 = vmul.f32 %v20626_v41, %v17698_v49  ;;  %v7859_v19 = vmul.f32 %v17522_v29, %v17698_v49  ;;  %v7613_v30 = vsel %vm693_vm4, %v7611_v35, %v7612_v4 }
 0x53f   :  { %v7282_v63 = vadd.f32 %v7218_v59, %v7150_v56  ;;  %v5415_v60 = vsel %vm693_vm4, %v5412_v33, %v5414_v13  ;;  %v6998_v22 = vrot.slane %v6759_v50, 2  ;;  %v8097_v8 = vsel %vm1178_vm5, %v8095_v14, %v8096_v3 }
 0x540   :  { %v5567_v15 = vadd.f32 %v5415_v60, %v5019_v10  ;;  %v5899_v25 = vsel %vm1178_vm5, %v5896_v51, %v5898_v36  ;;  %v7219_v42 = vmul.f32 %v20627_v45, %v17671_v1  ;;  %v6515_v40 = vsel %vm693_vm4, %v6512_v61, %v6514_v9 }
 0x541   :  { %v7766_v44 = vadd.f32 %v7613_v30, %v7282_v63  ;;  %v7614_v18 = vrot.slane %v7375_v43, 1  ;;  %v5176_v26 = vmul.f32 %v20629_v47, %v17581_v20  ;;  %v6999_v55 = vsel %vm1178_vm5, %v6996_v31, %v6998_v22 }
 0x542   :  { %v6051_v16 = vadd.f32 %v5899_v25, %v5567_v15  ;;  %v8098_v33 = vrot.slane %v7859_v19, 2  ;;  %v5177_v24 = vmul.f32 %v20629_v47, %v17589_v54  ;;  %v5660_v51 = vmul.f32 %v20631_v5, %v17581_v20 }
 0x543   :  { %v8250_v23 = vadd.f32 %v8097_v8, %v7766_v44  ;;  %v5416_v39 = vrot.slane %v5176_v26, 1  ;;  %v17732_v37 = vmul.f32 %v20631_v5, %v17589_v54  ;;  %v5020_v27 = vmul.f32 %v20630_v2, %v17581_v20  ;;  %v17781_v26 = vld [vmem:[#allocation2 + $0x2b0] sm:$0x3] }
 0x544   :  { %v6183_v61 = vadd.f32 %v6119_v46, %v6051_v16  ;;  %v5417_v12 = vrot.slane %v5177_v24, 1  ;;  %v6276_v31 = vmul.f32 %v20619_v0, %v17666_v58  ;;  %v5900_v28 = vrot.slane %v5660_v51, 2 }
 0x545   :  { %11149 = vmatprep.mubr.msk.f32.mxu1 %vm38_vm1, %v8250_v23  ;;  %v5901_v34 = vrot.slane %v17732_v37, 2  ;;  %v6277_v32 = vmul.f32 %v20619_v0, %v17671_v1  ;;  %v6760_v59 = vmul.f32 %v20620_v53, %v17666_v58  ;;  %v7615_v20 = vsel %vm693_vm4, %v7612_v4, %v7614_v18 }
 0x546   :  { %v6667_v48 = vadd.f32 %v6515_v40, %v6183_v61  ;;  %v5418_v35 = vsel %vm693_vm4, %v5416_v39, %v5417_v12  ;;  %v17752_v10 = vmul.f32 %v20620_v53, %v17671_v1  ;;  %v6516_v7 = vrot.slane %v6276_v31, 1 }
 0x547   :  { %v5568_v62 = vadd.f32 %v5418_v35, %v5020_v27  ;;  %v5902_v17 = vsel %vm1178_vm5, %v5900_v28, %v5901_v34  ;;  %v6517_v38 = vrot.slane %v6277_v32, 1  ;;  %v7000_v52 = vrot.slane %v6760_v59, 2 }
 0x548   :  { %v7151_v14 = vadd.f32 %v6999_v55, %v6667_v48  ;;  %v7001_v56 = vrot.slane %v17752_v10, 2  ;;  %v7376_v4 = vmul.f32 %v20626_v41, %v17739_v6  ;;  %v6120_v36 = vmul.f32 %v20618_v57, %v17666_v58 }
 0x549   :  { %v6052_v13 = vadd.f32 %v5902_v17, %v5568_v62  ;;  %v17762_v50 = vmul.f32 %v20626_v41, %v17747_v11  ;;  %v7860_v46 = vmul.f32 %v17522_v29, %v17739_v6  ;;  %v8099_v43 = vsel %vm1178_vm5, %v8096_v3, %v8098_v33 }
 0x54a   :  { %v7283_v9 = vadd.f32 %v7219_v42, %v7151_v14  ;;  %v7220_v19 = vmul.f32 %v20627_v45, %v17739_v6  ;;  %v17771_v63 = vmul.f32 %v17522_v29, %v17747_v11  ;;  %v6518_v60 = vsel %vm693_vm4, %v6516_v7, %v6517_v38 }
 0x54b   :  { %v6184_v30 = vadd.f32 %v6120_v36, %v6052_v13  ;;  %v7616_v22 = vrot.slane %v7376_v4, 1  ;;  %v7617_v8 = vrot.slane %v17762_v50, 1  ;;  %v7002_v25 = vsel %vm1178_vm5, %v7000_v52, %v7001_v56 }
 0x54c   :  { %v7767_v15 = vadd.f32 %v7615_v20, %v7283_v9  ;;  %v5178_v42 = vmul.f32 %v20629_v47, %v17623_v21  ;;  %v5662_v3 = vmul.f32 %v20631_v5, %v17623_v21  ;;  %v8100_v40 = vrot.slane %v7860_v46, 2 }
 0x54d   :  { %v6668_v44 = vadd.f32 %v6518_v60, %v6184_v30  ;;  %v8101_v18 = vrot.slane %v17771_v63, 2  ;;  %v6278_v16 = vmul.f32 %v20619_v0, %v17698_v49  ;;  %v5021_v33 = vmul.f32 %v20630_v2, %v17589_v54  ;;  %v17828_v60 = vld [vmem:[#allocation2 + $0x2b8] sm:$0xff] }
 0x54e   :  { %v8251_v55 = vadd.f32 %v8099_v43, %v7767_v15  ;;  %v5419_v24 = vrot.slane %v5178_v42, 1  ;;  %v5903_v23 = vrot.slane %v5662_v3, 2  ;;  %v7618_v51 = vsel %vm693_vm4, %v7616_v22, %v7617_v8 }
 0x54f   :  { %v7152_v39 = vadd.f32 %v7002_v25, %v6668_v44  ;;  %v6519_v37 = vrot.slane %v6278_v16, 1  ;;  %v6762_v21 = vmul.f32 %v20620_v53, %v17698_v49  ;;  %v6121_v27 = vmul.f32 %v20618_v57, %v17671_v1  ;;  %v17836_v25 = vld [vmem:[#allocation2 + $0x2c0] sm:$0xff] }
 0x550   :  { %11150 = vmatmul.mubr.msk.f32.gmra.mrb[54].mxu1 %vm38_vm1, %v8251_v55  ;;  %v5420_v61 = vsel %vm693_vm4, %v5417_v12, %v5419_v24  ;;  %v7378_v31 = vmul.f32 %v20626_v41, %v17781_v26  ;;  %v7862_v54 = vmul.f32 %v17522_v29, %v17781_v26  ;;  %v8102_v32 = vsel %vm1178_vm5, %v8100_v40, %v8101_v18 }
 0x551   :  { %v7284_v28 = vadd.f32 %v7220_v19, %v7152_v39  ;;  %v5569_v59 = vadd.f32 %v5420_v61, %v5021_v33  ;;  %v7221_v48 = vmul.f32 %v20627_v45, %v17747_v11  ;;  %v5904_v12 = vsel %vm1178_vm5, %v5901_v34, %v5903_v23 }
 0x552   :  { %v6520_v20 = vsel %vm693_vm4, %v6517_v38, %v6519_v37  ;;  %v7003_v35 = vrot.slane %v6762_v21, 2  ;;  %v5179_v10 = vmul.f32 %v20629_v47, %v17666_v58  ;;  %v7619_v7 = vrot.slane %v7378_v31, 1 }
 0x553   :  { %v7768_v62 = vadd.f32 %v7618_v51, %v7284_v28  ;;  %v6053_v17 = vadd.f32 %v5904_v12, %v5569_v59  ;;  %v17809_v14 = vmul.f32 %v20629_v47, %v17671_v1  ;;  %v8103_v52 = vrot.slane %v7862_v54, 2  ;;  %v17866_v59 = vpop.f32.mrb[8].mxu1 }
 0x554   :  { %v5022_v4 = vmul.f32 %v20630_v2, %v17666_v58  ;;  %v5421_v13 = vrot.slane %v5179_v10, 1  ;;  %v5663_v34 = vmul.f32 %v20631_v5, %v17666_v58  ;;  %v17818_v46 = vmul.f32 %v20631_v5, %v17671_v1  ;;  %v17871_v10 = vpop.f32.mrb[9].mxu1 }
 0x555   :  { %v8252_v38 = vadd.f32 %v8102_v32, %v7768_v62  ;;  %v6185_v36 = vadd.f32 %v6121_v27, %v6053_v17  ;;  %v5422_v50 = vrot.slane %v17809_v14, 1  ;;  %v7004_v9 = vsel %vm1178_vm5, %v7001_v56, %v7003_v35  ;;  %v17874_v62 = vld [vmem:[#allocation2 + $0x2c8] sm:$0x3] }
 0x556   :  { %v5905_v43 = vrot.slane %v5663_v34, 2  ;;  %v6279_v19 = vmul.f32 %v20619_v0, %v17739_v6  ;;  %v17825_v30 = vmul.f32 %v20619_v0, %v17747_v11  ;;  %v5906_v15 = vrot.slane %v17818_v46, 2 }
 0x557   :  { %11152 = vmatprep.mubr.msk.f32.mxu1 %vm38_vm1, %v8252_v38  ;;  %v6669_v58 = vadd.f32 %v6520_v20, %v6185_v36  ;;  %v5423_v22 = vsel %vm693_vm4, %v5421_v13, %v5422_v50  ;;  %v6763_v56 = vmul.f32 %v20620_v53, %v17739_v6  ;;  %v17841_v40 = vmul.f32 %v20620_v53, %v17747_v11 }
 0x558   :  { %v5570_v42 = vadd.f32 %v5423_v22, %v5022_v4  ;;  %v6521_v3 = vrot.slane %v6279_v19, 1  ;;  %v6522_v44 = vrot.slane %v17825_v30, 1  ;;  %v7620_v55 = vsel %vm693_vm4, %v7617_v8, %v7619_v7 }
 0x559   :  { %v7153_v16 = vadd.f32 %v7004_v9, %v6669_v58  ;;  %v5907_v33 = vsel %vm1178_vm5, %v5905_v43, %v5906_v15  ;;  %v7005_v24 = vrot.slane %v6763_v56, 2  ;;  %v6122_v39 = vmul.f32 %v20618_v57, %v17739_v6 }
 0x55a   :  { %v6054_v23 = vadd.f32 %v5907_v33, %v5570_v42  ;;  %v7006_v51 = vrot.slane %v17841_v40, 2  ;;  %v7379_v37 = vmul.f32 %v20626_v41, %v17828_v60  ;;  %v17852_v61 = vmul.f32 %v20626_v41, %v17836_v25 }
 0x55b   :  { %v7285_v21 = vadd.f32 %v7221_v48, %v7153_v16  ;;  %v7863_v8 = vmul.f32 %v17522_v29, %v17828_v60  ;;  %v17858_v27 = vmul.f32 %v17522_v29, %v17836_v25  ;;  %v8104_v31 = vsel %vm1178_vm5, %v8101_v18, %v8103_v52  ;;  %v17880_v52 = vpop.f32.mrb[10].mxu1 }
 0x55c   :  { %v6186_v54 = vadd.f32 %v6122_v39, %v6054_v23  ;;  %v6523_v28 = vsel %vm693_vm4, %v6521_v3, %v6522_v44  ;;  %v7222_v32 = vmul.f32 %v20627_v45, %v17828_v60  ;;  %v7007_v12 = vsel %vm1178_vm5, %v7005_v24, %v7006_v51  ;;  %v17885_v38 = vpop.f32.mrb[11].mxu1 }
 0x55d   :  { %v7769_v48 = vadd.f32 %v7620_v55, %v7285_v21  ;;  %v7621_v20 = vrot.slane %v7379_v37, 1  ;;  %v5023_v35 = vmul.f32 %v20630_v2, %v17671_v1  ;;  %v7622_v18 = vrot.slane %v17852_v61, 1  ;;  %v17889_v19 = vpop.f32.mrb[12].mxu1 }
 0x55e   :  { %v6670_v63 = vadd.f32 %v6523_v28, %v6186_v54  ;;  %v5181_v17 = vmul.f32 %v20629_v47, %v17698_v49  ;;  %v5665_v7 = vmul.f32 %v20631_v5, %v17698_v49  ;;  %v8105_v13 = vrot.slane %v7863_v8, 2  ;;  %v17900_v56 = vpop.f32.mrb[13].mxu1 }
 0x55f   :  { %v8253_v4 = vadd.f32 %v8104_v31, %v7769_v48  ;;  %v8106_v34 = vrot.slane %v17858_v27, 2  ;;  %v6281_v1 = vmul.f32 %v20619_v0, %v17781_v26  ;;  %v6765_v43 = vmul.f32 %v20620_v53, %v17781_v26  ;;  %v17906_v55 = vpop.f32.mrb[14].mxu1 }
 0x560   :  { %v7154_v36 = vadd.f32 %v7007_v12, %v6670_v63  ;;  %v5424_v46 = vrot.slane %v5181_v17, 1  ;;  %v5908_v9 = vrot.slane %v5665_v7, 2  ;;  %v6123_v49 = vmul.f32 %v20618_v57, %v17747_v11  ;;  %v17914_v37 = vpop.f32.mrb[15].mxu1 }
 0x561   :  { %11153 = vmatmul.mubr.msk.f32.gmra.mrb[56].mxu1 %vm38_vm1, %v8253_v4  ;;  %v6524_v30 = vrot.slane %v6281_v1, 1  ;;  %v7381_v58 = vmul.f32 %v20626_v41, %v17874_v62  ;;  %v17898_v22 = vmul.f32 %v17522_v29, %v17874_v62  ;;  %v7623_v3 = vsel %vm693_vm4, %v7621_v20, %v7622_v18  ;;  %v17919_v8 = vpop.f32.mrb[16].mxu1 }
 0x562   :  { %v7286_v42 = vadd.f32 %v7222_v32, %v7154_v36  ;;  %v5425_v40 = vsel %vm693_vm4, %v5422_v50, %v5424_v46  ;;  %v7008_v16 = vrot.slane %v6765_v43, 2  ;;  %v8107_v33 = vsel %vm1178_vm5, %v8105_v13, %v8106_v34  ;;  %v17927_v32 = vpop.f32.mrb[17].mxu1  ;;  %v17945_v13 = vld [vmem:[#allocation2 + $0x2d0] sm:$0xff] }
 0x563   :  { %v5571_v24 = vadd.f32 %v5425_v40, %v5023_v35  ;;  %v5909_v23 = vsel %vm1178_vm5, %v5906_v15, %v5908_v9  ;;  %v7223_v39 = vmul.f32 %v20627_v45, %v17836_v25  ;;  %v6525_v14 = vsel %vm693_vm4, %v6522_v44, %v6524_v30  ;;  %v17935_v35 = vpop.f32.mrb[18].mxu1  ;;  %v17957_v30 = vld [vmem:[#allocation2 + $0x2d8] sm:$0xff] }
 0x564   :  { %v7770_v21 = vadd.f32 %v7623_v3, %v7286_v42  ;;  %v7624_v61 = vrot.slane %v7381_v58, 1  ;;  %v5182_v50 = vmul.f32 %v20629_v47, %v17739_v6  ;;  %v7009_v54 = vsel %vm1178_vm5, %v7006_v51, %v7008_v16  ;;  %v17942_v4 = vpop.f32.mrb[19].mxu1 }
 0x565   :  { %v6055_v31 = vadd.f32 %v5909_v23, %v5571_v24  ;;  %v8108_v28 = vrot.slane %v17898_v22, 2  ;;  %v17925_v15 = vmul.f32 %v20629_v47, %v17747_v11  ;;  %v5666_v44 = vmul.f32 %v20631_v5, %v17739_v6  ;;  %v17954_v9 = vpop.f32.mrb[20].mxu1 }
 0x566   :  { %v8254_v48 = vadd.f32 %v8107_v33, %v7770_v21  ;;  %v5426_v12 = vrot.slane %v5182_v50, 1  ;;  %v17933_v20 = vmul.f32 %v20631_v5, %v17747_v11  ;;  %v5024_v63 = vmul.f32 %v20630_v2, %v17739_v6  ;;  %v17964_v42 = vpop.f32.mrb[21].mxu1 }
 0x567   :  { %v6187_v51 = vadd.f32 %v6123_v49, %v6055_v31  ;;  %v5427_v17 = vrot.slane %v17925_v15, 1  ;;  %v6282_v7 = vmul.f32 %v20619_v0, %v17828_v60  ;;  %v5910_v1 = vrot.slane %v5666_v44, 2  ;;  %v17970_v24 = vpop.f32.mrb[22].mxu1 }
 0x568   :  { %11155 = vmatprep.mubr.msk.f32.mxu1 %vm38_vm1, %v8254_v48  ;;  %v5911_v36 = vrot.slane %v17933_v20, 2  ;;  %v17950_v46 = vmul.f32 %v20619_v0, %v17836_v25  ;;  %v6766_v6 = vmul.f32 %v20620_v53, %v17828_v60  ;;  %v7625_v49 = vsel %vm693_vm4, %v7622_v18, %v7624_v61  ;;  %v17975_v61 = vpop.f32.mrb[23].mxu1 }
 0x569   :  { %v6671_v43 = vadd.f32 %v6525_v14, %v6187_v51  ;;  %v5428_v58 = vsel %vm693_vm4, %v5426_v12, %v5427_v17  ;;  %v17962_v22 = vmul.f32 %v20620_v53, %v17836_v25  ;;  %v6526_v16 = vrot.slane %v6282_v7, 1 }
 0x56a   :  { %v5572_v3 = vadd.f32 %v5428_v58, %v5024_v63  ;;  %v5912_v40 = vsel %vm1178_vm5, %v5910_v1, %v5911_v36  ;;  %v6527_v33 = vrot.slane %v17950_v46, 1  ;;  %v7010_v23 = vrot.slane %v6766_v6, 2 }
 0x56b   :  { %v7155_v18 = vadd.f32 %v7009_v54, %v6671_v43  ;;  %v7011_v21 = vrot.slane %v17962_v22, 2  ;;  %v7382_v14 = vmul.f32 %v20626_v41, %v17945_v13  ;;  %v6124_v31 = vmul.f32 %v20618_v57, %v17828_v60  ;;  %v17985_v54 = vpop.f32.mrb[24].mxu1 }
 0x56c   :  { %v6056_v50 = vadd.f32 %v5912_v40, %v5572_v3  ;;  %v17981_v15 = vmul.f32 %v20626_v41, %v17957_v30  ;;  %v7866_v48 = vmul.f32 %v17522_v29, %v17945_v13  ;;  %v8109_v44 = vsel %vm1178_vm5, %v8106_v34, %v8108_v28  ;;  %v17996_v7 = vpop.f32.mrb[25].mxu1 }
 0x56d   :  { %v7287_v12 = vadd.f32 %v7223_v39, %v7155_v18  ;;  %v7224_v51 = vmul.f32 %v20627_v45, %v17945_v13  ;;  %v17994_v63 = vmul.f32 %v17522_v29, %v17957_v30  ;;  %v6528_v46 = vsel %vm693_vm4, %v6526_v16, %v6527_v33  ;;  %v18008_v18 = vld [vmem:[#allocation2 + $0x2e0] sm:$0x3] }
 0x56e   :  { %v6188_v1 = vadd.f32 %v6124_v31, %v6056_v50  ;;  %v7626_v6 = vrot.slane %v7382_v14, 1  ;;  %v20322_v43 = vrot.slane %v17981_v15, 1  ;;  %v7012_v27 = vsel %vm1178_vm5, %v7010_v23, %v7011_v21 }
 0x56f   :  { %v7771_v39 = vadd.f32 %v7625_v49, %v7287_v12  ;;  %v5184_v34 = vmul.f32 %v20629_v47, %v17781_v26  ;;  %v5668_v28 = vmul.f32 %v20631_v5, %v17781_v26  ;;  %v8110_v3 = vrot.slane %v7866_v48, 2  ;;  %v18012_v49 = vpop.f32.mrb[26].mxu1 }
 0x570   :  { %v6672_v58 = vadd.f32 %v6528_v46, %v6188_v1  ;;  %v20323_v40 = vrot.slane %v17994_v63, 2  ;;  %v6284_v16 = vmul.f32 %v20619_v0, %v17874_v62  ;;  %v5025_v23 = vmul.f32 %v20630_v2, %v17747_v11  ;;  %v18016_v12 = vpop.f32.mrb[27].mxu1 }
 0x571   :  { %v8255_v14 = vadd.f32 %v8109_v44, %v7771_v39  ;;  %v5429_v50 = vrot.slane %v5184_v34, 1  ;;  %v5913_v31 = vrot.slane %v5668_v28, 2  ;;  %v7628_v48 = vsel %vm693_vm4, %v7626_v6, %v20322_v43 }
 0x572   :  { %v7156_v26 = vadd.f32 %v7012_v27, %v6672_v58  ;;  %v6529_v1 = vrot.slane %v6284_v16, 1  ;;  %v6768_v46 = vmul.f32 %v20620_v53, %v17874_v62  ;;  %v6125_v11 = vmul.f32 %v20618_v57, %v17836_v25  ;;  %v18036_v16 = vpop.f32.mrb[28].mxu1 }
 0x573   :  { %11156 = vmatmul.mubr.msk.f32.gmra.mrb[58].mxu1 %vm38_vm1, %v8255_v14  ;;  %v5430_v44 = vsel %vm693_vm4, %v5427_v17, %v5429_v50  ;;  %v7384_v39 = vmul.f32 %v20626_v41, %v18008_v18  ;;  %v7868_v27 = vmul.f32 %v17522_v29, %v18008_v18  ;;  %v8112_v6 = vsel %vm1178_vm5, %v8110_v3, %v20323_v40 }
 0x574   :  { %v7288_v34 = vadd.f32 %v7224_v51, %v7156_v26  ;;  %v5573_v28 = vadd.f32 %v5430_v44, %v5025_v23  ;;  %v7225_v58 = vmul.f32 %v20627_v45, %v17957_v30  ;;  %20632 = vst [vmem:[#allocation80_spill] sm:$0xff] %v18036_v16  ;;  %v5914_v17 = vsel %vm1178_vm5, %v5911_v36, %v5913_v31  ;;  %v18044_v26 = vpop.f32.mrb[29].mxu1 }
 0x575   :  { %v6530_v14 = vsel %vm693_vm4, %v6527_v33, %v6529_v1  ;;  %v7013_v50 = vrot.slane %v6768_v46, 2  ;;  %v5185_v51 = vmul.f32 %v20629_v47, %v17828_v60  ;;  %20633 = vst [vmem:[#allocation78_spill] sm:$0xff] %v18044_v26  ;;  %v7629_v23 = vrot.slane %v7384_v39, 1  ;;  %v18059_v39 = vpop.f32.mrb[30].mxu1  ;;  %v18120_v26 = vld [vmem:[#allocation2 + $0x2f8] sm:$0x3] }
 0x576   :  { %v7772_v43 = vadd.f32 %v7628_v48, %v7288_v34  ;;  %v6057_v3 = vadd.f32 %v5914_v17, %v5573_v28  ;;  %v18048_v44 = vmul.f32 %v20629_v47, %v17836_v25  ;;  %v8113_v40 = vrot.slane %v7868_v27, 2  ;;  %20634 = vst [vmem:[#allocation83_spill] sm:$0xff] %v18059_v39 }
 0x577   :  { %v5026_v20 = vmul.f32 %v20630_v2, %v17828_v60  ;;  %v5431_v36 = vrot.slane %v5185_v51, 1  ;;  %v5669_v33 = vmul.f32 %v20631_v5, %v17828_v60  ;;  %v18057_v48 = vmul.f32 %v20631_v5, %v17836_v25 }
 0x578   :  { %v8256_v31 = vadd.f32 %v8112_v6, %v7772_v43  ;;  %v6189_v1 = vadd.f32 %v6125_v11, %v6057_v3  ;;  %v20325_v46 = vrot.slane %v18048_v44, 1  ;;  %v7014_v27 = vsel %vm1178_vm5, %v7011_v21, %v7013_v50  ;;  %v18070_v43 = vpop.f32.mrb[31].mxu1  ;;  %v18073_v6 = vld [vmem:[#allocation2 + $0x2e8] sm:$0xff]  ;;  %v18081_v50 = vld [vmem:[#allocation2 + $0x2f0] sm:$0xff] }
 0x579   :  { %v5915_v34 = vrot.slane %v5669_v33, 2  ;;  %v6285_v28 = vmul.f32 %v20619_v0, %v17945_v13  ;;  %v18068_v60 = vmul.f32 %v20619_v0, %v17957_v30  ;;  %20635 = vst [vmem:[#allocation81_spill] sm:$0xff] %v18070_v43  ;;  %v5916_v21 = vrot.slane %v18057_v48, 2 }
 0x57a   :  { %11158 = vmatprep.mubr.msk.f32.mxu1 %vm38_vm1, %v8256_v31  ;;  %v6673_v11 = vadd.f32 %v6530_v14, %v6189_v1  ;;  %v5433_v22 = vsel %vm693_vm4, %v5431_v36, %v20325_v46  ;;  %v6769_v17 = vmul.f32 %v20620_v53, %v17945_v13  ;;  %v6770_v14 = vmul.f32 %v20620_v53, %v17957_v30  ;;  %v18090_v46 = vpop.f32.mrb[32].mxu1 }
 0x57b   :  { %v5574_v51 = vadd.f32 %v5433_v22, %v5026_v20  ;;  %v6531_v3 = vrot.slane %v6285_v28, 1  ;;  %v6532_v33 = vrot.slane %v18068_v60, 1  ;;  %v20636_v1 = vrot.slane %v17981_v15, 1  ;;  %20637 = vst [vmem:[#allocation90_spill] sm:$0xff] %v18090_v46  ;;  %v18096_v22 = vpop.f32.mrb[33].mxu1 }
 0x57c   :  { %v7157_v31 = vadd.f32 %v7014_v27, %v6673_v11  ;;  %v5917_v36 = vsel %vm1178_vm5, %v5915_v34, %v5916_v21  ;;  %v7015_v48 = vrot.slane %v6769_v17, 2  ;;  %v6126_v20 = vmul.f32 %v20618_v57, %v17945_v13  ;;  %20638 = vst [vmem:[#allocation82_spill] sm:$0xff] %v18096_v22  ;;  %v18117_v22 = vpop.f32.mrb[34].mxu1 }
 0x57d   :  { %v7630_v39 = vsel %vm693_vm4, %v20636_v1, %v7629_v23  ;;  %v6058_v43 = vadd.f32 %v5917_v36, %v5574_v51  ;;  %v7016_v28 = vrot.slane %v6770_v14, 2  ;;  %v7385_v60 = vmul.f32 %v20626_v41, %v18073_v6  ;;  %20640 = vst [vmem:[#allocation92_spill] sm:$0xff] %v18117_v22 }
 0x57e   :  { %v7289_v27 = vadd.f32 %v7225_v58, %v7157_v31  ;;  %v18100_v15 = vmul.f32 %v20626_v41, %v18081_v50  ;;  %v7869_v23 = vmul.f32 %v17522_v29, %v18073_v6  ;;  %v18106_v34 = vmul.f32 %v17522_v29, %v18081_v50 }
 0x57f   :  { %v20639_v11 = vrot.slane %v17994_v63, 2  ;;  %v6190_v51 = vadd.f32 %v6126_v20, %v6058_v43  ;;  %v6533_v14 = vsel %vm693_vm4, %v6531_v3, %v6532_v33  ;;  %v7226_v58 = vmul.f32 %v20627_v45, %v18073_v6 }
 0x580   :  { %v7773_v31 = vadd.f32 %v7630_v39, %v7289_v27  ;;  %v7017_v1 = vsel %vm1178_vm5, %v7015_v48, %v7016_v28  ;;  %v7631_v36 = vrot.slane %v7385_v60, 1  ;;  %v5027_v46 = vmul.f32 %v20630_v2, %v17836_v25  ;;  %v18126_v39 = vpop.f32.mrb[35].mxu1 }
 0x581   :  { %v8114_v17 = vsel %vm1178_vm5, %v20639_v11, %v8113_v40  ;;  %v6674_v16 = vadd.f32 %v6533_v14, %v6190_v51  ;;  %v7632_v63 = vrot.slane %v18100_v15, 1  ;;  %v5187_v40 = vmul.f32 %v20629_v47, %v17874_v62  ;;  %20641 = vst [vmem:[#allocation91_spill] sm:$0xff] %v18126_v39  ;;  %v18220_v39 = vld [vmem:[#allocation2 + $0x310] sm:$0x3] }
 0x582   :  { %v5671_v43 = vmul.f32 %v20631_v5, %v17874_v62  ;;  %v8257_v3 = vadd.f32 %v8114_v17, %v7773_v31  ;;  %v8115_v48 = vrot.slane %v7869_v23, 2  ;;  %v20333_v20 = vrot.slane %v18106_v34, 2 }
 0x583   :  { %v6287_v25 = vmul.f32 %v20619_v0, %v18008_v18  ;;  %v7158_v60 = vadd.f32 %v7017_v1, %v6674_v16  ;;  %v5434_v27 = vrot.slane %v5187_v40, 1  ;;  %v6771_v11 = vmul.f32 %v20620_v53, %v18008_v18 }
 0x584   :  { %v5918_v15 = vrot.slane %v5671_v43, 2  ;;  %11159 = vmatmul.mubr.msk.f32.gmra.mrb[60].mxu1 %vm38_vm1, %v8257_v3  ;;  %v6127_v62 = vmul.f32 %v20618_v57, %v17957_v30  ;;  %v7387_v23 = vmul.f32 %v20626_v41, %v18120_v26  ;;  %v7871_v17 = vmul.f32 %v17522_v29, %v18120_v26 }
 0x585   :  { %v6534_v51 = vrot.slane %v6287_v25, 1  ;;  %v7290_v14 = vadd.f32 %v7226_v58, %v7158_v60  ;;  %v7633_v16 = vsel %vm693_vm4, %v7631_v36, %v7632_v63  ;;  %v20642_v31 = vrot.slane %v18048_v44, 1  ;;  %v18144_v43 = vpop.f32.mrb[36].mxu1 }
 0x586   :  { %v7018_v40 = vrot.slane %v6771_v11, 2  ;;  %20643 = vst [vmem:[#allocation94_spill] sm:$0xff] %v18144_v43  ;;  %v8117_v3 = vsel %vm1178_vm5, %v8115_v48, %v20333_v20  ;;  %v5919_v22 = vsel %vm1178_vm5, %v5916_v21, %v5918_v15  ;;  %v7227_v29 = vmul.f32 %v20627_v45, %v18081_v50  ;;  %v18152_v58 = vpop.f32.mrb[37].mxu1 }
 0x587   :  { %v5435_v1 = vsel %vm693_vm4, %v20642_v31, %v5434_v27  ;;  %20644 = vst [vmem:[#allocation93_spill] sm:$0xff] %v18152_v58  ;;  %v7774_v36 = vadd.f32 %v7633_v16, %v7290_v14  ;;  %v6535_v44 = vsel %vm693_vm4, %v6532_v33, %v6534_v51  ;;  %v7634_v60 = vrot.slane %v7387_v23, 1  ;;  %v18171_v23 = vld [vmem:[#allocation2 + $0x300] sm:$0xff] }
 0x588   :  { %v5575_v25 = vadd.f32 %v5435_v1, %v5027_v46  ;;  %v5188_v27 = vmul.f32 %v20629_v47, %v17945_v13  ;;  %v7019_v31 = vsel %vm1178_vm5, %v7016_v28, %v7018_v40  ;;  %v8118_v43 = vrot.slane %v7871_v17, 2 }
 0x589   :  { %v5189_v46 = vmul.f32 %v20629_v47, %v17957_v30  ;;  %v8258_v21 = vadd.f32 %v8117_v3, %v7774_v36  ;;  %v5672_v15 = vmul.f32 %v20631_v5, %v17945_v13  ;;  %v18164_v14 = vmul.f32 %v20631_v5, %v17957_v30  ;;  %v18179_v3 = vld [vmem:[#allocation2 + $0x308] sm:$0xff] }
 0x58a   :  { %v6059_v11 = vadd.f32 %v5919_v22, %v5575_v25  ;;  %v5436_v48 = vrot.slane %v5188_v27, 1  ;;  %v5028_v51 = vmul.f32 %v20630_v2, %v17945_v13  ;;  %v6288_v28 = vmul.f32 %v20619_v0, %v18073_v6 }
 0x58b   :  { %v5437_v22 = vrot.slane %v5189_v46, 1  ;;  %11161 = vmatprep.mubr.msk.f32.mxu1 %vm38_vm1, %v8258_v21  ;;  %v5920_v17 = vrot.slane %v5672_v15, 2  ;;  %v5921_v16 = vrot.slane %v18164_v14, 2  ;;  %v6289_v1 = vmul.f32 %v20619_v0, %v18081_v50 }
 0x58c   :  { %v6191_v33 = vadd.f32 %v6127_v62, %v6059_v11  ;;  %v6772_v62 = vmul.f32 %v20620_v53, %v18073_v6  ;;  %v7635_v13 = vsel %vm693_vm4, %v7632_v63, %v7634_v60  ;;  %v18184_v36 = vmul.f32 %v20620_v53, %v18081_v50 }
 0x58d   :  { %v5438_v25 = vsel %vm693_vm4, %v5436_v48, %v5437_v22  ;;  %v5922_v11 = vsel %vm1178_vm5, %v5920_v17, %v5921_v16  ;;  %v6536_v46 = vrot.slane %v6288_v28, 1  ;;  %v6537_v21 = vrot.slane %v6289_v1, 1 }
 0x58e   :  { %v6675_v40 = vadd.f32 %v6535_v44, %v6191_v33  ;;  %v5576_v27 = vadd.f32 %v5438_v25, %v5028_v51  ;;  %v7020_v14 = vrot.slane %v6772_v62, 2  ;;  %v7021_v20 = vrot.slane %v18184_v36, 2  ;;  %v18199_v33 = vld [vmem:[%s20167_s5 + $0x8] ss:$0 sm:$0xff] }
 0x58f   :  { %v7388_v63 = vmul.f32 %v20626_v41, %v18171_v23  ;;  %v6128_v60 = vmul.f32 %v20618_v57, %v18073_v6  ;;  %v18194_v48 = vmul.f32 %v20626_v41, %v18179_v3  ;;  %v20645_v28 = vrot.slane %v18106_v34, 2 }
 0x590   :  { %v7159_v15 = vadd.f32 %v7019_v31, %v6675_v40  ;;  %v6060_v44 = vadd.f32 %v5922_v11, %v5576_v27  ;;  %v7872_v31 = vmul.f32 %v18199_v33, %v18171_v23  ;;  %v7228_v1 = vmul.f32 %v20627_v45, %v18171_v23 }
 0x591   :  { %v8119_v17 = vsel %vm1178_vm5, %v20645_v28, %v8118_v43  ;;  %v18210_v62 = vmul.f32 %v18199_v33, %v18179_v3  ;;  %v6538_v25 = vsel %vm693_vm4, %v6536_v46, %v6537_v21  ;;  %v7636_v36 = vrot.slane %v7388_v63, 1 }
 0x592   :  { %v7291_v51 = vadd.f32 %v7227_v29, %v7159_v15  ;;  %v6192_v40 = vadd.f32 %v6128_v60, %v6060_v44  ;;  %v7637_v27 = vrot.slane %v18194_v48, 1  ;;  %v7022_v29 = vsel %vm1178_vm5, %v7020_v14, %v7021_v20 }
 0x593   :  { %v5190_v34 = vmul.f32 %v20629_v47, %v18008_v18  ;;  %v5674_v43 = vmul.f32 %v20631_v5, %v18008_v18  ;;  %v8120_v28 = vrot.slane %v7872_v31, 2  ;;  %v20336_v58 = vrot.slane %v18210_v62, 2 }
 0x594   :  { %v7775_v11 = vadd.f32 %v7635_v13, %v7291_v51  ;;  %v6676_v15 = vadd.f32 %v6538_v25, %v6192_v40  ;;  %v6290_v46 = vmul.f32 %v20619_v0, %v18120_v26  ;;  %v5029_v13 = vmul.f32 %v20630_v2, %v17957_v30 }
 0x595   :  { %v5439_v14 = vrot.slane %v5190_v34, 1  ;;  %v5923_v44 = vrot.slane %v5674_v43, 2  ;;  %v7638_v48 = vsel %vm693_vm4, %v7636_v36, %v7637_v27  ;;  %v6774_v18 = vmul.f32 %v20620_v53, %v18120_v26 }
 0x596   :  { %v8259_v63 = vadd.f32 %v8119_v17, %v7775_v11  ;;  %v7160_v60 = vadd.f32 %v7022_v29, %v6676_v15  ;;  %v6539_v51 = vrot.slane %v6290_v46, 1  ;;  %v6129_v40 = vmul.f32 %v20618_v57, %v18081_v50 }
 0x597   :  { %v5440_v31 = vsel %vm693_vm4, %v5437_v22, %v5439_v14  ;;  %v7390_v17 = vmul.f32 %v20626_v41, %v18220_v39  ;;  %v7874_v30 = vmul.f32 %v18199_v33, %v18220_v39  ;;  %v8122_v36 = vsel %vm1178_vm5, %v8120_v28, %v20336_v58  ;;  %v18242_v34 = vpop.f32.mrb[38].mxu1 }
 0x598   :  { %11162 = vmatmul.mubr.msk.f32.gmra.mrb[62].mxu1 %vm38_vm1, %v8259_v63  ;;  %v7292_v25 = vadd.f32 %v7228_v1, %v7160_v60  ;;  %v5577_v11 = vadd.f32 %v5440_v31, %v5029_v13  ;;  %v7229_v29 = vmul.f32 %v20627_v45, %v18179_v3  ;;  %20646 = vst [vmem:[#allocation95_spill] sm:$0xff] %v18242_v34  ;;  %v7023_v15 = vrot.slane %v6774_v18, 2  ;;  %v18248_v63 = vpop.f32.mrb[39].mxu1 }
 0x599   :  { %v5924_v22 = vsel %vm1178_vm5, %v5921_v16, %v5923_v44  ;;  %v6540_v43 = vsel %vm693_vm4, %v6537_v21, %v6539_v51  ;;  %v5191_v46 = vmul.f32 %v20629_v47, %v18073_v6  ;;  %20647 = vst [vmem:[#allocation85_spill] sm:$0xff] %v18248_v63  ;;  %v7639_v60 = vrot.slane %v7390_v17, 1  ;;  %v18308_v63 = vld [vmem:[#allocation2 + $0x328] sm:$0x3] }
 0x59a   :  { %v7776_v1 = vadd.f32 %v7638_v48, %v7292_v25  ;;  %v6061_v14 = vadd.f32 %v5924_v22, %v5577_v11  ;;  %v18252_v28 = vmul.f32 %v20629_v47, %v18081_v50  ;;  %v8123_v13 = vrot.slane %v7874_v30, 2 }
 0x59b   :  { %v5030_v31 = vmul.f32 %v20630_v2, %v18073_v6  ;;  %v5441_v16 = vrot.slane %v5191_v46, 1  ;;  %v5675_v21 = vmul.f32 %v20631_v5, %v18073_v6  ;;  %v18261_v48 = vmul.f32 %v20631_v5, %v18081_v50 }
 0x59c   :  { %v8260_v44 = vadd.f32 %v8122_v36, %v7776_v1  ;;  %v6193_v51 = vadd.f32 %v6129_v40, %v6061_v14  ;;  %v5442_v18 = vrot.slane %v18252_v28, 1  ;;  %v7024_v17 = vsel %vm1178_vm5, %v7021_v20, %v7023_v15  ;;  %v18271_v40 = vld [vmem:[#allocation2 + $0x318] sm:$0xff]  ;;  %v18277_v15 = vld [vmem:[#allocation2 + $0x320] sm:$0xff] }
 0x59d   :  { %v5925_v25 = vrot.slane %v5675_v21, 2  ;;  %v6291_v30 = vmul.f32 %v20619_v0, %v18171_v23  ;;  %v18268_v11 = vmul.f32 %v20619_v0, %v18179_v3  ;;  %v5926_v22 = vrot.slane %v18261_v48, 2 }
 0x59e   :  { %11164 = vmatprep.mubr.msk.f32.mxu1 %vm38_vm1, %v8260_v44  ;;  %v6677_v6 = vadd.f32 %v6540_v43, %v6193_v51  ;;  %v5443_v36 = vsel %vm693_vm4, %v5441_v16, %v5442_v18  ;;  %v6775_v20 = vmul.f32 %v20620_v53, %v18171_v23  ;;  %v6776_v28 = vmul.f32 %v20620_v53, %v18179_v3 }
 0x59f   :  { %v5578_v46 = vadd.f32 %v5443_v36, %v5030_v31  ;;  %v6541_v1 = vrot.slane %v6291_v30, 1  ;;  %v6542_v14 = vrot.slane %v18268_v11, 1  ;;  %v7640_v43 = vsel %vm693_vm4, %v7637_v27, %v7639_v60 }
 0x5a0   :  { %v7161_v21 = vadd.f32 %v7024_v17, %v6677_v6  ;;  %v5927_v44 = vsel %vm1178_vm5, %v5925_v25, %v5926_v22  ;;  %v7025_v16 = vrot.slane %v6775_v20, 2  ;;  %v6130_v48 = vmul.f32 %v20618_v57, %v18171_v23 }
 0x5a1   :  { %v6062_v51 = vadd.f32 %v5927_v44, %v5578_v46  ;;  %v7026_v58 = vrot.slane %v6776_v28, 2  ;;  %v7391_v31 = vmul.f32 %v20626_v41, %v18271_v40  ;;  %v18290_v11 = vmul.f32 %v20626_v41, %v18277_v15 }
 0x5a2   :  { %v7293_v30 = vadd.f32 %v7229_v29, %v7161_v21  ;;  %v7875_v17 = vmul.f32 %v18199_v33, %v18271_v40  ;;  %v18296_v27 = vmul.f32 %v18199_v33, %v18277_v15  ;;  %v20648_v60 = vrot.slane %v18210_v62, 2 }
 0x5a3   :  { %v6194_v6 = vadd.f32 %v6130_v48, %v6062_v51  ;;  %v6543_v36 = vsel %vm693_vm4, %v6541_v1, %v6542_v14  ;;  %v7230_v29 = vmul.f32 %v20627_v45, %v18271_v40  ;;  %v7027_v46 = vsel %vm1178_vm5, %v7025_v16, %v7026_v58 }
 0x5a4   :  { %v8124_v25 = vsel %vm1178_vm5, %v20648_v60, %v8123_v13  ;;  %v7777_v20 = vadd.f32 %v7640_v43, %v7293_v30  ;;  %v7641_v28 = vrot.slane %v7391_v31, 1  ;;  %v5031_v21 = vmul.f32 %v20630_v2, %v18081_v50 }
 0x5a5   :  { %v6678_v44 = vadd.f32 %v6543_v36, %v6194_v6  ;;  %v7642_v34 = vrot.slane %v18290_v11, 1  ;;  %v5193_v62 = vmul.f32 %v20629_v47, %v18120_v26  ;;  %v5677_v13 = vmul.f32 %v20631_v5, %v18120_v26 }
 0x5a6   :  { %v8261_v1 = vadd.f32 %v8124_v25, %v7777_v20  ;;  %v8125_v51 = vrot.slane %v7875_v17, 2  ;;  %v8126_v43 = vrot.slane %v18296_v27, 2  ;;  %v6293_v16 = vmul.f32 %v20619_v0, %v18220_v39 }
 0x5a7   :  { %v7162_v48 = vadd.f32 %v7027_v46, %v6678_v44  ;;  %v5444_v50 = vrot.slane %v5193_v62, 1  ;;  %v5928_v31 = vrot.slane %v5677_v13, 2  ;;  %v6777_v30 = vmul.f32 %v20620_v53, %v18220_v39 }
 0x5a8   :  { %11165 = vmatmul.mubr.msk.f32.gmra.mrb[64].mxu1 %vm38_vm1, %v8261_v1  ;;  %v6131_v11 = vmul.f32 %v20618_v57, %v18179_v3  ;;  %v6544_v60 = vrot.slane %v6293_v16, 1  ;;  %v7393_v26 = vmul.f32 %v20626_v41, %v18308_v63  ;;  %v7877_v17 = vmul.f32 %v18199_v33, %v18308_v63  ;;  %v18328_v20 = vpop.f32.mrb[40].mxu1 }
 0x5a9   :  { %v7294_v27 = vadd.f32 %v7230_v29, %v7162_v48  ;;  %v7643_v25 = vsel %vm693_vm4, %v7641_v28, %v7642_v34  ;;  %v5445_v6 = vsel %vm693_vm4, %v5442_v18, %v5444_v50  ;;  %v7028_v36 = vrot.slane %v6777_v30, 2  ;;  %20649 = vst [vmem:[#allocation84_spill] sm:$0xff] %v18328_v20  ;;  %v18334_v1 = vpop.f32.mrb[41].mxu1 }
 0x5aa   :  { %v8127_v46 = vsel %vm1178_vm5, %v8125_v51, %v8126_v43  ;;  %v5579_v44 = vadd.f32 %v5445_v6, %v5031_v21  ;;  %v5929_v62 = vsel %vm1178_vm5, %v5926_v22, %v5928_v31  ;;  %v7231_v13 = vmul.f32 %v20627_v45, %v18277_v15  ;;  %20650 = vst [vmem:[#allocation87_spill] sm:$0xff] %v18334_v1  ;;  %v18395_v1 = vld [vmem:[#allocation2 + $0x340] sm:$0x3] }
 0x5ab   :  { %v7778_v16 = vadd.f32 %v7643_v25, %v7294_v27  ;;  %v6545_v29 = vsel %vm693_vm4, %v6542_v14, %v6544_v60  ;;  %v7644_v48 = vrot.slane %v7393_v26, 1  ;;  %v5194_v18 = vmul.f32 %v20629_v47, %v18171_v23 }
 0x5ac   :  { %v6063_v28 = vadd.f32 %v5929_v62, %v5579_v44  ;;  %v7029_v50 = vsel %vm1178_vm5, %v7026_v58, %v7028_v36  ;;  %v8128_v30 = vrot.slane %v7877_v17, 2  ;;  %v5195_v21 = vmul.f32 %v20629_v47, %v18179_v3  ;;  %v18353_v17 = vld [vmem:[#allocation2 + $0x330] sm:$0xff]  ;;  %v18361_v44 = vld [vmem:[#allocation2 + $0x338] sm:$0xff] }
 0x5ad   :  { %v8262_v22 = vadd.f32 %v8127_v46, %v7778_v16  ;;  %v5446_v51 = vrot.slane %v5194_v18, 1  ;;  %v5678_v31 = vmul.f32 %v20631_v5, %v18171_v23  ;;  %v18346_v27 = vmul.f32 %v20631_v5, %v18179_v3 }
 0x5ae   :  { %v6195_v14 = vadd.f32 %v6131_v11, %v6063_v28  ;;  %v5032_v60 = vmul.f32 %v20630_v2, %v18171_v23  ;;  %v5447_v26 = vrot.slane %v5195_v21, 1  ;;  %v6294_v58 = vmul.f32 %v20619_v0, %v18271_v40 }
 0x5af   :  { %11167 = vmatprep.mubr.msk.f32.mxu1 %vm38_vm1, %v8262_v22  ;;  %v5930_v25 = vrot.slane %v5678_v31, 2  ;;  %v5931_v6 = vrot.slane %v18346_v27, 2  ;;  %v6295_v36 = vmul.f32 %v20619_v0, %v18277_v15  ;;  %v6778_v11 = vmul.f32 %v20620_v53, %v18271_v40 }
 0x5b0   :  { %v6679_v46 = vadd.f32 %v6545_v29, %v6195_v14  ;;  %v7645_v23 = vsel %vm693_vm4, %v7642_v34, %v7644_v48  ;;  %v5448_v62 = vsel %vm693_vm4, %v5446_v51, %v5447_v26  ;;  %v18366_v16 = vmul.f32 %v20620_v53, %v18277_v15 }
 0x5b1   :  { %v5580_v18 = vadd.f32 %v5448_v62, %v5032_v60  ;;  %v5932_v28 = vsel %vm1178_vm5, %v5930_v25, %v5931_v6  ;;  %v6546_v21 = vrot.slane %v6294_v58, 1  ;;  %v6547_v22 = vrot.slane %v6295_v36, 1 }
 0x5b2   :  { %v7163_v31 = vadd.f32 %v7029_v50, %v6679_v46  ;;  %v7030_v27 = vrot.slane %v6778_v11, 2  ;;  %v7031_v20 = vrot.slane %v18366_v16, 2  ;;  %v7394_v34 = vmul.f32 %v20626_v41, %v18353_v17 }
 0x5b3   :  { %v6064_v29 = vadd.f32 %v5932_v28, %v5580_v18  ;;  %v6132_v48 = vmul.f32 %v20618_v57, %v18271_v40  ;;  %v18376_v51 = vmul.f32 %v20626_v41, %v18361_v44  ;;  %v7878_v14 = vmul.f32 %v18199_v33, %v18353_v17 }
 0x5b4   :  { %v7295_v60 = vadd.f32 %v7231_v13, %v7163_v31  ;;  %v8129_v50 = vsel %vm1178_vm5, %v8126_v43, %v8128_v30  ;;  %v7232_v58 = vmul.f32 %v20627_v45, %v18353_v17  ;;  %v18385_v25 = vmul.f32 %v18199_v33, %v18361_v44 }
 0x5b5   :  { %v6196_v36 = vadd.f32 %v6132_v48, %v6064_v29  ;;  %v6548_v11 = vsel %vm693_vm4, %v6546_v21, %v6547_v22  ;;  %v7646_v46 = vrot.slane %v7394_v34, 1  ;;  %v7647_v62 = vrot.slane %v18376_v51, 1 }
 0x5b6   :  { %v7779_v16 = vadd.f32 %v7645_v23, %v7295_v60  ;;  %v7032_v18 = vsel %vm1178_vm5, %v7030_v27, %v7031_v20  ;;  %v5196_v13 = vmul.f32 %v20629_v47, %v18220_v39  ;;  %v5680_v43 = vmul.f32 %v20631_v5, %v18220_v39 }
 0x5b7   :  { %v6680_v30 = vadd.f32 %v6548_v11, %v6196_v36  ;;  %v8130_v28 = vrot.slane %v7878_v14, 2  ;;  %v20341_v31 = vrot.slane %v18385_v25, 2  ;;  %v6296_v21 = vmul.f32 %v20619_v0, %v18308_v63 }
 0x5b8   :  { %v8263_v34 = vadd.f32 %v8129_v50, %v7779_v16  ;;  %v5033_v23 = vmul.f32 %v20630_v2, %v18179_v3  ;;  %v5449_v27 = vrot.slane %v5196_v13, 1  ;;  %v5933_v29 = vrot.slane %v5680_v43, 2 }
 0x5b9   :  { %v7164_v48 = vadd.f32 %v7032_v18, %v6680_v30  ;;  %v7648_v51 = vsel %vm693_vm4, %v7646_v46, %v7647_v62  ;;  %v6549_v60 = vrot.slane %v6296_v21, 1  ;;  %v6780_v39 = vmul.f32 %v20620_v53, %v18308_v63 }
 0x5ba   :  { %11168 = vmatmul.mubr.msk.f32.gmra.mrb[66].mxu1 %vm38_vm1, %v8263_v34  ;;  %v5450_v14 = vsel %vm693_vm4, %v5447_v26, %v5449_v27  ;;  %v6133_v36 = vmul.f32 %v20618_v57, %v18277_v15  ;;  %v7396_v50 = vmul.f32 %v20626_v41, %v18395_v1  ;;  %v7880_v3 = vmul.f32 %v18199_v33, %v18395_v1  ;;  %v18417_v13 = vpop.f32.mrb[42].mxu1 }
 0x5bb   :  { %v7296_v11 = vadd.f32 %v7232_v58, %v7164_v48  ;;  %v8132_v46 = vsel %vm1178_vm5, %v8130_v28, %v20341_v31  ;;  %v5581_v16 = vadd.f32 %v5450_v14, %v5033_v23  ;;  %v7233_v18 = vmul.f32 %v20627_v45, %v18361_v44  ;;  %20651 = vst [vmem:[#allocation86_spill] sm:$0xff] %v18417_v13  ;;  %v18423_v34 = vpop.f32.mrb[43].mxu1 }
 0x5bc   :  { %v5934_v26 = vsel %vm1178_vm5, %v5931_v6, %v5933_v29  ;;  %v6550_v43 = vsel %vm693_vm4, %v6547_v22, %v6549_v60  ;;  %v7033_v30 = vrot.slane %v6780_v39, 2  ;;  %v5197_v21 = vmul.f32 %v20629_v47, %v18271_v40 }
 0x5bd   :  { %v7780_v58 = vadd.f32 %v7648_v51, %v7296_v11  ;;  %v6065_v27 = vadd.f32 %v5934_v26, %v5581_v16  ;;  %v7649_v48 = vrot.slane %v7396_v50, 1  ;;  %v18427_v28 = vmul.f32 %v20629_v47, %v18277_v15 }
 0x5be   :  { %v8133_v23 = vrot.slane %v7880_v3, 2  ;;  %v5034_v14 = vmul.f32 %v20630_v2, %v18271_v40  ;;  %v5451_v6 = vrot.slane %v5197_v21, 1  ;;  %v5681_v22 = vmul.f32 %v20631_v5, %v18271_v40 }
 0x5bf   :  { %v8264_v29 = vadd.f32 %v8132_v46, %v7780_v58  ;;  %v6197_v60 = vadd.f32 %v6133_v36, %v6065_v27  ;;  %v5452_v39 = vrot.slane %v18427_v28, 1  ;;  %v18436_v51 = vmul.f32 %v20631_v5, %v18277_v15  ;;  %v4963_v36 = vld [vmem:[#allocation2 + $0x348] sm:$0xff] }
 0x5c0   :  { %v7034_v50 = vsel %vm1178_vm5, %v7031_v20, %v7033_v30  ;;  %v5935_v11 = vrot.slane %v5681_v22, 2  ;;  %v6297_v3 = vmul.f32 %v20619_v0, %v18353_v17  ;;  %v18443_v16 = vmul.f32 %v20619_v0, %v18361_v44  ;;  %v4964_v20 = vld [vmem:[#allocation2 + $0x350] sm:$0xff] }
 0x5c1   :  { %11170 = vmatprep.mubr.msk.f32.mxu1 %vm38_vm1, %v8264_v29  ;;  %v6681_v40 = vadd.f32 %v6550_v43, %v6197_v60  ;;  %v5453_v46 = vsel %vm693_vm4, %v5451_v6, %v5452_v39  ;;  %v5936_v26 = vrot.slane %v18436_v51, 2  ;;  %v6781_v21 = vmul.f32 %v20620_v53, %v18353_v17 }
 0x5c2   :  { %v5582_v30 = vadd.f32 %v5453_v46, %v5034_v14  ;;  %v6551_v58 = vrot.slane %v6297_v3, 1  ;;  %v6552_v27 = vrot.slane %v18443_v16, 1  ;;  %v18453_v28 = vmul.f32 %v20620_v53, %v18361_v44 }
 0x5c3   :  { %v7165_v22 = vadd.f32 %v7034_v50, %v6681_v40  ;;  %v7650_v43 = vsel %vm693_vm4, %v7647_v62, %v7649_v48  ;;  %v5937_v29 = vsel %vm1178_vm5, %v5935_v11, %v5936_v26  ;;  %v6134_v6 = vmul.f32 %v20618_v57, %v18353_v17 }
 0x5c4   :  { %v6066_v60 = vadd.f32 %v5937_v29, %v5582_v30  ;;  %v7035_v51 = vrot.slane %v6781_v21, 2  ;;  %v7397_v14 = vmul.f32 %v20626_v41, %v4963_v36  ;;  %v18462_v16 = vmul.f32 %v20626_v41, %v4964_v20 }
 0x5c5   :  { %v7297_v3 = vadd.f32 %v7233_v18, %v7165_v22  ;;  %v7881_v46 = vmul.f32 %v18199_v33, %v4963_v36  ;;  %v18466_v50 = vmul.f32 %v18199_v33, %v4964_v20  ;;  %v20652_v62 = vrot.slane %v18385_v25, 2 }
 0x5c6   :  { %v6198_v17 = vadd.f32 %v6134_v6, %v6066_v60  ;;  %v6553_v11 = vsel %vm693_vm4, %v6551_v58, %v6552_v27  ;;  %v7234_v40 = vmul.f32 %v20627_v45, %v4963_v36  ;;  %v7651_v30 = vrot.slane %v7397_v14, 1  ;;  %v4965_v60 = vld [vmem:[#allocation2 + $0x358] sm:$0x3] }
 0x5c7   :  { %v8134_v48 = vsel %vm1178_vm5, %v20652_v62, %v8133_v23  ;;  %v7781_v21 = vadd.f32 %v7650_v43, %v7297_v3  ;;  %v7652_v18 = vrot.slane %v18462_v16, 1  ;;  %v8135_v22 = vrot.slane %v7881_v46, 2 }
 0x5c8   :  { %v6682_v29 = vadd.f32 %v6553_v11, %v6198_v17  ;;  %v8136_v31 = vrot.slane %v18466_v50, 2  ;;  %v5199_v13 = vmul.f32 %v20629_v47, %v18308_v63  ;;  %v5683_v25 = vmul.f32 %v20631_v5, %v18308_v63 }
 0x5c9   :  { %v8265_v23 = vadd.f32 %v8134_v48, %v7781_v21  ;;  %v20653_v6 = vrot.slane %v18453_v28, 2  ;;  %v6299_v36 = vmul.f32 %v20619_v0, %v18395_v1  ;;  %v7653_v16 = vsel %vm693_vm4, %v7651_v30, %v7652_v18 }
 0x5ca   :  { %v5454_v14 = vrot.slane %v5199_v13, 1  ;;  %v5938_v3 = vrot.slane %v5683_v25, 2  ;;  %v5035_v47 = vmul.f32 %v20630_v2, %v18277_v15  ;;  %v6783_v63 = vmul.f32 %v20620_v53, %v18395_v1 }
 0x5cb   :  { %v7037_v58 = vsel %vm1178_vm5, %v7035_v51, %v20653_v6  ;;  %11171 = vmatmul.mubr.msk.f32.gmra.mrb[68].mxu1 %vm38_vm1, %v8265_v23  ;;  %v6554_v5 = vrot.slane %v6299_v36, 1  ;;  %v8137_v0 = vsel %vm1178_vm5, %v8135_v22, %v8136_v31  ;;  %v6135_v13 = vmul.f32 %v20618_v57, %v18361_v44  ;;  %v18496_v62 = vpop.f32.mrb[44].mxu1 }
 0x5cc   :  { %v7166_v43 = vadd.f32 %v7037_v58, %v6682_v29  ;;  %v5455_v51 = vsel %vm693_vm4, %v5452_v39, %v5454_v14  ;;  %v7235_v17 = vmul.f32 %v20627_v45, %v4964_v20  ;;  %v7399_v2 = vmul.f32 %v20626_v41, %v4965_v60  ;;  %v18501_v53 = vpop.f32.mrb[45].mxu1 }
 0x5cd   :  { %v5583_v48 = vadd.f32 %v5455_v51, %v5035_v47  ;;  %v7883_v15 = vmul.f32 %v18199_v33, %v4965_v60  ;;  %v5939_v11 = vsel %vm1178_vm5, %v5936_v26, %v5938_v3  ;;  %v8852_v39 = vsel %vm38_vm1, %v17866_v59, 0.0 }
 0x5ce   :  { %v7298_v46 = vadd.f32 %v7234_v40, %v7166_v43  ;;  %v8986_v57 = vmul.f32 %v17866_v59, %v17866_v59  ;;  %v6555_v40 = vsel %vm693_vm4, %v6552_v27, %v6554_v5  ;;  %v7038_v21 = vrot.slane %v6783_v63, 2 }
 0x5cf   :  { %v6067_v44 = vadd.f32 %v5939_v11, %v5583_v48  ;;  %v8851_v41 = vsel %vm38_vm1, %v17871_v10, 0.0  ;;  %v8985_v26 = vmul.f32 %v17871_v10, %v17871_v10  ;;  %v7654_v22 = vrot.slane %v7399_v2, 1 }
 0x5d0   :  { %v7782_v1 = vadd.f32 %v7653_v16, %v7298_v46  ;;  %v9050_v33 = vsel %vm38_vm1, %v8986_v57, 0.0  ;;  %v8853_v20 = vadd.f32 %v8852_v39, %v8851_v41  ;;  %v8138_v29 = vrot.slane %v7883_v15, 2 }
 0x5d1   :  { %v6199_v30 = vadd.f32 %v6135_v13, %v6067_v44  ;;  %v8854_v25 = vsel %vm38_vm1, %v17885_v38, 0.0  ;;  %v9049_v27 = vsel %vm38_vm1, %v8985_v26, 0.0  ;;  %v8988_v23 = vmul.f32 %v17880_v52, %v17880_v52 }
 0x5d2   :  { %v8266_v45 = vadd.f32 %v8137_v0, %v7782_v1  ;;  %v8855_v6 = vadd.f32 %v8854_v25, %v8853_v20  ;;  %v8987_v58 = vmul.f32 %v17885_v38, %v17885_v38  ;;  %v20654_v43 = vrot.slane %v18453_v28, 2 }
 0x5d3   :  { %v6683_v36 = vadd.f32 %v6555_v40, %v6199_v30  ;;  %v9051_v14 = vadd.f32 %v9050_v33, %v9049_v27  ;;  %v8856_v3 = vsel %vm38_vm1, %v17880_v52, 0.0  ;;  %v8858_v5 = vsel %vm38_vm1, %v17900_v56, 0.0 }
 0x5d4   :  { %11173 = vmatprep.mubr.msk.f32.mxu1 %vm38_vm1, %v8266_v45  ;;  %v7039_v60 = vsel %vm1178_vm5, %v20654_v43, %v7038_v21  ;;  %v8857_v16 = vadd.f32 %v8856_v3, %v8855_v6  ;;  %v9052_v47 = vsel %vm38_vm1, %v8987_v58, 0.0  ;;  %v8989_v63 = vmul.f32 %v17900_v56, %v17900_v56 }
 0x5d5   :  { %v7167_v46 = vadd.f32 %v7039_v60, %v6683_v36  ;;  %v7655_v0 = vsel %vm693_vm4, %v7652_v18, %v7654_v22  ;;  %v9053_v51 = vadd.f32 %v9052_v47, %v9051_v14  ;;  %v8860_v28 = vsel %vm38_vm1, %v17889_v19, 0.0 }
 0x5d6   :  { %v9054_v13 = vsel %vm38_vm1, %v8988_v23, 0.0  ;;  %v8990_v48 = vmul.f32 %v17889_v19, %v17889_v19  ;;  %v8859_v2 = vadd.f32 %v8858_v5, %v8857_v16  ;;  %v9056_v15 = vsel %vm38_vm1, %v8989_v63, 0.0 }
 0x5d7   :  { %v7299_v1 = vadd.f32 %v7235_v17, %v7167_v46  ;;  %v9055_v11 = vadd.f32 %v9054_v13, %v9053_v51  ;;  %v8862_v39 = vsel %vm38_vm1, %v17914_v37, 0.0  ;;  %v8991_v18 = vmul.f32 %v17914_v37, %v17914_v37 }
 0x5d8   :  { %v8139_v57 = vsel %vm1178_vm5, %v8136_v31, %v8138_v29  ;;  %v8861_v44 = vadd.f32 %v8860_v28, %v8859_v2  ;;  %v8992_v41 = vmul.f32 %v17906_v55, %v17906_v55  ;;  %v9058_v45 = vsel %vm38_vm1, %v8990_v48, 0.0 }
 0x5d9   :  { %v7783_v40 = vadd.f32 %v7655_v0, %v7299_v1  ;;  %v9057_v21 = vadd.f32 %v9056_v15, %v9055_v11  ;;  %v9060_v33 = vsel %vm38_vm1, %v8991_v18, 0.0  ;;  %v8993_v20 = vmul.f32 %v17927_v32, %v17927_v32 }
 0x5da   :  { %v8863_v17 = vadd.f32 %v8862_v39, %v8861_v44  ;;  %v8864_v50 = vsel %vm38_vm1, %v17906_v55, 0.0  ;;  %v8866_v31 = vsel %vm38_vm1, %v17927_v32, 0.0  ;;  %v9062_v29 = vsel %vm38_vm1, %v8992_v41, 0.0 }
 0x5db   :  { %v8267_v26 = vadd.f32 %v8139_v57, %v7783_v40  ;;  %v9059_v30 = vadd.f32 %v9058_v45, %v9057_v21  ;;  %v8994_v27 = vmul.f32 %v17919_v8, %v17919_v8  ;;  %v9064_v6 = vsel %vm38_vm1, %v8993_v20, 0.0 }
 0x5dc   :  { %v8865_v22 = vadd.f32 %v8864_v50, %v8863_v17  ;;  %v8995_v58 = vmul.f32 %v17942_v4, %v17942_v4  ;;  %v8868_v43 = vsel %vm38_vm1, %v17919_v8, 0.0  ;;  %v8870_v14 = vsel %vm38_vm1, %v17942_v4, 0.0 }
 0x5dd   :  { %11174 = vmatmul.mubr.msk.f32.gmra.mrb[70].mxu1 %vm38_vm1, %v8267_v26  ;;  %v9061_v25 = vadd.f32 %v9060_v33, %v9059_v30  ;;  %v18563_v36 = vpop.f32.mrb[46].mxu1  ;;  %v8996_v5 = vmul.f32 %v17935_v35, %v17935_v35  ;;  %v9066_v63 = vsel %vm38_vm1, %v8994_v27, 0.0  ;;  %v8997_v51 = vmul.f32 %v17964_v42, %v17964_v42 }
 0x5de   :  { %v8867_v23 = vadd.f32 %v8866_v31, %v8865_v22  ;;  %20655 = vst [vmem:[#allocation89_spill] sm:$0xff] %v18563_v36  ;;  %v18569_v3 = vpop.f32.mrb[47].mxu1  ;;  %v9068_v0 = vsel %vm38_vm1, %v8995_v58, 0.0  ;;  %v8872_v28 = vsel %vm38_vm1, %v17935_v35, 0.0  ;;  %v8874_v48 = vsel %vm38_vm1, %v17964_v42, 0.0 }
 0x5df   :  { %v9063_v60 = vadd.f32 %v9062_v29, %v9061_v25  ;;  %20656 = vst [vmem:[#allocation88_spill] sm:$0xff] %v18569_v3  ;;  %v9070_v15 = vsel %vm38_vm1, %v8996_v5, 0.0  ;;  %v8998_v11 = vmul.f32 %v17954_v9, %v17954_v9  ;;  %v9072_v18 = vsel %vm38_vm1, %v8997_v51, 0.0 }
 0x5e0   :  { %v8869_v16 = vadd.f32 %v8868_v43, %v8867_v23  ;;  %v8999_v57 = vmul.f32 %v17975_v61, %v17975_v61  ;;  %v8876_v44 = vsel %vm38_vm1, %v17954_v9, 0.0  ;;  %v8878_v21 = vsel %vm38_vm1, %v17975_v61, 0.0 }
 0x5e1   :  { %v9065_v47 = vadd.f32 %v9064_v6, %v9063_v60  ;;  %v9000_v17 = vmul.f32 %v17970_v24, %v17970_v24  ;;  %v9074_v33 = vsel %vm38_vm1, %v8998_v11, 0.0  ;;  %v9001_v50 = vmul.f32 %v17996_v7, %v17996_v7 }
 0x5e2   :  { %v8871_v46 = vadd.f32 %v8870_v14, %v8869_v16  ;;  %v9076_v26 = vsel %vm38_vm1, %v8999_v57, 0.0  ;;  %v8880_v30 = vsel %vm38_vm1, %v17970_v24, 0.0  ;;  %v8882_v22 = vsel %vm38_vm1, %v17996_v7, 0.0 }
 0x5e3   :  { %v9067_v13 = vadd.f32 %v9066_v63, %v9065_v47  ;;  %v9078_v25 = vsel %vm38_vm1, %v9000_v17, 0.0  ;;  %v9002_v23 = vmul.f32 %v17985_v54, %v17985_v54  ;;  %v9080_v58 = vsel %vm38_vm1, %v9001_v50, 0.0 }
 0x5e4   :  { %v8873_v2 = vadd.f32 %v8872_v28, %v8871_v46  ;;  %v9003_v43 = vmul.f32 %v18016_v12, %v18016_v12  ;;  %v8884_v60 = vsel %vm38_vm1, %v17985_v54, 0.0  ;;  %v8886_v16 = vsel %vm38_vm1, %v18016_v12, 0.0 }
 0x5e5   :  { %v9069_v1 = vadd.f32 %v9068_v0, %v9067_v13  ;;  %v9004_v0 = vmul.f32 %v18012_v49, %v18012_v49  ;;  %v9082_v51 = vsel %vm38_vm1, %v9002_v23, 0.0  ;;  %v20663_v23 = vld [vmem:[#allocation82_spill] sm:$0xff] }
 0x5e6   :  { %v8875_v39 = vadd.f32 %v8874_v48, %v8873_v2  ;;  %v9084_v13 = vsel %vm38_vm1, %v9003_v43, 0.0  ;;  %v20659_v48 = vld [vmem:[#allocation78_spill] sm:$0xff] }
 0x5e7   :  { %v9071_v40 = vadd.f32 %v9070_v15, %v9069_v1  ;;  %v9005_v2 = vmul.f32 %v20659_v48, %v20659_v48  ;;  %v8888_v15 = vsel %vm38_vm1, %v18012_v49, 0.0  ;;  %v8890_v11 = vsel %vm38_vm1, %v20659_v48, 0.0 }
 0x5e8   :  { %v8877_v41 = vadd.f32 %v8876_v44, %v8875_v39  ;;  %v20660_v44 = vld [vmem:[#allocation80_spill] sm:$0xff] }
 0x5e9   :  { %v9073_v45 = vadd.f32 %v9072_v18, %v9071_v40  ;;  %v9086_v18 = vsel %vm38_vm1, %v9004_v0, 0.0  ;;  %v9006_v40 = vmul.f32 %v20660_v44, %v20660_v44 }
 0x5ea   :  { %v8879_v20 = vadd.f32 %v8878_v21, %v8877_v41  ;;  %v9088_v41 = vsel %vm38_vm1, %v9005_v2, 0.0 }
 0x5eb   :  { %v9075_v31 = vadd.f32 %v9074_v33, %v9073_v45  ;;  %v20661_v45 = vld [vmem:[#allocation81_spill] sm:$0xff]  ;;  %v8892_v33 = vsel %vm38_vm1, %v20660_v44, 0.0 }
 0x5ec   :  { %v8881_v29 = vadd.f32 %v8880_v30, %v8879_v20  ;;  %v9007_v17 = vmul.f32 %v20661_v45, %v20661_v45 }
 0x5ed   :  { %v9077_v27 = vadd.f32 %v9076_v26, %v9075_v31  ;;  %v8894_v26 = vsel %vm38_vm1, %v20661_v45, 0.0  ;;  %v20662_v31 = vld [vmem:[#allocation83_spill] sm:$0xff] }
 0x5ee   :  { %v8883_v6 = vadd.f32 %v8882_v22, %v8881_v29  ;;  %v18611_v47 = vpop.f32.mrb[48].mxu1  ;;  %v9008_v22 = vmul.f32 %v20662_v31, %v20662_v31  ;;  %v9090_v29 = vsel %vm38_vm1, %v9006_v40, 0.0 }
 0x5ef   :  { %v9079_v14 = vadd.f32 %v9078_v25, %v9077_v27  ;;  %20657 = vst [vmem:[#allocation71_spill] sm:$0xff] %v18611_v47  ;;  %v18613_v63 = vpop.f32.mrb[49].mxu1  ;;  %v9092_v27 = vsel %vm38_vm1, %v9007_v17, 0.0 }
 0x5f0   :  { %v8885_v5 = vadd.f32 %v8884_v60, %v8883_v6  ;;  %20658 = vst [vmem:[#allocation69_spill] sm:$0xff] %v18613_v63  ;;  %v9009_v6 = vmul.f32 %v20663_v23, %v20663_v23  ;;  %v8898_v60 = vsel %vm38_vm1, %v20663_v23, 0.0 }
 0x5f1   :  { %v9081_v46 = vadd.f32 %v9080_v58, %v9079_v14  ;;  %v8896_v58 = vsel %vm38_vm1, %v20662_v31, 0.0 }
 0x5f2   :  { %v8887_v28 = vadd.f32 %v8886_v16, %v8885_v5  ;;  %v9094_v16 = vsel %vm38_vm1, %v9008_v22, 0.0 }
 0x5f3   :  { %v9083_v1 = vadd.f32 %v9082_v51, %v9081_v46  ;;  %v20664_v46 = vld [vmem:[#allocation90_spill] sm:$0xff] }
 0x5f4   :  { %v8889_v39 = vadd.f32 %v8888_v15, %v8887_v28  ;;  %v9010_v0 = vmul.f32 %v20664_v46, %v20664_v46  ;;  %v9096_v28 = vsel %vm38_vm1, %v9009_v6, 0.0  ;;  %v8900_v15 = vsel %vm38_vm1, %v20664_v46, 0.0 }
 0x5f5   :  { %v9085_v57 = vadd.f32 %v9084_v13, %v9083_v1  ;;  %v20665_v13 = vld [vmem:[#allocation91_spill] sm:$0xff] }
 0x5f6   :  { %v8891_v21 = vadd.f32 %v8890_v11, %v8889_v39  ;;  %v9011_v2 = vmul.f32 %v20665_v13, %v20665_v13  ;;  %v8902_v11 = vsel %vm38_vm1, %v20665_v13, 0.0 }
 0x5f7   :  { %v9087_v20 = vadd.f32 %v9086_v18, %v9085_v57  ;;  %v20666_v57 = vld [vmem:[#allocation92_spill] sm:$0xff] }
 0x5f8   :  { %v8893_v50 = vadd.f32 %v8892_v33, %v8891_v21  ;;  %v9012_v40 = vmul.f32 %v20666_v57, %v20666_v57  ;;  %v9100_v33 = vsel %vm38_vm1, %v9011_v2, 0.0 }
 0x5f9   :  { %v9089_v30 = vadd.f32 %v9088_v41, %v9087_v20  ;;  %v9098_v41 = vsel %vm38_vm1, %v9010_v0, 0.0  ;;  %v20668_v20 = vld [vmem:[#allocation93_spill] sm:$0xff] }
 0x5fa   :  { %v8895_v25 = vadd.f32 %v8894_v26, %v8893_v50  ;;  %v9013_v26 = vmul.f32 %v20668_v20, %v20668_v20 }
 0x5fb   :  { %v9091_v43 = vadd.f32 %v9090_v29, %v9089_v30  ;;  %v8904_v30 = vsel %vm38_vm1, %v20666_v57, 0.0  ;;  %v8906_v29 = vsel %vm38_vm1, %v20668_v20, 0.0 }
 0x5fc   :  { %v8897_v14 = vadd.f32 %v8896_v58, %v8895_v25  ;;  %v20670_v58 = vld [vmem:[#allocation94_spill] sm:$0xff] }
 0x5fd   :  { %v9093_v5 = vadd.f32 %v9092_v27, %v9091_v43  ;;  %v9102_v27 = vsel %vm38_vm1, %v9012_v40, 0.0  ;;  %v9014_v43 = vmul.f32 %v20670_v58, %v20670_v58  ;;  %v8908_v0 = vsel %vm38_vm1, %v20670_v58, 0.0 }
 0x5fe   :  { %v8899_v51 = vadd.f32 %v8898_v60, %v8897_v14  ;;  %v9104_v14 = vsel %vm38_vm1, %v9013_v26, 0.0 }
 0x5ff   :  { %v9095_v1 = vadd.f32 %v9094_v16, %v9093_v5  ;;  %v20671_v16 = vld [vmem:[#allocation85_spill] sm:$0xff] }
 0x600   :  { %v8901_v39 = vadd.f32 %v8900_v15, %v8899_v51  ;;  %v18657_v21 = vpop.f32.mrb[50].mxu1  ;;  %v9015_v5 = vmul.f32 %v20671_v16, %v20671_v16 }
 0x601   :  { %v9097_v18 = vadd.f32 %v9096_v28, %v9095_v1  ;;  %20667 = vst [vmem:[#allocation73_spill] sm:$0xff] %v18657_v21  ;;  %v18663_v50 = vpop.f32.mrb[51].mxu1  ;;  %v8910_v28 = vsel %vm38_vm1, %v20671_v16, 0.0  ;;  %v20672_v1 = vld [vmem:[#allocation95_spill] sm:$0xff] }
 0x602   :  { %v8903_v17 = vadd.f32 %v8902_v11, %v8901_v39  ;;  %20669 = vst [vmem:[#allocation70_spill] sm:$0xff] %v18663_v50  ;;  %v9016_v11 = vmul.f32 %v20672_v1, %v20672_v1  ;;  %v9106_v39 = vsel %vm38_vm1, %v9014_v43, 0.0  ;;  %v9108_v40 = vsel %vm38_vm1, %v9015_v5, 0.0 }
 0x603   :  { %v9099_v22 = vadd.f32 %v9098_v41, %v9097_v18  ;;  %v20673_v41 = vld [vmem:[#allocation87_spill] sm:$0xff] }
 0x604   :  { %v8905_v25 = vadd.f32 %v8904_v30, %v8903_v17  ;;  %v9017_v17 = vmul.f32 %v20673_v41, %v20673_v41  ;;  %v8914_v30 = vsel %vm38_vm1, %v20673_v41, 0.0 }
 0x605   :  { %v9101_v6 = vadd.f32 %v9100_v33, %v9099_v22  ;;  %v8912_v33 = vsel %vm38_vm1, %v20672_v1, 0.0 }
 0x606   :  { %v8907_v60 = vadd.f32 %v8906_v29, %v8905_v25  ;;  %v9110_v29 = vsel %vm38_vm1, %v9016_v11, 0.0 }
 0x607   :  { %v9103_v51 = vadd.f32 %v9102_v27, %v9101_v6  ;;  %v20674_v27 = vld [vmem:[#allocation84_spill] sm:$0xff] }
 0x608   :  { %v8909_v2 = vadd.f32 %v8908_v0, %v8907_v60  ;;  %v9018_v6 = vmul.f32 %v20674_v27, %v20674_v27  ;;  %v9112_v60 = vsel %vm38_vm1, %v9017_v17, 0.0  ;;  %v8916_v5 = vsel %vm38_vm1, %v20674_v27, 0.0 }
 0x609   :  { %v9105_v15 = vadd.f32 %v9104_v14, %v9103_v51  ;;  %v9019_v14 = vmul.f32 %v18423_v34, %v18423_v34  ;;  %v8918_v51 = vsel %vm38_vm1, %v18423_v34, 0.0  ;;  %v9021_v17 = vmul.f32 %v18501_v53, %v18501_v53 }
 0x60a   :  { %v8911_v18 = vadd.f32 %v8910_v28, %v8909_v2 }
 0x60b   :  { %v9107_v26 = vadd.f32 %v9106_v39, %v9105_v15  ;;  %v20675_v15 = vld [vmem:[#allocation86_spill] sm:$0xff]  ;;  %v9114_v39 = vsel %vm38_vm1, %v9018_v6, 0.0 }
 0x60c   :  { %v8913_v22 = vadd.f32 %v8912_v33, %v8911_v18  ;;  %v9020_v11 = vmul.f32 %v20675_v15, %v20675_v15 }
 0x60d   :  { %v9109_v25 = vadd.f32 %v9108_v40, %v9107_v26  ;;  %v9116_v40 = vsel %vm38_vm1, %v9019_v14, 0.0  ;;  %v8920_v26 = vsel %vm38_vm1, %v20675_v15, 0.0 }
 0x60e   :  { %v8915_v43 = vadd.f32 %v8914_v30, %v8913_v22  ;;  %v8922_v22 = vsel %vm38_vm1, %v18501_v53, 0.0  ;;  %v9118_v6 = vsel %vm38_vm1, %v9020_v11, 0.0  ;;  %v9024_v11 = vmul.f32 %v18563_v36, %v18563_v36 }
 0x60f   :  { %v9111_v0 = vadd.f32 %v9110_v29, %v9109_v25 }
 0x610   :  { %v8917_v28 = vadd.f32 %v8916_v5, %v8915_v43  ;;  %v9120_v5 = vsel %vm38_vm1, %v9021_v17, 0.0 }
 0x611   :  { %v9113_v2 = vadd.f32 %v9112_v60, %v9111_v0  ;;  %v18705_v33 = vpop.f32.mrb[52].mxu1  ;;  %v9022_v60 = vmul.f32 %v18496_v62, %v18496_v62  ;;  %v9023_v0 = vmul.f32 %v18569_v3, %v18569_v3 }
 0x612   :  { %v8919_v18 = vadd.f32 %v8918_v51, %v8917_v28  ;;  %20676 = vst [vmem:[#allocation75_spill] sm:$0xff] %v18705_v33  ;;  %v18711_v29 = vpop.f32.mrb[53].mxu1  ;;  %v8924_v51 = vsel %vm38_vm1, %v18496_v62, 0.0 }
 0x613   :  { %v9115_v30 = vadd.f32 %v9114_v39, %v9113_v2  ;;  %20677 = vst [vmem:[#allocation72_spill] sm:$0xff] %v18711_v29  ;;  %v8926_v2 = vsel %vm38_vm1, %v18569_v3, 0.0  ;;  %v9124_v17 = vsel %vm38_vm1, %v9023_v0, 0.0 }
 0x614   :  { %v8921_v25 = vadd.f32 %v8920_v26, %v8919_v18 }
 0x615   :  { %v9117_v43 = vadd.f32 %v9116_v40, %v9115_v30  ;;  %v9122_v40 = vsel %vm38_vm1, %v9022_v60, 0.0  ;;  %v9025_v30 = vmul.f32 %v18613_v63, %v18613_v63  ;;  %v9026_v60 = vmul.f32 %v18611_v47, %v18611_v47 }
 0x616   :  { %v8923_v14 = vadd.f32 %v8922_v22, %v8921_v25  ;;  %v8928_v22 = vsel %vm38_vm1, %v18563_v36, 0.0 }
 0x617   :  { %v9119_v28 = vadd.f32 %v9118_v6, %v9117_v43  ;;  %v8930_v6 = vsel %vm38_vm1, %v18613_v63, 0.0  ;;  %v9128_v0 = vsel %vm38_vm1, %v9025_v30, 0.0 }
 0x618   :  { %v8925_v39 = vadd.f32 %v8924_v51, %v8923_v14  ;;  %v9126_v14 = vsel %vm38_vm1, %v9024_v11, 0.0  ;;  %v9028_v11 = vmul.f32 %v18657_v21, %v18657_v21 }
 0x619   :  { %v9121_v18 = vadd.f32 %v9120_v5, %v9119_v28  ;;  %v9027_v28 = vmul.f32 %v18663_v50, %v18663_v50 }
 0x61a   :  { %v8927_v26 = vadd.f32 %v8926_v2, %v8925_v39  ;;  %v8932_v2 = vsel %vm38_vm1, %v18611_v47, 0.0 }
 0x61b   :  { %v9123_v25 = vadd.f32 %v9122_v40, %v9121_v18  ;;  %v8934_v18 = vsel %vm38_vm1, %v18663_v50, 0.0  ;;  %v9132_v30 = vsel %vm38_vm1, %v9027_v28, 0.0  ;;  %v9030_v28 = vmul.f32 %v18705_v33, %v18705_v33 }
 0x61c   :  { %v8929_v43 = vadd.f32 %v8928_v22, %v8927_v26 }
 0x61d   :  { %v9125_v5 = vadd.f32 %v9124_v17, %v9123_v25  ;;  %v9130_v17 = vsel %vm38_vm1, %v9026_v60, 0.0  ;;  %v9029_v25 = vmul.f32 %v18711_v29, %v18711_v29 }
 0x61e   :  { %v8931_v51 = vadd.f32 %v8930_v6, %v8929_v43  ;;  %v8936_v6 = vsel %vm38_vm1, %v18657_v21, 0.0 }
 0x61f   :  { %v9127_v39 = vadd.f32 %v9126_v14, %v9125_v5  ;;  %v8938_v14 = vsel %vm38_vm1, %v18711_v29, 0.0 }
 0x620   :  { %v8933_v40 = vadd.f32 %v8932_v2, %v8931_v51 }
 0x621   :  { %v9129_v26 = vadd.f32 %v9128_v0, %v9127_v39  ;;  %v9134_v0 = vsel %vm38_vm1, %v9028_v11, 0.0 }
 0x622   :  { %v8935_v22 = vadd.f32 %v8934_v18, %v8933_v40  ;;  %v9136_v18 = vsel %vm38_vm1, %v9029_v25, 0.0 }
 0x623   :  { %v9131_v43 = vadd.f32 %v9130_v17, %v9129_v26  ;;  %v18753_v51 = vpop.f32.mrb[54].mxu1  ;;  %v8940_v26 = vsel %vm38_vm1, %v18705_v33, 0.0 }
 0x624   :  { %v8937_v5 = vadd.f32 %v8936_v6, %v8935_v22  ;;  %20678 = vst [vmem:[#allocation77_spill] sm:$0xff] %v18753_v51  ;;  %v18756_v60 = vpop.f32.mrb[55].mxu1  ;;  %v9138_v6 = vsel %vm38_vm1, %v9030_v28, 0.0 }
 0x625   :  { %v9133_v2 = vadd.f32 %v9132_v30, %v9131_v43  ;;  %20679 = vst [vmem:[#allocation74_spill] sm:$0xff] %v18756_v60  ;;  %v9031_v40 = vmul.f32 %v18756_v60, %v18756_v60  ;;  %v8942_v22 = vsel %vm38_vm1, %v18756_v60, 0.0  ;;  %v9032_v43 = vmul.f32 %v18753_v51, %v18753_v51 }
 0x626   :  { %v8939_v39 = vadd.f32 %v8938_v14, %v8937_v5  ;;  %v8944_v5 = vsel %vm38_vm1, %v18753_v51, 0.0 }
 0x627   :  { %v9135_v17 = vadd.f32 %v9134_v0, %v9133_v2  ;;  %v9140_v25 = vsel %vm38_vm1, %v9031_v40, 0.0  ;;  %v9142_v0 = vsel %vm38_vm1, %v9032_v43, 0.0 }
 0x628   :  { %v8941_v11 = vadd.f32 %v8940_v26, %v8939_v39 }
 0x629   :  { %v9137_v30 = vadd.f32 %v9136_v18, %v9135_v17 }
 0x62a   :  { %v8943_v14 = vadd.f32 %v8942_v22, %v8941_v11 }
 0x62b   :  { %v9139_v29 = vadd.f32 %v9138_v6, %v9137_v30 }
 0x62c   :  { %v8945_v21 = vadd.f32 %v8944_v5, %v8943_v14 }
 0x62d   :  { %v9141_v33 = vadd.f32 %v9140_v25, %v9139_v29 }
 0x62f   :  { %v9143_v2 = vadd.f32 %v9142_v0, %v9141_v33 }
 0x634   :  { %v18774_v60 = vpop.f32.mrb[56].mxu1 }
 0x635   :  { %20680 = vst [vmem:[#allocation79_spill] sm:$0xff] %v18774_v60  ;;  %v18776_v39 = vpop.f32.mrb[57].mxu1  ;;  %v9034_v28 = vmul.f32 %v18774_v60, %v18774_v60  ;;  %v8948_v29 = vsel %vm38_vm1, %v18774_v60, 0.0 }
 0x636   :  { %20681 = vst [vmem:[#allocation76_spill] sm:$0xff] %v18776_v39  ;;  %v8946_v18 = vsel %vm38_vm1, %v18776_v39, 0.0  ;;  %v9033_v40 = vmul.f32 %v18776_v39, %v18776_v39  ;;  %v20696_v39 = vlaneseq }
 0x637   :  { %v8947_v26 = vadd.f32 %v8946_v18, %v8945_v21  ;;  %v9146_v11 = vsel %vm38_vm1, %v9034_v28, 0.0 }
 0x638   :  { %v9144_v17 = vsel %vm38_vm1, %v9033_v40, 0.0  ;;  %v18889_v51 = vand.u32 127, %v20696_v39 }
 0x639   :  { %v9145_v33 = vadd.f32 %v9144_v17, %v9143_v2  ;;  %v8949_v22 = vadd.f32 %v8948_v29, %v8947_v26 }
 0x63a   :  { %20697 = vst [vmem:[#allocation80_spill] sm:$0xff] %v18889_v51 }
 0x63b   :  { %v9147_v30 = vadd.f32 %v9146_v11, %v9145_v33 }
 0x646   :  { %v18788_v6 = vpop.f32.mrb[58].mxu1 }
 0x647   :  { %20682 = vst [vmem:[#allocation101_spill] sm:$0xff] %v18788_v6  ;;  %v18790_v43 = vpop.f32.mrb[59].mxu1  ;;  %v9036_v14 = vmul.f32 %v18788_v6, %v18788_v6  ;;  %v8952_v0 = vsel %vm38_vm1, %v18788_v6, 0.0 }
 0x648   :  { %20683 = vst [vmem:[#allocation103_spill] sm:$0xff] %v18790_v43  ;;  %v8950_v21 = vsel %vm38_vm1, %v18790_v43, 0.0  ;;  %v9035_v25 = vmul.f32 %v18790_v43, %v18790_v43 }
 0x649   :  { %v8951_v5 = vadd.f32 %v8950_v21, %v8949_v22  ;;  %v9150_v40 = vsel %vm38_vm1, %v9036_v14, 0.0 }
 0x64a   :  { %v9148_v2 = vsel %vm38_vm1, %v9035_v25, 0.0 }
 0x64b   :  { %v9149_v28 = vadd.f32 %v9148_v2, %v9147_v30  ;;  %v8953_v18 = vadd.f32 %v8952_v0, %v8951_v5 }
 0x64d   :  { %v9151_v26 = vadd.f32 %v9150_v40, %v9149_v28 }
 0x657   :  { %v18802_v29 = vpop.f32.mrb[60].mxu1 }
 0x658   :  { %20684 = vst [vmem:[#allocation105_spill] sm:$0xff] %v18802_v29  ;;  %v18804_v17 = vpop.f32.mrb[61].mxu1  ;;  %v9038_v33 = vmul.f32 %v18802_v29, %v18802_v29  ;;  %v8956_v30 = vsel %vm38_vm1, %v18802_v29, 0.0 }
 0x659   :  { %20685 = vst [vmem:[#allocation100_spill] sm:$0xff] %v18804_v17  ;;  %v8954_v22 = vsel %vm38_vm1, %v18804_v17, 0.0  ;;  %v9037_v11 = vmul.f32 %v18804_v17, %v18804_v17 }
 0x65a   :  { %v8955_v21 = vadd.f32 %v8954_v22, %v8953_v18  ;;  %v9154_v0 = vsel %vm38_vm1, %v9038_v33, 0.0 }
 0x65b   :  { %v9152_v14 = vsel %vm38_vm1, %v9037_v11, 0.0 }
 0x65c   :  { %v9153_v25 = vadd.f32 %v9152_v14, %v9151_v26  ;;  %v8957_v5 = vadd.f32 %v8956_v30, %v8955_v21 }
 0x65e   :  { %v9155_v2 = vadd.f32 %v9154_v0, %v9153_v25 }
 0x66b   :  { %v18816_v28 = vpop.f32.mrb[62].mxu1 }
 0x66c   :  { %20686 = vst [vmem:[#allocation99_spill] sm:$0xff] %v18816_v28  ;;  %v18818_v40 = vpop.f32.mrb[63].mxu1  ;;  %v9040_v6 = vmul.f32 %v18816_v28, %v18816_v28  ;;  %v8960_v26 = vsel %vm38_vm1, %v18816_v28, 0.0 }
 0x66d   :  { %20687 = vst [vmem:[#allocation104_spill] sm:$0xff] %v18818_v40  ;;  %v8958_v18 = vsel %vm38_vm1, %v18818_v40, 0.0  ;;  %v9039_v22 = vmul.f32 %v18818_v40, %v18818_v40 }
 0x66e   :  { %v8959_v29 = vadd.f32 %v8958_v18, %v8957_v5  ;;  %v9158_v30 = vsel %vm38_vm1, %v9040_v6, 0.0 }
 0x66f   :  { %v9156_v33 = vsel %vm38_vm1, %v9039_v22, 0.0 }
 0x670   :  { %v9157_v11 = vadd.f32 %v9156_v33, %v9155_v2  ;;  %v8961_v21 = vadd.f32 %v8960_v26, %v8959_v29 }
 0x672   :  { %v9159_v14 = vadd.f32 %v9158_v30, %v9157_v11 }
 0x67b   :  { %v18830_v25 = vpop.f32.mrb[64].mxu1 }
 0x67c   :  { %20688 = vst [vmem:[#allocation106_spill] sm:$0xff] %v18830_v25  ;;  %v18832_v0 = vpop.f32.mrb[65].mxu1  ;;  %v9042_v17 = vmul.f32 %v18830_v25, %v18830_v25  ;;  %v8964_v29 = vsel %vm38_vm1, %v18830_v25, 0.0 }
 0x67d   :  { %20689 = vst [vmem:[#allocation102_spill] sm:$0xff] %v18832_v0  ;;  %v8962_v5 = vsel %vm38_vm1, %v18832_v0, 0.0  ;;  %v9041_v18 = vmul.f32 %v18832_v0, %v18832_v0 }
 0x67e   :  { %v8963_v28 = vadd.f32 %v8962_v5, %v8961_v21  ;;  %v9162_v26 = vsel %vm38_vm1, %v9042_v17, 0.0 }
 0x67f   :  { %v9160_v6 = vsel %vm38_vm1, %v9041_v18, 0.0 }
 0x680   :  { %v9161_v2 = vadd.f32 %v9160_v6, %v9159_v14  ;;  %v8965_v22 = vadd.f32 %v8964_v29, %v8963_v28 }
 0x682   :  { %v9163_v33 = vadd.f32 %v9162_v26, %v9161_v2 }
 0x68d   :  { %v18844_v11 = vpop.f32.mrb[66].mxu1 }
 0x68e   :  { %20690 = vst [vmem:[#allocation107_spill] sm:$0xff] %v18844_v11  ;;  %v18846_v30 = vpop.f32.mrb[67].mxu1  ;;  %v9044_v40 = vmul.f32 %v18844_v11, %v18844_v11  ;;  %v8968_v28 = vsel %vm38_vm1, %v18844_v11, 0.0 }
 0x68f   :  { %20691 = vst [vmem:[#allocation96_spill] sm:$0xff] %v18846_v30  ;;  %v8966_v21 = vsel %vm38_vm1, %v18846_v30, 0.0  ;;  %v9043_v5 = vmul.f32 %v18846_v30, %v18846_v30 }
 0x690   :  { %v8967_v25 = vadd.f32 %v8966_v21, %v8965_v22  ;;  %v9166_v29 = vsel %vm38_vm1, %v9044_v40, 0.0 }
 0x691   :  { %v9164_v17 = vsel %vm38_vm1, %v9043_v5, 0.0 }
 0x692   :  { %v9165_v14 = vadd.f32 %v9164_v17, %v9163_v33  ;;  %v8969_v18 = vadd.f32 %v8968_v28, %v8967_v25 }
 0x694   :  { %v9167_v6 = vadd.f32 %v9166_v29, %v9165_v14  ;;  %v20694_v14 = vld [vmem:[#allocation7_spill] sm:$0xff] }
 0x695   :  { %v9475_v29 = vshra.s32 %v20694_v14, 6 }
 0x697   :  { %v9491_v60 = vmul.u32 64, %v9475_v29 }
 0x69e   :  { %v18858_v2 = vpop.f32.mrb[68].mxu1 }
 0x69f   :  { %20692 = vst [vmem:[#allocation98_spill] sm:$0xff] %v18858_v2  ;;  %v18860_v26 = vpop.f32.mrb[69].mxu1  ;;  %v9046_v0 = vmul.f32 %v18858_v2, %v18858_v2  ;;  %v8972_v25 = vsel %vm38_vm1, %v18858_v2, 0.0  ;;  %v9571_v2 = vmul.u32 16, %v9475_v29  ;;  %v9460_v29 = vadd.s32 8, %v20694_v14 }
 0x6a0   :  { %20693 = vst [vmem:[#allocation97_spill] sm:$0xff] %v18860_v26  ;;  %v8970_v22 = vsel %vm38_vm1, %v18860_v26, 0.0  ;;  %v9045_v21 = vmul.f32 %v18860_v26, %v18860_v26 }
 0x6a1   :  { %v8971_v11 = vadd.f32 %v8970_v22, %v8969_v18  ;;  %v9170_v28 = vsel %vm38_vm1, %v9046_v0, 0.0  ;;  %v9507_v0 = vsub.s32 %v20694_v14, %v9491_v60 }
 0x6a2   :  { %v9168_v40 = vsel %vm38_vm1, %v9045_v21, 0.0 }
 0x6a3   :  { %v9169_v33 = vadd.f32 %v9168_v40, %v9167_v6  ;;  %v8973_v5 = vadd.f32 %v8972_v25, %v8971_v11 }
 0x6a5   :  { %v9171_v17 = vadd.f32 %v9170_v28, %v9169_v33  ;;  %v9523_v28 = vshra.s32 %v9507_v0, 3 }
 0x6a7   :  { %v9539_v63 = vmul.u32 8, %v9523_v28 }
 0x6a9   :  { %v9555_v36 = vsub.s32 %v9507_v0, %v9539_v63  ;;  %v9461_v63 = vadd.s32 16, %v20694_v14 }
 0x6b0   :  { %v18873_v30 = vpop.f32.mrb[70].mxu1 }
 0x6b1   :  { %20695 = vst [vmem:[#allocation78_spill] sm:$0xff] %v18873_v30  ;;  %v18875_v43 = vpop.f32.mrb[71].mxu1  ;;  %v9048_v18 = vmul.f32 %v18873_v30, %v18873_v30  ;;  %v8976_v21 = vsel %vm38_vm1, %v18873_v30, 0.0  ;;  %v18892_v30 = vadd.s32 128, %v18889_v51 }
 0x6b2   :  { %v8974_v22 = vsel %vm38_vm1, %v18875_v43, 0.0  ;;  %v9047_v6 = vmul.f32 %v18875_v43, %v18875_v43 }
 0x6b3   :  { %v8975_v11 = vadd.f32 %v8974_v22, %v8973_v5  ;;  %v9174_v26 = vsel %vm38_vm1, %v9048_v18, 0.0  ;;  %v9587_v5 = vmul.u32 2, %v9523_v28  ;;  %20698 = vst [vmem:[#allocation81_spill] sm:$0xff] %v18892_v30 }
 0x6b4   :  { %v9172_v25 = vsel %vm38_vm1, %v9047_v6, 0.0 }
 0x6b5   :  { %v8977_v40 = vadd.f32 %v8976_v21, %v8975_v11  ;;  %v9173_v33 = vadd.f32 %v9172_v25, %v9171_v17  ;;  %v9603_v3 = vadd.s32 %v9587_v5, %v9571_v2  ;;  %v18895_v17 = vadd.s32 384, %v18889_v51 }
 0x6b6   :  { %v9635_v11 = vmul.u32 2, %v9555_v36  ;;  %v9477_v5 = vshra.s32 %v9461_v63, 6 }
 0x6b7   :  { %v8978_v50 = vrot.slane %v8977_v40, 4  ;;  %v9175_v47 = vadd.f32 %v9174_v26, %v9173_v33  ;;  %20699 = vst [vmem:[#allocation83_spill] sm:$0xff] %v18895_v17  ;;  %v9619_v39 = vmul.u32 16, %v9603_v3 }
 0x6b9   :  { %v8979_v22 = vadd.f32 %v8978_v50, %v8977_v40  ;;  %v9176_v60 = vrot.slane %v9175_v47, 4  ;;  %v18898_v25 = vadd.s32 %v9635_v11, %v9619_v39  ;;  %v9476_v50 = vshra.s32 %v9460_v29, 6 }
 0x6ba   :  { %v20372_v40 = vmov 1.0   ;;  %v9493_v39 = vmul.u32 64, %v9477_v5  ;;  %v18908_v11 = vadd.s32 24, %v20694_v14 }
 0x6bb   :  { %v8980_v18 = vrot.slane %v8979_v22, 2  ;;  %v9177_v6 = vadd.f32 %v9176_v60, %v9175_v47  ;;  %20700 = vst [vmem:[#allocation82_spill] sm:$0xff] %v18898_v25  ;;  %vm9673_vm6 = vcmp.eq.s32.totalorder %v18892_v30, %v18898_v25  ;;  %vm9675_vm7 = vcmp.eq.s32.totalorder %v18895_v17, %v18898_v25 }
 0x6bc   :  { %10591 = vmatprep.mubr.msk.f32.mxu0 %vm9673_vm6, %v20372_v40  ;;  %10623 = vmatprep.mubr.msk.f32.mxu1 %vm9675_vm7, %v20372_v40  ;;  %v9492_v28 = vmul.u32 64, %v9476_v50  ;;  %20701 = vst [vmem:[#allocation90_spill] sm:$0xff] %v18908_v11  ;;  %v18910_v30 = vsub.s32 %v9461_v63, %v9493_v39  ;;  %v8269_v63 = vld [vmem:[%s20170_s7] sm:$0x1]  ;;  %v18936_v25 = vmul.u32 16, %v9477_v5 }
 0x6bd   :  { %v8981_v21 = vadd.f32 %v8980_v18, %v8979_v22  ;;  %v9178_v26 = vrot.slane %v9177_v6, 2 }
 0x6be   :  { %20702 = vst [vmem:[#allocation91_spill] sm:$0xff] %v18910_v30  ;;  %20708 = vst [vmem:[#allocation87_spill] sm:$0xff] %v18936_v25  ;;  %v20734_v25 = vld [vmem:[#allocation100_spill] sm:$0xff] }
 0x6bf   :  { %v8982_v2 = vrot.slane %v8981_v21, 1  ;;  %v9179_v0 = vadd.f32 %v9178_v26, %v9177_v6  ;;  %v9508_v6 = vsub.s32 %v9460_v29, %v9492_v28 }
 0x6c1   :  { %v8983_v36 = vadd.f32 %v8982_v2, %v8981_v21  ;;  %v9180_v3 = vrot.slane %v9179_v0, 1  ;;  %v9524_v17 = vshra.s32 %v9508_v6, 3  ;;  %v20374_v21 = vshra.s32 %v18908_v11, 6 }
 0x6c2   :  { %v18914_v2 = vadd.s32 32, %v20694_v14 }
 0x6c3   :  { %v8984_v47 = vmul.f32 0.001953125, %v8983_v36  ;;  %v9181_v33 = vadd.f32 %v9180_v3, %v9179_v0  ;;  %v9540_v0 = vmul.u32 8, %v9524_v17  ;;  %v9572_v36 = vmul.u32 16, %v9476_v50 }
 0x6c4   :  { %20703 = vst [vmem:[#allocation92_spill] sm:$0xff] %v18914_v2  ;;  %v9525_v3 = vshra.s32 %v18910_v30, 3  ;;  %v9494_v29 = vmul.u32 64, %v20374_v21  ;;  %v20377_v28 = vshra.s32 %v18914_v2, 6  ;;  %v20725_v30 = vld [vmem:[#allocation72_spill] sm:$0xff] }
 0x6c5   :  { %v9182_v22 = vmul.f32 0.001953125, %v9181_v33  ;;  %v9183_v60 = vmul.f32 %v8984_v47, %v8984_v47  ;;  %v9588_v33 = vmul.u32 2, %v9524_v17 }
 0x6c6   :  { %v18931_v50 = vsub.s32 %v18908_v11, %v9494_v29  ;;  %v18948_v29 = vmul.u32 2, %v9525_v3  ;;  %v20712_v11 = vld [vmem:[#allocation12_spill] sm:$0xff] }
 0x6c7   :  { %v9184_v18 = vsub.f32 %v9182_v22, %v9183_v60  ;;  %v18921_v22 = vadd.s32 40, %v20694_v14  ;;  %v9556_v60 = vsub.s32 %v9508_v6, %v9540_v0  ;;  %v18928_v39 = vadd.s32 %v9588_v33, %v9572_v36  ;;  %v8270_v6 = vld [vmem:[%s20171_s8] sm:$0x1] }
 0x6c8   :  { %20707 = vst [vmem:[#allocation95_spill] sm:$0xff] %v18931_v50  ;;  %v18942_v0 = vadd.s32 256, %v18889_v51  ;;  %20711 = vst [vmem:[#allocation108_spill] sm:$0xff] %v18948_v29  ;;  %v18963_v51 = vadd.s32 48, %v20694_v14  ;;  %v20731_v50 = vld [vmem:[#allocation103_spill] sm:$0xff]  ;;  %v20732_v29 = vld [vmem:[#allocation101_spill] sm:$0xff] }
 0x6c9   :  { %v9185_v26 = vadd.f32 1e-05, %v9184_v18  ;;  %20704 = vst [vmem:[#allocation93_spill] sm:$0xff] %v18921_v22  ;;  %v18926_v18 = vmul.u32 8, %v9525_v3  ;;  %20706 = vst [vmem:[#allocation85_spill] sm:$0xff] %v18928_v39  ;;  %v18944_v36 = vmul.u32 2, %v9556_v60 }
 0x6ca   :  { %20709 = vst [vmem:[#allocation84_spill] sm:$0xff] %v18942_v0  ;;  %v20714_v0 = vshra.s32 %v18921_v22, 6  ;;  %20716 = vst [vmem:[#allocation110_spill] sm:$0xff] %v18963_v51  ;;  %v18966_v3 = vadd.s32 56, %v20694_v14  ;;  %v20727_v22 = vld [vmem:[#allocation74_spill] sm:$0xff]  ;;  %v20730_v39 = vld [vmem:[#allocation79_spill] sm:$0xff] }
 0x6cb   :  { %11272 = vrsqrt.f32 %v9185_v26  ;;  %20705 = vst [vmem:[#allocation94_spill] sm:$0xff] %v18926_v18  ;;  %v9495_v26 = vmul.u32 64, %v20377_v28  ;;  %20710 = vst [vmem:[#allocation86_spill] sm:$0xff] %v18944_v36  ;;  %v20724_v18 = vld [vmem:[#allocation73_spill] sm:$0xff]  ;;  %v20729_v36 = vld [vmem:[#allocation76_spill] sm:$0xff] }
 0x6cc   :  { %v18960_v60 = vmul.u32 64, %v20714_v0  ;;  %20717 = vst [vmem:[#allocation111_spill] sm:$0xff] %v18966_v3  ;;  %v20736_v14 = vld [vmem:[#allocation105_spill] sm:$0xff]  ;;  %v20740_v3 = vld [vmem:[#allocation99_spill] sm:$0xff]  ;;  %v20742_v51 = vld [vmem:[#allocation102_spill] sm:$0xff] }
 0x6ce   :  { %20715 = vst [vmem:[#allocation109_spill] sm:$0xff] %v18960_v60  ;;  %v20728_v60 = vld [vmem:[#allocation77_spill] sm:$0xff] }
 0x6d5   :  { %v11273_v17 = vpop.eup %11272 }
 0x6d6   :  { %v9187_v21 = vmul.f32 %v11273_v17, %v8269_v63  ;;  %v18956_v17 = vsub.s32 %v18914_v2, %v9495_v26  ;;  %v20722_v63 = vld [vmem:[#allocation71_spill] sm:$0xff]  ;;  %v20723_v2 = vld [vmem:[#allocation70_spill] sm:$0xff] }
 0x6d8   :  { %v9188_v28 = vmul.f32 %v9187_v21, %v8984_v47  ;;  %v18951_v40 = vrot.slane %v9187_v21, %v20712_v11  ;;  %20713 = vst [vmem:[#allocation12_spill] sm:$0xff] %v18956_v17  ;;  %v20726_v17 = vld [vmem:[#allocation75_spill] sm:$0xff] }
 0x6da   :  { %v9189_v47 = vsub.f32 %v8270_v6, %v9188_v28  ;;  %v9258_v21 = vmul.f32 %v18951_v40, %v18875_v43  ;;  %v18972_v33 = vmul.f32 %v18951_v40, %v17871_v10  ;;  %v18976_v26 = vmul.f32 %v17866_v59, %v18951_v40  ;;  %v20719_v6 = vld [vmem:[#allocation88_spill] sm:$0xff] }
 0x6db   :  { %v18980_v0 = vmul.f32 %v18951_v40, %v17885_v38  ;;  %v18984_v5 = vmul.f32 %v17880_v52, %v18951_v40  ;;  %v18988_v28 = vmul.f32 %v18951_v40, %v17900_v56  ;;  %v18992_v10 = vmul.f32 %v17889_v19, %v18951_v40 }
 0x6dc   :  { %v18995_v43 = vrot.slane %v9189_v47, %v20712_v11  ;;  %v18999_v59 = vmul.f32 %v18951_v40, %v17914_v37  ;;  %v19003_v38 = vmul.f32 %v17906_v55, %v18951_v40  ;;  %v19007_v52 = vmul.f32 %v18951_v40, %v17927_v32  ;;  %v20720_v47 = vld [vmem:[#allocation89_spill] sm:$0xff] }
 0x6dd   :  { %v19011_v56 = vmul.f32 %v17919_v8, %v18951_v40  ;;  %v19015_v19 = vmul.f32 %v18951_v40, %v17942_v4  ;;  %v19019_v37 = vmul.f32 %v17935_v35, %v18951_v40  ;;  %v19023_v55 = vmul.f32 %v18951_v40, %v17964_v42 }
 0x6de   :  { %v19026_v11 = vadd.f32 %v18995_v43, %v9258_v21  ;;  %v19030_v32 = vmul.f32 %v17954_v9, %v18951_v40  ;;  %v19034_v8 = vmul.f32 %v18951_v40, %v17975_v61  ;;  %v19038_v4 = vmul.f32 %v17970_v24, %v18951_v40  ;;  %v20721_v21 = vld [vmem:[#allocation69_spill] sm:$0xff] }
 0x6df   :  { %v19042_v35 = vmul.f32 %v18951_v40, %v17996_v7  ;;  %v19046_v42 = vmul.f32 %v17985_v54, %v18951_v40  ;;  %v19050_v9 = vmul.f32 %v18951_v40, %v18016_v12  ;;  %v19054_v61 = vmul.f32 %v18012_v49, %v18951_v40 }
 0x6e0   :  { %20718 = vst [vmem:[#allocation112_spill] sm:$0xff] %v19026_v11  ;;  %v19058_v24 = vmul.f32 %v18951_v40, %v20659_v48  ;;  %v19062_v7 = vmul.f32 %v20660_v44, %v18951_v40  ;;  %v19066_v54 = vmul.f32 %v18951_v40, %v20661_v45  ;;  %v19070_v12 = vmul.f32 %v20662_v31, %v18951_v40  ;;  %v20738_v11 = vld [vmem:[#allocation104_spill] sm:$0xff] }
 0x6e1   :  { %v19074_v49 = vmul.f32 %v18951_v40, %v20663_v23  ;;  %v19078_v48 = vmul.f32 %v20664_v46, %v18951_v40  ;;  %v19082_v44 = vmul.f32 %v18951_v40, %v20665_v13  ;;  %v19086_v45 = vmul.f32 %v20666_v57, %v18951_v40 }
 0x6e2   :  { %v19090_v31 = vmul.f32 %v18951_v40, %v20668_v20  ;;  %v19094_v23 = vmul.f32 %v20670_v58, %v18951_v40  ;;  %v19098_v46 = vmul.f32 %v18951_v40, %v20671_v16  ;;  %v19102_v13 = vmul.f32 %v20672_v1, %v18951_v40 }
 0x6e3   :  { %v19106_v57 = vmul.f32 %v18951_v40, %v20673_v41  ;;  %v19110_v20 = vmul.f32 %v20674_v27, %v18951_v40  ;;  %v19114_v58 = vmul.f32 %v18951_v40, %v18423_v34  ;;  %v19118_v16 = vmul.f32 %v20675_v15, %v18951_v40 }
 0x6e4   :  { %v19122_v1 = vmul.f32 %v18951_v40, %v18501_v53  ;;  %v19126_v41 = vmul.f32 %v18496_v62, %v18951_v40  ;;  %v19130_v27 = vmul.f32 %v18951_v40, %v20719_v6  ;;  %v19134_v34 = vmul.f32 %v20720_v47, %v18951_v40 }
 0x6e5   :  { %v19138_v15 = vmul.f32 %v18951_v40, %v20721_v21  ;;  %v19142_v53 = vmul.f32 %v20722_v63, %v18951_v40  ;;  %v19146_v62 = vmul.f32 %v18951_v40, %v20723_v2  ;;  %v19150_v6 = vmul.f32 %v20724_v18, %v18951_v40 }
 0x6e6   :  { %v19154_v47 = vmul.f32 %v18951_v40, %v20725_v30  ;;  %v19158_v21 = vmul.f32 %v20726_v17, %v18951_v40  ;;  %v19162_v63 = vmul.f32 %v18951_v40, %v20727_v22  ;;  %v19166_v2 = vmul.f32 %v20728_v60, %v18951_v40 }
 0x6e7   :  { %v19170_v18 = vmul.f32 %v18951_v40, %v20729_v36  ;;  %v19174_v30 = vmul.f32 %v20730_v39, %v18951_v40  ;;  %v19178_v17 = vmul.f32 %v18951_v40, %v20731_v50  ;;  %v19182_v22 = vmul.f32 %v20732_v29, %v18951_v40 }
 0x6e8   :  { %v19186_v60 = vmul.f32 %v18951_v40, %v20734_v25  ;;  %v19190_v36 = vmul.f32 %v20736_v14, %v18951_v40  ;;  %v19194_v39 = vmul.f32 %v18951_v40, %v20738_v11  ;;  %v19198_v50 = vmul.f32 %v20740_v3, %v18951_v40 }
 0x6e9   :  { %20733 = vst [vmem:[#allocation88_spill] sm:$0xff] %v19182_v22  ;;  %v19202_v29 = vmul.f32 %v18951_v40, %v20742_v51  ;;  %v20744_v22 = vld [vmem:[#allocation106_spill] sm:$0xff] }
 0x6ea   :  { %20735 = vst [vmem:[#allocation89_spill] sm:$0xff] %v19186_v60  ;;  %20737 = vst [vmem:[#allocation69_spill] sm:$0xff] %v19190_v36  ;;  %v19206_v25 = vmul.f32 %v20744_v22, %v18951_v40  ;;  %v20745_v60 = vld [vmem:[#allocation96_spill] sm:$0xff]  ;;  %v20746_v36 = vld [vmem:[#allocation107_spill] sm:$0xff] }
 0x6eb   :  { %20739 = vst [vmem:[#allocation71_spill] sm:$0xff] %v19194_v39  ;;  %20741 = vst [vmem:[#allocation70_spill] sm:$0xff] %v19198_v50  ;;  %v19210_v14 = vmul.f32 %v18951_v40, %v20745_v60  ;;  %v19214_v11 = vmul.f32 %v20746_v36, %v18951_v40  ;;  %v20747_v39 = vld [vmem:[#allocation97_spill] sm:$0xff]  ;;  %v20748_v50 = vld [vmem:[#allocation98_spill] sm:$0xff]  ;;  %v19230_v60 = vadd.f32 %v18995_v43, %v18972_v33 }
 0x6ec   :  { %20743 = vst [vmem:[#allocation73_spill] sm:$0xff] %v19202_v29  ;;  %v19218_v3 = vmul.f32 %v18951_v40, %v20747_v39  ;;  %v19222_v51 = vmul.f32 %v20748_v50, %v18951_v40  ;;  %v20749_v29 = vld [vmem:[#allocation78_spill] sm:$0xff]  ;;  %v19234_v36 = vadd.f32 %v18995_v43, %v18976_v26  ;;  %v19238_v39 = vadd.f32 %v18995_v43, %v18980_v0 }
 0x6ed   :  { %v19226_v22 = vmul.f32 %v20749_v29, %v18951_v40  ;;  %v19242_v50 = vadd.f32 %v18995_v43, %v18984_v5  ;;  %v19246_v40 = vadd.f32 %v18995_v43, %v18988_v28  ;;  %v19250_v33 = vadd.f32 %v18995_v43, %v18992_v10 }
 0x6ee   :  { %v19254_v26 = vadd.f32 %v18995_v43, %v18999_v59  ;;  %v19258_v0 = vadd.f32 %v18995_v43, %v19003_v38  ;;  %v19262_v5 = vadd.f32 %v18995_v43, %v19007_v52  ;;  %v19266_v28 = vadd.f32 %v18995_v43, %v19011_v56 }
 0x6ef   :  { %v19270_v10 = vadd.f32 %v18995_v43, %v19015_v19  ;;  %v19274_v59 = vadd.f32 %v18995_v43, %v19019_v37  ;;  %v19278_v38 = vadd.f32 %v18995_v43, %v19023_v55  ;;  %v19282_v52 = vadd.f32 %v18995_v43, %v19030_v32 }
 0x6f0   :  { %v19286_v56 = vadd.f32 %v18995_v43, %v19034_v8  ;;  %v19290_v19 = vadd.f32 %v18995_v43, %v19038_v4  ;;  %v19294_v37 = vadd.f32 %v18995_v43, %v19042_v35  ;;  %v19298_v55 = vadd.f32 %v18995_v43, %v19046_v42 }
 0x6f1   :  { %v19302_v32 = vadd.f32 %v18995_v43, %v19050_v9  ;;  %v19306_v8 = vadd.f32 %v18995_v43, %v19054_v61  ;;  %v19310_v4 = vadd.f32 %v18995_v43, %v19058_v24  ;;  %v19314_v35 = vadd.f32 %v18995_v43, %v19062_v7 }
 0x6f2   :  { %v19318_v42 = vadd.f32 %v18995_v43, %v19066_v54  ;;  %v19322_v9 = vadd.f32 %v18995_v43, %v19070_v12  ;;  %v19326_v61 = vadd.f32 %v18995_v43, %v19074_v49  ;;  %v19330_v24 = vadd.f32 %v18995_v43, %v19078_v48 }
 0x6f3   :  { %v19334_v7 = vadd.f32 %v18995_v43, %v19082_v44  ;;  %v19338_v54 = vadd.f32 %v18995_v43, %v19086_v45  ;;  %v19342_v12 = vadd.f32 %v18995_v43, %v19090_v31  ;;  %v19346_v49 = vadd.f32 %v18995_v43, %v19094_v23 }
 0x6f4   :  { %20750 = vst [vmem:[#allocation72_spill] sm:$0xff] %v19326_v61  ;;  %20751 = vst [vmem:[#allocation75_spill] sm:$0xff] %v19330_v24  ;;  %v19350_v48 = vadd.f32 %v18995_v43, %v19098_v46  ;;  %v19354_v44 = vadd.f32 %v18995_v43, %v19102_v13  ;;  %v9298_v45 = vadd.f32 %v18995_v43, %v19106_v57  ;;  %v20796_v24 = vld [vmem:[#allocation40_spill] sm:$0xff] }
 0x6f5   :  { %20752 = vst [vmem:[#allocation74_spill] sm:$0xff] %v19334_v7  ;;  %20753 = vst [vmem:[#allocation77_spill] sm:$0xff] %v19338_v54  ;;  %v9299_v29 = vadd.f32 %v18995_v43, %v19110_v20  ;;  %v9300_v31 = vadd.f32 %v18995_v43, %v19114_v58  ;;  %v9301_v23 = vadd.f32 %v18995_v43, %v19118_v16  ;;  %v20765_v54 = vld [vmem:[#allocation73_spill] sm:$0xff]  ;;  %v20794_v7 = vld [vmem:[#allocation38_spill] sm:$0xff] }
 0x6f6   :  { %20754 = vst [vmem:[#allocation76_spill] sm:$0xff] %v19342_v12  ;;  %20755 = vst [vmem:[#allocation79_spill] sm:$0xff] %v19346_v49  ;;  %v9302_v46 = vadd.f32 %v18995_v43, %v19122_v1  ;;  %v9304_v13 = vadd.f32 %v18995_v43, %v19130_v27  ;;  %v9305_v57 = vadd.f32 %v18995_v43, %v19134_v34  ;;  %v20761_v49 = vld [vmem:[#allocation71_spill] sm:$0xff]  ;;  %v20763_v12 = vld [vmem:[#allocation70_spill] sm:$0xff] }
 0x6f7   :  { %20756 = vst [vmem:[#allocation103_spill] sm:$0xff] %v19350_v48  ;;  %20757 = vst [vmem:[#allocation101_spill] sm:$0xff] %v19354_v44  ;;  %v9303_v48 = vadd.f32 %v18995_v43, %v19126_v41  ;;  %v9306_v20 = vadd.f32 %v18995_v43, %v19138_v15  ;;  %v9307_v58 = vadd.f32 %v18995_v43, %v19142_v53 }
 0x6f8   :  { %v9308_v16 = vadd.f32 %v18995_v43, %v19146_v62  ;;  %v9309_v1 = vadd.f32 %v18995_v43, %v19150_v6  ;;  %v9310_v41 = vadd.f32 %v18995_v43, %v19154_v47  ;;  %v9311_v27 = vadd.f32 %v18995_v43, %v19158_v21  ;;  %v20758_v47 = vld [vmem:[#allocation88_spill] sm:$0xff] }
 0x6f9   :  { %v9312_v34 = vadd.f32 %v18995_v43, %v19162_v63  ;;  %v9313_v15 = vadd.f32 %v18995_v43, %v19166_v2  ;;  %v19390_v53 = vadd.f32 %v18995_v43, %v19170_v18  ;;  %v19394_v62 = vadd.f32 %v18995_v43, %v19174_v30  ;;  %v20759_v63 = vld [vmem:[#allocation89_spill] sm:$0xff] }
 0x6fa   :  { %v19398_v6 = vadd.f32 %v18995_v43, %v19178_v17  ;;  %v19402_v21 = vadd.f32 %v18995_v43, %v20758_v47  ;;  %v19406_v44 = vadd.f32 %v18995_v43, %v20759_v63  ;;  %v20760_v2 = vld [vmem:[#allocation69_spill] sm:$0xff]  ;;  %v19414_v30 = vadd.f32 %v18995_v43, %v20761_v49 }
 0x6fb   :  { %v19410_v18 = vadd.f32 %v18995_v43, %v20760_v2  ;;  %v19418_v17 = vadd.f32 %v18995_v43, %v20763_v12  ;;  %v19422_v47 = vadd.f32 %v18995_v43, %v20765_v54  ;;  %v19426_v63 = vadd.f32 %v18995_v43, %v19206_v25 }
 0x6fc   :  { %20762 = vst [vmem:[#allocation100_spill] sm:$0xff] %v19414_v30  ;;  %v19430_v2 = vadd.f32 %v18995_v43, %v19210_v14  ;;  %v19434_v49 = vadd.f32 %v18995_v43, %v19214_v11  ;;  %v19438_v12 = vadd.f32 %v18995_v43, %v19218_v3  ;;  %v19442_v54 = vadd.f32 %v18995_v43, %v19222_v51 }
 0x6fd   :  { %20764 = vst [vmem:[#allocation105_spill] sm:$0xff] %v19418_v17  ;;  %20766 = vst [vmem:[#allocation104_spill] sm:$0xff] %v19422_v47  ;;  %v19446_v25 = vadd.f32 %v18995_v43, %v19226_v22  ;;  %v20775_v47 = vld [vmem:[#allocation3_spill] sm:$0xff]  ;;  %v20779_v22 = vld [vmem:[#allocation8_spill] sm:$0xff]  ;;  %v9365_v61 = vadd.f32 %v9301_v23, %v20796_v24 }
 0x6fe   :  { %20767 = vst [vmem:[#allocation99_spill] sm:$0xff] %v19426_v63  ;;  %20768 = vst [vmem:[#allocation102_spill] sm:$0xff] %v19430_v2  ;;  %v19452_v11 = vadd.f32 %v19230_v60, %v20775_v47  ;;  %v19468_v63 = vadd.f32 %v19246_v40, %v20779_v22  ;;  %v20780_v2 = vld [vmem:[#allocation9_spill] sm:$0xff]  ;;  %v20781_v47 = vld [vmem:[#allocation10_spill] sm:$0xff] }
 0x6ff   :  { %20769 = vst [vmem:[#allocation106_spill] sm:$0xff] %v19434_v49  ;;  %20770 = vst [vmem:[#allocation96_spill] sm:$0xff] %v19438_v12  ;;  %v20776_v49 = vld [vmem:[#allocation4_spill] sm:$0xff]  ;;  %v20777_v12 = vld [vmem:[#allocation5_spill] sm:$0xff]  ;;  %v19472_v60 = vadd.f32 %v19250_v33, %v20780_v2 }
 0x700   :  { %20771 = vst [vmem:[#allocation107_spill] sm:$0xff] %v19442_v54  ;;  %20772 = vst [vmem:[#allocation97_spill] sm:$0xff] %v19446_v25  ;;  %v19456_v3 = vadd.f32 %v19234_v36, %v20776_v49  ;;  %v19460_v51 = vadd.f32 %v19238_v39, %v20777_v12  ;;  %v20778_v54 = vld [vmem:[#allocation6_spill] sm:$0xff]  ;;  %v19476_v36 = vadd.f32 %v19254_v26, %v20781_v47  ;;  %v20782_v49 = vld [vmem:[#allocation11_spill] sm:$0xff] }
 0x701   :  { %v19464_v43 = vadd.f32 %v19242_v50, %v20778_v54  ;;  %v19480_v39 = vadd.f32 %v19258_v0, %v20782_v49  ;;  %v20783_v12 = vld [vmem:[#allocation13_spill] sm:$0xff]  ;;  %v20784_v54 = vld [vmem:[#allocation14_spill] sm:$0xff]  ;;  %v20785_v22 = vld [vmem:[#allocation15_spill] sm:$0xff]  ;;  %v9363_v25 = vadd.f32 %v9299_v29, %v20794_v7 }
 0x702   :  { %v19484_v50 = vadd.f32 %v19262_v5, %v20783_v12  ;;  %v19488_v40 = vadd.f32 %v19266_v28, %v20784_v54  ;;  %v19492_v33 = vadd.f32 %v19270_v10, %v20785_v22  ;;  %v20786_v2 = vld [vmem:[#allocation16_spill] sm:$0xff]  ;;  %v20787_v47 = vld [vmem:[#allocation17_spill] sm:$0xff]  ;;  %v20788_v49 = vld [vmem:[#allocation18_spill] sm:$0xff] }
 0x703   :  { %v19496_v26 = vadd.f32 %v19274_v59, %v20786_v2  ;;  %v19500_v0 = vadd.f32 %v19278_v38, %v20787_v47  ;;  %v19504_v5 = vadd.f32 %v19282_v52, %v20788_v49  ;;  %v20789_v12 = vld [vmem:[#allocation19_spill] sm:$0xff]  ;;  %v20790_v54 = vld [vmem:[#allocation20_spill] sm:$0xff]  ;;  %v20791_v22 = vld [vmem:[#allocation21_spill] sm:$0xff] }
 0x704   :  { %v19508_v28 = vadd.f32 %v19286_v56, %v20789_v12  ;;  %v19512_v10 = vadd.f32 %v19290_v19, %v20790_v54  ;;  %v9346_v59 = vadd.f32 %v19294_v37, %v20791_v22  ;;  %v20792_v2 = vld [vmem:[#allocation22_spill] sm:$0xff]  ;;  %v20793_v38 = vld [vmem:[#allocation37_spill] sm:$0xff]  ;;  %v20795_v52 = vld [vmem:[#allocation39_spill] sm:$0xff] }
 0x705   :  { %v9347_v14 = vadd.f32 %v19298_v55, %v20792_v2  ;;  %v9362_v47 = vadd.f32 %v9298_v45, %v20793_v38  ;;  %v9364_v49 = vadd.f32 %v9300_v31, %v20795_v52  ;;  %v20797_v56 = vld [vmem:[#allocation41_spill] sm:$0xff]  ;;  %v20798_v17 = vld [vmem:[#allocation42_spill] sm:$0xff]  ;;  %v20799_v54 = vld [vmem:[#allocation43_spill] sm:$0xff] }
 0x706   :  { %v19523_v12 = vadd.f32 %v9302_v46, %v20797_v56  ;;  %v19526_v19 = vadd.f32 %v9303_v48, %v20798_v17  ;;  %v19529_v30 = vadd.f32 %v9304_v13, %v20799_v54  ;;  %v20800_v37 = vld [vmem:[#allocation44_spill] sm:$0xff]  ;;  %v20801_v55 = vld [vmem:[#allocation45_spill] sm:$0xff]  ;;  %v20802_v7 = vld [vmem:[#allocation46_spill] sm:$0xff]  ;;  %v9396_v56 = vmax.f32 %v19460_v51, 0.0 }
 0x707   :  { %v19532_v22 = vadd.f32 %v9305_v57, %v20800_v37  ;;  %v19535_v45 = vadd.f32 %v9306_v20, %v20801_v55  ;;  %v19538_v29 = vadd.f32 %v9307_v58, %v20802_v7  ;;  %v20803_v31 = vld [vmem:[#allocation47_spill] sm:$0xff]  ;;  %v20804_v23 = vld [vmem:[#allocation48_spill] sm:$0xff]  ;;  %v20805_v48 = vld [vmem:[#allocation49_spill] sm:$0xff]  ;;  %v9394_v58 = vmax.f32 %v19452_v11, 0.0 }
 0x708   :  { %v19541_v24 = vadd.f32 %v9308_v16, %v20803_v31  ;;  %v19544_v46 = vadd.f32 %v9309_v1, %v20804_v23  ;;  %v19547_v17 = vadd.f32 %v9310_v41, %v20805_v48  ;;  %v20806_v13 = vld [vmem:[#allocation50_spill] sm:$0xff]  ;;  %v20807_v57 = vld [vmem:[#allocation51_spill] sm:$0xff]  ;;  %v20808_v20 = vld [vmem:[#allocation52_spill] sm:$0xff]  ;;  %v9395_v16 = vmax.f32 %v19456_v3, 0.0 }
 0x709   :  { %v19550_v2 = vadd.f32 %v9311_v27, %v20806_v13  ;;  %v19553_v38 = vadd.f32 %v9312_v34, %v20807_v57  ;;  %v19556_v52 = vadd.f32 %v9313_v15, %v20808_v20  ;;  %v9397_v1 = vmax.f32 %v19464_v43, 0.0  ;;  %v20811_v11 = vld [vmem:[#allocation23_spill] sm:$0xff]  ;;  %v20812_v43 = vld [vmem:[#allocation24_spill] sm:$0xff] }
 0x70a   :  { %v9398_v41 = vmax.f32 %v19468_v63, 0.0  ;;  %v9399_v54 = vmax.f32 %v19472_v60, 0.0  ;;  %v9400_v27 = vmax.f32 %v19476_v36, 0.0  ;;  %v9401_v34 = vmax.f32 %v19480_v39, 0.0 }
 0x70b   :  { %v9402_v37 = vmax.f32 %v19484_v50, 0.0  ;;  %v9403_v15 = vmax.f32 %v19488_v40, 0.0  ;;  %v9410_v55 = vmax.f32 %v9346_v59, 0.0  ;;  %v9411_v7 = vmax.f32 %v9347_v14, 0.0  ;;  %v20837_v50 = vld [vmem:[#allocation32_spill] sm:$0xff] }
 0x70c   :  { %v9426_v31 = vmax.f32 %v9362_v47, 0.0  ;;  %v9427_v23 = vmax.f32 %v9363_v25, 0.0  ;;  %v9428_v48 = vmax.f32 %v9364_v49, 0.0  ;;  %v9429_v13 = vmax.f32 %v9365_v61, 0.0  ;;  %v20809_v47 = vld [vmem:[#allocation53_spill] sm:$0xff]  ;;  %v20813_v25 = vld [vmem:[#allocation55_spill] sm:$0xff] }
 0x70d   :  { %v9430_v57 = vmax.f32 %v19523_v12, 0.0  ;;  %v9431_v20 = vmax.f32 %v19526_v19, 0.0  ;;  %v9432_v3 = vmax.f32 %v19529_v30, 0.0  ;;  %v9433_v51 = vmax.f32 %v19532_v22, 0.0  ;;  %v20810_v12 = vld [vmem:[#allocation54_spill] sm:$0xff] }
 0x70e   :  { %v11202_v59 = vpack.c.bf16 %v9411_v7, %v9410_v55  ;;  %v9378_v49 = vadd.f32 %v19390_v53, %v20809_v47  ;;  %v9379_v30 = vadd.f32 %v19394_v62, %v20810_v12  ;;  %v11204_v19 = vpack.c.bf16 %v9395_v16, %v9394_v58  ;;  %v20814_v55 = vld [vmem:[#allocation56_spill] sm:$0xff] }
 0x70f   :  { %v11236_v22 = vpack.c.bf16 %v9427_v23, %v9426_v31  ;;  %v9348_v63 = vadd.f32 %v19302_v32, %v20811_v11  ;;  %v9349_v14 = vadd.f32 %v19306_v8, %v20812_v43  ;;  %v9380_v61 = vadd.f32 %v19398_v6, %v20813_v25  ;;  %v20815_v32 = vld [vmem:[#allocation25_spill] sm:$0xff]  ;;  %v20818_v25 = vld [vmem:[#allocation58_spill] sm:$0xff] }
 0x710   :  { %11203 = vmatprep.subr.bf16.mxu0 %v11202_v59  ;;  %v9442_v60 = vmax.f32 %v9378_v49, 0.0  ;;  %v9381_v7 = vadd.f32 %v19402_v21, %v20814_v55  ;;  %v9443_v53 = vmax.f32 %v9379_v30, 0.0  ;;  %v11208_v62 = vpack.c.bf16 %v9397_v1, %v9396_v56  ;;  %v20816_v49 = vld [vmem:[#allocation26_spill] sm:$0xff]  ;;  %v20817_v43 = vld [vmem:[#allocation57_spill] sm:$0xff] }
 0x711   :  { %11205 = vmatpush3.bf16.msra.mxu0 %v11204_v19  ;;  %v9412_v47 = vmax.f32 %v9348_v63, 0.0  ;;  %v11240_v58 = vpack.c.bf16 %v9429_v13, %v9428_v48  ;;  %v9413_v16 = vmax.f32 %v9349_v14, 0.0  ;;  %v9444_v31 = vmax.f32 %v9380_v61, 0.0  ;;  %v20822_v19 = vld [vmem:[#allocation100_spill] sm:$0xff] }
 0x712   :  { %v9445_v23 = vmax.f32 %v9381_v7, 0.0  ;;  %v9350_v11 = vadd.f32 %v19310_v4, %v20815_v32  ;;  %v11234_v59 = vpack.c.bf16 %v9443_v53, %v9442_v60  ;;  %v9351_v8 = vadd.f32 %v19314_v35, %v20816_v49  ;;  %v20819_v35 = vld [vmem:[#allocation27_spill] sm:$0xff]  ;;  %v20826_v32 = vld [vmem:[#allocation72_spill] sm:$0xff] }
 0x713   :  { %v9382_v6 = vadd.f32 %v19406_v44, %v20817_v43  ;;  %v9383_v21 = vadd.f32 %v19410_v18, %v20818_v25  ;;  %v11206_v12 = vpack.c.bf16 %v9413_v16, %v9412_v47  ;;  %v11212_v1 = vpack.c.bf16 %v9399_v54, %v9398_v41  ;;  %v20820_v44 = vld [vmem:[#allocation28_spill] sm:$0xff]  ;;  %v20821_v18 = vld [vmem:[#allocation59_spill] sm:$0xff]  ;;  %v20829_v43 = vld [vmem:[#allocation61_spill] sm:$0xff] }
 0x714   :  { %v11238_v63 = vpack.c.bf16 %v9445_v23, %v9444_v31  ;;  %v9414_v56 = vmax.f32 %v9350_v11, 0.0  ;;  %11235 = vmatprep.subr.bf16.mxu1 %v11234_v59  ;;  %v9415_v48 = vmax.f32 %v9351_v8, 0.0  ;;  %v11244_v61 = vpack.c.bf16 %v9431_v20, %v9430_v57  ;;  %v20823_v57 = vld [vmem:[#allocation60_spill] sm:$0xff]  ;;  %v20824_v20 = vld [vmem:[#allocation105_spill] sm:$0xff]  ;;  %v20828_v59 = vld [vmem:[#allocation75_spill] sm:$0xff] }
 0x715   :  { %v9446_v13 = vmax.f32 %v9382_v6, 0.0  ;;  %v9447_v14 = vmax.f32 %v9383_v21, 0.0  ;;  %v9440_v4 = vmax.f32 %v19553_v38, 0.0  ;;  %11237 = vmatpush3.bf16.msra.mxu1 %v11236_v22  ;;  %11207 = vmatprep.subr.bf16.mxu0 %v11206_v12  ;;  %v9352_v60 = vadd.f32 %v19318_v42, %v20819_v35  ;;  %v20825_v23 = vld [vmem:[#allocation29_spill] sm:$0xff]  ;;  %v20830_v6 = vld [vmem:[#allocation104_spill] sm:$0xff]  ;;  %v20831_v21 = vld [vmem:[#allocation62_spill] sm:$0xff] }
 0x716   :  { %v9353_v30 = vadd.f32 %v19322_v9, %v20820_v44  ;;  %v9384_v55 = vadd.f32 %v20822_v19, %v20821_v18  ;;  %v9441_v41 = vmax.f32 %v19556_v52, 0.0  ;;  %11239 = vmatprep.subr.bf16.mxu1 %v11238_v63  ;;  %11209 = vmatpush3.bf16.msra.mxu0 %v11208_v62  ;;  %v11210_v54 = vpack.c.bf16 %v9415_v48, %v9414_v56  ;;  %v20827_v62 = vld [vmem:[#allocation30_spill] sm:$0xff]  ;;  %v20832_v12 = vld [vmem:[#allocation99_spill] sm:$0xff] }
 0x717   :  { %v11242_v7 = vpack.c.bf16 %v9447_v14, %v9446_v13  ;;  %v9385_v53 = vadd.f32 %v20824_v20, %v20823_v57  ;;  %v9416_v22 = vmax.f32 %v9352_v60, 0.0  ;;  %v11216_v42 = vpack.c.bf16 %v9401_v34, %v9400_v27  ;;  %v20835_v13 = vld [vmem:[#allocation31_spill] sm:$0xff]  ;;  %v20836_v14 = vld [vmem:[#allocation74_spill] sm:$0xff]  ;;  %v20838_v60 = vld [vmem:[#allocation77_spill] sm:$0xff] }
 0x718   :  { %v9417_v47 = vmax.f32 %v9353_v30, 0.0  ;;  %v9448_v16 = vmax.f32 %v9384_v55, 0.0  ;;  %11211 = vmatprep.subr.bf16.mxu0 %v11210_v54  ;;  %v11248_v31 = vpack.c.bf16 %v9433_v51, %v9432_v3  ;;  %v9354_v11 = vadd.f32 %v20826_v32, %v20825_v23  ;;  %v20841_v30 = vld [vmem:[#allocation64_spill] sm:$0xff]  ;;  %v20842_v18 = vld [vmem:[#allocation106_spill] sm:$0xff] }
 0x719   :  { %v9449_v9 = vmax.f32 %v9385_v53, 0.0  ;;  %v9355_v49 = vadd.f32 %v20828_v59, %v20827_v62  ;;  %11241 = vmatpush3.bf16.msra.mxu1 %v11240_v58  ;;  %v9386_v25 = vadd.f32 %v20830_v6, %v20829_v43  ;;  %v9387_v36 = vadd.f32 %v20832_v12, %v20831_v21  ;;  %v20848_v23 = vld [vmem:[#allocation76_spill] sm:$0xff]  ;;  %v20851_v62 = vld [vmem:[#allocation65_spill] sm:$0xff] }
 0x71a   :  { %v11214_v8 = vpack.c.bf16 %v9417_v47, %v9416_v22  ;;  %v11220_v39 = vpack.c.bf16 %v9403_v15, %v9402_v37  ;;  %11243 = vmatprep.subr.bf16.mxu1 %v11242_v7  ;;  %11213 = vmatpush3.bf16.msra.mxu0 %v11212_v1  ;;  %v9418_v34 = vmax.f32 %v9354_v11, 0.0  ;;  %v20833_v51 = vmax.f32 %v19535_v45, 0.0  ;;  %v20839_v15 = vld [vmem:[#allocation63_spill] sm:$0xff]  ;;  %v20840_v1 = vld [vmem:[#allocation102_spill] sm:$0xff]  ;;  %v20852_v59 = vld [vmem:[#allocation96_spill] sm:$0xff] }
 0x71b   :  { %v11246_v27 = vpack.c.bf16 %v9449_v9, %v9448_v16  ;;  %v9419_v3 = vmax.f32 %v9355_v49, 0.0  ;;  %v20834_v58 = vmax.f32 %v19538_v29, 0.0  ;;  %v9450_v56 = vmax.f32 %v9386_v25, 0.0  ;;  %v20847_v9 = vld [vmem:[#allocation33_spill] sm:$0xff]  ;;  %v20850_v11 = vld [vmem:[#allocation79_spill] sm:$0xff] }
 0x71c   :  { %11215 = vmatprep.subr.bf16.mxu0 %v11214_v8  ;;  %v9451_v48 = vmax.f32 %v9387_v36, 0.0  ;;  %v9356_v35 = vadd.f32 %v20836_v14, %v20835_v13  ;;  %v9357_v40 = vadd.f32 %v20838_v60, %v20837_v50  ;;  %v9388_v44 = vadd.f32 %v20840_v1, %v20839_v15  ;;  %v20853_v8 = vld [vmem:[#allocation66_spill] sm:$0xff]  ;;  %v20861_v13 = vld [vmem:[#allocation36_spill] sm:$0xff]  ;;  %v20862_v14 = vld [vmem:[#allocation101_spill] sm:$0xff] }
 0x71d   :  { %v11252_v63 = vpack.c.bf16 %v20834_v58, %v20833_v51  ;;  %v11218_v37 = vpack.c.bf16 %v9419_v3, %v9418_v34  ;;  %v9389_v19 = vadd.f32 %v20842_v18, %v20841_v30  ;;  %v20843_v45 = vmax.f32 %v19492_v33, 0.0  ;;  %11245 = vmatpush3.bf16.msra.mxu1 %v11244_v61  ;;  %v20849_v33 = vld [vmem:[#allocation34_spill] sm:$0xff]  ;;  %v20859_v58 = vld [vmem:[#allocation35_spill] sm:$0xff]  ;;  %v20864_v50 = vld [vmem:[#allocation112_spill] sm:$0xff] }
 0x71e   :  { %v20844_v29 = vmax.f32 %v19496_v26, 0.0  ;;  %v11250_v54 = vpack.c.bf16 %v9451_v48, %v9450_v56  ;;  %v9420_v7 = vmax.f32 %v9356_v35, 0.0  ;;  %v9421_v57 = vmax.f32 %v9357_v40, 0.0  ;;  %11247 = vmatprep.subr.bf16.mxu1 %v11246_v27  ;;  %11217 = vmatpush3.bf16.msra.mxu0 %v11216_v42  ;;  %v20860_v56 = vld [vmem:[#allocation103_spill] sm:$0xff]  ;;  %v20865_v40 = vld [vmem:[#allocation68_spill] sm:$0xff] }
 0x71f   :  { %v20845_v20 = vmax.f32 %v19541_v24, 0.0  ;;  %v20846_v53 = vmax.f32 %v19544_v46, 0.0  ;;  %v9452_v47 = vmax.f32 %v9388_v44, 0.0  ;;  %v9453_v16 = vmax.f32 %v9389_v19, 0.0  ;;  %11219 = vmatprep.subr.bf16.mxu0 %v11218_v37  ;;  %v20854_v24 = vld [vmem:[#allocation107_spill] sm:$0xff] }
 0x720   :  { %v11224_v55 = vpack.c.bf16 %v20844_v29, %v20843_v45  ;;  %v9358_v32 = vadd.f32 %v20848_v23, %v20847_v9  ;;  %v9359_v26 = vadd.f32 %v20850_v11, %v20849_v33  ;;  %v11222_v61 = vpack.c.bf16 %v9421_v57, %v9420_v7  ;;  %v20863_v35 = vld [vmem:[#allocation67_spill] sm:$0xff]  ;;  %v20874_v9 = vld [vmem:[#allocation90_spill] sm:$0xff]  ;;  %v20878_v11 = vld [vmem:[#allocation85_spill] sm:$0xff] }
 0x721   :  { %v11256_v22 = vpack.c.bf16 %v20846_v53, %v20845_v20  ;;  %v9390_v49 = vadd.f32 %v20852_v59, %v20851_v62  ;;  %v9391_v43 = vadd.f32 %v20854_v24, %v20853_v8  ;;  %v20855_v46 = vmax.f32 %v19500_v0, 0.0  ;;  %11249 = vmatpush3.bf16.msra.mxu1 %v11248_v31  ;;  %v20871_v7 = vld [vmem:[#allocation7_spill] sm:$0xff] }
 0x722   :  { %v20856_v42 = vmax.f32 %v19504_v5, 0.0  ;;  %v11254_v25 = vpack.c.bf16 %v9453_v16, %v9452_v47  ;;  %v9422_v21 = vmax.f32 %v9358_v32, 0.0  ;;  %v9423_v12 = vmax.f32 %v9359_v26, 0.0  ;;  %11251 = vmatprep.subr.bf16.mxu1 %v11250_v54  ;;  %11221 = vmatpush3.bf16.msra.mxu0 %v11220_v39  ;;  %v20872_v53 = vld [vmem:[#allocation87_spill] sm:$0xff]  ;;  %v20873_v47 = vld [vmem:[#allocation108_spill] sm:$0xff]  ;;  %v20881_v26 = vld [vmem:[#allocation109_spill] sm:$0xff] }
 0x723   :  { %v20857_v36 = vmax.f32 %v19547_v17, 0.0  ;;  %v20858_v27 = vmax.f32 %v19550_v2, 0.0  ;;  %v9454_v3 = vmax.f32 %v9390_v49, 0.0  ;;  %v9455_v51 = vmax.f32 %v9391_v43, 0.0  ;;  %v20866_v17 = vld [vmem:[#allocation97_spill] sm:$0xff]  ;;  %v20867_v2 = vld [vmem:[#allocation110_spill] sm:$0xff]  ;;  %11223 = vmatprep.subr.bf16.mxu0 %v11222_v61 }
 0x724   :  { %v11228_v6 = vpack.c.bf16 %v20856_v42, %v20855_v46  ;;  %v9360_v48 = vadd.f32 %v20860_v56, %v20859_v58  ;;  %v9361_v0 = vadd.f32 %v20862_v14, %v20861_v13  ;;  %v11226_v5 = vpack.c.bf16 %v9423_v12, %v9422_v21  ;;  %v20884_v49 = vld [vmem:[#allocation12_spill] sm:$0xff]  ;;  %v20887_v46 = vld [vmem:[#allocation111_spill] sm:$0xff] }
 0x725   :  { %v11260_v34 = vpack.c.bf16 %v20858_v27, %v20857_v36  ;;  %v9392_v60 = vadd.f32 %v20864_v50, %v20863_v35  ;;  %v9393_v37 = vadd.f32 %v20866_v17, %v20865_v40  ;;  %v20868_v15 = vshra.s32 %v20867_v2, 6  ;;  %11253 = vmatpush3.bf16.msra.mxu1 %v11252_v63  ;;  %v20882_v63 = vld [vmem:[#allocation93_spill] sm:$0xff]  ;;  %v20886_v43 = vld [vmem:[#allocation80_spill] sm:$0xff]  ;;  %v20890_v27 = vld [vmem:[#allocation91_spill] sm:$0xff] }
 0x726   :  { %v11258_v1 = vpack.c.bf16 %v9455_v51, %v9454_v3  ;;  %v9424_v44 = vmax.f32 %v9360_v48, 0.0  ;;  %v9425_v30 = vmax.f32 %v9361_v0, 0.0  ;;  %v20869_v18 = vmax.f32 %v19508_v28, 0.0  ;;  %11255 = vmatprep.subr.bf16.mxu1 %v11254_v25  ;;  %11225 = vmatpush3.bf16.msra.mxu0 %v11224_v55  ;;  %v20885_v55 = vld [vmem:[#allocation82_spill] sm:$0xff]  ;;  %v20889_v12 = vld [vmem:[#allocation84_spill] sm:$0xff]  ;;  %v20893_v48 = vld [vmem:[#allocation81_spill] sm:$0xff] }
 0x727   :  { %v9497_v31 = vmul.u32 64, %v20868_v15  ;;  %v20870_v19 = vmax.f32 %v19512_v10, 0.0  ;;  %v9456_v39 = vmax.f32 %v9392_v60, 0.0  ;;  %v9457_v29 = vmax.f32 %v9393_v37, 0.0  ;;  %v20876_v10 = vld [vmem:[#allocation95_spill] sm:$0xff]  ;;  %11227 = vmatprep.subr.bf16.mxu0 %v11226_v5  ;;  %v20891_v3 = vld [vmem:[#allocation94_spill] sm:$0xff] }
 0x728   :  { %v11264_v54 = vpack.c.bf16 %v9441_v41, %v9440_v4  ;;  %v19685_v57 = vadd.s32 64, %v20871_v7  ;;  %v11230_v20 = vpack.c.bf16 %v9425_v30, %v9424_v44  ;;  %v9605_v16 = vadd.s32 %v20873_v47, %v20872_v53  ;;  %v20880_v4 = vld [vmem:[#allocation86_spill] sm:$0xff]  ;;  %v20894_v13 = vld [vmem:[#allocation92_spill] sm:$0xff]  ;;  %v10154_v15 = vld [vmem:[%s20172_s9] sm:$0xf] }
 0x729   :  { %v11232_v45 = vpack.c.bf16 %v20870_v19, %v20869_v18  ;;  %v20875_v28 = vshra.s32 %v20874_v9, 6  ;;  %v20877_v32 = vshra.s32 %v20876_v10, 3  ;;  %v11262_v38 = vpack.c.bf16 %v9457_v29, %v9456_v39  ;;  %11257 = vmatpush3.bf16.msra.mxu1 %v11256_v22 }
 0x72a   :  { %v20879_v52 = vmul.u32 16, %v20878_v11  ;;  %v19700_v61 = vsub.s32 %v20882_v63, %v20881_v26  ;;  %v9527_v8 = vshra.s32 %v20884_v49, 3  ;;  %v19706_v24 = vsub.s32 %v20867_v2, %v9497_v31  ;;  %11259 = vmatprep.subr.bf16.mxu1 %v11258_v1  ;;  %11229 = vmatpush3.bf16.msra.mxu0 %v11228_v6  ;;  %v20896_v6 = vld [vmem:[#allocation83_spill] sm:$0xff] }
 0x72b   :  { %v9574_v23 = vmul.u32 16, %v20875_v28  ;;  %v9590_v33 = vmul.u32 2, %v20877_v32  ;;  %v20883_v62 = vmov %v20877_v32  ;;  %vm9672_vm8 = vcmp.eq.s32.totalorder %v20886_v43, %v20885_v55  ;;  %11231 = vmatprep.subr.bf16.mxu0 %v11230_v20 }
 0x72c   :  { %v19696_v41 = vadd.s32 %v20880_v4, %v20879_v52  ;;  %v9542_v59 = vmul.u32 8, %v20883_v62  ;;  %v20888_v42 = vshra.s32 %v20887_v46, 6  ;;  %v9483_v21 = vshra.s32 %v19685_v57, 6 }
 0x72d   :  { %vm9674_vm9 = vcmp.eq.s32.totalorder %v20889_v12, %v20885_v55  ;;  %v9621_v36 = vmul.u32 16, %v9605_v16  ;;  %v20892_v51 = vsub.s32 %v20890_v27, %v20891_v3  ;;  %v9606_v56 = vadd.s32 %v9590_v33, %v9574_v23  ;;  %11261 = vmatpush3.bf16.msra.mxu1 %v11260_v34 }
 0x72e   :  { %v9498_v25 = vmul.u32 64, %v20888_v42  ;;  %vm9677_vm10 = vcmp.eq.s32.totalorder %v20893_v48, %v19696_v41  ;;  %v20895_v14 = vshra.s32 %v20894_v13, 6  ;;  %v9528_v5 = vshra.s32 %v19700_v61, 3  ;;  %11263 = vmatprep.subr.bf16.mxu1 %v11262_v38  ;;  %11233 = vmatpush3.bf16.msra.mxu0 %v11232_v45 }
 0x72f   :  { %v9637_v58 = vmul.u32 2, %v20892_v51  ;;  %v19724_v22 = vadd.s32 72, %v20871_v7  ;;  %v9558_v35 = vsub.s32 %v20876_v10, %v9542_v59  ;;  %v9543_v50 = vmul.u32 8, %v9527_v8  ;;  %11176 = vmatprep.subr.msk.mxu0 %vm3862_vm0, %v10154_v15 }
 0x730   :  { %v9575_v0 = vmul.u32 16, %v20895_v14  ;;  %v9591_v60 = vmul.u32 2, %v9527_v8  ;;  %v9529_v40 = vshra.s32 %v19706_v24, 3  ;;  %vm9679_vm11 = vcmp.eq.s32.totalorder %v20896_v6, %v19696_v41 }
 0x731   :  { %vm9676_vm12 = vcmp.eq.s32.totalorder %v20886_v43, %v19696_v41  ;;  %v19733_v17 = vsub.s32 %v20887_v46, %v9498_v25  ;;  %v9499_v37 = vmul.u32 64, %v9483_v21  ;;  %v19740_v31 = vadd.s32 %v9637_v58, %v9621_v36  ;;  %11265 = vmatpush3.bf16.msra.mxu1 %v11264_v54 }
 0x732   :  { %v9622_v1 = vmul.u32 16, %v9606_v56  ;;  %v20897_v44 = vshra.s32 %v20882_v63, 6  ;;  %v19745_v18 = vadd.s32 80, %v20871_v7  ;;  %vm9678_vm13 = vcmp.eq.s32.totalorder %v20889_v12, %v19696_v41 }
 0x733   :  { %v9544_v19 = vmul.u32 8, %v9528_v5  ;;  %v9592_v39 = vmul.u32 2, %v9528_v5  ;;  %v9484_v29 = vshra.s32 %v19724_v22, 6  ;;  %v9559_v34 = vsub.s32 %v20884_v49, %v9543_v50 }
 0x734   :  { %v9576_v30 = vmul.u32 16, %v20897_v44  ;;  %v9638_v20 = vmul.u32 2, %v9558_v35  ;;  %v9607_v53 = vadd.s32 %v9591_v60, %v9575_v0  ;;  %v20898_v16 = vshra.s32 %v20867_v2, 6 }
 0x735   :  { %v9545_v47 = vmul.u32 8, %v9529_v40  ;;  %v9593_v28 = vmul.u32 2, %v9529_v40  ;;  %v9530_v45 = vshra.s32 %v19733_v17, 3  ;;  %v19756_v23 = vsub.s32 %v19685_v57, %v9499_v37 }
 0x736   :  { %v9577_v9 = vmul.u32 16, %v20898_v16  ;;  %v20899_v10 = vmov 1.0   ;;  %vm9681_vm14 = vcmp.eq.s32.totalorder %v20893_v48, %v19740_v31  ;;  %vm9683_vm15 = vcmp.eq.s32.totalorder %v20896_v6, %v19740_v31 }
 0x737   :  { %10592 = vmatmul.mubr.msk.f32.vlgmr.msra.gmra.mrb[56].mxu0 %vm9672_vm8, %v20899_v10  ;;  %v9485_v2 = vshra.s32 %v19745_v18, 6  ;;  %v19768_v32 = vadd.s32 88, %v20871_v7  ;;  %vm9680_vm2 = vcmp.eq.s32.totalorder %v20886_v43, %v19740_v31  ;;  %v9560_v54 = vsub.s32 %v19700_v61, %v9544_v19  ;;  %10624 = vmatmul.mubr.msk.f32.vlgmr.msra.gmra.mrb[72].mxu1 %vm9674_vm9, %v20899_v10 }
 0x738   :  { %10593 = vmatprep.mubr.msk.f32.mxu0 %vm9677_vm10, %v20899_v10  ;;  %v9608_v33 = vadd.s32 %v9592_v39, %v9576_v30  ;;  %v9500_v38 = vmul.u32 64, %v9484_v29  ;;  %11177 = vmatpush3.msk.msra.mxu0 %vm3862_vm0, %v10154_v15  ;;  %v19780_v11 = vadd.s32 %v9638_v20, %v9622_v1  ;;  %v9623_v52 = vmul.u32 16, %v9607_v53 }
 0x739   :  { %v9639_v4 = vmul.u32 2, %v9559_v34  ;;  %v9561_v26 = vsub.s32 %v19706_v24, %v9545_v47  ;;  %v9609_v63 = vadd.s32 %v9593_v28, %v9577_v9  ;;  %v9546_v62 = vmul.u32 8, %v9530_v45  ;;  %10625 = vmatprep.mubr.msk.f32.mxu1 %vm9679_vm11, %v20899_v10 }
 0x73a   :  { %v20900_v61 = vmov %v20888_v42  ;;  %v9531_v49 = vshra.s32 %v19756_v23, 3  ;;  %vm9682_vm0 = vcmp.eq.s32.totalorder %v20889_v12, %v19740_v31  ;;  %v9594_v8 = vmul.u32 2, %v9530_v45 }
 0x73b   :  { %v9578_v59 = vmul.u32 16, %v20900_v61  ;;  %10594 = vmatmul.mubr.msk.f32.gmra.mrb[58].mxu0 %vm9676_vm12, %v20899_v10  ;;  %v9501_v24 = vmul.u32 64, %v9485_v2  ;;  %v9486_v55 = vshra.s32 %v19768_v32, 6  ;;  %v19808_v25 = vsub.s32 %v19724_v22, %v9500_v38  ;;  %10626 = vmatmul.mubr.msk.f32.gmra.mrb[74].mxu1 %vm9678_vm13, %v20899_v10 }
 0x73c   :  { %10595 = vmatprep.mubr.msk.f32.mxu0 %vm9681_vm14, %v20899_v10  ;;  %v9624_v46 = vmul.u32 16, %v9608_v33  ;;  %v9640_v42 = vmul.u32 2, %v9560_v54  ;;  %v19811_v36 = vadd.s32 96, %v20871_v7  ;;  %vm9685_vm3 = vcmp.eq.s32.totalorder %v20893_v48, %v19780_v11  ;;  %10627 = vmatprep.mubr.msk.f32.mxu1 %vm9683_vm15, %v20899_v10 }
 0x73d   :  { %v19815_v27 = vadd.s32 %v9639_v4, %v9623_v52  ;;  %v9641_v3 = vmul.u32 2, %v9561_v26  ;;  %v9579_v51 = vmul.u32 16, %v9483_v21  ;;  %vm9687_vm4 = vcmp.eq.s32.totalorder %v20896_v6, %v19780_v11 }
 0x73e   :  { %vm9684_vm5 = vcmp.eq.s32.totalorder %v20886_v43, %v19780_v11  ;;  %v9625_v58 = vmul.u32 16, %v9609_v63  ;;  %v9595_v56 = vmul.u32 2, %v9531_v49  ;;  %v9562_v57 = vsub.s32 %v19733_v17, %v9546_v62 }
 0x73f   :  { %10596 = vmatmul.mubr.msk.f32.gmra.mrb[60].mxu0 %vm9680_vm2, %v20899_v10  ;;  %v9610_v41 = vadd.s32 %v9594_v8, %v9578_v59  ;;  %v19837_v21 = vsub.s32 %v19745_v18, %v9501_v24  ;;  %v9502_v13 = vmul.u32 64, %v9486_v55  ;;  %v9547_v14 = vmul.u32 8, %v9531_v49  ;;  %10628 = vmatmul.mubr.msk.f32.gmra.mrb[76].mxu1 %vm9682_vm0, %v20899_v10 }
 0x740   :  { %10597 = vmatprep.mubr.msk.f32.mxu0 %vm9685_vm3, %v20899_v10  ;;  %v9532_v0 = vshra.s32 %v19808_v25, 3  ;;  %v9487_v5 = vshra.s32 %v19811_v36, 6  ;;  %v19845_v35 = vadd.s32 104, %v20871_v7  ;;  %vm9686_vm6 = vcmp.eq.s32.totalorder %v20889_v12, %v19780_v11  ;;  %10629 = vmatprep.mubr.msk.f32.mxu1 %vm9687_vm4, %v20899_v10 }
 0x741   :  { %vm9689_vm7 = vcmp.eq.s32.totalorder %v20893_v48, %v19815_v27  ;;  %vm9691_vm8 = vcmp.eq.s32.totalorder %v20896_v6, %v19815_v27  ;;  %v9656_v50 = vadd.s32 %v9640_v42, %v9624_v46  ;;  %vm9688_vm9 = vcmp.eq.s32.totalorder %v20886_v43, %v19815_v27 }
 0x742   :  { %v19859_v60 = vadd.s32 %v9641_v3, %v9625_v58  ;;  %v9611_v40 = vadd.s32 %v9595_v56, %v9579_v51  ;;  %v9580_v17 = vmul.u32 16, %v9484_v29  ;;  %v9626_v37 = vmul.u32 16, %v9610_v41 }
 0x743   :  { %10598 = vmatmul.mubr.msk.f32.gmra.mrb[62].mxu0 %vm9684_vm5, %v20899_v10  ;;  %v9642_v15 = vmul.u32 2, %v9562_v57  ;;  %v9533_v31 = vshra.s32 %v19837_v21, 3  ;;  %v19873_v1 = vsub.s32 %v19768_v32, %v9502_v13  ;;  %v9563_v22 = vsub.s32 %v19756_v23, %v9547_v14  ;;  %10630 = vmatmul.mubr.msk.f32.gmra.mrb[78].mxu1 %vm9686_vm6, %v20899_v10 }
 0x744   :  { %10599 = vmatprep.mubr.msk.f32.mxu0 %vm9689_vm7, %v20899_v10  ;;  %v9596_v44 = vmul.u32 2, %v9532_v0  ;;  %v9503_v30 = vmul.u32 64, %v9487_v5  ;;  %v9488_v19 = vshra.s32 %v19845_v35, 6  ;;  %vm9690_vm10 = vcmp.eq.s32.totalorder %v20889_v12, %v19815_v27  ;;  %10631 = vmatprep.mubr.msk.f32.mxu1 %vm9691_vm8, %v20899_v10 }
 0x745   :  { %vm9693_vm11 = vcmp.eq.s32.totalorder %v20893_v48, %v9656_v50  ;;  %v9548_v39 = vmul.u32 8, %v9532_v0  ;;  %v19884_v29 = vadd.s32 112, %v20871_v7  ;;  %vm9695_vm12 = vcmp.eq.s32.totalorder %v20896_v6, %v9656_v50 }
 0x746   :  { %vm9692_vm13 = vcmp.eq.s32.totalorder %v20886_v43, %v9656_v50  ;;  %vm9697_vm14 = vcmp.eq.s32.totalorder %v20893_v48, %v19859_v60  ;;  %v9627_v20 = vmul.u32 16, %v9611_v40  ;;  %v19902_v34 = vadd.s32 %v9642_v15, %v9626_v37 }
 0x747   :  { %10600 = vmatmul.mubr.msk.f32.gmra.mrb[64].mxu0 %vm9688_vm9, %v20899_v10  ;;  %v9581_v53 = vmul.u32 16, %v9485_v2  ;;  %v9597_v47 = vmul.u32 2, %v9533_v31  ;;  %v9534_v16 = vshra.s32 %v19873_v1, 3  ;;  %v9612_v28 = vadd.s32 %v9596_v44, %v9580_v17  ;;  %10632 = vmatmul.mubr.msk.f32.gmra.mrb[80].mxu1 %vm9690_vm10, %v20899_v10 }
 0x748   :  { %10601 = vmatprep.mubr.msk.f32.mxu0 %vm9693_vm11, %v20899_v10  ;;  %v9643_v9 = vmul.u32 2, %v9563_v22  ;;  %v19909_v45 = vsub.s32 %v19811_v36, %v9503_v30  ;;  %v9504_v23 = vmul.u32 64, %v9488_v19  ;;  %v9564_v54 = vsub.s32 %v19808_v25, %v9548_v39  ;;  %10633 = vmatprep.mubr.msk.f32.mxu1 %vm9695_vm12, %v20899_v10 }
 0x749   :  { %v9549_v33 = vmul.u32 8, %v9533_v31  ;;  %v9489_v38 = vshra.s32 %v19884_v29, 6  ;;  %v19916_v18 = vadd.s32 120, %v20871_v7  ;;  %vm9694_vm15 = vcmp.eq.s32.totalorder %v20889_v12, %v9656_v50 }
 0x74a   :  { %vm9699_vm2 = vcmp.eq.s32.totalorder %v20896_v6, %v19859_v60  ;;  %vm9696_vm0 = vcmp.eq.s32.totalorder %v20886_v43, %v19859_v60  ;;  %v9582_v2 = vmul.u32 16, %v9486_v55  ;;  %vm9701_vm3 = vcmp.eq.s32.totalorder %v20893_v48, %v19902_v34 }
 0x74b   :  { %10602 = vmatmul.mubr.msk.f32.gmra.mrb[66].mxu0 %vm9692_vm13, %v20899_v10  ;;  %v9613_v7 = vadd.s32 %v9597_v47, %v9581_v53  ;;  %v9550_v11 = vmul.u32 8, %v9534_v16  ;;  %v9598_v52 = vmul.u32 2, %v9534_v16  ;;  %v19941_v32 = vadd.s32 %v9643_v9, %v9627_v20  ;;  %10634 = vmatmul.mubr.msk.f32.gmra.mrb[82].mxu1 %vm9694_vm15, %v20899_v10 }
 0x74c   :  { %10603 = vmatprep.mubr.msk.f32.mxu0 %vm9697_vm14, %v20899_v10  ;;  %v9628_v4 = vmul.u32 16, %v9612_v28  ;;  %v9535_v26 = vshra.s32 %v19909_v45, 3  ;;  %v19945_v63 = vsub.s32 %v19845_v35, %v9504_v23  ;;  %v9644_v62 = vmul.u32 2, %v9564_v54  ;;  %10635 = vmatprep.mubr.msk.f32.mxu1 %vm9699_vm2, %v20899_v10 }
 0x74d   :  { %v9565_v61 = vsub.s32 %v19837_v21, %v9549_v33  ;;  %v9505_v59 = vmul.u32 64, %v9489_v38  ;;  %v9490_v49 = vshra.s32 %v19916_v18, 6  ;;  %vm9698_vm4 = vcmp.eq.s32.totalorder %v20889_v12, %v19859_v60 }
 0x74e   :  { %vm9703_vm5 = vcmp.eq.s32.totalorder %v20896_v6, %v19902_v34  ;;  %vm9700_vm6 = vcmp.eq.s32.totalorder %v20886_v43, %v19902_v34  ;;  %v9629_v8 = vmul.u32 16, %v9613_v7  ;;  %v9566_v24 = vsub.s32 %v19873_v1, %v9550_v11 }
 0x74f   :  { %10604 = vmatmul.mubr.msk.f32.gmra.mrb[68].mxu0 %vm9696_vm0, %v20899_v10  ;;  %v9614_v55 = vadd.s32 %v9598_v52, %v9582_v2  ;;  %v9583_v46 = vmul.u32 16, %v9487_v5  ;;  %vm9705_vm7 = vcmp.eq.s32.totalorder %v20893_v48, %v19941_v32  ;;  %v9551_v42 = vmul.u32 8, %v9535_v26  ;;  %10636 = vmatmul.mubr.msk.f32.gmra.mrb[84].mxu1 %vm9698_vm4, %v20899_v10 }
 0x750   :  { %10605 = vmatprep.mubr.msk.f32.mxu0 %vm9701_vm3, %v20899_v10  ;;  %v9599_v25 = vmul.u32 2, %v9535_v26  ;;  %v9536_v27 = vshra.s32 %v19945_v63, 3  ;;  %v9660_v3 = vadd.s32 %v9644_v62, %v9628_v4  ;;  %v9645_v51 = vmul.u32 2, %v9565_v61  ;;  %10637 = vmatprep.mubr.msk.f32.mxu1 %vm9703_vm5, %v20899_v10 }
 0x751   :  { %v19979_v58 = vsub.s32 %v19884_v29, %v9505_v59  ;;  %v9506_v56 = vmul.u32 64, %v9490_v49  ;;  %vm9702_vm8 = vcmp.eq.s32.totalorder %v20889_v12, %v19902_v34  ;;  %v9584_v36 = vmul.u32 16, %v9488_v19 }
 0x752   :  { %vm9707_vm9 = vcmp.eq.s32.totalorder %v20896_v6, %v19941_v32  ;;  %vm9704_vm10 = vcmp.eq.s32.totalorder %v20886_v43, %v19941_v32  ;;  %v9630_v57 = vmul.u32 16, %v9614_v55  ;;  %v9646_v41 = vmul.u32 2, %v9566_v24 }
 0x753   :  { %10606 = vmatmul.mubr.msk.f32.gmra.mrb[70].mxu0 %vm9700_vm6, %v20899_v10  ;;  %v9567_v21 = vsub.s32 %v19909_v45, %v9551_v42  ;;  %v9615_v13 = vadd.s32 %v9599_v25, %v9583_v46  ;;  %v9552_v14 = vmul.u32 8, %v9536_v27  ;;  %v9600_v0 = vmul.u32 2, %v9536_v27  ;;  %10638 = vmatmul.mubr.msk.f32.gmra.mrb[86].mxu1 %vm9702_vm8, %v20899_v10 }
 0x754   :  { %10607 = vmatprep.mubr.msk.f32.mxu0 %vm9705_vm7, %v20899_v10  ;;  %vm9709_vm11 = vcmp.eq.s32.totalorder %v20893_v48, %v9660_v3  ;;  %v9661_v5 = vadd.s32 %v9645_v51, %v9629_v8  ;;  %v9537_v35 = vshra.s32 %v19979_v58, 3  ;;  %v9522_v50 = vsub.s32 %v19916_v18, %v9506_v56  ;;  %10639 = vmatprep.mubr.msk.f32.mxu1 %vm9707_vm9, %v20899_v10 }
 0x755   :  { %vm9706_vm12 = vcmp.eq.s32.totalorder %v20889_v12, %v19941_v32  ;;  %vm9711_vm13 = vcmp.eq.s32.totalorder %v20896_v6, %v9660_v3  ;;  %vm9708_vm14 = vcmp.eq.s32.totalorder %v20886_v43, %v9660_v3  ;;  %v9662_v60 = vadd.s32 %v9646_v41, %v9630_v57 }
 0x756   :  { %v9585_v40 = vmul.u32 16, %v9489_v38  ;;  %v9631_v17 = vmul.u32 16, %v9615_v13  ;;  %v9568_v15 = vsub.s32 %v19945_v63, %v9552_v14  ;;  %v9616_v31 = vadd.s32 %v9600_v0, %v9584_v36 }
 0x757   :  { %10608 = vmatmul.mubr.msk.f32.gmra.mrb[72].mxu0 %vm9704_vm10, %v20899_v10  ;;  %v9647_v37 = vmul.u32 2, %v9567_v21  ;;  %vm9713_vm15 = vcmp.eq.s32.totalorder %v20893_v48, %v9661_v5  ;;  %v9553_v1 = vmul.u32 8, %v9537_v35  ;;  %v9538_v44 = vshra.s32 %v9522_v50, 3  ;;  %10640 = vmatmul.mubr.msk.f32.gmra.mrb[88].mxu1 %vm9706_vm12, %v20899_v10 }
 0x758   :  { %10609 = vmatprep.mubr.msk.f32.mxu0 %vm9709_vm11, %v20899_v10  ;;  %v9601_v22 = vmul.u32 2, %v9537_v35  ;;  %10641 = vmatprep.mubr.msk.f32.mxu1 %vm9711_vm13, %v20899_v10  ;;  %vm9710_vm2 = vcmp.eq.s32.totalorder %v20889_v12, %v9660_v3  ;;  %vm9715_vm0 = vcmp.eq.s32.totalorder %v20896_v6, %v9661_v5  ;;  %vm9712_vm3 = vcmp.eq.s32.totalorder %v20886_v43, %v9661_v5 }
 0x759   :  { %v9586_v30 = vmul.u32 16, %v9490_v49  ;;  %vm9717_vm4 = vcmp.eq.s32.totalorder %v20893_v48, %v9662_v60  ;;  %v9663_v19 = vadd.s32 %v9647_v37, %v9631_v17  ;;  %v9632_v39 = vmul.u32 16, %v9616_v31 }
 0x75a   :  { %v9648_v29 = vmul.u32 2, %v9568_v15  ;;  %v9569_v20 = vsub.s32 %v19979_v58, %v9553_v1  ;;  %v9617_v34 = vadd.s32 %v9601_v22, %v9585_v40  ;;  %v9554_v53 = vmul.u32 8, %v9538_v44 }
 0x75b   :  { %10610 = vmatmul.mubr.msk.f32.gmra.mrb[74].mxu0 %vm9708_vm14, %v20899_v10  ;;  %v9602_v47 = vmul.u32 2, %v9538_v44  ;;  %10642 = vmatmul.mubr.msk.f32.gmra.mrb[90].mxu1 %vm9710_vm2, %v20899_v10  ;;  %vm9714_vm5 = vcmp.eq.s32.totalorder %v20889_v12, %v9661_v5  ;;  %vm9719_vm6 = vcmp.eq.s32.totalorder %v20896_v6, %v9662_v60  ;;  %vm9716_vm7 = vcmp.eq.s32.totalorder %v20886_v43, %v9662_v60 }
 0x75c   :  { %10611 = vmatprep.mubr.msk.f32.mxu0 %vm9713_vm15, %v20899_v10  ;;  %10643 = vmatprep.mubr.msk.f32.mxu1 %vm9715_vm0, %v20899_v10  ;;  %vm9721_vm8 = vcmp.eq.s32.totalorder %v20893_v48, %v9663_v19  ;;  %v9664_v16 = vadd.s32 %v9648_v29, %v9632_v39  ;;  %v9633_v9 = vmul.u32 16, %v9617_v34  ;;  %v9649_v28 = vmul.u32 2, %v9569_v20 }
 0x75d   :  { %v9570_v45 = vsub.s32 %v9522_v50, %v9554_v53  ;;  %v9618_v23 = vadd.s32 %v9602_v47, %v9586_v30  ;;  %vm9718_vm9 = vcmp.eq.s32.totalorder %v20889_v12, %v9662_v60  ;;  %vm9723_vm10 = vcmp.eq.s32.totalorder %v20896_v6, %v9663_v19 }
 0x75e   :  { %vm9720_vm11 = vcmp.eq.s32.totalorder %v20886_v43, %v9663_v19  ;;  %vm9725_vm12 = vcmp.eq.s32.totalorder %v20893_v48, %v9664_v16  ;;  %v9665_v54 = vadd.s32 %v9649_v28, %v9633_v9  ;;  %vm9722_vm13 = vcmp.eq.s32.totalorder %v20889_v12, %v9663_v19 }
 0x75f   :  { %10612 = vmatmul.mubr.msk.f32.gmra.mrb[76].mxu0 %vm9712_vm3, %v20899_v10  ;;  %10644 = vmatmul.mubr.msk.f32.gmra.mrb[92].mxu1 %vm9714_vm5, %v20899_v10  ;;  %v9634_v33 = vmul.u32 16, %v9618_v23  ;;  %v9650_v38 = vmul.u32 2, %v9570_v45  ;;  %vm9727_vm14 = vcmp.eq.s32.totalorder %v20896_v6, %v9664_v16  ;;  %vm9724_vm15 = vcmp.eq.s32.totalorder %v20886_v43, %v9664_v16 }
 0x760   :  { %10613 = vmatprep.mubr.msk.f32.mxu0 %vm9717_vm4, %v20899_v10  ;;  %10645 = vmatprep.mubr.msk.f32.mxu1 %vm9719_vm6, %v20899_v10  ;;  %vm9729_vm2 = vcmp.eq.s32.totalorder %v20893_v48, %v9665_v54  ;;  %vm9726_vm0 = vcmp.eq.s32.totalorder %v20889_v12, %v9664_v16  ;;  %vm9731_vm3 = vcmp.eq.s32.totalorder %v20896_v6, %v9665_v54 }
 0x761   :  { %v9666_v18 = vadd.s32 %v9650_v38, %v9634_v33  ;;  %vm9728_vm4 = vcmp.eq.s32.totalorder %v20886_v43, %v9665_v54  ;;  %vm9730_vm6 = vcmp.eq.s32.totalorder %v20889_v12, %v9665_v54 }
 0x763   :  { %10614 = vmatmul.mubr.msk.f32.gmra.mrb[78].mxu0 %vm9716_vm7, %v20899_v10  ;;  %10646 = vmatmul.mubr.msk.f32.gmra.mrb[94].mxu1 %vm9718_vm9, %v20899_v10  ;;  %vm9733_vm5 = vcmp.eq.s32.totalorder %v20893_v48, %v9666_v18  ;;  %vm9735_vm7 = vcmp.eq.s32.totalorder %v20896_v6, %v9666_v18  ;;  %vm9734_vm9 = vcmp.eq.s32.totalorder %v20889_v12, %v9666_v18 }
 0x764   :  { %10615 = vmatprep.mubr.msk.f32.mxu0 %vm9721_vm8, %v20899_v10  ;;  %10647 = vmatprep.mubr.msk.f32.mxu1 %vm9723_vm10, %v20899_v10  ;;  %vm9732_vm8 = vcmp.eq.s32.totalorder %v20886_v43, %v9666_v18  ;;  %vm10374_vm10 = vcmask 64512  }
 0x767   :  { %10616 = vmatmul.mubr.msk.f32.gmra.mrb[80].mxu0 %vm9720_vm11, %v20899_v10  ;;  %10648 = vmatmul.mubr.msk.f32.gmra.mrb[96].mxu1 %vm9722_vm13, %v20899_v10 }
 0x768   :  { %10617 = vmatprep.mubr.msk.f32.mxu0 %vm9725_vm12, %v20899_v10  ;;  %10649 = vmatprep.mubr.msk.f32.mxu1 %vm9727_vm14, %v20899_v10 }
 0x76b   :  { %10618 = vmatmul.mubr.msk.f32.gmra.mrb[82].mxu0 %vm9724_vm15, %v20899_v10  ;;  %10650 = vmatmul.mubr.msk.f32.gmra.mrb[98].mxu1 %vm9726_vm0, %v20899_v10 }
 0x76c   :  { %10619 = vmatprep.mubr.msk.f32.mxu0 %vm9729_vm2, %v20899_v10  ;;  %10651 = vmatprep.mubr.msk.f32.mxu1 %vm9731_vm3, %v20899_v10 }
 0x76f   :  { %10620 = vmatmul.mubr.msk.f32.gmra.mrb[84].mxu0 %vm9728_vm4, %v20899_v10  ;;  %10652 = vmatmul.mubr.msk.f32.gmra.mrb[100].mxu1 %vm9730_vm6, %v20899_v10 }
 0x770   :  { %10621 = vmatprep.mubr.msk.f32.mxu0 %vm9733_vm5, %v20899_v10  ;;  %10653 = vmatprep.mubr.msk.f32.mxu1 %vm9735_vm7, %v20899_v10 }
 0x773   :  { %10622 = vmatmul.mubr.msk.f32.gmra.mrb[86].mxu0 %vm9732_vm8, %v20899_v10  ;;  %10654 = vmatmul.mubr.msk.f32.gmra.mrb[102].mxu1 %vm9734_vm9, %v20899_v10 }
 0x80a   :  { %v10835_v48 = vpop.f32.mrb[56].mxu0  ;;  %v10915_v11 = vpop.f32.mrb[72].mxu1 }
 0x80b   :  { %v10836_v2 = vpop.f32.mrb[57].mxu0  ;;  %v10916_v52 = vpop.f32.mrb[73].mxu1 }
 0x80c   :  { %v10837_v7 = vadd.f32 %v10836_v2, %v10835_v48  ;;  %v10917_v4 = vadd.f32 %v10916_v52, %v10915_v11 }
 0x80e   :  { %v10838_v32 = vpop.f32.mrb[58].mxu0  ;;  %v10076_v43 = vadd.f32 %v10917_v4, %v10837_v7  ;;  %v10918_v63 = vpop.f32.mrb[74].mxu1 }
 0x80f   :  { %v10839_v6 = vpop.f32.mrb[59].mxu0  ;;  %v10919_v62 = vpop.f32.mrb[75].mxu1 }
 0x810   :  { %v10840_v26 = vadd.f32 %v10839_v6, %v10838_v32  ;;  %v10920_v59 = vadd.f32 %v10919_v62, %v10918_v63  ;;  %11178 = vmatprep.mubr.msk.f32.mxu0 %vm38_vm1, %v10076_v43 }
 0x812   :  { %v10841_v61 = vpop.f32.mrb[60].mxu0  ;;  %v10081_v8 = vadd.f32 %v10920_v59, %v10840_v26  ;;  %v10921_v10 = vpop.f32.mrb[76].mxu1 }
 0x813   :  { %v10842_v49 = vpop.f32.mrb[61].mxu0  ;;  %v10922_v24 = vpop.f32.mrb[77].mxu1 }
 0x814   :  { %v10843_v12 = vadd.f32 %v10842_v49, %v10841_v61  ;;  %v10923_v46 = vadd.f32 %v10922_v24, %v10921_v10  ;;  %11179 = vmatmul.mubr.msk.f32.vlgmr.msra.gmra.mrb[88].mxu0 %vm38_vm1, %v10081_v8 }
 0x816   :  { %v10844_v55 = vpop.f32.mrb[62].mxu0  ;;  %v10086_v27 = vadd.f32 %v10923_v46, %v10843_v12  ;;  %v10924_v3 = vpop.f32.mrb[78].mxu1 }
 0x817   :  { %v10845_v42 = vpop.f32.mrb[63].mxu0  ;;  %v10925_v51 = vpop.f32.mrb[79].mxu1 }
 0x818   :  { %v10846_v25 = vadd.f32 %v10845_v42, %v10844_v55  ;;  %v10926_v56 = vadd.f32 %v10925_v51, %v10924_v3  ;;  %11181 = vmatprep.mubr.msk.f32.mxu0 %vm38_vm1, %v10086_v27 }
 0x81a   :  { %v10847_v58 = vpop.f32.mrb[64].mxu0  ;;  %v10091_v41 = vadd.f32 %v10926_v56, %v10846_v25  ;;  %v10927_v21 = vpop.f32.mrb[80].mxu1 }
 0x81b   :  { %v10848_v36 = vpop.f32.mrb[65].mxu0  ;;  %v10928_v13 = vpop.f32.mrb[81].mxu1 }
 0x81c   :  { %v10849_v57 = vadd.f32 %v10848_v36, %v10847_v58  ;;  %v10929_v0 = vadd.f32 %v10928_v13, %v10927_v21  ;;  %11182 = vmatmul.mubr.msk.f32.gmra.mrb[90].mxu0 %vm38_vm1, %v10091_v41 }
 0x81e   :  { %v10850_v14 = vpop.f32.mrb[66].mxu0  ;;  %v10096_v50 = vadd.f32 %v10929_v0, %v10849_v57  ;;  %v10930_v60 = vpop.f32.mrb[82].mxu1 }
 0x81f   :  { %v10851_v5 = vpop.f32.mrb[67].mxu0  ;;  %v10931_v40 = vpop.f32.mrb[83].mxu1 }
 0x820   :  { %v10852_v35 = vadd.f32 %v10851_v5, %v10850_v14  ;;  %v10932_v37 = vadd.f32 %v10931_v40, %v10930_v60  ;;  %11184 = vmatprep.mubr.msk.f32.mxu0 %vm38_vm1, %v10096_v50 }
 0x822   :  { %v10853_v17 = vpop.f32.mrb[68].mxu0  ;;  %v10101_v1 = vadd.f32 %v10932_v37, %v10852_v35  ;;  %v10933_v22 = vpop.f32.mrb[84].mxu1 }
 0x823   :  { %v10854_v15 = vpop.f32.mrb[69].mxu0  ;;  %v10934_v44 = vpop.f32.mrb[85].mxu1 }
 0x824   :  { %v10855_v31 = vadd.f32 %v10854_v15, %v10853_v17  ;;  %v10935_v19 = vadd.f32 %v10934_v44, %v10933_v22  ;;  %11185 = vmatmul.mubr.msk.f32.gmra.mrb[92].mxu0 %vm38_vm1, %v10101_v1 }
 0x826   :  { %v10856_v30 = vpop.f32.mrb[70].mxu0  ;;  %v10106_v20 = vadd.f32 %v10935_v19, %v10855_v31  ;;  %v10936_v34 = vpop.f32.mrb[86].mxu1  ;;  %v10655_v19 = vld [vmem:[%s20173_s10] ss:$0 sm:$0xff] }
 0x827   :  { %v10857_v39 = vpop.f32.mrb[71].mxu0  ;;  %v10937_v53 = vpop.f32.mrb[87].mxu1 }
 0x828   :  { %v10858_v29 = vadd.f32 %v10857_v39, %v10856_v30  ;;  %v10938_v16 = vadd.f32 %v10937_v53, %v10936_v34  ;;  %11187 = vmatprep.mubr.msk.f32.mxu0 %vm38_vm1, %v10106_v20 }
 0x82a   :  { %v10859_v47 = vpop.f32.mrb[72].mxu0  ;;  %v10111_v45 = vadd.f32 %v10938_v16, %v10858_v29  ;;  %v10939_v23 = vpop.f32.mrb[88].mxu1 }
 0x82b   :  { %v10860_v9 = vpop.f32.mrb[73].mxu0  ;;  %v10940_v54 = vpop.f32.mrb[89].mxu1 }
 0x82c   :  { %v10861_v28 = vadd.f32 %v10860_v9, %v10859_v47  ;;  %v10941_v38 = vadd.f32 %v10940_v54, %v10939_v23  ;;  %11188 = vmatmul.mubr.msk.f32.gmra.mrb[94].mxu0 %vm38_vm1, %v10111_v45 }
 0x82e   :  { %v10862_v33 = vpop.f32.mrb[74].mxu0  ;;  %v10116_v2 = vadd.f32 %v10941_v38, %v10861_v28  ;;  %v10942_v7 = vpop.f32.mrb[90].mxu1 }
 0x82f   :  { %v10863_v18 = vpop.f32.mrb[75].mxu0  ;;  %v10943_v11 = vpop.f32.mrb[91].mxu1 }
 0x830   :  { %v10864_v48 = vadd.f32 %v10863_v18, %v10862_v33  ;;  %v10944_v32 = vadd.f32 %v10943_v11, %v10942_v7  ;;  %11190 = vmatprep.mubr.msk.f32.mxu0 %vm38_vm1, %v10116_v2 }
 0x832   :  { %v10865_v52 = vpop.f32.mrb[76].mxu0  ;;  %v10121_v26 = vadd.f32 %v10944_v32, %v10864_v48  ;;  %v10945_v43 = vpop.f32.mrb[92].mxu1 }
 0x833   :  { %v10866_v4 = vpop.f32.mrb[77].mxu0  ;;  %v10946_v63 = vpop.f32.mrb[93].mxu1 }
 0x834   :  { %v10867_v6 = vadd.f32 %v10866_v4, %v10865_v52  ;;  %v10947_v61 = vadd.f32 %v10946_v63, %v10945_v43  ;;  %11191 = vmatmul.mubr.msk.f32.gmra.mrb[96].mxu0 %vm38_vm1, %v10121_v26 }
 0x836   :  { %v10868_v62 = vpop.f32.mrb[78].mxu0  ;;  %v10126_v12 = vadd.f32 %v10947_v61, %v10867_v6  ;;  %v10948_v8 = vpop.f32.mrb[94].mxu1 }
 0x837   :  { %v10869_v59 = vpop.f32.mrb[79].mxu0  ;;  %v10949_v10 = vpop.f32.mrb[95].mxu1 }
 0x838   :  { %v10870_v49 = vadd.f32 %v10869_v59, %v10868_v62  ;;  %v10950_v55 = vadd.f32 %v10949_v10, %v10948_v8  ;;  %11193 = vmatprep.mubr.msk.f32.mxu0 %vm38_vm1, %v10126_v12 }
 0x83a   :  { %v10871_v24 = vpop.f32.mrb[80].mxu0  ;;  %v10131_v25 = vadd.f32 %v10950_v55, %v10870_v49  ;;  %v10951_v27 = vpop.f32.mrb[96].mxu1 }
 0x83b   :  { %v10872_v46 = vpop.f32.mrb[81].mxu0  ;;  %v10952_v3 = vpop.f32.mrb[97].mxu1 }
 0x83c   :  { %v10873_v42 = vadd.f32 %v10872_v46, %v10871_v24  ;;  %v10953_v58 = vadd.f32 %v10952_v3, %v10951_v27  ;;  %11194 = vmatmul.mubr.msk.f32.gmra.mrb[98].mxu0 %vm38_vm1, %v10131_v25 }
 0x83e   :  { %v10874_v51 = vpop.f32.mrb[82].mxu0  ;;  %v10136_v57 = vadd.f32 %v10953_v58, %v10873_v42  ;;  %v10954_v41 = vpop.f32.mrb[98].mxu1 }
 0x83f   :  { %v10875_v56 = vpop.f32.mrb[83].mxu0  ;;  %v10955_v21 = vpop.f32.mrb[99].mxu1 }
 0x840   :  { %v10876_v36 = vadd.f32 %v10875_v56, %v10874_v51  ;;  %v10956_v14 = vadd.f32 %v10955_v21, %v10954_v41  ;;  %11196 = vmatprep.mubr.msk.f32.mxu0 %vm38_vm1, %v10136_v57 }
 0x842   :  { %v10877_v13 = vpop.f32.mrb[84].mxu0  ;;  %v10141_v35 = vadd.f32 %v10956_v14, %v10876_v36  ;;  %v10957_v50 = vpop.f32.mrb[100].mxu1 }
 0x843   :  { %v10878_v0 = vpop.f32.mrb[85].mxu0  ;;  %v10958_v60 = vpop.f32.mrb[101].mxu1 }
 0x844   :  { %v10879_v5 = vadd.f32 %v10878_v0, %v10877_v13  ;;  %v10959_v17 = vadd.f32 %v10958_v60, %v10957_v50  ;;  %11197 = vmatmul.mubr.msk.f32.gmra.mrb[100].mxu0 %vm38_vm1, %v10141_v35 }
 0x846   :  { %v10880_v40 = vpop.f32.mrb[86].mxu0  ;;  %v10146_v31 = vadd.f32 %v10959_v17, %v10879_v5  ;;  %v10960_v1 = vpop.f32.mrb[102].mxu1 }
 0x847   :  { %v10881_v37 = vpop.f32.mrb[87].mxu0  ;;  %v10961_v22 = vpop.f32.mrb[103].mxu1 }
 0x848   :  { %v10882_v15 = vadd.f32 %v10881_v37, %v10880_v40  ;;  %v10962_v44 = vadd.f32 %v10961_v22, %v10960_v1  ;;  %11199 = vmatprep.mubr.msk.f32.mxu0 %vm38_vm1, %v10146_v31 }
 0x84a   :  { %v10151_v30 = vadd.f32 %v10962_v44, %v10882_v15 }
 0x84c   :  { %11200 = vmatmul.mubr.msk.f32.gmra.mrb[102].mxu0 %vm38_vm1, %v10151_v30 }
 0x8e7   :  { %v11180_v39 = vpop.f32.mrb[88].mxu0 }
 0x8e8   :  { %v10285_v29 = vadd.f32 %v11180_v39, %v10655_v19  ;;  %v10279_v20 = vpop.f32.mrb[89].mxu0 }
 0x8e9   :  { %v10280_v34 = vadd.f32 %v10655_v19, %v10279_v20 }
 0x8ea   :  { %v10359_v53 = vmax.f32 %v10285_v29, 0.0 }
 0x8eb   :  { %v10358_v47 = vmax.f32 %v10280_v34, 0.0 }
 0x8ec   :  { %10376 = vst.msk [vmem:[%s20174_s11 + $0x8] sm:$0xff] %vm10374_vm10, %v10359_v53 }
 0x8ed   :  { %10375 = vst.msk [vmem:[%s20174_s11] sm:$0xff] %vm10374_vm10, %v10358_v47 }
 0x8ef   :  { %v11183_v16 = vpop.f32.mrb[90].mxu0 }
 0x8f0   :  { %v10295_v9 = vadd.f32 %v11183_v16, %v10655_v19  ;;  %v10289_v28 = vpop.f32.mrb[91].mxu0 }
 0x8f1   :  { %v10290_v45 = vadd.f32 %v10655_v19, %v10289_v28 }
 0x8f2   :  { %v10361_v23 = vmax.f32 %v10295_v9, 0.0 }
 0x8f3   :  { %v10360_v54 = vmax.f32 %v10290_v45, 0.0 }
 0x8f4   :  { %10378 = vst.msk [vmem:[%s20174_s11 + $0x18] sm:$0xff] %vm10374_vm10, %v10361_v23 }
 0x8f5   :  { %10377 = vst.msk [vmem:[%s20174_s11 + $0x10] sm:$0xff] %vm10374_vm10, %v10360_v54 }
 0x8f7   :  { %v11186_v33 = vpop.f32.mrb[92].mxu0 }
 0x8f8   :  { %v10305_v38 = vadd.f32 %v11186_v33, %v10655_v19  ;;  %v10299_v18 = vpop.f32.mrb[93].mxu0 }
 0x8f9   :  { %v10300_v48 = vadd.f32 %v10655_v19, %v10299_v18 }
 0x8fa   :  { %v10363_v2 = vmax.f32 %v10305_v38, 0.0 }
 0x8fb   :  { %v10362_v7 = vmax.f32 %v10300_v48, 0.0 }
 0x8fc   :  { %10380 = vst.msk [vmem:[%s20174_s11 + $0x28] sm:$0xff] %vm10374_vm10, %v10363_v2 }
 0x8fd   :  { %10379 = vst.msk [vmem:[%s20174_s11 + $0x20] sm:$0xff] %vm10374_vm10, %v10362_v7 }
 0x8ff   :  { %v11189_v11 = vpop.f32.mrb[94].mxu0 }
 0x900   :  { %v10315_v52 = vadd.f32 %v11189_v11, %v10655_v19  ;;  %v10309_v32 = vpop.f32.mrb[95].mxu0 }
 0x901   :  { %v10310_v4 = vadd.f32 %v10655_v19, %v10309_v32 }
 0x902   :  { %v10365_v6 = vmax.f32 %v10315_v52, 0.0 }
 0x903   :  { %v10364_v26 = vmax.f32 %v10310_v4, 0.0 }
 0x904   :  { %10382 = vst.msk [vmem:[%s20174_s11 + $0x38] sm:$0xff] %vm10374_vm10, %v10365_v6 }
 0x905   :  { %10381 = vst.msk [vmem:[%s20174_s11 + $0x30] sm:$0xff] %vm10374_vm10, %v10364_v26 }
 0x907   :  { %v11192_v43 = vpop.f32.mrb[96].mxu0 }
 0x908   :  { %v10325_v63 = vadd.f32 %v11192_v43, %v10655_v19  ;;  %v10319_v62 = vpop.f32.mrb[97].mxu0 }
 0x909   :  { %v10320_v61 = vadd.f32 %v10655_v19, %v10319_v62 }
 0x90a   :  { %v10367_v59 = vmax.f32 %v10325_v63, 0.0 }
 0x90b   :  { %v10366_v49 = vmax.f32 %v10320_v61, 0.0 }
 0x90c   :  { %10384 = vst.msk [vmem:[%s20174_s11 + $0x48] sm:$0xff] %vm10374_vm10, %v10367_v59 }
 0x90d   :  { %10383 = vst.msk [vmem:[%s20174_s11 + $0x40] sm:$0xff] %vm10374_vm10, %v10366_v49 }
 0x90f   :  { %v11195_v12 = vpop.f32.mrb[98].mxu0 }
 0x910   :  { %v10335_v8 = vadd.f32 %v11195_v12, %v10655_v19  ;;  %v10329_v10 = vpop.f32.mrb[99].mxu0 }
 0x911   :  { %v10330_v24 = vadd.f32 %v10655_v19, %v10329_v10 }
 0x912   :  { %v10369_v55 = vmax.f32 %v10335_v8, 0.0 }
 0x913   :  { %v10368_v46 = vmax.f32 %v10330_v24, 0.0 }
 0x914   :  { %10386 = vst.msk [vmem:[%s20174_s11 + $0x58] sm:$0xff] %vm10374_vm10, %v10369_v55 }
 0x915   :  { %10385 = vst.msk [vmem:[%s20174_s11 + $0x50] sm:$0xff] %vm10374_vm10, %v10368_v46 }
 0x917   :  { %v11198_v42 = vpop.f32.mrb[100].mxu0 }
 0x918   :  { %v10345_v25 = vadd.f32 %v11198_v42, %v10655_v19  ;;  %v10339_v27 = vpop.f32.mrb[101].mxu0 }
 0x919   :  { %v10340_v3 = vadd.f32 %v10655_v19, %v10339_v27 }
 0x91a   :  { %v10371_v51 = vmax.f32 %v10345_v25, 0.0 }
 0x91b   :  { %v10370_v58 = vmax.f32 %v10340_v3, 0.0 }
 0x91c   :  { %10388 = vst.msk [vmem:[%s20174_s11 + $0x68] sm:$0xff] %vm10374_vm10, %v10371_v51 }
 0x91d   :  { %10387 = vst.msk [vmem:[%s20174_s11 + $0x60] sm:$0xff] %vm10374_vm10, %v10370_v58 }
 0x91f   :  { %v11201_v56 = vpop.f32.mrb[102].mxu0 }
 0x920   :  { %v10355_v36 = vadd.f32 %v11201_v56, %v10655_v19  ;;  %v10349_v57 = vpop.f32.mrb[103].mxu0 }
 0x921   :  { %v10350_v41 = vadd.f32 %v10655_v19, %v10349_v57 }
 0x922   :  { %v10373_v21 = vmax.f32 %v10355_v36, 0.0 }
 0x923   :  { %v10372_v13 = vmax.f32 %v10350_v41, 0.0 }
 0x924   :  { %10390 = vst.msk [vmem:[%s20174_s11 + $0x78] sm:$0xff] %vm10374_vm10, %v10373_v21 }
 0x925   :  { %10389 = vst.msk [vmem:[%s20174_s11 + $0x70] sm:$0xff] %vm10374_vm10, %v10372_v13 }

</bundles_post_ra>
